<compile_context>
chip_gen: v7x
topology: tpu7x:2x2x1
jax: 0.10.0
libtpu: 0.0.40
codegen_flags: <defaults>
</compile_context>

<pallas_src>
import numpy as np

import jax
import jax.numpy as jnp
from jax.experimental import pallas as pl
from jax.experimental.pallas import tpu as pltpu


# ----------------------------- fused Pallas kernel -------------------------

def _net_fwd_kernel(x_ref, t1_ref, b1_ref, t2_ref, b2_ref,
                    g1_ref, fb1_ref, w2_ref, fb2_ref, o_ref):
    """Entire forward pass for one image (one grid step); everything in VMEM."""
    x = x_ref[0]                                        # (28, 28) f32

    # conv1 + ReLU  ->  a1[ho, ci*24 + wi], shape (24, 240)
    a1 = jnp.dot(x[0:24, :], t1_ref[0], preferred_element_type=jnp.float32)
    for ki in range(1, 5):
        a1 = a1 + jnp.dot(x[ki:ki + 24, :], t1_ref[ki],
                          preferred_element_type=jnp.float32)
    a1 = jnp.maximum(a1 + b1_ref[...], 0.0)

    # conv2 + ReLU  ->  a2[ho, co*20 + wo], shape (20, 400)
    a2 = jnp.dot(a1[0:20, :], t2_ref[0], preferred_element_type=jnp.float32)
    for ki in range(1, 5):
        a2 = a2 + jnp.dot(a1[ki:ki + 20, :], t2_ref[ki],
                          preferred_element_type=jnp.float32)
    a2 = jnp.maximum(a2 + b2_ref[...], 0.0)

    # fc1 + ReLU  (torch NCHW-flatten order folded into g1)  ->  (1, 50)
    acc = fb1_ref[...]                                  # start from the bias
    for h in range(20):
        acc = acc + jnp.dot(a2[h:h + 1, :], g1_ref[h],
                            preferred_element_type=jnp.float32)
    a3 = jnp.maximum(acc, 0.0)

    # fc2  ->  (1, 10)
    logits = jnp.dot(a3, w2_ref[...],
                     preferred_element_type=jnp.float32) + fb2_ref[...]

    # log_softmax (fused; max/exp/log on the (1,10) tile)
    m = jnp.max(logits, axis=-1, keepdims=True)
    s = logits - m
    lse = jnp.log(jnp.sum(jnp.exp(s), axis=-1, keepdims=True))
    o_ref[0] = (s - lse).astype(o_ref.dtype)


# ------------------------ parameter preparation (one-time) -----------------

def init_params(key):
    """Deterministic synthetic params with PyTorch-convention shapes."""
    ks = jax.random.split(key, 8)

    def u(k, shape, fan_in):
        bound = 1.0 / (fan_in ** 0.5)
        return jax.random.uniform(k, shape, jnp.float32, -bound, bound)

    return {
        "conv1_w": u(ks[0], (10, 1, 5, 5), 1 * 5 * 5),
        "conv1_b": u(ks[1], (10,), 1 * 5 * 5),
        "conv2_w": u(ks[2], (20, 10, 5, 5), 10 * 5 * 5),
        "conv2_b": u(ks[3], (20,), 10 * 5 * 5),
        "fc1_w":   u(ks[4], (50, 20 * 20 * 20), 20 * 20 * 20),
        "fc1_b":   u(ks[5], (50,), 20 * 20 * 20),
        "fc2_w":   u(ks[6], (10, 50), 50),
        "fc2_b":   u(ks[7], (10,), 50),
    }


def prepare_params(params):
    """One-time (outside jit) rewrite of torch-layout weights into
    kernel-ready banded-matmul / permuted matrices."""
    w1 = np.asarray(params["conv1_w"], np.float32)   # (10, 1, 5, 5)
    b1 = np.asarray(params["conv1_b"], np.float32)   # (10,)
    w2 = np.asarray(params["conv2_w"], np.float32)   # (20, 10, 5, 5)
    b2 = np.asarray(params["conv2_b"], np.float32)   # (20,)
    fw1 = np.asarray(params["fc1_w"], np.float32)    # (50, 8000)
    fb1 = np.asarray(params["fc1_b"], np.float32)    # (50,)
    fw2 = np.asarray(params["fc2_w"], np.float32)    # (10, 50)
    fb2 = np.asarray(params["fc2_b"], np.float32)    # (10,)

    # conv1 banded matrices: T1[ki, win, co*24+wo] = w1[co,0,ki,win-wo] (band)
    T1 = np.zeros((5, 28, 10, 24), np.float32)
    for ki in range(5):
        for kj in range(5):
            for wo in range(24):
                T1[ki, wo + kj, :, wo] = w1[:, 0, ki, kj]
    T1 = T1.reshape(5, 28, 240)
    b1e = np.repeat(b1, 24).reshape(1, 240)          # bias per (co*24+wo) col

    # conv2 banded matrices: T2[ki, ci*24+win, co*20+wo] = w2[co,ci,ki,win-wo]
    T2 = np.zeros((5, 10, 24, 20, 20), np.float32)
    for ki in range(5):
        for kj in range(5):
            for wo in range(20):
                T2[ki, :, wo + kj, :, wo] = w2[:, :, ki, kj].T   # (ci, co)
    T2 = T2.reshape(5, 240, 400)
    b2e = np.repeat(b2, 20).reshape(1, 400)          # bias per (co*20+wo) col

    # fc1: fold torch's NCHW flatten (index = co*400 + ho*20 + wo) into a
    # permuted weight  G1[ho, co*20+wo, j] = fc1_w[j, co*400 + ho*20 + wo]
    G1 = fw1.reshape(50, 20, 20, 20).transpose(2, 1, 3, 0).reshape(20, 400, 50)

    return {
        "t1": jnp.asarray(T1), "b1": jnp.asarray(b1e),
        "t2": jnp.asarray(T2), "b2": jnp.asarray(b2e),
        "g1": jnp.asarray(G1), "fb1": jnp.asarray(fb1.reshape(1, 50)),
        "w2": jnp.asarray(fw2.T.copy()),              # (50, 10)
        "fb2": jnp.asarray(fb2.reshape(1, 10)),
    }


# ------------------------------- forward pass ------------------------------

@jax.jit
def net_forward(kparams, x):
    """x: NCHW (N, 1, 28, 28) float32 -> (N, 10) log-probs."""
    N = x.shape[0]
    x3 = x.astype(jnp.float32).reshape(N, 28, 28)
    out = pl.pallas_call(
        _net_fwd_kernel,
        out_shape=jax.ShapeDtypeStruct((N, 1, 10), jnp.float32),
        grid=(N,),
        in_specs=[
            pl.BlockSpec((1, 28, 28), lambda n: (n, 0, 0)),    # image n
            pl.BlockSpec((5, 28, 240), lambda n: (0, 0, 0)),   # conv1 banded W
            pl.BlockSpec((1, 240), lambda n: (0, 0)),          # conv1 bias
            pl.BlockSpec((5, 240, 400), lambda n: (0, 0, 0)),  # conv2 banded W
            pl.BlockSpec((1, 400), lambda n: (0, 0)),          # conv2 bias
            pl.BlockSpec((20, 400, 50), lambda n: (0, 0, 0)),  # fc1 (permuted)
            pl.BlockSpec((1, 50), lambda n: (0, 0)),           # fc1 bias
            pl.BlockSpec((50, 10), lambda n: (0, 0)),          # fc2 (K,N)
            pl.BlockSpec((1, 10), lambda n: (0, 0)),           # fc2 bias
        ],
        out_specs=pl.BlockSpec((1, 1, 10), lambda n: (n, 0, 0)),
        compiler_params=pltpu.CompilerParams(
            dimension_semantics=("parallel",),        # batch across TCs (v7x)
            vmem_limit_bytes=32 * 1024 * 1024,
        ),
    )(x3, kparams["t1"], kparams["b1"], kparams["t2"], kparams["b2"],
      kparams["g1"], kparams["fb1"], kparams["w2"], kparams["fb2"])
    return out.reshape(N, 10)


# ----------------------- pure-JAX reference (for checking) -----------------

@jax.jit
def net_forward_reference(params, x):
    hp = jax.lax.Precision.HIGHEST
    y = jax.lax.conv_general_dilated(
        x, params["conv1_w"], window_strides=(1, 1), padding="VALID",
        dimension_numbers=("NCHW", "OIHW", "NCHW"), precision=hp)
    y = jnp.maximum(y + params["conv1_b"].reshape(1, -1, 1, 1), 0.0)
    y = jax.lax.conv_general_dilated(
        y, params["conv2_w"], window_strides=(1, 1), padding="VALID",
        dimension_numbers=("NCHW", "OIHW", "NCHW"), precision=hp)
    y = jnp.maximum(y + params["conv2_b"].reshape(1, -1, 1, 1), 0.0)
    y = y.reshape(y.shape[0], -1)                      # torch view(-1, 8000)
    y = jnp.maximum(jnp.dot(y, params["fc1_w"].T, precision=hp)
                    + params["fc1_b"], 0.0)
    y = jnp.dot(y, params["fc2_w"].T, precision=hp) + params["fc2_b"]
    return jax.nn.log_softmax(y, axis=1)


if __name__ == "__main__":
    key = jax.random.PRNGKey(0)
    pkey, xkey = jax.random.split(key)
    params = init_params(pkey)
    kparams = prepare_params(params)                   # one-time weight prep
    # batch=2; spatial must be 28x28 so the flatten matches fc1's 8000 inputs.
    x = jax.random.normal(xkey, (2, 1, 28, 28), jnp.float32)

    out = jax.block_until_ready(net_forward(kparams, x))
    assert out.shape == (2, 10)
    assert bool(jnp.all(jnp.isfinite(out)))
    # log_softmax rows must sum to ~1 in prob space
    assert bool(jnp.allclose(jnp.sum(jnp.exp(out), axis=1), 1.0, atol=1e-4))
    # parity with the straightforward (PyTorch-semantics) reference
    ref = jax.block_until_ready(net_forward_reference(params, x))
    assert bool(jnp.allclose(out, ref, atol=2e-2, rtol=0.0)), (
        "max abs diff vs reference: "
        + str(float(jnp.max(jnp.abs(out - ref)))))
    print("KERNEL_OK")
</pallas_src>

<mosaic_0001>
module attributes {stable_mosaic.version = 11 : i64} {
  func.func @_net_fwd_kernel(%arg0: i32, %arg1: memref<1x28x28xf32, #tpu.memory_space<vmem>>, %arg2: memref<5x28x240xf32, #tpu.memory_space<vmem>>, %arg3: memref<1x240xf32, #tpu.memory_space<vmem>>, %arg4: memref<5x240x400xf32, #tpu.memory_space<vmem>>, %arg5: memref<1x400xf32, #tpu.memory_space<vmem>>, %arg6: memref<20x400x50xf32, #tpu.memory_space<vmem>>, %arg7: memref<1x50xf32, #tpu.memory_space<vmem>>, %arg8: memref<50x10xf32, #tpu.memory_space<vmem>>, %arg9: memref<1x10xf32, #tpu.memory_space<vmem>>, %arg10: memref<1x1x10xf32, #tpu.memory_space<vmem>>) attributes {dimension_semantics = [#tpu.dimension_semantics<parallel>], iteration_bounds = array<i64: 2>, scalar_prefetch = 0 : i64, scratch_operands = 0 : i64, tpu.core_type = #tpu.core_type<tc>, window_params = [{transform_indices = @transform_0, window_bounds = array<i64: 1, 28, 28>}, {pipeline_mode = #tpu.pipeline_mode<synchronous>, transform_indices = @transform_1, window_bounds = array<i64: 5, 28, 240>}, {pipeline_mode = #tpu.pipeline_mode<synchronous>, transform_indices = @transform_2, window_bounds = array<i64: 1, 240>}, {pipeline_mode = #tpu.pipeline_mode<synchronous>, transform_indices = @transform_3, window_bounds = array<i64: 5, 240, 400>}, {pipeline_mode = #tpu.pipeline_mode<synchronous>, transform_indices = @transform_4, window_bounds = array<i64: 1, 400>}, {pipeline_mode = #tpu.pipeline_mode<synchronous>, transform_indices = @transform_5, window_bounds = array<i64: 20, 400, 50>}, {pipeline_mode = #tpu.pipeline_mode<synchronous>, transform_indices = @transform_6, window_bounds = array<i64: 1, 50>}, {pipeline_mode = #tpu.pipeline_mode<synchronous>, transform_indices = @transform_7, window_bounds = array<i64: 50, 10>}, {pipeline_mode = #tpu.pipeline_mode<synchronous>, transform_indices = @transform_8, window_bounds = array<i64: 1, 10>}, {transform_indices = @transform_9, window_bounds = array<i64: 1, 1, 10>}]} {
    %c0 = arith.constant 0 : index
    %c0_0 = arith.constant 0 : index
    %c0_1 = arith.constant 0 : index
    %0 = vector.load %arg1[%c0, %c0_0, %c0_1] : memref<1x28x28xf32, #tpu.memory_space<vmem>>, vector<1x28x28xf32>
    %1 = vector.shape_cast %0 : vector<1x28x28xf32> to vector<28x28xf32>
    %2 = vector.extract_strided_slice %1 {offsets = [0, 0], sizes = [24, 28], strides = [1, 1]} : vector<28x28xf32> to vector<24x28xf32>
    %c0_2 = arith.constant 0 : index
    %c0_3 = arith.constant 0 : index
    %c0_4 = arith.constant 0 : index
    %3 = vector.load %arg2[%c0_2, %c0_3, %c0_4] : memref<5x28x240xf32, #tpu.memory_space<vmem>>, vector<1x28x240xf32>
    %4 = vector.shape_cast %3 : vector<1x28x240xf32> to vector<28x240xf32>
    %cst = arith.constant dense<0.000000e+00> : vector<24x240xf32>
    %5 = tpu.matmul %2, %4, %cst {dimension_numbers = #tpu.dot_dimension_numbers<[1], [0], [0], [1], [0, 0, 1, 1], [], []>} : vector<24x28xf32>, vector<28x240xf32>, vector<24x240xf32> -> vector<24x240xf32>
    %6 = vector.extract_strided_slice %1 {offsets = [1, 0], sizes = [24, 28], strides = [1, 1]} : vector<28x28xf32> to vector<24x28xf32>
    %c1 = arith.constant 1 : index
    %c0_5 = arith.constant 0 : index
    %c0_6 = arith.constant 0 : index
    %7 = vector.load %arg2[%c1, %c0_5, %c0_6] : memref<5x28x240xf32, #tpu.memory_space<vmem>>, vector<1x28x240xf32>
    %8 = vector.shape_cast %7 : vector<1x28x240xf32> to vector<28x240xf32>
    %cst_7 = arith.constant dense<0.000000e+00> : vector<24x240xf32>
    %9 = tpu.matmul %6, %8, %cst_7 {dimension_numbers = #tpu.dot_dimension_numbers<[1], [0], [0], [1], [0, 0, 1, 1], [], []>} : vector<24x28xf32>, vector<28x240xf32>, vector<24x240xf32> -> vector<24x240xf32>
    %10 = arith.addf %5, %9 : vector<24x240xf32>
    %11 = vector.extract_strided_slice %1 {offsets = [2, 0], sizes = [24, 28], strides = [1, 1]} : vector<28x28xf32> to vector<24x28xf32>
    %c2 = arith.constant 2 : index
    %c0_8 = arith.constant 0 : index
    %c0_9 = arith.constant 0 : index
    %12 = vector.load %arg2[%c2, %c0_8, %c0_9] : memref<5x28x240xf32, #tpu.memory_space<vmem>>, vector<1x28x240xf32>
    %13 = vector.shape_cast %12 : vector<1x28x240xf32> to vector<28x240xf32>
    %cst_10 = arith.constant dense<0.000000e+00> : vector<24x240xf32>
    %14 = tpu.matmul %11, %13, %cst_10 {dimension_numbers = #tpu.dot_dimension_numbers<[1], [0], [0], [1], [0, 0, 1, 1], [], []>} : vector<24x28xf32>, vector<28x240xf32>, vector<24x240xf32> -> vector<24x240xf32>
    %15 = arith.addf %10, %14 : vector<24x240xf32>
    %16 = vector.extract_strided_slice %1 {offsets = [3, 0], sizes = [24, 28], strides = [1, 1]} : vector<28x28xf32> to vector<24x28xf32>
    %c3 = arith.constant 3 : index
    %c0_11 = arith.constant 0 : index
    %c0_12 = arith.constant 0 : index
    %17 = vector.load %arg2[%c3, %c0_11, %c0_12] : memref<5x28x240xf32, #tpu.memory_space<vmem>>, vector<1x28x240xf32>
    %18 = vector.shape_cast %17 : vector<1x28x240xf32> to vector<28x240xf32>
    %cst_13 = arith.constant dense<0.000000e+00> : vector<24x240xf32>
    %19 = tpu.matmul %16, %18, %cst_13 {dimension_numbers = #tpu.dot_dimension_numbers<[1], [0], [0], [1], [0, 0, 1, 1], [], []>} : vector<24x28xf32>, vector<28x240xf32>, vector<24x240xf32> -> vector<24x240xf32>
    %20 = arith.addf %15, %19 : vector<24x240xf32>
    %21 = vector.extract_strided_slice %1 {offsets = [4, 0], sizes = [24, 28], strides = [1, 1]} : vector<28x28xf32> to vector<24x28xf32>
    %c4 = arith.constant 4 : index
    %c0_14 = arith.constant 0 : index
    %c0_15 = arith.constant 0 : index
    %22 = vector.load %arg2[%c4, %c0_14, %c0_15] : memref<5x28x240xf32, #tpu.memory_space<vmem>>, vector<1x28x240xf32>
    %23 = vector.shape_cast %22 : vector<1x28x240xf32> to vector<28x240xf32>
    %cst_16 = arith.constant dense<0.000000e+00> : vector<24x240xf32>
    %24 = tpu.matmul %21, %23, %cst_16 {dimension_numbers = #tpu.dot_dimension_numbers<[1], [0], [0], [1], [0, 0, 1, 1], [], []>} : vector<24x28xf32>, vector<28x240xf32>, vector<24x240xf32> -> vector<24x240xf32>
    %25 = arith.addf %20, %24 : vector<24x240xf32>
    %c0_17 = arith.constant 0 : index
    %c0_18 = arith.constant 0 : index
    %26 = vector.load %arg3[%c0_17, %c0_18] : memref<1x240xf32, #tpu.memory_space<vmem>>, vector<1x240xf32>
    %27 = vector.broadcast %26 : vector<1x240xf32> to vector<24x240xf32>
    %28 = arith.addf %25, %27 : vector<24x240xf32>
    %cst_19 = arith.constant 0.000000e+00 : f32
    %29 = vector.broadcast %cst_19 : f32 to vector<24x240xf32>
    %30 = arith.maximumf %28, %29 : vector<24x240xf32>
    %31 = vector.extract_strided_slice %30 {offsets = [0, 0], sizes = [20, 240], strides = [1, 1]} : vector<24x240xf32> to vector<20x240xf32>
    %c0_20 = arith.constant 0 : index
    %c0_21 = arith.constant 0 : index
    %c0_22 = arith.constant 0 : index
    %32 = vector.load %arg4[%c0_20, %c0_21, %c0_22] : memref<5x240x400xf32, #tpu.memory_space<vmem>>, vector<1x240x400xf32>
    %33 = vector.shape_cast %32 : vector<1x240x400xf32> to vector<240x400xf32>
    %cst_23 = arith.constant dense<0.000000e+00> : vector<20x400xf32>
    %34 = tpu.matmul %31, %33, %cst_23 {dimension_numbers = #tpu.dot_dimension_numbers<[1], [0], [0], [1], [0, 0, 1, 1], [], []>} : vector<20x240xf32>, vector<240x400xf32>, vector<20x400xf32> -> vector<20x400xf32>
    %35 = vector.extract_strided_slice %30 {offsets = [1, 0], sizes = [20, 240], strides = [1, 1]} : vector<24x240xf32> to vector<20x240xf32>
    %c1_24 = arith.constant 1 : index
    %c0_25 = arith.constant 0 : index
    %c0_26 = arith.constant 0 : index
    %36 = vector.load %arg4[%c1_24, %c0_25, %c0_26] : memref<5x240x400xf32, #tpu.memory_space<vmem>>, vector<1x240x400xf32>
    %37 = vector.shape_cast %36 : vector<1x240x400xf32> to vector<240x400xf32>
    %cst_27 = arith.constant dense<0.000000e+00> : vector<20x400xf32>
    %38 = tpu.matmul %35, %37, %cst_27 {dimension_numbers = #tpu.dot_dimension_numbers<[1], [0], [0], [1], [0, 0, 1, 1], [], []>} : vector<20x240xf32>, vector<240x400xf32>, vector<20x400xf32> -> vector<20x400xf32>
    %39 = arith.addf %34, %38 : vector<20x400xf32>
    %40 = vector.extract_strided_slice %30 {offsets = [2, 0], sizes = [20, 240], strides = [1, 1]} : vector<24x240xf32> to vector<20x240xf32>
    %c2_28 = arith.constant 2 : index
    %c0_29 = arith.constant 0 : index
    %c0_30 = arith.constant 0 : index
    %41 = vector.load %arg4[%c2_28, %c0_29, %c0_30] : memref<5x240x400xf32, #tpu.memory_space<vmem>>, vector<1x240x400xf32>
    %42 = vector.shape_cast %41 : vector<1x240x400xf32> to vector<240x400xf32>
    %cst_31 = arith.constant dense<0.000000e+00> : vector<20x400xf32>
    %43 = tpu.matmul %40, %42, %cst_31 {dimension_numbers = #tpu.dot_dimension_numbers<[1], [0], [0], [1], [0, 0, 1, 1], [], []>} : vector<20x240xf32>, vector<240x400xf32>, vector<20x400xf32> -> vector<20x400xf32>
    %44 = arith.addf %39, %43 : vector<20x400xf32>
    %45 = vector.extract_strided_slice %30 {offsets = [3, 0], sizes = [20, 240], strides = [1, 1]} : vector<24x240xf32> to vector<20x240xf32>
    %c3_32 = arith.constant 3 : index
    %c0_33 = arith.constant 0 : index
    %c0_34 = arith.constant 0 : index
    %46 = vector.load %arg4[%c3_32, %c0_33, %c0_34] : memref<5x240x400xf32, #tpu.memory_space<vmem>>, vector<1x240x400xf32>
    %47 = vector.shape_cast %46 : vector<1x240x400xf32> to vector<240x400xf32>
    %cst_35 = arith.constant dense<0.000000e+00> : vector<20x400xf32>
    %48 = tpu.matmul %45, %47, %cst_35 {dimension_numbers = #tpu.dot_dimension_numbers<[1], [0], [0], [1], [0, 0, 1, 1], [], []>} : vector<20x240xf32>, vector<240x400xf32>, vector<20x400xf32> -> vector<20x400xf32>
    %49 = arith.addf %44, %48 : vector<20x400xf32>
    %50 = vector.extract_strided_slice %30 {offsets = [4, 0], sizes = [20, 240], strides = [1, 1]} : vector<24x240xf32> to vector<20x240xf32>
    %c4_36 = arith.constant 4 : index
    %c0_37 = arith.constant 0 : index
    %c0_38 = arith.constant 0 : index
    %51 = vector.load %arg4[%c4_36, %c0_37, %c0_38] : memref<5x240x400xf32, #tpu.memory_space<vmem>>, vector<1x240x400xf32>
    %52 = vector.shape_cast %51 : vector<1x240x400xf32> to vector<240x400xf32>
    %cst_39 = arith.constant dense<0.000000e+00> : vector<20x400xf32>
    %53 = tpu.matmul %50, %52, %cst_39 {dimension_numbers = #tpu.dot_dimension_numbers<[1], [0], [0], [1], [0, 0, 1, 1], [], []>} : vector<20x240xf32>, vector<240x400xf32>, vector<20x400xf32> -> vector<20x400xf32>
    %54 = arith.addf %49, %53 : vector<20x400xf32>
    %c0_40 = arith.constant 0 : index
    %c0_41 = arith.constant 0 : index
    %55 = vector.load %arg5[%c0_40, %c0_41] : memref<1x400xf32, #tpu.memory_space<vmem>>, vector<1x400xf32>
    %56 = vector.broadcast %55 : vector<1x400xf32> to vector<20x400xf32>
    %57 = arith.addf %54, %56 : vector<20x400xf32>
    %cst_42 = arith.constant 0.000000e+00 : f32
    %58 = vector.broadcast %cst_42 : f32 to vector<20x400xf32>
    %59 = arith.maximumf %57, %58 : vector<20x400xf32>
    %c0_43 = arith.constant 0 : index
    %c0_44 = arith.constant 0 : index
    %60 = vector.load %arg7[%c0_43, %c0_44] : memref<1x50xf32, #tpu.memory_space<vmem>>, vector<1x50xf32>
    %61 = vector.extract_strided_slice %59 {offsets = [0, 0], sizes = [1, 400], strides = [1, 1]} : vector<20x400xf32> to vector<1x400xf32>
    %c0_45 = arith.constant 0 : index
    %c0_46 = arith.constant 0 : index
    %c0_47 = arith.constant 0 : index
    %62 = vector.load %arg6[%c0_45, %c0_46, %c0_47] : memref<20x400x50xf32, #tpu.memory_space<vmem>>, vector<1x400x50xf32>
    %63 = vector.shape_cast %62 : vector<1x400x50xf32> to vector<400x50xf32>
    %cst_48 = arith.constant dense<0.000000e+00> : vector<1x50xf32>
    %64 = tpu.matmul %61, %63, %cst_48 {dimension_numbers = #tpu.dot_dimension_numbers<[1], [0], [0], [1], [0, 0, 1, 1], [], []>} : vector<1x400xf32>, vector<400x50xf32>, vector<1x50xf32> -> vector<1x50xf32>
    %65 = arith.addf %60, %64 : vector<1x50xf32>
    %66 = vector.extract_strided_slice %59 {offsets = [1, 0], sizes = [1, 400], strides = [1, 1]} : vector<20x400xf32> to vector<1x400xf32>
    %c1_49 = arith.constant 1 : index
    %c0_50 = arith.constant 0 : index
    %c0_51 = arith.constant 0 : index
    %67 = vector.load %arg6[%c1_49, %c0_50, %c0_51] : memref<20x400x50xf32, #tpu.memory_space<vmem>>, vector<1x400x50xf32>
    %68 = vector.shape_cast %67 : vector<1x400x50xf32> to vector<400x50xf32>
    %cst_52 = arith.constant dense<0.000000e+00> : vector<1x50xf32>
    %69 = tpu.matmul %66, %68, %cst_52 {dimension_numbers = #tpu.dot_dimension_numbers<[1], [0], [0], [1], [0, 0, 1, 1], [], []>} : vector<1x400xf32>, vector<400x50xf32>, vector<1x50xf32> -> vector<1x50xf32>
    %70 = arith.addf %65, %69 : vector<1x50xf32>
    %71 = vector.extract_strided_slice %59 {offsets = [2, 0], sizes = [1, 400], strides = [1, 1]} : vector<20x400xf32> to vector<1x400xf32>
    %c2_53 = arith.constant 2 : index
    %c0_54 = arith.constant 0 : index
    %c0_55 = arith.constant 0 : index
    %72 = vector.load %arg6[%c2_53, %c0_54, %c0_55] : memref<20x400x50xf32, #tpu.memory_space<vmem>>, vector<1x400x50xf32>
    %73 = vector.shape_cast %72 : vector<1x400x50xf32> to vector<400x50xf32>
    %cst_56 = arith.constant dense<0.000000e+00> : vector<1x50xf32>
    %74 = tpu.matmul %71, %73, %cst_56 {dimension_numbers = #tpu.dot_dimension_numbers<[1], [0], [0], [1], [0, 0, 1, 1], [], []>} : vector<1x400xf32>, vector<400x50xf32>, vector<1x50xf32> -> vector<1x50xf32>
    %75 = arith.addf %70, %74 : vector<1x50xf32>
    %76 = vector.extract_strided_slice %59 {offsets = [3, 0], sizes = [1, 400], strides = [1, 1]} : vector<20x400xf32> to vector<1x400xf32>
    %c3_57 = arith.constant 3 : index
    %c0_58 = arith.constant 0 : index
    %c0_59 = arith.constant 0 : index
    %77 = vector.load %arg6[%c3_57, %c0_58, %c0_59] : memref<20x400x50xf32, #tpu.memory_space<vmem>>, vector<1x400x50xf32>
    %78 = vector.shape_cast %77 : vector<1x400x50xf32> to vector<400x50xf32>
    %cst_60 = arith.constant dense<0.000000e+00> : vector<1x50xf32>
    %79 = tpu.matmul %76, %78, %cst_60 {dimension_numbers = #tpu.dot_dimension_numbers<[1], [0], [0], [1], [0, 0, 1, 1], [], []>} : vector<1x400xf32>, vector<400x50xf32>, vector<1x50xf32> -> vector<1x50xf32>
    %80 = arith.addf %75, %79 : vector<1x50xf32>
    %81 = vector.extract_strided_slice %59 {offsets = [4, 0], sizes = [1, 400], strides = [1, 1]} : vector<20x400xf32> to vector<1x400xf32>
    %c4_61 = arith.constant 4 : index
    %c0_62 = arith.constant 0 : index
    %c0_63 = arith.constant 0 : index
    %82 = vector.load %arg6[%c4_61, %c0_62, %c0_63] : memref<20x400x50xf32, #tpu.memory_space<vmem>>, vector<1x400x50xf32>
    %83 = vector.shape_cast %82 : vector<1x400x50xf32> to vector<400x50xf32>
    %cst_64 = arith.constant dense<0.000000e+00> : vector<1x50xf32>
    %84 = tpu.matmul %81, %83, %cst_64 {dimension_numbers = #tpu.dot_dimension_numbers<[1], [0], [0], [1], [0, 0, 1, 1], [], []>} : vector<1x400xf32>, vector<400x50xf32>, vector<1x50xf32> -> vector<1x50xf32>
    %85 = arith.addf %80, %84 : vector<1x50xf32>
    %86 = vector.extract_strided_slice %59 {offsets = [5, 0], sizes = [1, 400], strides = [1, 1]} : vector<20x400xf32> to vector<1x400xf32>
    %c5 = arith.constant 5 : index
    %c0_65 = arith.constant 0 : index
    %c0_66 = arith.constant 0 : index
    %87 = vector.load %arg6[%c5, %c0_65, %c0_66] : memref<20x400x50xf32, #tpu.memory_space<vmem>>, vector<1x400x50xf32>
    %88 = vector.shape_cast %87 : vector<1x400x50xf32> to vector<400x50xf32>
    %cst_67 = arith.constant dense<0.000000e+00> : vector<1x50xf32>
    %89 = tpu.matmul %86, %88, %cst_67 {dimension_numbers = #tpu.dot_dimension_numbers<[1], [0], [0], [1], [0, 0, 1, 1], [], []>} : vector<1x400xf32>, vector<400x50xf32>, vector<1x50xf32> -> vector<1x50xf32>
    %90 = arith.addf %85, %89 : vector<1x50xf32>
    %91 = vector.extract_strided_slice %59 {offsets = [6, 0], sizes = [1, 400], strides = [1, 1]} : vector<20x400xf32> to vector<1x400xf32>
    %c6 = arith.constant 6 : index
    %c0_68 = arith.constant 0 : index
    %c0_69 = arith.constant 0 : index
    %92 = vector.load %arg6[%c6, %c0_68, %c0_69] : memref<20x400x50xf32, #tpu.memory_space<vmem>>, vector<1x400x50xf32>
    %93 = vector.shape_cast %92 : vector<1x400x50xf32> to vector<400x50xf32>
    %cst_70 = arith.constant dense<0.000000e+00> : vector<1x50xf32>
    %94 = tpu.matmul %91, %93, %cst_70 {dimension_numbers = #tpu.dot_dimension_numbers<[1], [0], [0], [1], [0, 0, 1, 1], [], []>} : vector<1x400xf32>, vector<400x50xf32>, vector<1x50xf32> -> vector<1x50xf32>
    %95 = arith.addf %90, %94 : vector<1x50xf32>
    %96 = vector.extract_strided_slice %59 {offsets = [7, 0], sizes = [1, 400], strides = [1, 1]} : vector<20x400xf32> to vector<1x400xf32>
    %c7 = arith.constant 7 : index
    %c0_71 = arith.constant 0 : index
    %c0_72 = arith.constant 0 : index
    %97 = vector.load %arg6[%c7, %c0_71, %c0_72] : memref<20x400x50xf32, #tpu.memory_space<vmem>>, vector<1x400x50xf32>
    %98 = vector.shape_cast %97 : vector<1x400x50xf32> to vector<400x50xf32>
    %cst_73 = arith.constant dense<0.000000e+00> : vector<1x50xf32>
    %99 = tpu.matmul %96, %98, %cst_73 {dimension_numbers = #tpu.dot_dimension_numbers<[1], [0], [0], [1], [0, 0, 1, 1], [], []>} : vector<1x400xf32>, vector<400x50xf32>, vector<1x50xf32> -> vector<1x50xf32>
    %100 = arith.addf %95, %99 : vector<1x50xf32>
    %101 = vector.extract_strided_slice %59 {offsets = [8, 0], sizes = [1, 400], strides = [1, 1]} : vector<20x400xf32> to vector<1x400xf32>
    %c8 = arith.constant 8 : index
    %c0_74 = arith.constant 0 : index
    %c0_75 = arith.constant 0 : index
    %102 = vector.load %arg6[%c8, %c0_74, %c0_75] : memref<20x400x50xf32, #tpu.memory_space<vmem>>, vector<1x400x50xf32>
    %103 = vector.shape_cast %102 : vector<1x400x50xf32> to vector<400x50xf32>
    %cst_76 = arith.constant dense<0.000000e+00> : vector<1x50xf32>
    %104 = tpu.matmul %101, %103, %cst_76 {dimension_numbers = #tpu.dot_dimension_numbers<[1], [0], [0], [1], [0, 0, 1, 1], [], []>} : vector<1x400xf32>, vector<400x50xf32>, vector<1x50xf32> -> vector<1x50xf32>
    %105 = arith.addf %100, %104 : vector<1x50xf32>
    %106 = vector.extract_strided_slice %59 {offsets = [9, 0], sizes = [1, 400], strides = [1, 1]} : vector<20x400xf32> to vector<1x400xf32>
    %c9 = arith.constant 9 : index
    %c0_77 = arith.constant 0 : index
    %c0_78 = arith.constant 0 : index
    %107 = vector.load %arg6[%c9, %c0_77, %c0_78] : memref<20x400x50xf32, #tpu.memory_space<vmem>>, vector<1x400x50xf32>
    %108 = vector.shape_cast %107 : vector<1x400x50xf32> to vector<400x50xf32>
    %cst_79 = arith.constant dense<0.000000e+00> : vector<1x50xf32>
    %109 = tpu.matmul %106, %108, %cst_79 {dimension_numbers = #tpu.dot_dimension_numbers<[1], [0], [0], [1], [0, 0, 1, 1], [], []>} : vector<1x400xf32>, vector<400x50xf32>, vector<1x50xf32> -> vector<1x50xf32>
    %110 = arith.addf %105, %109 : vector<1x50xf32>
    %111 = vector.extract_strided_slice %59 {offsets = [10, 0], sizes = [1, 400], strides = [1, 1]} : vector<20x400xf32> to vector<1x400xf32>
    %c10 = arith.constant 10 : index
    %c0_80 = arith.constant 0 : index
    %c0_81 = arith.constant 0 : index
    %112 = vector.load %arg6[%c10, %c0_80, %c0_81] : memref<20x400x50xf32, #tpu.memory_space<vmem>>, vector<1x400x50xf32>
    %113 = vector.shape_cast %112 : vector<1x400x50xf32> to vector<400x50xf32>
    %cst_82 = arith.constant dense<0.000000e+00> : vector<1x50xf32>
    %114 = tpu.matmul %111, %113, %cst_82 {dimension_numbers = #tpu.dot_dimension_numbers<[1], [0], [0], [1], [0, 0, 1, 1], [], []>} : vector<1x400xf32>, vector<400x50xf32>, vector<1x50xf32> -> vector<1x50xf32>
    %115 = arith.addf %110, %114 : vector<1x50xf32>
    %116 = vector.extract_strided_slice %59 {offsets = [11, 0], sizes = [1, 400], strides = [1, 1]} : vector<20x400xf32> to vector<1x400xf32>
    %c11 = arith.constant 11 : index
    %c0_83 = arith.constant 0 : index
    %c0_84 = arith.constant 0 : index
    %117 = vector.load %arg6[%c11, %c0_83, %c0_84] : memref<20x400x50xf32, #tpu.memory_space<vmem>>, vector<1x400x50xf32>
    %118 = vector.shape_cast %117 : vector<1x400x50xf32> to vector<400x50xf32>
    %cst_85 = arith.constant dense<0.000000e+00> : vector<1x50xf32>
    %119 = tpu.matmul %116, %118, %cst_85 {dimension_numbers = #tpu.dot_dimension_numbers<[1], [0], [0], [1], [0, 0, 1, 1], [], []>} : vector<1x400xf32>, vector<400x50xf32>, vector<1x50xf32> -> vector<1x50xf32>
    %120 = arith.addf %115, %119 : vector<1x50xf32>
    %121 = vector.extract_strided_slice %59 {offsets = [12, 0], sizes = [1, 400], strides = [1, 1]} : vector<20x400xf32> to vector<1x400xf32>
    %c12 = arith.constant 12 : index
    %c0_86 = arith.constant 0 : index
    %c0_87 = arith.constant 0 : index
    %122 = vector.load %arg6[%c12, %c0_86, %c0_87] : memref<20x400x50xf32, #tpu.memory_space<vmem>>, vector<1x400x50xf32>
    %123 = vector.shape_cast %122 : vector<1x400x50xf32> to vector<400x50xf32>
    %cst_88 = arith.constant dense<0.000000e+00> : vector<1x50xf32>
    %124 = tpu.matmul %121, %123, %cst_88 {dimension_numbers = #tpu.dot_dimension_numbers<[1], [0], [0], [1], [0, 0, 1, 1], [], []>} : vector<1x400xf32>, vector<400x50xf32>, vector<1x50xf32> -> vector<1x50xf32>
    %125 = arith.addf %120, %124 : vector<1x50xf32>
    %126 = vector.extract_strided_slice %59 {offsets = [13, 0], sizes = [1, 400], strides = [1, 1]} : vector<20x400xf32> to vector<1x400xf32>
    %c13 = arith.constant 13 : index
    %c0_89 = arith.constant 0 : index
    %c0_90 = arith.constant 0 : index
    %127 = vector.load %arg6[%c13, %c0_89, %c0_90] : memref<20x400x50xf32, #tpu.memory_space<vmem>>, vector<1x400x50xf32>
    %128 = vector.shape_cast %127 : vector<1x400x50xf32> to vector<400x50xf32>
    %cst_91 = arith.constant dense<0.000000e+00> : vector<1x50xf32>
    %129 = tpu.matmul %126, %128, %cst_91 {dimension_numbers = #tpu.dot_dimension_numbers<[1], [0], [0], [1], [0, 0, 1, 1], [], []>} : vector<1x400xf32>, vector<400x50xf32>, vector<1x50xf32> -> vector<1x50xf32>
    %130 = arith.addf %125, %129 : vector<1x50xf32>
    %131 = vector.extract_strided_slice %59 {offsets = [14, 0], sizes = [1, 400], strides = [1, 1]} : vector<20x400xf32> to vector<1x400xf32>
    %c14 = arith.constant 14 : index
    %c0_92 = arith.constant 0 : index
    %c0_93 = arith.constant 0 : index
    %132 = vector.load %arg6[%c14, %c0_92, %c0_93] : memref<20x400x50xf32, #tpu.memory_space<vmem>>, vector<1x400x50xf32>
    %133 = vector.shape_cast %132 : vector<1x400x50xf32> to vector<400x50xf32>
    %cst_94 = arith.constant dense<0.000000e+00> : vector<1x50xf32>
    %134 = tpu.matmul %131, %133, %cst_94 {dimension_numbers = #tpu.dot_dimension_numbers<[1], [0], [0], [1], [0, 0, 1, 1], [], []>} : vector<1x400xf32>, vector<400x50xf32>, vector<1x50xf32> -> vector<1x50xf32>
    %135 = arith.addf %130, %134 : vector<1x50xf32>
    %136 = vector.extract_strided_slice %59 {offsets = [15, 0], sizes = [1, 400], strides = [1, 1]} : vector<20x400xf32> to vector<1x400xf32>
    %c15 = arith.constant 15 : index
    %c0_95 = arith.constant 0 : index
    %c0_96 = arith.constant 0 : index
    %137 = vector.load %arg6[%c15, %c0_95, %c0_96] : memref<20x400x50xf32, #tpu.memory_space<vmem>>, vector<1x400x50xf32>
    %138 = vector.shape_cast %137 : vector<1x400x50xf32> to vector<400x50xf32>
    %cst_97 = arith.constant dense<0.000000e+00> : vector<1x50xf32>
    %139 = tpu.matmul %136, %138, %cst_97 {dimension_numbers = #tpu.dot_dimension_numbers<[1], [0], [0], [1], [0, 0, 1, 1], [], []>} : vector<1x400xf32>, vector<400x50xf32>, vector<1x50xf32> -> vector<1x50xf32>
    %140 = arith.addf %135, %139 : vector<1x50xf32>
    %141 = vector.extract_strided_slice %59 {offsets = [16, 0], sizes = [1, 400], strides = [1, 1]} : vector<20x400xf32> to vector<1x400xf32>
    %c16 = arith.constant 16 : index
    %c0_98 = arith.constant 0 : index
    %c0_99 = arith.constant 0 : index
    %142 = vector.load %arg6[%c16, %c0_98, %c0_99] : memref<20x400x50xf32, #tpu.memory_space<vmem>>, vector<1x400x50xf32>
    %143 = vector.shape_cast %142 : vector<1x400x50xf32> to vector<400x50xf32>
    %cst_100 = arith.constant dense<0.000000e+00> : vector<1x50xf32>
    %144 = tpu.matmul %141, %143, %cst_100 {dimension_numbers = #tpu.dot_dimension_numbers<[1], [0], [0], [1], [0, 0, 1, 1], [], []>} : vector<1x400xf32>, vector<400x50xf32>, vector<1x50xf32> -> vector<1x50xf32>
    %145 = arith.addf %140, %144 : vector<1x50xf32>
    %146 = vector.extract_strided_slice %59 {offsets = [17, 0], sizes = [1, 400], strides = [1, 1]} : vector<20x400xf32> to vector<1x400xf32>
    %c17 = arith.constant 17 : index
    %c0_101 = arith.constant 0 : index
    %c0_102 = arith.constant 0 : index
    %147 = vector.load %arg6[%c17, %c0_101, %c0_102] : memref<20x400x50xf32, #tpu.memory_space<vmem>>, vector<1x400x50xf32>
    %148 = vector.shape_cast %147 : vector<1x400x50xf32> to vector<400x50xf32>
    %cst_103 = arith.constant dense<0.000000e+00> : vector<1x50xf32>
    %149 = tpu.matmul %146, %148, %cst_103 {dimension_numbers = #tpu.dot_dimension_numbers<[1], [0], [0], [1], [0, 0, 1, 1], [], []>} : vector<1x400xf32>, vector<400x50xf32>, vector<1x50xf32> -> vector<1x50xf32>
    %150 = arith.addf %145, %149 : vector<1x50xf32>
    %151 = vector.extract_strided_slice %59 {offsets = [18, 0], sizes = [1, 400], strides = [1, 1]} : vector<20x400xf32> to vector<1x400xf32>
    %c18 = arith.constant 18 : index
    %c0_104 = arith.constant 0 : index
    %c0_105 = arith.constant 0 : index
    %152 = vector.load %arg6[%c18, %c0_104, %c0_105] : memref<20x400x50xf32, #tpu.memory_space<vmem>>, vector<1x400x50xf32>
    %153 = vector.shape_cast %152 : vector<1x400x50xf32> to vector<400x50xf32>
    %cst_106 = arith.constant dense<0.000000e+00> : vector<1x50xf32>
    %154 = tpu.matmul %151, %153, %cst_106 {dimension_numbers = #tpu.dot_dimension_numbers<[1], [0], [0], [1], [0, 0, 1, 1], [], []>} : vector<1x400xf32>, vector<400x50xf32>, vector<1x50xf32> -> vector<1x50xf32>
    %155 = arith.addf %150, %154 : vector<1x50xf32>
    %156 = vector.extract_strided_slice %59 {offsets = [19, 0], sizes = [1, 400], strides = [1, 1]} : vector<20x400xf32> to vector<1x400xf32>
    %c19 = arith.constant 19 : index
    %c0_107 = arith.constant 0 : index
    %c0_108 = arith.constant 0 : index
    %157 = vector.load %arg6[%c19, %c0_107, %c0_108] : memref<20x400x50xf32, #tpu.memory_space<vmem>>, vector<1x400x50xf32>
    %158 = vector.shape_cast %157 : vector<1x400x50xf32> to vector<400x50xf32>
    %cst_109 = arith.constant dense<0.000000e+00> : vector<1x50xf32>
    %159 = tpu.matmul %156, %158, %cst_109 {dimension_numbers = #tpu.dot_dimension_numbers<[1], [0], [0], [1], [0, 0, 1, 1], [], []>} : vector<1x400xf32>, vector<400x50xf32>, vector<1x50xf32> -> vector<1x50xf32>
    %160 = arith.addf %155, %159 : vector<1x50xf32>
    %cst_110 = arith.constant 0.000000e+00 : f32
    %161 = vector.broadcast %cst_110 : f32 to vector<1x50xf32>
    %162 = arith.maximumf %160, %161 : vector<1x50xf32>
    %c0_111 = arith.constant 0 : index
    %c0_112 = arith.constant 0 : index
    %163 = vector.load %arg8[%c0_111, %c0_112] : memref<50x10xf32, #tpu.memory_space<vmem>>, vector<50x10xf32>
    %cst_113 = arith.constant dense<0.000000e+00> : vector<1x10xf32>
    %164 = tpu.matmul %162, %163, %cst_113 {dimension_numbers = #tpu.dot_dimension_numbers<[1], [0], [0], [1], [0, 0, 1, 1], [], []>} : vector<1x50xf32>, vector<50x10xf32>, vector<1x10xf32> -> vector<1x10xf32>
    %c0_114 = arith.constant 0 : index
    %c0_115 = arith.constant 0 : index
    %165 = vector.load %arg9[%c0_114, %c0_115] : memref<1x10xf32, #tpu.memory_space<vmem>>, vector<1x10xf32>
    %166 = arith.addf %164, %165 : vector<1x10xf32>
    %cst_116 = arith.constant dense<0xFF800000> : vector<1xf32>
    %167 = vector.multi_reduction <maximumf>, %166, %cst_116 [1] : vector<1x10xf32> to vector<1xf32>
    %168 = vector.shape_cast %167 : vector<1xf32> to vector<1x1xf32>
    %169 = vector.broadcast %168 : vector<1x1xf32> to vector<1x10xf32>
    %170 = arith.subf %166, %169 : vector<1x10xf32>
    %171 = math.exp %170 : vector<1x10xf32>
    %cst_117 = arith.constant dense<0.000000e+00> : vector<1xf32>
    %172 = vector.multi_reduction <add>, %171, %cst_117 [1] : vector<1x10xf32> to vector<1xf32>
    %173 = vector.shape_cast %172 : vector<1xf32> to vector<1x1xf32>
    %174 = math.log %173 : vector<1x1xf32>
    %175 = vector.broadcast %174 : vector<1x1xf32> to vector<1x10xf32>
    %176 = arith.subf %170, %175 : vector<1x10xf32>
    %c0_118 = arith.constant 0 : index
    %c0_119 = arith.constant 0 : index
    %c0_120 = arith.constant 0 : index
    %177 = vector.load %arg10[%c0_118, %c0_119, %c0_120] : memref<1x1x10xf32, #tpu.memory_space<vmem>>, vector<1x1x10xf32>
    %178 = vector.shape_cast %177 : vector<1x1x10xf32> to vector<1x10xf32>
    %179 = vector.shape_cast %176 : vector<1x10xf32> to vector<1x1x10xf32>
    tpu.vector_store %arg10[%c0_118, %c0_119, %c0_120], %179 {strides = array<i32>} : memref<1x1x10xf32, #tpu.memory_space<vmem>>, vector<1x1x10xf32>,
    return
  }
  func.func @transform_0(%arg0: i32) -> (i32, i32, i32) {
    %c0_i32 = arith.constant 0 : i32
    %c0_i32_0 = arith.constant 0 : i32
    %c0_i32_1 = arith.constant 0 : i32
    return %arg0, %c0_i32, %c0_i32_0 : i32, i32, i32
  }
  func.func @transform_1(%arg0: i32) -> (i32, i32, i32) {
    %c0_i32 = arith.constant 0 : i32
    %c0_i32_0 = arith.constant 0 : i32
    %c0_i32_1 = arith.constant 0 : i32
    %c0_i32_2 = arith.constant 0 : i32
    return %c0_i32, %c0_i32_0, %c0_i32_1 : i32, i32, i32
  }
  func.func @transform_2(%arg0: i32) -> (i32, i32) {
    %c0_i32 = arith.constant 0 : i32
    %c0_i32_0 = arith.constant 0 : i32
    %c0_i32_1 = arith.constant 0 : i32
    return %c0_i32, %c0_i32_0 : i32, i32
  }
  func.func @transform_3(%arg0: i32) -> (i32, i32, i32) {
    %c0_i32 = arith.constant 0 : i32
    %c0_i32_0 = arith.constant 0 : i32
    %c0_i32_1 = arith.constant 0 : i32
    %c0_i32_2 = arith.constant 0 : i32
    return %c0_i32, %c0_i32_0, %c0_i32_1 : i32, i32, i32
  }
  func.func @transform_4(%arg0: i32) -> (i32, i32) {
    %c0_i32 = arith.constant 0 : i32
    %c0_i32_0 = arith.constant 0 : i32
    %c0_i32_1 = arith.constant 0 : i32
    return %c0_i32, %c0_i32_0 : i32, i32
  }
  func.func @transform_5(%arg0: i32) -> (i32, i32, i32) {
    %c0_i32 = arith.constant 0 : i32
    %c0_i32_0 = arith.constant 0 : i32
    %c0_i32_1 = arith.constant 0 : i32
    %c0_i32_2 = arith.constant 0 : i32
    return %c0_i32, %c0_i32_0, %c0_i32_1 : i32, i32, i32
  }
  func.func @transform_6(%arg0: i32) -> (i32, i32) {
    %c0_i32 = arith.constant 0 : i32
    %c0_i32_0 = arith.constant 0 : i32
    %c0_i32_1 = arith.constant 0 : i32
    return %c0_i32, %c0_i32_0 : i32, i32
  }
  func.func @transform_7(%arg0: i32) -> (i32, i32) {
    %c0_i32 = arith.constant 0 : i32
    %c0_i32_0 = arith.constant 0 : i32
    %c0_i32_1 = arith.constant 0 : i32
    return %c0_i32, %c0_i32_0 : i32, i32
  }
  func.func @transform_8(%arg0: i32) -> (i32, i32) {
    %c0_i32 = arith.constant 0 : i32
    %c0_i32_0 = arith.constant 0 : i32
    %c0_i32_1 = arith.constant 0 : i32
    return %c0_i32, %c0_i32_0 : i32, i32
  }
  func.func @transform_9(%arg0: i32) -> (i32, i32, i32) {
    %c0_i32 = arith.constant 0 : i32
    %c0_i32_0 = arith.constant 0 : i32
    %c0_i32_1 = arith.constant 0 : i32
    return %arg0, %c0_i32, %c0_i32_0 : i32, i32, i32
  }
}

</mosaic_0001>

<bundles_post_ra>
// kernel: net_forward.1
= control target key start
LH: loop header
LB: loop body
LE: loop exit
PB: predicated region body
PF: predicated region fallthrough
CT: control target
= control target key end

     0   :  { %14 = vsyncpa [#allocation3], 0  ;;  %s16766_s0 = inlined_call_operand.vmem [shape: f32[2,28,28], index: 0, kind: input, shape index: {}]   ;;  %s16767_s1 = inlined_call_operand.vmem [shape: f32[5,28,240], index: 1, kind: input, shape index: {}]   ;;  %s16768_s2 = inlined_call_operand.vmem [shape: f32[1,240], index: 2, kind: input, shape index: {}]   ;;  %s16769_s3 = inlined_call_operand.vmem [shape: f32[5,240,400], index: 3, kind: input, shape index: {}]   ;;  %s16770_s4 = inlined_call_operand.vmem [shape: f32[1,400], index: 4, kind: input, shape index: {}]   ;;  %s16771_s5 = inlined_call_operand.vmem [shape: f32[20,400,50], index: 5, kind: input, shape index: {}]   ;;  %s16772_s6 = inlined_call_operand.vmem [shape: f32[1,50], index: 6, kind: input, shape index: {}]   ;;  %s16773_s7 = inlined_call_operand.vmem [shape: f32[50,10], index: 7, kind: input, shape index: {}]   ;;  %s16774_s8 = inlined_call_operand.vmem [shape: f32[1,10], index: 8, kind: input, shape index: {}]   ;;  %s16775_s9 = inlined_call_operand.hbm [shape: f32[2,1,10], index: 9, kind: output, shape index: {}]  }
   0x1   :  { %16 = vsyncpa [#allocation3 + $0x1], 0  ;;  %s11127_s30 = smov 0   ;;  %s11129_s10 = smov 0  }
   0x2   :  { %s11131_s11 = smov 0   ;;  %s11133_s12 = smov 0  }
   0x3 LB: > { %s11148_s13 = sadd.s32 4294967295, %s11070_s12   ;;  %s6718_s14 = sadd.s32 4294967294, %s11070_s12   ;;  %s11070_s12 = sphi %s11133_s12, %s16785_s12   ;;  %s11066_s11 = sphi %s11131_s11, %s16784_s11   ;;  %s11062_s10 = sphi %s11129_s10, %s16783_s10   ;;  %s11058_s30 = sphi %s11127_s30, %s16782_s30  }
   0x4   : > { %s11152_s15 = sadd.s32 1, %s11070_s12   ;;  %s223_s16 = sadd.s32 1, %s11066_s11 }
   0x5   : > { %s220_s17 = ssub.s32 %s11070_s12, %s11152_s15  ;;  %p233_p0 = scmp.ne.s32.totalorder %s11066_s11, %s11062_s10 }
   0x6   : > { %p221_p1 = scmp.eq.s32.totalorder %s220_s17, 0  ;;  %p234_p2 = scmp.eq.s32.totalorder %s11148_s13, 1 }
   0x7   : > { %p239_p3 = scmp.ne.s32.totalorder %s11062_s10, %s11058_s30  ;;  %p240_p4 = scmp.eq.s32.totalorder %s6718_s14, 1 }
   0x8   : > { %s11163_s18 = scalar_select %p221_p1, %s11066_s11, %s223_s16  }
   0x9   : > { %p11165_p5 = por %p234_p2, %p233_p0  ;;  %p11169_p6 = por %p240_p4, %p239_p3 }
   0xa   : > { %16776 = sst [smem:[#allocation5_spill]] %s11163_s18  ;;  %p6721_p7 = scmp.ge.s32.totalorder %s11070_s12, 1 }
   0xb   : > { %p290_p8 = scmp.lt.s32.totalorder %s11070_s12, 3 }
   0xd   : > { %p291_p9 = pnand %p6721_p7, %p290_p8 }
   0xe   : > { %v6725_v0 = vld [vmem:[%s16767_s1 + $0x48] sm:$0xff] (!%p291_p9)  ;;  %v6727_v1 = vld [vmem:[%s16767_s1 + $0x58] sm:$0xff] (!%p291_p9)  ;;  %v6724_v2 = vld [vmem:[%s16767_s1 + $0x40] sm:$0xff] (!%p291_p9)  ;;  %vm370_vm0 = vcmask (!%p291_p9), 1043456   ;;  %v11072_v7 = vmov (!%p291_p9), 0.0   ;;  %p325_p10 = scmp.lt.s32.totalorder (!%p291_p9), %s11148_s13, 1 }
   0xf   : > { %294 = sbr.rel (%p291_p9) target bundleno = 2208 (0x8a0), region = 56  ;;  %v8992_v3 = vpack.c.bf16 (!%p291_p9), %v6727_v1, %v6725_v0  ;;  %v6726_v4 = vld [vmem:[%s16767_s1 + $0x50] sm:$0xff] (!%p291_p9)  ;;  %v6729_v5 = vld [vmem:[%s16767_s1 + $0x68] sm:$0xff] (!%p291_p9)  ;;  %v6731_v6 = vld [vmem:[%s16767_s1 + $0x78] sm:$0xf] (!%p291_p9)  ;;  %441 = vmatprep.mubr.f32.mxu0 (!%p291_p9), %v11072_v7  ;;  %vm11073_vm1 = vmmov (!%p291_p9), 1  }
  0x10   : > { %v8994_v8 = vpack.c.bf16 (!%p291_p9), %v6726_v4, %v6724_v2  ;;  %v8996_v9 = vpack.c.bf16 (!%p291_p9), %v6731_v6, %v6729_v5  ;;  %vm11196_vm2 = vmpackc.low (!%p291_p9), %vm370_vm0, %vm11073_vm1  ;;  %v6728_v11 = vld [vmem:[%s16767_s1 + $0x60] sm:$0xff] (!%p291_p9)  ;;  %v6730_v12 = vld [vmem:[%s16767_s1 + $0x70] sm:$0xf] (!%p291_p9)  ;;  %vm355_vm3 = vcmask (!%p291_p9), 1046528   ;;  %vm363_vm4 = vcmask (!%p291_p9), 228352   ;;  %s323_s28 = sand.u32 (!%p291_p9), 1, %s11062_s10  }
  0x11   : > { %8993 = vmatprep.subr.bf16.mxu0 (!%p291_p9), %v8992_v3  ;;  %v335_v13 = vld [vmem:[%s16767_s1 + $0x8] sm:$0xff] (!%p291_p9)  ;;  %v337_v14 = vld [vmem:[%s16767_s1 + $0x18] sm:$0xff] (!%p291_p9)  ;;  %v8999_v15 = vpack.c.bf16 (!%p291_p9), %v6730_v12, %v6728_v11  ;;  %v334_v17 = vld [vmem:[%s16767_s1] sm:$0xff] (!%p291_p9)  ;;  %vm564_vm5 = vcmask (!%p291_p9), 1045504   ;;  %vm682_vm6 = vcmask (!%p291_p9), 1044480   ;;  %vm1192_vm7 = vcmask (!%p291_p9), 916480  }
  0x12   : > { %8995 = vmatpush1.bf16.msra.mxu0 (!%p291_p9), %v8994_v8  ;;  %v9002_v16 = vpack.c.bf16 (!%p291_p9), %v337_v14, %v335_v13  ;;  %v336_v18 = vld [vmem:[%s16767_s1 + $0x10] sm:$0xff] (!%p291_p9)  ;;  %v339_v19 = vld [vmem:[%s16767_s1 + $0x28] sm:$0xff] (!%p291_p9)  ;;  %v341_v20 = vld [vmem:[%s16767_s1 + $0x38] sm:$0xf] (!%p291_p9)  ;;  %vm2588_vm8 = vcmask (!%p291_p9), 130048   ;;  %vm11075_vm9 = vmmov (!%p291_p9), 0  }
  0x13   : > { %8998 = vmatprep.subr.msk.bf16.mxu0 (!%p291_p9), %vm11196_vm2, %v8996_v9  ;;  %v9004_v26 = vpack.c.bf16 (!%p291_p9), %v336_v18, %v334_v17  ;;  %v9006_v28 = vpack.c.bf16 (!%p291_p9), %v341_v20, %v339_v19  ;;  %v338_v29 = vld [vmem:[%s16767_s1 + $0x20] sm:$0xff] (!%p291_p9)  ;;  %v340_v30 = vld [vmem:[%s16767_s1 + $0x30] sm:$0xf] (!%p291_p9)  ;;  %v6743_v33 = vld [vmem:[%s16767_s1 + $0x88] sm:$0xff] (!%p291_p9)  ;;  %vm6562_vm10 = vcmask (!%p291_p9), 1041408   ;;  %vm6558_vm11 = vcmask (!%p291_p9), 408576  }
  0x14   : > { %v6745_v34 = vld [vmem:[%s16767_s1 + $0x98] sm:$0xff] (!%p291_p9)  ;;  %v9009_v36 = vpack.c.bf16 (!%p291_p9), %v340_v30, %v338_v29  ;;  %v6782_v39 = vld [vmem:[%s16769_s3 + $0x3c8] sm:$0xff] (!%p291_p9)  ;;  %v6742_v42 = vld [vmem:[%s16767_s1 + $0x80] sm:$0xff] (!%p291_p9)  ;;  %vm6636_vm12 = vcmask (!%p291_p9), 73728   ;;  %s8263_s29 = sshll.u32 (!%p291_p9), %s11148_s13, 4  ;;  %s324_s18 = scalar_lea.vmem (!%p291_p9), [#allocation2], %s323_s28 }
  0x15   : > { %v9012_v38 = vpack.c.bf16 (!%p291_p9), %v6745_v34, %v6743_v33  ;;  %v6786_v40 = vld [vmem:[%s16769_s3 + $0x3e8] sm:$0xff] (!%p291_p9)  ;;  %v6781_v43 = vld [vmem:[%s16769_s3 + $0x3c0] sm:$0xff] (!%p291_p9)  ;;  %v6744_v44 = vld [vmem:[%s16767_s1 + $0x90] sm:$0xff] (!%p291_p9)  ;;  %s16723_s17 = scalar_lea.hbm (!%p291_p9), %s16775_s9, %s8263_s29  ;;  %s6651_s21 = scalar_lea.sflag (!%p291_p9), [#allocation3], %s323_s28 }
  0x16   : > { %s326_s25 = scalar_select %p325_p10, %s11148_s13, 1  ;;  %9001 = vmatpush1.bf16.msk.msra.mxu0 %vm11196_vm2, %v8999_v15  ;;  %v6747_v45 = vld [vmem:[%s16767_s1 + $0xa8] sm:$0xff]  ;;  %v9042_v46 = vpack.c.bf16 %v6786_v40, %v6782_v39  ;;  %v6785_v47 = vld [vmem:[%s16769_s3 + $0x3e0] sm:$0xff]  ;;  %v6749_v48 = vld [vmem:[%s16767_s1 + $0xb8] sm:$0xf]  ;;  %v9014_v55 = vpack.c.bf16 %v6744_v44, %v6742_v42 }
  0x17   : > { %9003 = vmatprep.subr.bf16.mxu0 %v9002_v16  ;;  %v9044_v49 = vpack.c.bf16 %v6785_v47, %v6781_v43  ;;  %v6790_v50 = vld [vmem:[%s16769_s3 + $0x408] sm:$0xff]  ;;  %v6789_v53 = vld [vmem:[%s16769_s3 + $0x400] sm:$0xff]  ;;  %v9016_v58 = vpack.c.bf16 %v6749_v48, %v6747_v45  ;;  %v6748_v59 = vld [vmem:[%s16767_s1 + $0xb0] sm:$0xf]  ;;  %s11076_s13 = smov [#allocation2]  }
  0x18   : > { %s8266_s14 = sshll.u32 %s326_s25, 5  ;;  %v6794_v51 = vld [vmem:[%s16769_s3 + $0x428] sm:$0xff]  ;;  %9043 = vmatprep.subr.bf16.mxu1 %v9042_v46  ;;  %v6793_v54 = vld [vmem:[%s16769_s3 + $0x420] sm:$0xff]  ;;  %v6758_v63 = vld [vmem:[%s16767_s1 + $0xd8] sm:$0xff]  ;;  %s6663_s25 = sshll.u32 %s324_s18, 4  ;;  %s16725_s25 = int_to_ptr.vmem [resolvable:$true] %s6663_s25 }
  0x19   : > { %s329_s26 = scalar_lea.vmem %s16766_s0, %s8266_s14  ;;  %v9046_v52 = vpack.c.bf16 %v6794_v51, %v6790_v50  ;;  %v6746_v56 = vld [vmem:[%s16767_s1 + $0xa0] sm:$0xff]  ;;  %9045 = vmatpush1.bf16.msra.mxu1 %v9044_v49  ;;  %v6798_v57 = vld [vmem:[%s16769_s3 + $0x448] sm:$0xff]  ;;  %v9048_v61 = vpack.c.bf16 %v6793_v54, %v6789_v53  ;;  %v6757_v18 = vld [vmem:[%s16767_s1 + $0xd0] sm:$0xff]  ;;  %s11008_s22 = scalar_lea.vmem %s16725_s25, 16 }
  0x1a   : > { %v11230_v21 = vld [vmem:[%s329_s26] sm:$0xff]  ;;  %v11232_v22 = vld [vmem:[%s329_s26 + $0x8] sm:$0xff]  ;;  %v11234_v23 = vld [vmem:[%s329_s26 + $0x10] sm:$0xff]  ;;  %v9019_v5 = vpack.c.bf16 %v6748_v59, %v6746_v56  ;;  %p11009_p11 = scmp.ne.s32.totalorder %s16725_s25, %s11008_s22  ;;  %s11012_s23 = sshll.u32 %s11076_s13, 4  ;;  %s11013_s23 = int_to_ptr.vmem [resolvable:$false] %s11012_s23 }
  0x1b   : > { %v356_v24 = vrot.slane %v11230_v21, 1  ;;  %v357_v25 = vrot.slane %v11232_v22, 1  ;;  %v359_v27 = vrot.slane %v11234_v23, 1  ;;  %v11247_v31 = vld [vmem:[%s329_s26 + $0x18] sm:$0xf]  ;;  %v6756_v60 = vld [vmem:[%s16767_s1 + $0xc8] sm:$0xff]  ;;  %9047 = vmatprep.subr.bf16.mxu1 %v9046_v52  ;;  %p11015_p0 = scmp.lt.s32.totalorder %s16725_s25, %s11013_s23 }
  0x1c   : > { %v361_v37 = vrot.slane %v11247_v31, 1  ;;  %v6802_v62 = vld [vmem:[%s16769_s3 + $0x468] sm:$0xff]  ;;  %v6797_v1 = vld [vmem:[%s16769_s3 + $0x440] sm:$0xff]  ;;  %v9022_v6 = vpack.c.bf16 %v6758_v63, %v6756_v60  ;;  %v565_v15 = vrot.slane %v11230_v21, 2  ;;  %v566_v16 = vrot.slane %v11232_v22, 2  ;;  %v6771_v39 = vld [vmem:[%s16767_s1 + $0x118] sm:$0xff]  ;;  %p11010_p12 = pnand %p11009_p11, %p11165_p5 }
  0x1d   : > { %v358_v32 = vsel %vm355_vm3, %v356_v24, %v357_v25  ;;  %v360_v35 = vsel %vm355_vm3, %v357_v25, %v359_v27  ;;  %v9050_v0 = vpack.c.bf16 %v6802_v62, %v6798_v57  ;;  %v6801_v2 = vld [vmem:[%s16769_s3 + $0x460] sm:$0xff]  ;;  %v6806_v3 = vld [vmem:[%s16769_s3 + $0x488] sm:$0xff]  ;;  %9049 = vmatpush1.bf16.msra.mxu1 %v9048_v61  ;;  %v6762_v24 = vld [vmem:[%s16767_s1 + $0xf8] sm:$0xf]  ;;  %v568_v33 = vrot.slane %v11234_v23, 2  ;;  %s11014_s24 = scalar_lea.vmem %s11013_s23, 32 }
  0x1e   : > { %6734 = vmatmul.mubr.msk.f32.vlgmr.msra.gmra.mrb[0].mxu0 %vm363_vm4, %v358_v32  ;;  %v362_v41 = vsel %vm355_vm3, %v359_v27, %v361_v37  ;;  %v6810_v4 = vld [vmem:[%s16769_s3 + $0x4a8] sm:$0xff]  ;;  %v9052_v8 = vpack.c.bf16 %v6801_v2, %v6797_v1  ;;  %v6805_v11 = vld [vmem:[%s16769_s3 + $0x480] sm:$0xff]  ;;  %v567_v30 = vsel %vm564_vm5, %v565_v15, %v566_v16  ;;  %v570_v47 = vrot.slane %v11247_v31, 2  ;;  %v6770_v59 = vld [vmem:[%s16767_s1 + $0x110] sm:$0xff]  ;;  %p11011_p13 = pneg %p11010_p12  ;;  %p11016_p1 = scmp.lt.s32.totalorder %s11014_s24, %s11008_s22 }
  0x1f   : > { %9005 = vmatpush1.bf16.msra.mxu0 %v9004_v26  ;;  %447 = vmatprep.mubr.f32.mxu0 %v11072_v7  ;;  %v9054_v9 = vpack.c.bf16 %v6810_v4, %v6806_v3  ;;  %v6809_v12 = vld [vmem:[%s16769_s3 + $0x4a0] sm:$0xff]  ;;  %v6814_v13 = vld [vmem:[%s16769_s3 + $0x4c8] sm:$0xff]  ;;  %v569_v45 = vsel %vm564_vm5, %v566_v16, %v568_v33  ;;  %v683_v56 = vrot.slane %v11230_v21, 3  ;;  %v684_v57 = vrot.slane %v11232_v22, 3  ;;  %v6775_v62 = vld [vmem:[%s16767_s1 + $0x138] sm:$0xf] }
  0x20   : > { %9008 = vmatprep.subr.msk.bf16.mxu0 %vm11196_vm2, %v9006_v28  ;;  %9051 = vmatprep.subr.bf16.mxu1 %v9050_v0  ;;  %v6818_v14 = vld [vmem:[%s16769_s3 + $0x4e8] sm:$0xff]  ;;  %v6755_v17 = vld [vmem:[%s16767_s1 + $0xc0] sm:$0xff]  ;;  %v9056_v20 = vpack.c.bf16 %v6809_v12, %v6805_v11  ;;  %v6774_v11 = vld [vmem:[%s16767_s1 + $0x130] sm:$0xf]  ;;  %p11017_p2 = por %p11016_p1, %p11015_p0 }
  0x21   : > { %v6760_v19 = vld [vmem:[%s16767_s1 + $0xe8] sm:$0xff]  ;;  %9053 = vmatpush1.bf16.msra.mxu1 %v9052_v8  ;;  %v9058_v25 = vpack.c.bf16 %v6818_v14, %v6814_v13  ;;  %v6813_v26 = vld [vmem:[%s16769_s3 + $0x4c0] sm:$0xff]  ;;  %v9024_v32 = vpack.c.bf16 %v6757_v18, %v6755_v17  ;;  %v685_v4 = vsel %vm682_vm6, %v683_v56, %v684_v57  ;;  %v6784_v12 = vld [vmem:[%s16769_s3 + $0x3d8] sm:$0xff]  ;;  %v805_v56 = vrot.slane %v11247_v31, 4 }
  0x22   : > { %6735 = vmatmul.mubr.msk.f32.gmra.mrb[2].mxu0 %vm363_vm4, %v360_v35  ;;  %9055 = vmatprep.subr.bf16.mxu1 %v9054_v9  ;;  %v6817_v27 = vld [vmem:[%s16769_s3 + $0x4e0] sm:$0xff]  ;;  %v6822_v28 = vld [vmem:[%s16769_s3 + $0x508] sm:$0xff]  ;;  %v9026_v34 = vpack.c.bf16 %v6762_v24, %v6760_v19  ;;  %v6788_v14 = vld [vmem:[%s16769_s3 + $0x3f8] sm:$0xff]  ;;  %p11018_p3 = pnand %p11017_p2, %p11011_p13 }
  0x23   : > { %453 = vmatprep.mubr.f32.mxu0 %v11072_v7  ;;  %9011 = vmatpush1.bf16.msk.msra.mxu0 %vm11196_vm2, %v9009_v36  ;;  %v6826_v29 = vld [vmem:[%s16769_s3 + $0x528] sm:$0xff]  ;;  %v6759_v35 = vld [vmem:[%s16767_s1 + $0xe0] sm:$0xff]  ;;  %v6761_v36 = vld [vmem:[%s16767_s1 + $0xf0] sm:$0xf] }
  0x24   : > { %9013 = vmatprep.subr.bf16.mxu0 %v9012_v38  ;;  %v6769_v37 = vld [vmem:[%s16767_s1 + $0x108] sm:$0xff]  ;;  %v9060_v38 = vpack.c.bf16 %v6817_v27, %v6813_v26  ;;  %v9062_v40 = vpack.c.bf16 %v6826_v29, %v6822_v28  ;;  %v6825_v42 = vld [vmem:[%s16769_s3 + $0x520] sm:$0xff]  ;;  %v9029_v46 = vpack.c.bf16 %v6761_v36, %v6759_v35  ;;  %v9102_v26 = vpack.c.bf16 %v6788_v14, %v6784_v12  ;;  %v6792_v10 = vld [vmem:[%s16769_s3 + $0x418] sm:$0xff] }
  0x25   : > { %9057 = vmatpush1.bf16.msra.mxu1 %v9056_v20  ;;  %v6830_v43 = vld [vmem:[%s16769_s3 + $0x548] sm:$0xff]  ;;  %v9032_v48 = vpack.c.bf16 %v6771_v39, %v6769_v37  ;;  %v6829_v51 = vld [vmem:[%s16769_s3 + $0x540] sm:$0xff]  ;;  %v800_v35 = vrot.slane %v11230_v21, 4  ;;  %v801_v36 = vrot.slane %v11232_v22, 4  ;;  %v6783_v37 = vld [vmem:[%s16769_s3 + $0x3d0] sm:$0xff] }
  0x26   : > { %6736 = vmatmul.mubr.msk.f32.gmra.mrb[4].mxu0 %vm363_vm4, %v362_v41  ;;  %9059 = vmatprep.subr.bf16.mxu1 %v9058_v25  ;;  %v6821_v41 = vld [vmem:[%s16769_s3 + $0x500] sm:$0xff]  ;;  %v6834_v44 = vld [vmem:[%s16769_s3 + $0x568] sm:$0xff]  ;;  %v688_v25 = vrot.slane %v11247_v31, 3  ;;  %v6812_v31 = vld [vmem:[%s16769_s3 + $0x4b8] sm:$0xff] }
  0x27   : > { %536 = vmatprep.mubr.f32.mxu0 %v11072_v7  ;;  %v9064_v49 = vpack.c.bf16 %v6825_v42, %v6821_v41  ;;  %v9066_v50 = vpack.c.bf16 %v6834_v44, %v6830_v43  ;;  %v6833_v52 = vld [vmem:[%s16769_s3 + $0x560] sm:$0xff]  ;;  %v6838_v53 = vld [vmem:[%s16769_s3 + $0x588] sm:$0xff]  ;;  %v802_v44 = vsel %vm370_vm0, %v800_v35, %v801_v36  ;;  %v6824_v12 = vld [vmem:[%s16769_s3 + $0x518] sm:$0xff] }
  0x28   : > { %v6842_v54 = vld [vmem:[%s16769_s3 + $0x5a8] sm:$0xff]  ;;  %v9068_v61 = vpack.c.bf16 %v6833_v52, %v6829_v51  ;;  %v6837_v0 = vld [vmem:[%s16769_s3 + $0x580] sm:$0xff]  ;;  %v6852_v35 = vld [vmem:[%s16769_s3 + $0x5f8] sm:$0xff] }
  0x29   : > { %9061 = vmatpush1.bf16.msra.mxu1 %v9060_v38  ;;  %v6773_v60 = vld [vmem:[%s16767_s1 + $0x128] sm:$0xff]  ;;  %v9070_v63 = vpack.c.bf16 %v6842_v54, %v6838_v53  ;;  %v6841_v1 = vld [vmem:[%s16769_s3 + $0x5a0] sm:$0xff]  ;;  %v6787_v38 = vld [vmem:[%s16769_s3 + $0x3f0] sm:$0xff] }
  0x2a   : > { %6739 = vmatmul.mubr.msk.f32.vlgmr.msra.gmra.mrb[0].mxu0 %vm363_vm4, %v11230_v21  ;;  %9063 = vmatprep.subr.bf16.mxu1 %v9062_v40  ;;  %v6846_v2 = vld [vmem:[%s16769_s3 + $0x5c8] sm:$0xff]  ;;  %v9036_v8 = vpack.c.bf16 %v6775_v62, %v6773_v60  ;;  %v6772_v9 = vld [vmem:[%s16767_s1 + $0x120] sm:$0xff]  ;;  %v9072_v13 = vpack.c.bf16 %v6841_v1, %v6837_v0  ;;  %v6796_v21 = vld [vmem:[%s16769_s3 + $0x438] sm:$0xff] }
  0x2b   : > { %9015 = vmatpush1.bf16.msra.mxu0 %v9014_v55  ;;  %542 = vmatprep.mubr.f32.mxu0 %v11072_v7  ;;  %v571_v55 = vsel %vm564_vm5, %v568_v33, %v570_v47  ;;  %v6850_v3 = vld [vmem:[%s16769_s3 + $0x5e8] sm:$0xff]  ;;  %v6845_v16 = vld [vmem:[%s16769_s3 + $0x5c0] sm:$0xff]  ;;  %v9039_v24 = vpack.c.bf16 %v6774_v11, %v6772_v9  ;;  %v9106_v47 = vpack.c.bf16 %v6796_v21, %v6792_v10  ;;  %v6803_v60 = vld [vmem:[%s16769_s3 + $0x470] sm:$0xff] }
  0x2c   : > { %9018 = vmatprep.subr.msk.bf16.mxu0 %vm11196_vm2, %v9016_v58  ;;  %v6768_v58 = vld [vmem:[%s16767_s1 + $0x100] sm:$0xff]  ;;  %v9074_v15 = vpack.c.bf16 %v6850_v3, %v6846_v2  ;;  %v6854_v18 = vld [vmem:[%s16769_s3 + $0x608] sm:$0xff]  ;;  %v6808_v62 = vld [vmem:[%s16769_s3 + $0x498] sm:$0xff] }
  0x2d   : > { %9065 = vmatpush1.bf16.msra.mxu1 %v9064_v49  ;;  %v6849_v17 = vld [vmem:[%s16769_s3 + $0x5e0] sm:$0xff]  ;;  %v6858_v19 = vld [vmem:[%s16769_s3 + $0x628] sm:$0xff]  ;;  %v6795_v49 = vld [vmem:[%s16769_s3 + $0x430] sm:$0xff]  ;;  %v9114_v1 = vpack.c.bf16 %v6812_v31, %v6808_v62 }
  0x2e   : > { %6740 = vmatmul.mubr.msk.f32.gmra.mrb[2].mxu0 %vm363_vm4, %v11232_v22  ;;  %9067 = vmatprep.subr.bf16.mxu1 %v9066_v50  ;;  %v9076_v27 = vpack.c.bf16 %v6849_v17, %v6845_v16  ;;  %v9078_v28 = vpack.c.bf16 %v6858_v19, %v6854_v18  ;;  %v6853_v29 = vld [vmem:[%s16769_s3 + $0x600] sm:$0xff]  ;;  %v6866_v33 = vld [vmem:[%s16769_s3 + $0x668] sm:$0xff]  ;;  %v6800_v50 = vld [vmem:[%s16769_s3 + $0x458] sm:$0xff] }
  0x2f   : > { %548 = vmatprep.mubr.f32.mxu0 %v11072_v7  ;;  %9021 = vmatpush1.bf16.msk.msra.mxu0 %vm11196_vm2, %v9019_v5  ;;  %v9034_v5 = vpack.c.bf16 %v6770_v59, %v6768_v58  ;;  %v6861_v40 = vld [vmem:[%s16769_s3 + $0x640] sm:$0xff]  ;;  %v6870_v42 = vld [vmem:[%s16769_s3 + $0x688] sm:$0xff]  ;;  %v6799_v59 = vld [vmem:[%s16769_s3 + $0x450] sm:$0xff] }
  0x30   : > { %9023 = vmatprep.subr.bf16.mxu0 %v9022_v6  ;;  %v686_v6 = vrot.slane %v11234_v23, 3  ;;  %v6865_v41 = vld [vmem:[%s16769_s3 + $0x660] sm:$0xff]  ;;  %v6874_v43 = vld [vmem:[%s16769_s3 + $0x6a8] sm:$0xff]  ;;  %v9112_v0 = vpack.c.bf16 %v6803_v60, %v6799_v59  ;;  %v6807_v2 = vld [vmem:[%s16769_s3 + $0x490] sm:$0xff] }
  0x31   : > { %9069 = vmatpush1.bf16.msra.mxu1 %v9068_v61  ;;  %v9084_v51 = vpack.c.bf16 %v6865_v41, %v6861_v40  ;;  %v9086_v52 = vpack.c.bf16 %v6874_v43, %v6870_v42  ;;  %v6869_v53 = vld [vmem:[%s16769_s3 + $0x680] sm:$0xff]  ;;  %v6811_v3 = vld [vmem:[%s16769_s3 + $0x4b0] sm:$0xff]  ;;  %v6832_v18 = vld [vmem:[%s16769_s3 + $0x558] sm:$0xff] }
  0x32   : > { %6741 = vmatmul.mubr.msk.f32.gmra.mrb[4].mxu0 %vm363_vm4, %v11234_v23  ;;  %9071 = vmatprep.subr.bf16.mxu1 %v9070_v63  ;;  %v687_v20 = vsel %vm682_vm6, %v684_v57, %v686_v6  ;;  %v6873_v54 = vld [vmem:[%s16769_s3 + $0x6a0] sm:$0xff]  ;;  %v6815_v9 = vld [vmem:[%s16769_s3 + $0x4d0] sm:$0xff]  ;;  %v6836_v19 = vld [vmem:[%s16769_s3 + $0x578] sm:$0xff] }
  0x33   : > { %648 = vmatprep.mubr.f32.mxu0 %v11072_v7  ;;  %v9088_v61 = vpack.c.bf16 %v6873_v54, %v6869_v53  ;;  %v6819_v11 = vld [vmem:[%s16769_s3 + $0x4f0] sm:$0xff]  ;;  %v6860_v21 = vld [vmem:[%s16769_s3 + $0x638] sm:$0xff]  ;;  %v6877_v60 = vld [vmem:[%s16769_s3 + $0x6c0] sm:$0xff] }
  0x34   : > { %v9120_v14 = vpack.c.bf16 %v6819_v11, %v6815_v9  ;;  %v6823_v16 = vld [vmem:[%s16769_s3 + $0x510] sm:$0xff]  ;;  %v6864_v43 = vld [vmem:[%s16769_s3 + $0x658] sm:$0xff]  ;;  %v6881_v62 = vld [vmem:[%s16769_s3 + $0x6e0] sm:$0xff] }
  0x35   : > { %9073 = vmatpush1.bf16.msra.mxu1 %v9072_v13  ;;  %v6828_v13 = vld [vmem:[%s16769_s3 + $0x538] sm:$0xff]  ;;  %v6827_v17 = vld [vmem:[%s16769_s3 + $0x530] sm:$0xff]  ;;  %v6889_v9 = vld [vmem:[%s16769_s3 + $0x720] sm:$0xff] }
  0x36   : > { %6752 = vmatmul.mubr.msk.f32.vlgmr.msra.gmra.mrb[0].mxu0 %vm363_vm4, %v567_v30  ;;  %9075 = vmatprep.subr.bf16.mxu1 %v9074_v15  ;;  %v6857_v30 = vld [vmem:[%s16769_s3 + $0x620] sm:$0xff]  ;;  %v9122_v15 = vpack.c.bf16 %v6828_v13, %v6824_v12  ;;  %v6851_v10 = vld [vmem:[%s16769_s3 + $0x5f0] sm:$0xff]  ;;  %v6884_v59 = vld [vmem:[%s16769_s3 + $0x6f8] sm:$0xff] }
  0x37   : > { %9025 = vmatpush1.bf16.msra.mxu0 %v9024_v32  ;;  %654 = vmatprep.mubr.f32.mxu0 %v11072_v7  ;;  %v6862_v32 = vld [vmem:[%s16769_s3 + $0x648] sm:$0xff]  ;;  %v9080_v39 = vpack.c.bf16 %v6857_v30, %v6853_v29  ;;  %v6855_v41 = vld [vmem:[%s16769_s3 + $0x610] sm:$0xff] }
  0x38   : > { %9028 = vmatprep.subr.msk.bf16.mxu0 %vm11196_vm2, %v9026_v34  ;;  %v689_v34 = vsel %vm682_vm6, %v686_v6, %v688_v25  ;;  %v9082_v22 = vpack.c.bf16 %v6866_v33, %v6862_v32  ;;  %v9116_v6 = vpack.c.bf16 %v6811_v3, %v6807_v2  ;;  %v6831_v25 = vld [vmem:[%s16769_s3 + $0x550] sm:$0xff]  ;;  %v6886_v2 = vld [vmem:[%s16769_s3 + $0x708] sm:$0xff] }
  0x39   : > { %9077 = vmatpush1.bf16.msra.mxu1 %v9076_v27  ;;  %v6840_v27 = vld [vmem:[%s16769_s3 + $0x598] sm:$0xff]  ;;  %v6839_v32 = vld [vmem:[%s16769_s3 + $0x590] sm:$0xff]  ;;  %v6890_v3 = vld [vmem:[%s16769_s3 + $0x728] sm:$0xff] }
  0x3a   : > { %6753 = vmatmul.mubr.msk.f32.gmra.mrb[2].mxu0 %vm363_vm4, %v569_v45  ;;  %9079 = vmatprep.subr.bf16.mxu1 %v9078_v28  ;;  %v803_v45 = vrot.slane %v11234_v23, 4  ;;  %v6804_v23 = vld [vmem:[%s16769_s3 + $0x478] sm:$0xff]  ;;  %v6843_v33 = vld [vmem:[%s16769_s3 + $0x5b0] sm:$0xff] }
  0x3b   : > { %660 = vmatprep.mubr.f32.mxu0 %v11072_v7  ;;  %9031 = vmatpush1.bf16.msk.msra.mxu0 %vm11196_vm2, %v9029_v46  ;;  %v9104_v46 = vpack.c.bf16 %v6787_v38, %v6783_v37  ;;  %v9110_v58 = vpack.c.bf16 %v6804_v23, %v6800_v50  ;;  %v6844_v28 = vld [vmem:[%s16769_s3 + $0x5b8] sm:$0xff]  ;;  %v6847_v38 = vld [vmem:[%s16769_s3 + $0x5d0] sm:$0xff] }
  0x3c   : > { %9033 = vmatprep.subr.bf16.mxu0 %v9032_v48  ;;  %v6791_v48 = vld [vmem:[%s16769_s3 + $0x410] sm:$0xff]  ;;  %v806_v63 = vsel %vm370_vm0, %v803_v45, %v805_v56  ;;  %v9130_v30 = vpack.c.bf16 %v6844_v28, %v6840_v27  ;;  %v6876_v50 = vld [vmem:[%s16769_s3 + $0x6b8] sm:$0xff]  ;;  %v6882_v56 = vld [vmem:[%s16769_s3 + $0x6e8] sm:$0xff] }
  0x3d   : > { %9081 = vmatpush1.bf16.msra.mxu1 %v9080_v39  ;;  %v9108_v57 = vpack.c.bf16 %v6795_v49, %v6791_v48  ;;  %v6856_v39 = vld [vmem:[%s16769_s3 + $0x618] sm:$0xff]  ;;  %v6859_v42 = vld [vmem:[%s16769_s3 + $0x630] sm:$0xff] }
  0x3e   : > { %6754 = vmatmul.mubr.msk.f32.gmra.mrb[4].mxu0 %vm363_vm4, %v571_v55  ;;  %9083 = vmatprep.subr.bf16.mxu1 %v9082_v22  ;;  %v804_v55 = vsel %vm370_vm0, %v801_v36, %v803_v45  ;;  %v9132_v36 = vpack.c.bf16 %v6843_v33, %v6839_v32  ;;  %v9136_v22 = vpack.c.bf16 %v6851_v10, %v6847_v38  ;;  %v6867_v48 = vld [vmem:[%s16769_s3 + $0x670] sm:$0xff]  ;;  %v6872_v49 = vld [vmem:[%s16769_s3 + $0x698] sm:$0xff]  ;;  %v933_v32 = vld [vmem:[%s16769_s3 + $0x8] sm:$0xff]  ;;  %v910_v38 = vlaneseq }
  0x3f   : > { %766 = vmatprep.mubr.f32.mxu0 %v11072_v7  ;;  %v9138_v40 = vpack.c.bf16 %v6860_v21, %v6856_v39  ;;  %v9140_v45 = vpack.c.bf16 %v6859_v42, %v6855_v41  ;;  %v9146_v23 = vpack.c.bf16 %v6876_v50, %v6872_v49  ;;  %v6875_v53 = vld [vmem:[%s16769_s3 + $0x6b0] sm:$0xff]  ;;  %v937_v33 = vld [vmem:[%s16769_s3 + $0x28] sm:$0xff]  ;;  %v908_v21 = vld [vmem:[%s16768_s2] sm:$0x3] }
  0x40   : > { %v6879_v31 = vld [vmem:[%s16769_s3 + $0x6d0] sm:$0xff]  ;;  %v11766_v10 = vshrl.u32 %v910_v38, 7  ;;  %v957_v38 = vld [vmem:[%s16769_s3 + $0xc8] sm:$0xff] }
  0x41   : > { %9085 = vmatpush1.bf16.msra.mxu1 %v9084_v51  ;;  %v6887_v13 = vld [vmem:[%s16769_s3 + $0x710] sm:$0xff] }
  0x42   : > { %6765 = vmatmul.mubr.msk.f32.vlgmr.msra.gmra.mrb[0].mxu0 %vm363_vm4, %v685_v4  ;;  %9087 = vmatprep.subr.bf16.mxu1 %v9086_v52  ;;  %v6816_v4 = vld [vmem:[%s16769_s3 + $0x4d8] sm:$0xff]  ;;  %v6871_v52 = vld [vmem:[%s16769_s3 + $0x690] sm:$0xff]  ;;  %v916_v39 = vsub.s32 1, %v11766_v10 }
  0x43   : > { %9035 = vmatpush1.bf16.msra.mxu0 %v9034_v5  ;;  %772 = vmatprep.mubr.f32.mxu0 %v11072_v7  ;;  %v6820_v5 = vld [vmem:[%s16769_s3 + $0x4f8] sm:$0xff]  ;;  %v9148_v54 = vpack.c.bf16 %v6875_v53, %v6871_v52  ;;  %v6895_v28 = vld [vmem:[%s16769_s3 + $0x750] sm:$0xff]  ;;  %v932_v52 = vld [vmem:[%s16769_s3] sm:$0xff] }
  0x44   : > { %9038 = vmatprep.subr.msk.bf16.mxu0 %vm11196_vm2, %v9036_v8  ;;  %v9118_v8 = vpack.c.bf16 %v6820_v5, %v6816_v4  ;;  %v6888_v4 = vld [vmem:[%s16769_s3 + $0x718] sm:$0xff]  ;;  %v9094_v5 = vpack.c.bf16 %v6890_v3, %v6886_v2  ;;  %v936_v53 = vld [vmem:[%s16769_s3 + $0x20] sm:$0xff] }
  0x45   : > { %9089 = vmatpush1.bf16.msra.mxu1 %v9088_v61 }
  0x46   : > { %6766 = vmatmul.mubr.msk.f32.gmra.mrb[2].mxu0 %vm363_vm4, %v687_v20  ;;  %v9124_v20 = vpack.c.bf16 %v6827_v17, %v6823_v16  ;;  %v6894_v16 = vld [vmem:[%s16769_s3 + $0x748] sm:$0xff] }
  0x47   : > { %778 = vmatprep.mubr.f32.mxu0 %v11072_v7  ;;  %9041 = vmatpush1.bf16.msk.msra.mxu0 %vm11196_vm2, %v9039_v24  ;;  %v9126_v24 = vpack.c.bf16 %v6836_v19, %v6832_v18  ;;  %v6898_v17 = vld [vmem:[%s16769_s3 + $0x768] sm:$0xff]  ;;  %v6896_v18 = vld [vmem:[%s16769_s3 + $0x758] sm:$0xff] }
  0x48   : > { %9103 = vmatprep.subr.bf16.mxu0 %v9102_v26  ;;  %v6835_v26 = vld [vmem:[%s16769_s3 + $0x570] sm:$0xff]  ;;  %v9098_v19 = vpack.c.bf16 %v6898_v17, %v6894_v16 }
  0x49   : > { %v9128_v29 = vpack.c.bf16 %v6835_v26, %v6831_v25  ;;  %v6897_v25 = vld [vmem:[%s16769_s3 + $0x760] sm:$0xff]  ;;  %v946_v16 = vld [vmem:[%s16769_s3 + $0x70] sm:$0xff] }
  0x4a   : > { %6767 = vmatmul.mubr.msk.f32.gmra.mrb[4].mxu0 %vm363_vm4, %v689_v34  ;;  %v6848_v34 = vld [vmem:[%s16769_s3 + $0x5d8] sm:$0xff] }
  0x4b   : > { %883 = vmatprep.mubr.f32.mxu0 %v11072_v7  ;;  %v9134_v37 = vpack.c.bf16 %v6852_v35, %v6848_v34  ;;  %v935_v34 = vld [vmem:[%s16769_s3 + $0x18] sm:$0xff]  ;;  %v9162_v35 = vpack.c.bf16 %v937_v33, %v933_v32  ;;  %v952_v32 = vld [vmem:[%s16769_s3 + $0xa0] sm:$0xff]  ;;  %v950_v33 = vld [vmem:[%s16769_s3 + $0x90] sm:$0xff] }
  0x4e   : > { %6778 = vmatmul.mubr.msk.f32.vlgmr.msra.gmra.mrb[0].mxu0 %vm363_vm4, %v802_v44  ;;  %v6868_v44 = vld [vmem:[%s16769_s3 + $0x678] sm:$0xff] }
  0x4f   : > { %889 = vmatprep.mubr.f32.mxu0 %v11072_v7  ;;  %9105 = vmatpush1.bf16.msra.mxu0 %v9104_v46  ;;  %v9142_v46 = vpack.c.bf16 %v6868_v44, %v6864_v43 }
  0x50   : > { %9107 = vmatprep.subr.bf16.mxu0 %v9106_v47  ;;  %v6863_v47 = vld [vmem:[%s16769_s3 + $0x650] sm:$0xff] }
  0x51   : > { %v9144_v51 = vpack.c.bf16 %v6867_v48, %v6863_v47 }
  0x52   : > { %6779 = vmatmul.mubr.msk.f32.gmra.mrb[2].mxu0 %vm363_vm4, %v804_v55  ;;  %v6878_v55 = vld [vmem:[%s16769_s3 + $0x6c8] sm:$0xff] }
  0x53   : > { %895 = vmatprep.mubr.f32.mxu0 %v11072_v7  ;;  %9109 = vmatpush1.bf16.msra.mxu0 %v9108_v57  ;;  %v9090_v57 = vpack.c.bf16 %v6882_v56, %v6878_v55  ;;  %v934_v56 = vld [vmem:[%s16769_s3 + $0x10] sm:$0xff] }
  0x54   : > { %9111 = vmatprep.subr.bf16.mxu0 %v9110_v58  ;;  %v6880_v58 = vld [vmem:[%s16769_s3 + $0x6d8] sm:$0xff] }
  0x55   : > { %v9150_v61 = vpack.c.bf16 %v6884_v59, %v6880_v58  ;;  %9091 = vmatprep.subr.bf16.mxu1 %v9090_v57  ;;  %v938_v57 = vld [vmem:[%s16769_s3 + $0x30] sm:$0xff]  ;;  %v941_v58 = vld [vmem:[%s16769_s3 + $0x48] sm:$0xff] }
  0x56   : > { %6780 = vmatmul.mubr.msk.f32.gmra.mrb[4].mxu0 %vm363_vm4, %v806_v63  ;;  %v6883_v63 = vld [vmem:[%s16769_s3 + $0x6f0] sm:$0xff] }
  0x57   : > { %9113 = vmatpush1.bf16.msra.mxu0 %v9112_v0  ;;  %v9092_v0 = vpack.c.bf16 %v6881_v62, %v6877_v60  ;;  %v945_v62 = vld [vmem:[%s16769_s3 + $0x68] sm:$0xff] }
  0x58   : > { %9115 = vmatprep.subr.bf16.mxu0 %v9114_v1  ;;  %v9152_v1 = vpack.c.bf16 %v6883_v63, %v6879_v31  ;;  %v943_v31 = vld [vmem:[%s16769_s3 + $0x58] sm:$0xff] }
  0x59   : > { %9093 = vmatpush1.bf16.msra.mxu1 %v9092_v0  ;;  %v947_v63 = vld [vmem:[%s16769_s3 + $0x78] sm:$0xff] }
  0x5a   : > { %9095 = vmatprep.subr.bf16.mxu1 %v9094_v5  ;;  %v9164_v5 = vpack.c.bf16 %v936_v53, %v932_v52  ;;  %v969_v53 = vld [vmem:[%s16769_s3 + $0x128] sm:$0xff] }
  0x5b   : > { %9117 = vmatpush1.bf16.msra.mxu0 %v9116_v6  ;;  %v6892_v6 = vld [vmem:[%s16769_s3 + $0x738] sm:$0xff] }
  0x5c   : > { %9119 = vmatprep.subr.bf16.mxu0 %v9118_v8  ;;  %v6885_v8 = vld [vmem:[%s16769_s3 + $0x700] sm:$0xff]  ;;  %v9154_v11 = vpack.c.bf16 %v6892_v6, %v6888_v4  ;;  %v9224_v6 = vpack.c.bf16 %v938_v57, %v934_v56  ;;  %v971_v56 = vld [vmem:[%s16769_s3 + $0x138] sm:$0xff] }
  0x5d   : > { %v9096_v12 = vpack.c.bf16 %v6889_v9, %v6885_v8  ;;  %v940_v8 = vld [vmem:[%s16769_s3 + $0x40] sm:$0xff] }
  0x5f   : > { %9121 = vmatpush1.bf16.msra.mxu0 %v9120_v14  ;;  %v6891_v14 = vld [vmem:[%s16769_s3 + $0x730] sm:$0xff]  ;;  %9097 = vmatpush1.bf16.msra.mxu1 %v9096_v12  ;;  %v9166_v12 = vpack.c.bf16 %v945_v62, %v941_v58 }
  0x60   : > { %9123 = vmatprep.subr.bf16.mxu0 %v9122_v15  ;;  %v9156_v15 = vpack.c.bf16 %v6891_v14, %v6887_v13  ;;  %9099 = vmatprep.subr.bf16.mxu1 %v9098_v19  ;;  %v9226_v13 = vpack.c.bf16 %v947_v63, %v943_v31  ;;  %v944_v14 = vld [vmem:[%s16769_s3 + $0x60] sm:$0xff]  ;;  %v949_v19 = vld [vmem:[%s16769_s3 + $0x88] sm:$0xff]  ;;  %v966_v31 = vld [vmem:[%s16769_s3 + $0x110] sm:$0xff] }
  0x61   : > { %v970_v63 = vld [vmem:[%s16769_s3 + $0x130] sm:$0xff] }
  0x63   : > { %9125 = vmatpush1.bf16.msra.mxu0 %v9124_v20  ;;  %v6900_v20 = vld [vmem:[%s16769_s3 + $0x778] sm:$0xff] }
  0x64   : > { %9127 = vmatprep.subr.bf16.mxu0 %v9126_v24  ;;  %v6893_v24 = vld [vmem:[%s16769_s3 + $0x740] sm:$0xff]  ;;  %v9158_v26 = vpack.c.bf16 %v6900_v20, %v6896_v18 }
  0x65   : > { %v9100_v27 = vpack.c.bf16 %v6897_v25, %v6893_v24  ;;  %v953_v24 = vld [vmem:[%s16769_s3 + $0xa8] sm:$0xff]  ;;  %v951_v25 = vld [vmem:[%s16769_s3 + $0x98] sm:$0xff] }
  0x67   : > { %9129 = vmatpush1.bf16.msra.mxu0 %v9128_v29  ;;  %v6899_v29 = vld [vmem:[%s16769_s3 + $0x770] sm:$0xff]  ;;  %9101 = vmatpush1.bf16.msra.mxu1 %v9100_v27  ;;  %v9168_v27 = vpack.c.bf16 %v944_v14, %v940_v8  ;;  %v972_v8 = vld [vmem:[%s16769_s3 + $0x140] sm:$0xff] }
  0x68   : > { %9131 = vmatprep.subr.bf16.mxu0 %v9130_v30  ;;  %v9160_v30 = vpack.c.bf16 %v6899_v29, %v6895_v28  ;;  %9163 = vmatprep.subr.bf16.mxu1 %v9162_v35  ;;  %v948_v29 = vld [vmem:[%s16769_s3 + $0x80] sm:$0xff]  ;;  %v974_v14 = vld [vmem:[%s16769_s3 + $0x150] sm:$0xff] }
  0x6b   : > { %9133 = vmatpush1.bf16.msra.mxu0 %v9132_v36  ;;  %v939_v36 = vld [vmem:[%s16769_s3 + $0x38] sm:$0xff] }
  0x6c   : > { %9135 = vmatprep.subr.bf16.mxu0 %v9134_v37  ;;  %v9222_v37 = vpack.c.bf16 %v939_v36, %v935_v34  ;;  %v954_v34 = vld [vmem:[%s16769_s3 + $0xb0] sm:$0xff]  ;;  %v9170_v36 = vpack.c.bf16 %v953_v24, %v949_v19  ;;  %v987_v19 = vld [vmem:[%s16769_s3 + $0x1b8] sm:$0xff] }
  0x6f   : > { %9137 = vmatpush1.bf16.msra.mxu0 %v9136_v22  ;;  %v912_v22 = vsub.s32 0, %v11766_v10 }
  0x70   : > { %9139 = vmatprep.subr.bf16.mxu0 %v9138_v40  ;;  %v917_v40 = vrot.slane %v908_v21, %v916_v39 }
  0x71   : > { %v913_v41 = vrot.slane %v908_v21, %v912_v22  ;;  %v961_v21 = vld [vmem:[%s16769_s3 + $0xe8] sm:$0xff] }
  0x73   : > { %9141 = vmatpush1.bf16.msra.mxu0 %v9140_v45 }
  0x74   : > { %9143 = vmatprep.subr.bf16.mxu0 %v9142_v46 }
  0x77   : > { %9145 = vmatpush1.bf16.msra.mxu0 %v9144_v51 }
  0x78   : > { %9147 = vmatprep.subr.bf16.mxu0 %v9146_v23 }
  0x7b   : > { %9149 = vmatpush1.bf16.msra.mxu0 %v9148_v54 }
  0x7c   : > { %9151 = vmatprep.subr.bf16.mxu0 %v9150_v61 }
  0x7f   : > { %9153 = vmatpush1.bf16.msra.mxu0 %v9152_v1 }
  0x80   : > { %9155 = vmatprep.subr.bf16.mxu0 %v9154_v11 }
  0x83   : > { %9157 = vmatpush1.bf16.msra.mxu0 %v9156_v15  ;;  %v942_v15 = vld [vmem:[%s16769_s3 + $0x50] sm:$0xff] }
  0x84   : > { %9159 = vmatprep.subr.bf16.mxu0 %v9158_v26  ;;  %v955_v26 = vld [vmem:[%s16769_s3 + $0xb8] sm:$0xff]  ;;  %v9228_v28 = vpack.c.bf16 %v946_v16, %v942_v15  ;;  %v978_v15 = vld [vmem:[%s16769_s3 + $0x170] sm:$0xff]  ;;  %v981_v16 = vld [vmem:[%s16769_s3 + $0x188] sm:$0xff] }
  0x85   : > { %v9244_v24 = vpack.c.bf16 %v978_v15, %v974_v14 }
  0x87   : > { %9161 = vmatpush1.bf16.msra.mxu0 %v9160_v30 }
  0x88   : > { %9223 = vmatprep.subr.bf16.mxu0 %v9222_v37  ;;  %v9230_v37 = vpack.c.bf16 %v955_v26, %v951_v25  ;;  %v980_v25 = vld [vmem:[%s16769_s3 + $0x180] sm:$0xff] }
  0x89   : > { %v984_v26 = vld [vmem:[%s16769_s3 + $0x1a0] sm:$0xff] }
 0x121   : > { %v885_v42 = vpop.f32.mrb[0].mxu0 }
 0x122   : > { %v887_v43 = vpop.f32.mrb[1].mxu0  ;;  %v920_v45 = vadd.f32 %v913_v41, %v885_v42  ;;  %v9172_v42 = vpack.c.bf16 %v952_v32, %v948_v29  ;;  %v982_v29 = vld [vmem:[%s16769_s3 + $0x190] sm:$0xff]  ;;  %v989_v32 = vld [vmem:[%s16769_s3 + $0x1c8] sm:$0xff] }
 0x123   : > { %v921_v44 = vadd.f32 %v917_v40, %v887_v43  ;;  %v9232_v43 = vpack.c.bf16 %v954_v34, %v950_v33  ;;  %v993_v33 = vld [vmem:[%s16769_s3 + $0x1e8] sm:$0xff]  ;;  %v991_v34 = vld [vmem:[%s16769_s3 + $0x1d8] sm:$0xff] }
 0x124   : > { %v11779_v51 = vmax.f32 %v920_v45, 0.0  ;;  %v960_v45 = vld [vmem:[%s16769_s3 + $0xe0] sm:$0xff] }
 0x125   : > { %v891_v46 = vpop.f32.mrb[2].mxu0  ;;  %v11777_v49 = vmax.f32 %v921_v44, 0.0  ;;  %v956_v44 = vld [vmem:[%s16769_s3 + $0xc0] sm:$0xff] }
 0x126   : > { %v922_v47 = vadd.f32 %v913_v41, %v891_v46  ;;  %v893_v48 = vpop.f32.mrb[3].mxu0  ;;  %v1179_v4 = vrot.slane %v11779_v51, 1  ;;  %v958_v46 = vld [vmem:[%s16769_s3 + $0xd0] sm:$0xff]  ;;  %v9176_v57 = vpack.c.bf16 %v960_v45, %v956_v44  ;;  %v997_v44 = vld [vmem:[%s16769_s3 + $0x208] sm:$0xff] }
 0x127   : > { %v923_v50 = vadd.f32 %v917_v40, %v893_v48  ;;  %v1182_v1 = vrot.slane %v11777_v49, 1  ;;  %v965_v48 = vld [vmem:[%s16769_s3 + $0x108] sm:$0xff] }
 0x128   : > { %v11781_v23 = vmax.f32 %v922_v47, 0.0  ;;  %v962_v47 = vld [vmem:[%s16769_s3 + $0xf0] sm:$0xff]  ;;  %v1001_v45 = vld [vmem:[%s16769_s3 + $0x228] sm:$0xff] }
 0x129   : > { %v11789_v54 = vmax.f32 %v923_v50, 0.0  ;;  %v897_v55 = vpop.f32.mrb[4].mxu0  ;;  %v9174_v50 = vpack.c.bf16 %v961_v21, %v957_v38  ;;  %v9236_v58 = vpack.c.bf16 %v962_v47, %v958_v46  ;;  %v988_v38 = vld [vmem:[%s16769_s3 + $0x1c0] sm:$0xff]  ;;  %v999_v46 = vld [vmem:[%s16769_s3 + $0x218] sm:$0xff] }
 0x12a   : > { %v924_v59 = vadd.f32 %v913_v41, %v897_v55  ;;  %v899_v60 = vpop.f32.mrb[5].mxu0  ;;  %v1180_v61 = vrot.slane %v11781_v23, 1  ;;  %v963_v41 = vld [vmem:[%s16769_s3 + $0xf8] sm:$0xff]  ;;  %v992_v21 = vld [vmem:[%s16769_s3 + $0x1e0] sm:$0xff] }
 0x12b   : > { %v925_v0 = vadd.f32 %v917_v40, %v899_v60  ;;  %v1183_v2 = vrot.slane %v11789_v54, 1  ;;  %v959_v40 = vld [vmem:[%s16769_s3 + $0xd8] sm:$0xff]  ;;  %v968_v60 = vld [vmem:[%s16769_s3 + $0x120] sm:$0xff] }
 0x12c   : > { %v11812_v3 = vmax.f32 %v924_v59, 0.0  ;;  %v1181_v17 = vsel %vm355_vm3, %v1179_v4, %v1180_v61  ;;  %v9234_v52 = vpack.c.bf16 %v963_v41, %v959_v40  ;;  %v967_v55 = vld [vmem:[%s16769_s3 + $0x118] sm:$0xff]  ;;  %v964_v59 = vld [vmem:[%s16769_s3 + $0x100] sm:$0xff]  ;;  %v9190_v40 = vpack.c.bf16 %v993_v33, %v989_v32 }
 0x12d   : > { %v11818_v9 = vmax.f32 %v925_v0, 0.0  ;;  %v1184_v11 = vsel %vm355_vm3, %v1182_v1, %v1183_v2  ;;  %v9238_v62 = vpack.c.bf16 %v971_v56, %v967_v55  ;;  %v973_v0 = vld [vmem:[%s16769_s3 + $0x148] sm:$0xff]  ;;  %v979_v4 = vld [vmem:[%s16769_s3 + $0x178] sm:$0xff]  ;;  %v9194_v55 = vpack.c.bf16 %v1001_v45, %v997_v44  ;;  %v1020_v32 = vld [vmem:[%s16769_s3 + $0x2c0] sm:$0xff] }
 0x12e   : > { %6901 = vmatprep.mubr.msk.f32.mxu1 %vm1192_vm7, %v1184_v11  ;;  %6904 = vmatprep.mubr.msk.f32.mxu0 %vm1192_vm7, %v1184_v11  ;;  %v1185_v18 = vrot.slane %v11812_v3, 1  ;;  %v977_v1 = vld [vmem:[%s16769_s3 + $0x168] sm:$0xff]  ;;  %v976_v11 = vld [vmem:[%s16769_s3 + $0x160] sm:$0xff]  ;;  %v1003_v47 = vld [vmem:[%s16769_s3 + $0x238] sm:$0xff] }
 0x12f   : > { %1264 = vmatmul.mubr.f32.vlgmr.msra.gmra.mrb[0].mxu1 %v1181_v17  ;;  %1347 = vmatmul.mubr.f32.vlgmr.msra.gmra.mrb[6].mxu0 %v1181_v17  ;;  %v1187_v20 = vrot.slane %v11818_v9, 1  ;;  %v985_v17 = vld [vmem:[%s16769_s3 + $0x1a8] sm:$0xff]  ;;  %v9254_v56 = vpack.c.bf16 %v1003_v47, %v999_v46  ;;  %v1024_v33 = vld [vmem:[%s16769_s3 + $0x2e0] sm:$0xff] }
 0x130   : > { %9165 = vmatpush1.bf16.msra.mxu1 %v9164_v5  ;;  %9225 = vmatpush1.bf16.msra.mxu0 %v9224_v6  ;;  %v1186_v35 = vsel %vm355_vm3, %v1180_v61, %v1185_v18  ;;  %v9178_v61 = vpack.c.bf16 %v969_v53, %v965_v48  ;;  %v9180_v5 = vpack.c.bf16 %v968_v60, %v964_v59  ;;  %v1000_v53 = vld [vmem:[%s16769_s3 + $0x220] sm:$0xff]  ;;  %v1005_v59 = vld [vmem:[%s16769_s3 + $0x248] sm:$0xff] }
 0x131   : > { %v1188_v30 = vsel %vm355_vm3, %v1183_v2, %v1187_v20  ;;  %9167 = vmatprep.subr.bf16.mxu1 %v9166_v12  ;;  %9227 = vmatprep.subr.bf16.mxu0 %v9226_v13  ;;  %v975_v2 = vld [vmem:[%s16769_s3 + $0x158] sm:$0xff]  ;;  %v9240_v6 = vpack.c.bf16 %v970_v63, %v966_v31  ;;  %v9182_v12 = vpack.c.bf16 %v977_v1, %v973_v0  ;;  %v1009_v60 = vld [vmem:[%s16769_s3 + $0x268] sm:$0xff]  ;;  %v1004_v0 = vld [vmem:[%s16769_s3 + $0x240] sm:$0xff] }
 0x132   : > { %6902 = vmatprep.mubr.msk.f32.mxu1 %vm1192_vm7, %v1188_v30  ;;  %6905 = vmatprep.mubr.msk.f32.mxu0 %vm1192_vm7, %v1188_v30  ;;  %v9242_v13 = vpack.c.bf16 %v979_v4, %v975_v2  ;;  %v986_v30 = vld [vmem:[%s16769_s3 + $0x1b0] sm:$0xff]  ;;  %v9192_v48 = vpack.c.bf16 %v992_v21, %v988_v38  ;;  %v1008_v1 = vld [vmem:[%s16769_s3 + $0x260] sm:$0xff]  ;;  %v9198_v2 = vpack.c.bf16 %v1009_v60, %v1005_v59  ;;  %v1029_v38 = vld [vmem:[%s16769_s3 + $0x308] sm:$0xff] }
 0x133   : > { %1270 = vmatmul.mubr.f32.gmra.mrb[2].mxu1 %v1186_v35  ;;  %1353 = vmatmul.mubr.f32.gmra.mrb[8].mxu0 %v1186_v35  ;;  %v995_v35 = vld [vmem:[%s16769_s3 + $0x1f8] sm:$0xff]  ;;  %v9200_v14 = vpack.c.bf16 %v1008_v1, %v1004_v0  ;;  %v1033_v21 = vld [vmem:[%s16769_s3 + $0x328] sm:$0xff]  ;;  %v1028_v44 = vld [vmem:[%s16769_s3 + $0x300] sm:$0xff] }
 0x134   : > { %9169 = vmatpush1.bf16.msra.mxu1 %v9168_v27  ;;  %9229 = vmatpush1.bf16.msra.mxu0 %v9228_v28  ;;  %v9186_v27 = vpack.c.bf16 %v985_v17, %v981_v16  ;;  %v9250_v41 = vpack.c.bf16 %v995_v35, %v991_v34  ;;  %v1012_v16 = vld [vmem:[%s16769_s3 + $0x280] sm:$0xff]  ;;  %v9210_v46 = vpack.c.bf16 %v1033_v21, %v1029_v38  ;;  %v1045_v0 = vld [vmem:[%s16769_s3 + $0x388] sm:$0xff] }
 0x135   : > { %6903 = vmatprep.mubr.msk.f32.mxu1 %vm1192_vm7, %v1187_v20  ;;  %6906 = vmatprep.mubr.msk.f32.mxu0 %vm1192_vm7, %v1187_v20  ;;  %v9184_v20 = vpack.c.bf16 %v976_v11, %v972_v8  ;;  %v1013_v8 = vld [vmem:[%s16769_s3 + $0x288] sm:$0xff]  ;;  %v1016_v17 = vld [vmem:[%s16769_s3 + $0x2a0] sm:$0xff] }
 0x136   : > { %9171 = vmatprep.subr.bf16.mxu1 %v9170_v36  ;;  %9231 = vmatprep.subr.bf16.mxu0 %v9230_v37  ;;  %v9188_v36 = vpack.c.bf16 %v984_v26, %v980_v25  ;;  %v9248_v37 = vpack.c.bf16 %v986_v30, %v982_v29  ;;  %v1017_v11 = vld [vmem:[%s16769_s3 + $0x2a8] sm:$0xff]  ;;  %v9204_v29 = vpack.c.bf16 %v1016_v17, %v1012_v16  ;;  %v1032_v45 = vld [vmem:[%s16769_s3 + $0x320] sm:$0xff] }
 0x137   : > { %1276 = vmatmul.mubr.f32.gmra.mrb[4].mxu1 %v1185_v18  ;;  %1359 = vmatmul.mubr.f32.gmra.mrb[10].mxu0 %v1185_v18  ;;  %v983_v18 = vld [vmem:[%s16769_s3 + $0x198] sm:$0xff]  ;;  %v1021_v25 = vld [vmem:[%s16769_s3 + $0x2c8] sm:$0xff]  ;;  %v1036_v59 = vld [vmem:[%s16769_s3 + $0x340] sm:$0xff] }
 0x138   : > { %9173 = vmatpush1.bf16.msra.mxu1 %v9172_v42  ;;  %9233 = vmatpush1.bf16.msra.mxu0 %v9232_v43  ;;  %v9246_v28 = vpack.c.bf16 %v987_v19, %v983_v18  ;;  %v990_v42 = vld [vmem:[%s16769_s3 + $0x1d0] sm:$0xff]  ;;  %v9202_v18 = vpack.c.bf16 %v1017_v11, %v1013_v8  ;;  %v1025_v26 = vld [vmem:[%s16769_s3 + $0x2e8] sm:$0xff]  ;;  %v1040_v60 = vld [vmem:[%s16769_s3 + $0x360] sm:$0xff] }
 0x139   : > { %6907 = vmatprep.mubr.msk.f32.mxu1 %vm1192_vm7, %v11777_v49  ;;  %6910 = vmatprep.mubr.msk.f32.mxu0 %vm1192_vm7, %v11777_v49  ;;  %v994_v43 = vld [vmem:[%s16769_s3 + $0x1f0] sm:$0xff]  ;;  %v9206_v34 = vpack.c.bf16 %v1025_v26, %v1021_v25  ;;  %v1049_v1 = vld [vmem:[%s16769_s3 + $0x3a8] sm:$0xff]  ;;  %v1044_v8 = vld [vmem:[%s16769_s3 + $0x380] sm:$0xff] }
 0x13a   : > { %9175 = vmatprep.subr.bf16.mxu1 %v9174_v50  ;;  %9235 = vmatprep.subr.bf16.mxu0 %v9234_v52  ;;  %v9252_v50 = vpack.c.bf16 %v994_v43, %v990_v42  ;;  %v996_v52 = vld [vmem:[%s16769_s3 + $0x200] sm:$0xff]  ;;  %v9208_v42 = vpack.c.bf16 %v1024_v33, %v1020_v32  ;;  %v6914_v16 = vld [vmem:[%s16769_s3 + $0x788] sm:$0xff] }
 0x13b   : > { %v9196_v31 = vpack.c.bf16 %v1000_v53, %v996_v52  ;;  %v1037_v52 = vld [vmem:[%s16769_s3 + $0x348] sm:$0xff]  ;;  %v1048_v11 = vld [vmem:[%s16769_s3 + $0x3a0] sm:$0xff] }
 0x13c   : > { %9177 = vmatpush1.bf16.msra.mxu1 %v9176_v57  ;;  %9237 = vmatpush1.bf16.msra.mxu0 %v9236_v58  ;;  %v998_v57 = vld [vmem:[%s16769_s3 + $0x210] sm:$0xff]  ;;  %v1041_v53 = vld [vmem:[%s16769_s3 + $0x368] sm:$0xff]  ;;  %v6921_v38 = vld [vmem:[%s16769_s3 + $0x7c0] sm:$0xff] }
 0x13d   : > { %9179 = vmatprep.subr.bf16.mxu1 %v9178_v61  ;;  %9239 = vmatprep.subr.bf16.mxu0 %v9238_v62  ;;  %v1002_v58 = vld [vmem:[%s16769_s3 + $0x230] sm:$0xff]  ;;  %v1007_v61 = vld [vmem:[%s16769_s3 + $0x258] sm:$0xff]  ;;  %v6918_v17 = vld [vmem:[%s16769_s3 + $0x7a8] sm:$0xff] }
 0x13e   : > { %v1011_v62 = vld [vmem:[%s16769_s3 + $0x278] sm:$0xff]  ;;  %v9256_v63 = vpack.c.bf16 %v1002_v58, %v998_v57  ;;  %v9212_v57 = vpack.c.bf16 %v1032_v45, %v1028_v44  ;;  %v9282_v25 = vpack.c.bf16 %v6918_v17, %v6914_v16  ;;  %v6922_v32 = vld [vmem:[%s16769_s3 + $0x7c8] sm:$0xff]  ;;  %v6925_v21 = vld [vmem:[%s16769_s3 + $0x7e0] sm:$0xff] }
 0x13f   : > { %v9258_v4 = vpack.c.bf16 %v1011_v62, %v1007_v61  ;;  %v9214_v61 = vpack.c.bf16 %v1041_v53, %v1037_v52  ;;  %v6926_v33 = vld [vmem:[%s16769_s3 + $0x7e8] sm:$0xff]  ;;  %v6929_v52 = vld [vmem:[%s16769_s3 + $0x800] sm:$0xff]  ;;  %v6952_v16 = vld [vmem:[%s16769_s3 + $0x8b8] sm:$0xff] }
 0x140   : > { %9181 = vmatpush1.bf16.msra.mxu1 %v9180_v5  ;;  %9241 = vmatpush1.bf16.msra.mxu0 %v9240_v6  ;;  %v1006_v5 = vld [vmem:[%s16769_s3 + $0x250] sm:$0xff]  ;;  %v6930_v44 = vld [vmem:[%s16769_s3 + $0x808] sm:$0xff]  ;;  %v6933_v53 = vld [vmem:[%s16769_s3 + $0x820] sm:$0xff] }
 0x141   : > { %9183 = vmatprep.subr.bf16.mxu1 %v9182_v12  ;;  %9243 = vmatprep.subr.bf16.mxu0 %v9242_v13  ;;  %v1010_v6 = vld [vmem:[%s16769_s3 + $0x270] sm:$0xff]  ;;  %v1015_v12 = vld [vmem:[%s16769_s3 + $0x298] sm:$0xff]  ;;  %v6934_v45 = vld [vmem:[%s16769_s3 + $0x828] sm:$0xff] }
 0x142   : > { %v1019_v13 = vld [vmem:[%s16769_s3 + $0x2b8] sm:$0xff]  ;;  %v9260_v15 = vpack.c.bf16 %v1010_v6, %v1006_v5  ;;  %v9216_v5 = vpack.c.bf16 %v1040_v60, %v1036_v59  ;;  %v6938_v59 = vld [vmem:[%s16769_s3 + $0x848] sm:$0xff]  ;;  %v1662_v60 = vrot.slane %v11789_v54, 2 }
 0x143   : > { %v9262_v19 = vpack.c.bf16 %v1019_v13, %v1015_v12  ;;  %v9218_v12 = vpack.c.bf16 %v1049_v1, %v1045_v0  ;;  %v1661_v0 = vrot.slane %v11777_v49, 2 }
 0x144   : > { %9185 = vmatpush1.bf16.msra.mxu1 %v9184_v20  ;;  %9245 = vmatpush1.bf16.msra.mxu0 %v9244_v24  ;;  %v1014_v20 = vld [vmem:[%s16769_s3 + $0x290] sm:$0xff] }
 0x145   : > { %9187 = vmatprep.subr.bf16.mxu1 %v9186_v27  ;;  %9247 = vmatprep.subr.bf16.mxu0 %v9246_v28  ;;  %v1018_v24 = vld [vmem:[%s16769_s3 + $0x2b0] sm:$0xff]  ;;  %v1023_v27 = vld [vmem:[%s16769_s3 + $0x2d8] sm:$0xff] }
 0x146   : > { %v1027_v28 = vld [vmem:[%s16769_s3 + $0x2f8] sm:$0xff]  ;;  %v9264_v30 = vpack.c.bf16 %v1018_v24, %v1014_v20  ;;  %v9220_v20 = vpack.c.bf16 %v1048_v11, %v1044_v8  ;;  %v6939_v8 = vld [vmem:[%s16769_s3 + $0x850] sm:$0xff] }
 0x147   : > { %v9266_v35 = vpack.c.bf16 %v1027_v28, %v1023_v27  ;;  %v6913_v27 = vld [vmem:[%s16769_s3 + $0x780] sm:$0xff]  ;;  %v6943_v11 = vld [vmem:[%s16769_s3 + $0x870] sm:$0xff] }
 0x148   : > { %9189 = vmatpush1.bf16.msra.mxu1 %v9188_v36  ;;  %9249 = vmatpush1.bf16.msra.mxu0 %v9248_v37  ;;  %v1022_v36 = vld [vmem:[%s16769_s3 + $0x2d0] sm:$0xff]  ;;  %v6917_v28 = vld [vmem:[%s16769_s3 + $0x7a0] sm:$0xff] }
 0x149   : > { %9191 = vmatprep.subr.bf16.mxu1 %v9190_v40  ;;  %9251 = vmatprep.subr.bf16.mxu0 %v9250_v41  ;;  %v1026_v37 = vld [vmem:[%s16769_s3 + $0x2f0] sm:$0xff]  ;;  %v1031_v40 = vld [vmem:[%s16769_s3 + $0x318] sm:$0xff] }
 0x14a   : > { %v1035_v41 = vld [vmem:[%s16769_s3 + $0x338] sm:$0xff]  ;;  %v9268_v43 = vpack.c.bf16 %v1026_v37, %v1022_v36  ;;  %v9284_v36 = vpack.c.bf16 %v6917_v28, %v6913_v27  ;;  %v6951_v27 = vld [vmem:[%s16769_s3 + $0x8b0] sm:$0xff]  ;;  %v6954_v28 = vld [vmem:[%s16769_s3 + $0x8c8] sm:$0xff] }
 0x14b   : > { %v9270_v47 = vpack.c.bf16 %v1035_v41, %v1031_v40  ;;  %v9286_v40 = vpack.c.bf16 %v6926_v33, %v6922_v32  ;;  %v6960_v32 = vld [vmem:[%s16769_s3 + $0x8f8] sm:$0xff] }
 0x14c   : > { %9193 = vmatpush1.bf16.msra.mxu1 %v9192_v48  ;;  %9253 = vmatpush1.bf16.msra.mxu0 %v9252_v50  ;;  %v1030_v48 = vld [vmem:[%s16769_s3 + $0x310] sm:$0xff] }
 0x14d   : > { %9195 = vmatprep.subr.bf16.mxu1 %v9194_v55  ;;  %9255 = vmatprep.subr.bf16.mxu0 %v9254_v56  ;;  %v1034_v50 = vld [vmem:[%s16769_s3 + $0x330] sm:$0xff]  ;;  %v1039_v55 = vld [vmem:[%s16769_s3 + $0x358] sm:$0xff] }
 0x14e   : > { %v1043_v56 = vld [vmem:[%s16769_s3 + $0x378] sm:$0xff]  ;;  %v9272_v58 = vpack.c.bf16 %v1034_v50, %v1030_v48  ;;  %v9288_v48 = vpack.c.bf16 %v6925_v21, %v6921_v38  ;;  %v6955_v21 = vld [vmem:[%s16769_s3 + $0x8d0] sm:$0xff] }
 0x14f   : > { %v9274_v62 = vpack.c.bf16 %v1043_v56, %v1039_v55  ;;  %v9290_v55 = vpack.c.bf16 %v6934_v45, %v6930_v44  ;;  %v6968_v44 = vld [vmem:[%s16769_s3 + $0x938] sm:$0xff] }
 0x150   : > { %9197 = vmatpush1.bf16.msra.mxu1 %v9196_v31  ;;  %9257 = vmatpush1.bf16.msra.mxu0 %v9256_v63  ;;  %v1038_v31 = vld [vmem:[%s16769_s3 + $0x350] sm:$0xff] }
 0x151   : > { %9199 = vmatprep.subr.bf16.mxu1 %v9198_v2  ;;  %9259 = vmatprep.subr.bf16.mxu0 %v9258_v4  ;;  %v1042_v63 = vld [vmem:[%s16769_s3 + $0x370] sm:$0xff]  ;;  %v1047_v2 = vld [vmem:[%s16769_s3 + $0x398] sm:$0xff] }
 0x152   : > { %v1051_v4 = vld [vmem:[%s16769_s3 + $0x3b8] sm:$0xff]  ;;  %v9276_v6 = vpack.c.bf16 %v1042_v63, %v1038_v31  ;;  %v9292_v63 = vpack.c.bf16 %v6933_v53, %v6929_v52  ;;  %v6963_v53 = vld [vmem:[%s16769_s3 + $0x910] sm:$0xff] }
 0x153   : > { %v9278_v13 = vpack.c.bf16 %v1051_v4, %v1047_v2  ;;  %v6944_v31 = vld [vmem:[%s16769_s3 + $0x878] sm:$0xff]  ;;  %v6937_v2 = vld [vmem:[%s16769_s3 + $0x840] sm:$0xff] }
 0x154   : > { %9201 = vmatpush1.bf16.msra.mxu1 %v9200_v14  ;;  %9261 = vmatpush1.bf16.msra.mxu0 %v9260_v15  ;;  %v1046_v14 = vld [vmem:[%s16769_s3 + $0x390] sm:$0xff]  ;;  %v6941_v4 = vld [vmem:[%s16769_s3 + $0x860] sm:$0xff] }
 0x155   : > { %9203 = vmatprep.subr.bf16.mxu1 %v9202_v18  ;;  %9263 = vmatprep.subr.bf16.mxu0 %v9262_v19  ;;  %v1050_v15 = vld [vmem:[%s16769_s3 + $0x3b0] sm:$0xff]  ;;  %v6916_v18 = vld [vmem:[%s16769_s3 + $0x798] sm:$0xff]  ;;  %v9296_v17 = vpack.c.bf16 %v6941_v4, %v6937_v2 }
 0x156   : > { %v6920_v19 = vld [vmem:[%s16769_s3 + $0x7b8] sm:$0xff]  ;;  %v9280_v24 = vpack.c.bf16 %v1050_v15, %v1046_v14  ;;  %v6950_v14 = vld [vmem:[%s16769_s3 + $0x8a8] sm:$0xff]  ;;  %v6971_v2 = vld [vmem:[%s16769_s3 + $0x950] sm:$0xff] }
 0x157   : > { %v9342_v26 = vpack.c.bf16 %v6920_v19, %v6916_v18  ;;  %v6948_v15 = vld [vmem:[%s16769_s3 + $0x898] sm:$0xff]  ;;  %v9356_v18 = vpack.c.bf16 %v6943_v11, %v6939_v8  ;;  %v6945_v19 = vld [vmem:[%s16769_s3 + $0x880] sm:$0xff]  ;;  %v6975_v4 = vld [vmem:[%s16769_s3 + $0x970] sm:$0xff] }
 0x158   : > { %9205 = vmatpush1.bf16.msra.mxu1 %v9204_v29  ;;  %9265 = vmatpush1.bf16.msra.mxu0 %v9264_v30  ;;  %v6915_v29 = vld [vmem:[%s16769_s3 + $0x790] sm:$0xff]  ;;  %v6980_v8 = vld [vmem:[%s16769_s3 + $0x998] sm:$0xff] }
 0x159   : > { %9207 = vmatprep.subr.bf16.mxu1 %v9206_v34  ;;  %9267 = vmatprep.subr.bf16.mxu0 %v9266_v35  ;;  %v6919_v30 = vld [vmem:[%s16769_s3 + $0x7b0] sm:$0xff]  ;;  %v6924_v34 = vld [vmem:[%s16769_s3 + $0x7d8] sm:$0xff] }
 0x15a   : > { %v6928_v35 = vld [vmem:[%s16769_s3 + $0x7f8] sm:$0xff]  ;;  %v9344_v37 = vpack.c.bf16 %v6919_v30, %v6915_v29  ;;  %v6958_v29 = vld [vmem:[%s16769_s3 + $0x8e8] sm:$0xff] }
 0x15b   : > { %v9346_v41 = vpack.c.bf16 %v6928_v35, %v6924_v34  ;;  %v6956_v30 = vld [vmem:[%s16769_s3 + $0x8d8] sm:$0xff]  ;;  %v6953_v35 = vld [vmem:[%s16769_s3 + $0x8c0] sm:$0xff] }
 0x15c   : > { %9209 = vmatpush1.bf16.msra.mxu1 %v9208_v42  ;;  %9269 = vmatpush1.bf16.msra.mxu0 %v9268_v43  ;;  %v6923_v42 = vld [vmem:[%s16769_s3 + $0x7d0] sm:$0xff]  ;;  %v9362_v38 = vpack.c.bf16 %v6960_v32, %v6956_v30  ;;  %v6984_v11 = vld [vmem:[%s16769_s3 + $0x9b8] sm:$0xff]  ;;  %v6989_v30 = vld [vmem:[%s16769_s3 + $0x9e0] sm:$0xff] }
 0x15d   : > { %9211 = vmatprep.subr.bf16.mxu1 %v9210_v46  ;;  %9271 = vmatprep.subr.bf16.mxu0 %v9270_v47  ;;  %v6927_v43 = vld [vmem:[%s16769_s3 + $0x7f0] sm:$0xff]  ;;  %v6932_v46 = vld [vmem:[%s16769_s3 + $0x818] sm:$0xff] }
 0x15e   : > { %v6936_v47 = vld [vmem:[%s16769_s3 + $0x838] sm:$0xff]  ;;  %v9348_v50 = vpack.c.bf16 %v6927_v43, %v6923_v42  ;;  %v6966_v42 = vld [vmem:[%s16769_s3 + $0x928] sm:$0xff] }
 0x15f   : > { %v9350_v56 = vpack.c.bf16 %v6936_v47, %v6932_v46  ;;  %v6964_v43 = vld [vmem:[%s16769_s3 + $0x918] sm:$0xff]  ;;  %v6961_v47 = vld [vmem:[%s16769_s3 + $0x900] sm:$0xff] }
 0x160   : > { %9213 = vmatpush1.bf16.msra.mxu1 %v9212_v57  ;;  %9273 = vmatpush1.bf16.msra.mxu0 %v9272_v58  ;;  %v6931_v57 = vld [vmem:[%s16769_s3 + $0x810] sm:$0xff]  ;;  %v9366_v52 = vpack.c.bf16 %v6968_v44, %v6964_v43  ;;  %v6997_v43 = vld [vmem:[%s16769_s3 + $0xa20] sm:$0xff] }
 0x161   : > { %9215 = vmatprep.subr.bf16.mxu1 %v9214_v61  ;;  %9275 = vmatprep.subr.bf16.mxu0 %v9274_v62  ;;  %v6935_v58 = vld [vmem:[%s16769_s3 + $0x830] sm:$0xff]  ;;  %v6942_v61 = vld [vmem:[%s16769_s3 + $0x868] sm:$0xff]  ;;  %v6940_v62 = vld [vmem:[%s16769_s3 + $0x858] sm:$0xff] }
 0x162   : > { %v9352_v1 = vpack.c.bf16 %v6935_v58, %v6931_v57  ;;  %v6974_v57 = vld [vmem:[%s16769_s3 + $0x968] sm:$0xff]  ;;  %v6972_v58 = vld [vmem:[%s16769_s3 + $0x958] sm:$0xff] }
 0x164   : > { %9217 = vmatpush1.bf16.msra.mxu1 %v9216_v5  ;;  %9277 = vmatpush1.bf16.msra.mxu0 %v9276_v6  ;;  %v9294_v5 = vpack.c.bf16 %v6942_v61, %v6938_v59  ;;  %v9354_v6 = vpack.c.bf16 %v6944_v31, %v6940_v62  ;;  %v6976_v59 = vld [vmem:[%s16769_s3 + $0x978] sm:$0xff]  ;;  %v6969_v31 = vld [vmem:[%s16769_s3 + $0x940] sm:$0xff] }
 0x165   : > { %9219 = vmatprep.subr.bf16.mxu1 %v9218_v12  ;;  %9279 = vmatprep.subr.bf16.mxu0 %v9278_v13  ;;  %v6946_v12 = vld [vmem:[%s16769_s3 + $0x888] sm:$0xff]  ;;  %v1663_v13 = vsel %vm564_vm5, %v1661_v0, %v1662_v60 }
 0x168   : > { %9221 = vmatpush1.bf16.msra.mxu1 %v9220_v20  ;;  %9281 = vmatpush1.bf16.msra.mxu0 %v9280_v24  ;;  %v6949_v20 = vld [vmem:[%s16769_s3 + $0x8a0] sm:$0xff]  ;;  %v9298_v24 = vpack.c.bf16 %v6950_v14, %v6946_v12 }
 0x169   : > { %9283 = vmatprep.subr.bf16.mxu1 %v9282_v25  ;;  %9343 = vmatprep.subr.bf16.mxu0 %v9342_v26  ;;  %v9358_v25 = vpack.c.bf16 %v6952_v16, %v6948_v15  ;;  %v6947_v26 = vld [vmem:[%s16769_s3 + $0x890] sm:$0xff]  ;;  %v9300_v33 = vpack.c.bf16 %v6949_v20, %v6945_v19  ;;  %v6977_v14 = vld [vmem:[%s16769_s3 + $0x980] sm:$0xff]  ;;  %v6986_v20 = vld [vmem:[%s16769_s3 + $0x9c8] sm:$0xff] }
 0x16a   : > { %v9360_v34 = vpack.c.bf16 %v6951_v27, %v6947_v26  ;;  %v6981_v15 = vld [vmem:[%s16769_s3 + $0x9a0] sm:$0xff]  ;;  %v6983_v19 = vld [vmem:[%s16769_s3 + $0x9b0] sm:$0xff]  ;;  %v6992_v26 = vld [vmem:[%s16769_s3 + $0x9f8] sm:$0xff] }
 0x16b   : > { %1436 = vmatmul.mubr.f32.vlgmr.msra.gmra.mrb[0].mxu1 %v11779_v51  ;;  %1519 = vmatmul.mubr.f32.vlgmr.msra.gmra.mrb[6].mxu0 %v11779_v51  ;;  %v9316_v27 = vpack.c.bf16 %v6981_v15, %v6977_v14  ;;  %v7015_v14 = vld [vmem:[%s16769_s3 + $0xab0] sm:$0xff]  ;;  %v7018_v15 = vld [vmem:[%s16769_s3 + $0xac8] sm:$0xff] }
 0x16c   : > { %6908 = vmatprep.mubr.msk.f32.mxu1 %vm1192_vm7, %v11789_v54  ;;  %6911 = vmatprep.mubr.msk.f32.mxu0 %vm1192_vm7, %v11789_v54 }
 0x16d   : > { %9285 = vmatpush1.bf16.msra.mxu1 %v9284_v36  ;;  %9345 = vmatpush1.bf16.msra.mxu0 %v9344_v37  ;;  %v6957_v36 = vld [vmem:[%s16769_s3 + $0x8e0] sm:$0xff]  ;;  %v9302_v37 = vpack.c.bf16 %v6958_v29, %v6954_v28 }
 0x16e   : > { %9287 = vmatprep.subr.bf16.mxu1 %v9286_v40  ;;  %9347 = vmatprep.subr.bf16.mxu0 %v9346_v41  ;;  %v6959_v40 = vld [vmem:[%s16769_s3 + $0x8f0] sm:$0xff]  ;;  %v6962_v41 = vld [vmem:[%s16769_s3 + $0x908] sm:$0xff]  ;;  %v9304_v45 = vpack.c.bf16 %v6957_v36, %v6953_v35  ;;  %v6985_v29 = vld [vmem:[%s16769_s3 + $0x9c0] sm:$0xff] }
 0x16f   : > { %1442 = vmatmul.mubr.f32.gmra.mrb[2].mxu1 %v11781_v23  ;;  %1525 = vmatmul.mubr.f32.gmra.mrb[8].mxu0 %v11781_v23  ;;  %v9364_v46 = vpack.c.bf16 %v6959_v40, %v6955_v21  ;;  %v6991_v35 = vld [vmem:[%s16769_s3 + $0x9f0] sm:$0xff]  ;;  %v6994_v36 = vld [vmem:[%s16769_s3 + $0xa08] sm:$0xff]  ;;  %v7000_v21 = vld [vmem:[%s16769_s3 + $0xa38] sm:$0xff]  ;;  %v9320_v40 = vpack.c.bf16 %v6989_v30, %v6985_v29 }
 0x170   : > { %6909 = vmatprep.mubr.msk.f32.mxu1 %vm1192_vm7, %v11818_v9  ;;  %6912 = vmatprep.mubr.msk.f32.mxu0 %vm1192_vm7, %v11818_v9  ;;  %v7023_v29 = vld [vmem:[%s16769_s3 + $0xaf0] sm:$0xff]  ;;  %v7026_v30 = vld [vmem:[%s16769_s3 + $0xb08] sm:$0xff] }
 0x171   : > { %9289 = vmatpush1.bf16.msra.mxu1 %v9288_v48  ;;  %9349 = vmatpush1.bf16.msra.mxu0 %v9348_v50  ;;  %v6965_v48 = vld [vmem:[%s16769_s3 + $0x920] sm:$0xff]  ;;  %v9306_v50 = vpack.c.bf16 %v6966_v42, %v6962_v41 }
 0x172   : > { %9291 = vmatprep.subr.bf16.mxu1 %v9290_v55  ;;  %9351 = vmatprep.subr.bf16.mxu0 %v9350_v56  ;;  %v6967_v55 = vld [vmem:[%s16769_s3 + $0x930] sm:$0xff]  ;;  %v6970_v56 = vld [vmem:[%s16769_s3 + $0x948] sm:$0xff]  ;;  %v9308_v61 = vpack.c.bf16 %v6965_v48, %v6961_v47  ;;  %v6993_v42 = vld [vmem:[%s16769_s3 + $0xa00] sm:$0xff] }
 0x173   : > { %1448 = vmatmul.mubr.f32.gmra.mrb[4].mxu1 %v11812_v3  ;;  %1531 = vmatmul.mubr.f32.gmra.mrb[10].mxu0 %v11812_v3  ;;  %v9368_v62 = vpack.c.bf16 %v6967_v55, %v6963_v53  ;;  %v9310_v0 = vpack.c.bf16 %v6974_v57, %v6970_v56  ;;  %v6999_v47 = vld [vmem:[%s16769_s3 + $0xa30] sm:$0xff]  ;;  %v7002_v48 = vld [vmem:[%s16769_s3 + $0xa48] sm:$0xff]  ;;  %v7008_v53 = vld [vmem:[%s16769_s3 + $0xa78] sm:$0xff]  ;;  %v9324_v55 = vpack.c.bf16 %v6997_v43, %v6993_v42 }
 0x174   : > { %7033 = vmatprep.mubr.msk.f32.mxu1 %vm1192_vm7, %v1663_v13  ;;  %7036 = vmatprep.mubr.msk.f32.mxu0 %vm1192_vm7, %v1663_v13  ;;  %v9372_v13 = vpack.c.bf16 %v6975_v4, %v6971_v2  ;;  %v7001_v57 = vld [vmem:[%s16769_s3 + $0xa40] sm:$0xff]  ;;  %v7016_v2 = vld [vmem:[%s16769_s3 + $0xab8] sm:$0xff]  ;;  %v7031_v42 = vld [vmem:[%s16769_s3 + $0xb30] sm:$0xff] }
 0x175   : > { %9293 = vmatpush1.bf16.msra.mxu1 %v9292_v63  ;;  %9353 = vmatpush1.bf16.msra.mxu0 %v9352_v1  ;;  %v6973_v63 = vld [vmem:[%s16769_s3 + $0x960] sm:$0xff]  ;;  %v9370_v1 = vpack.c.bf16 %v6976_v59, %v6972_v58  ;;  %v7040_v43 = vld [vmem:[%s16769_s3 + $0xb48] sm:$0xff] }
 0x176   : > { %9295 = vmatprep.subr.bf16.mxu1 %v9294_v5  ;;  %9355 = vmatprep.subr.bf16.mxu0 %v9354_v6  ;;  %v6978_v5 = vld [vmem:[%s16769_s3 + $0x988] sm:$0xff]  ;;  %v9312_v12 = vpack.c.bf16 %v6973_v63, %v6969_v31  ;;  %v7005_v58 = vld [vmem:[%s16769_s3 + $0xa60] sm:$0xff]  ;;  %v7007_v31 = vld [vmem:[%s16769_s3 + $0xa70] sm:$0xff] }
 0x177   : > { %v6982_v6 = vld [vmem:[%s16769_s3 + $0x9a8] sm:$0xff]  ;;  %v9328_v4 = vpack.c.bf16 %v7005_v58, %v7001_v57  ;;  %v7041_v57 = vld [vmem:[%s16769_s3 + $0xb50] sm:$0xff] }
 0x178   : > { %v9314_v16 = vpack.c.bf16 %v6982_v6, %v6978_v5  ;;  %v7010_v63 = vld [vmem:[%s16769_s3 + $0xa88] sm:$0xff]  ;;  %v7009_v6 = vld [vmem:[%s16769_s3 + $0xa80] sm:$0xff]  ;;  %v7045_v58 = vld [vmem:[%s16769_s3 + $0xb70] sm:$0xff] }
 0x179   : > { %9297 = vmatpush1.bf16.msra.mxu1 %v9296_v17  ;;  %9357 = vmatpush1.bf16.msra.mxu0 %v9356_v18  ;;  %v9374_v17 = vpack.c.bf16 %v6984_v11, %v6980_v8  ;;  %v6979_v18 = vld [vmem:[%s16769_s3 + $0x990] sm:$0xff]  ;;  %v7013_v8 = vld [vmem:[%s16769_s3 + $0xaa0] sm:$0xff] }
 0x17a   : > { %9299 = vmatprep.subr.bf16.mxu1 %v9298_v24  ;;  %9359 = vmatprep.subr.bf16.mxu0 %v9358_v25  ;;  %v6990_v24 = vld [vmem:[%s16769_s3 + $0x9e8] sm:$0xff]  ;;  %v6988_v25 = vld [vmem:[%s16769_s3 + $0x9d8] sm:$0xff]  ;;  %v9376_v28 = vpack.c.bf16 %v6983_v19, %v6979_v18  ;;  %v9332_v19 = vpack.c.bf16 %v7013_v8, %v7009_v6  ;;  %v1664_v8 = vrot.slane %v11812_v3, 2 }
 0x17b   : > { %v9318_v32 = vpack.c.bf16 %v6990_v24, %v6986_v20  ;;  %v7024_v18 = vld [vmem:[%s16769_s3 + $0xaf8] sm:$0xff]  ;;  %v7017_v24 = vld [vmem:[%s16769_s3 + $0xac0] sm:$0xff] }
 0x17d   : > { %9301 = vmatpush1.bf16.msra.mxu1 %v9300_v33  ;;  %9361 = vmatpush1.bf16.msra.mxu0 %v9360_v34  ;;  %v9378_v33 = vpack.c.bf16 %v6992_v26, %v6988_v25  ;;  %v6987_v34 = vld [vmem:[%s16769_s3 + $0x9d0] sm:$0xff]  ;;  %v7021_v25 = vld [vmem:[%s16769_s3 + $0xae0] sm:$0xff] }
 0x17e   : > { %9303 = vmatprep.subr.bf16.mxu1 %v9302_v37  ;;  %9363 = vmatprep.subr.bf16.mxu0 %v9362_v38  ;;  %v6998_v37 = vld [vmem:[%s16769_s3 + $0xa28] sm:$0xff]  ;;  %v6996_v38 = vld [vmem:[%s16769_s3 + $0xa18] sm:$0xff]  ;;  %v9380_v41 = vpack.c.bf16 %v6991_v35, %v6987_v34  ;;  %v9336_v35 = vpack.c.bf16 %v7021_v25, %v7017_v24  ;;  %v7055_v24 = vld [vmem:[%s16769_s3 + $0xbc0] sm:$0xff] }
 0x17f   : > { %v9322_v44 = vpack.c.bf16 %v6998_v37, %v6994_v36  ;;  %v7032_v34 = vld [vmem:[%s16769_s3 + $0xb38] sm:$0xff]  ;;  %v7025_v37 = vld [vmem:[%s16769_s3 + $0xb00] sm:$0xff] }
 0x180   : > { %v7059_v25 = vld [vmem:[%s16769_s3 + $0xbe0] sm:$0xff] }
 0x181   : > { %9305 = vmatpush1.bf16.msra.mxu1 %v9304_v45  ;;  %9365 = vmatpush1.bf16.msra.mxu0 %v9364_v46  ;;  %v9382_v45 = vpack.c.bf16 %v7000_v21, %v6996_v38  ;;  %v6995_v46 = vld [vmem:[%s16769_s3 + $0xa10] sm:$0xff]  ;;  %v7029_v38 = vld [vmem:[%s16769_s3 + $0xb20] sm:$0xff] }
 0x182   : > { %9307 = vmatprep.subr.bf16.mxu1 %v9306_v50  ;;  %9367 = vmatprep.subr.bf16.mxu0 %v9366_v52  ;;  %v7006_v50 = vld [vmem:[%s16769_s3 + $0xa68] sm:$0xff]  ;;  %v7004_v52 = vld [vmem:[%s16769_s3 + $0xa58] sm:$0xff]  ;;  %v9384_v56 = vpack.c.bf16 %v6999_v47, %v6995_v46  ;;  %v9340_v47 = vpack.c.bf16 %v7029_v38, %v7025_v37  ;;  %v9412_v37 = vpack.c.bf16 %v7059_v25, %v7055_v24  ;;  %v1979_v38 = vrot.slane %v11777_v49, 3 }
 0x183   : > { %v9326_v59 = vpack.c.bf16 %v7006_v50, %v7002_v48  ;;  %v7046_v46 = vld [vmem:[%s16769_s3 + $0xb78] sm:$0xff] }
 0x185   : > { %9309 = vmatpush1.bf16.msra.mxu1 %v9308_v61  ;;  %9369 = vmatpush1.bf16.msra.mxu0 %v9368_v62  ;;  %v9386_v61 = vpack.c.bf16 %v7008_v53, %v7004_v52  ;;  %v7003_v62 = vld [vmem:[%s16769_s3 + $0xa50] sm:$0xff]  ;;  %v7039_v53 = vld [vmem:[%s16769_s3 + $0xb40] sm:$0xff] }
 0x186   : > { %9311 = vmatprep.subr.bf16.mxu1 %v9310_v0  ;;  %9371 = vmatprep.subr.bf16.mxu0 %v9370_v1  ;;  %v7014_v0 = vld [vmem:[%s16769_s3 + $0xaa8] sm:$0xff]  ;;  %v7012_v1 = vld [vmem:[%s16769_s3 + $0xa98] sm:$0xff]  ;;  %v9388_v5 = vpack.c.bf16 %v7007_v31, %v7003_v62 }
 0x187   : > { %v9330_v11 = vpack.c.bf16 %v7014_v0, %v7010_v63  ;;  %v7052_v62 = vld [vmem:[%s16769_s3 + $0xba8] sm:$0xff]  ;;  %v7050_v31 = vld [vmem:[%s16769_s3 + $0xb98] sm:$0xff]  ;;  %v1658_v0 = vrot.slane %v11779_v51, 2 }
 0x188   : > { %v7054_v63 = vld [vmem:[%s16769_s3 + $0xbb8] sm:$0xff] }
 0x189   : > { %9313 = vmatpush1.bf16.msra.mxu1 %v9312_v12  ;;  %9373 = vmatpush1.bf16.msra.mxu0 %v9372_v13  ;;  %v9390_v12 = vpack.c.bf16 %v7016_v2, %v7012_v1  ;;  %v7011_v13 = vld [vmem:[%s16769_s3 + $0xa90] sm:$0xff]  ;;  %v9464_v2 = vpack.c.bf16 %v7045_v58, %v7041_v57  ;;  %v7075_v57 = vld [vmem:[%s16769_s3 + $0xc60] sm:$0xff] }
 0x18a   : > { %9315 = vmatprep.subr.bf16.mxu1 %v9314_v16  ;;  %9375 = vmatprep.subr.bf16.mxu0 %v9374_v17  ;;  %v7022_v16 = vld [vmem:[%s16769_s3 + $0xae8] sm:$0xff]  ;;  %v7020_v17 = vld [vmem:[%s16769_s3 + $0xad8] sm:$0xff]  ;;  %v9392_v20 = vpack.c.bf16 %v7015_v14, %v7011_v13  ;;  %v7049_v13 = vld [vmem:[%s16769_s3 + $0xb90] sm:$0xff] }
 0x18b   : > { %v9334_v26 = vpack.c.bf16 %v7022_v16, %v7018_v15  ;;  %v7053_v14 = vld [vmem:[%s16769_s3 + $0xbb0] sm:$0xff]  ;;  %v7056_v15 = vld [vmem:[%s16769_s3 + $0xbc8] sm:$0xff] }
 0x18d   : > { %9317 = vmatpush1.bf16.msra.mxu1 %v9316_v27  ;;  %9377 = vmatpush1.bf16.msra.mxu0 %v9376_v28  ;;  %v9394_v27 = vpack.c.bf16 %v7024_v18, %v7020_v17  ;;  %v7019_v28 = vld [vmem:[%s16769_s3 + $0xad0] sm:$0xff]  ;;  %v7060_v17 = vld [vmem:[%s16769_s3 + $0xbe8] sm:$0xff]  ;;  %v7058_v18 = vld [vmem:[%s16769_s3 + $0xbd8] sm:$0xff] }
 0x18e   : > { %9319 = vmatprep.subr.bf16.mxu1 %v9318_v32  ;;  %9379 = vmatprep.subr.bf16.mxu0 %v9378_v33  ;;  %v7030_v32 = vld [vmem:[%s16769_s3 + $0xb28] sm:$0xff]  ;;  %v7028_v33 = vld [vmem:[%s16769_s3 + $0xb18] sm:$0xff]  ;;  %v9396_v36 = vpack.c.bf16 %v7023_v29, %v7019_v28  ;;  %v7057_v29 = vld [vmem:[%s16769_s3 + $0xbd0] sm:$0xff] }
 0x18f   : > { %v9338_v21 = vpack.c.bf16 %v7030_v32, %v7026_v30  ;;  %v7061_v30 = vld [vmem:[%s16769_s3 + $0xbf0] sm:$0xff]  ;;  %v7064_v32 = vld [vmem:[%s16769_s3 + $0xc08] sm:$0xff] }
 0x191   : > { %9321 = vmatpush1.bf16.msra.mxu1 %v9320_v40  ;;  %9381 = vmatpush1.bf16.msra.mxu0 %v9380_v41  ;;  %v9398_v40 = vpack.c.bf16 %v7032_v34, %v7028_v33  ;;  %v7027_v41 = vld [vmem:[%s16769_s3 + $0xb10] sm:$0xff]  ;;  %v1980_v33 = vrot.slane %v11789_v54, 3  ;;  %v7068_v34 = vld [vmem:[%s16769_s3 + $0xc28] sm:$0xff] }
 0x192   : > { %9323 = vmatprep.subr.bf16.mxu1 %v9322_v44  ;;  %9383 = vmatprep.subr.bf16.mxu0 %v9382_v45  ;;  %v7044_v44 = vld [vmem:[%s16769_s3 + $0xb68] sm:$0xff]  ;;  %v7042_v45 = vld [vmem:[%s16769_s3 + $0xb58] sm:$0xff]  ;;  %v9400_v48 = vpack.c.bf16 %v7031_v42, %v7027_v41  ;;  %v7067_v41 = vld [vmem:[%s16769_s3 + $0xc20] sm:$0xff]  ;;  %v9414_v42 = vpack.c.bf16 %v7068_v34, %v7064_v32 }
 0x193   : > { %v9402_v50 = vpack.c.bf16 %v7044_v44, %v7040_v43  ;;  %v9462_v52 = vpack.c.bf16 %v7046_v46, %v7042_v45  ;;  %v7065_v44 = vld [vmem:[%s16769_s3 + $0xc10] sm:$0xff]  ;;  %v7072_v46 = vld [vmem:[%s16769_s3 + $0xc48] sm:$0xff]  ;;  %v7102_v32 = vld [vmem:[%s16769_s3 + $0xd38] sm:$0xff] }
 0x194   : > { %v7069_v45 = vld [vmem:[%s16769_s3 + $0xc30] sm:$0xff] }
 0x195   : > { %9325 = vmatpush1.bf16.msra.mxu1 %v9324_v55  ;;  %9385 = vmatpush1.bf16.msra.mxu0 %v9384_v56  ;;  %v7043_v55 = vld [vmem:[%s16769_s3 + $0xb60] sm:$0xff]  ;;  %v1659_v56 = vrot.slane %v11781_v23, 2 }
 0x196   : > { %9327 = vmatprep.subr.bf16.mxu1 %v9326_v59  ;;  %9387 = vmatprep.subr.bf16.mxu0 %v9386_v61  ;;  %v7048_v59 = vld [vmem:[%s16769_s3 + $0xb88] sm:$0xff]  ;;  %v1666_v61 = vrot.slane %v11818_v9, 2  ;;  %v9404_v1 = vpack.c.bf16 %v7043_v55, %v7039_v53  ;;  %v9476_v55 = vpack.c.bf16 %v7069_v45, %v7065_v44  ;;  %v7106_v44 = vld [vmem:[%s16769_s3 + $0xd58] sm:$0xff] }
 0x197   : > { %v1660_v6 = vsel %vm564_vm5, %v1658_v0, %v1659_v56  ;;  %v7082_v0 = vld [vmem:[%s16769_s3 + $0xc98] sm:$0xff] }
 0x198   : > { %v1667_v16 = vsel %vm564_vm5, %v1662_v60, %v1666_v61  ;;  %v9468_v60 = vpack.c.bf16 %v7053_v14, %v7049_v13  ;;  %v7085_v13 = vld [vmem:[%s16769_s3 + $0xcb0] sm:$0xff]  ;;  %v7088_v14 = vld [vmem:[%s16769_s3 + $0xcc8] sm:$0xff]  ;;  %v7110_v45 = vld [vmem:[%s16769_s3 + $0xd78] sm:$0xff] }
 0x199   : > { %9329 = vmatpush1.bf16.msra.mxu1 %v9328_v4  ;;  %9389 = vmatpush1.bf16.msra.mxu0 %v9388_v5  ;;  %v7047_v4 = vld [vmem:[%s16769_s3 + $0xb80] sm:$0xff] }
 0x19a   : > { %9331 = vmatprep.subr.bf16.mxu1 %v9330_v11  ;;  %9391 = vmatprep.subr.bf16.mxu0 %v9390_v12  ;;  %v7051_v5 = vld [vmem:[%s16769_s3 + $0xba0] sm:$0xff]  ;;  %v9406_v11 = vpack.c.bf16 %v7052_v62, %v7048_v59  ;;  %v9466_v12 = vpack.c.bf16 %v7054_v63, %v7050_v31  ;;  %v7077_v62 = vld [vmem:[%s16769_s3 + $0xc70] sm:$0xff]  ;;  %v7080_v31 = vld [vmem:[%s16769_s3 + $0xc88] sm:$0xff] }
 0x19b   : > { %v7084_v63 = vld [vmem:[%s16769_s3 + $0xca8] sm:$0xff] }
 0x19d   : > { %9333 = vmatpush1.bf16.msra.mxu1 %v9332_v19  ;;  %9393 = vmatpush1.bf16.msra.mxu0 %v9392_v20  ;;  %v7062_v19 = vld [vmem:[%s16769_s3 + $0xbf8] sm:$0xff]  ;;  %v9408_v20 = vpack.c.bf16 %v7051_v5, %v7047_v4  ;;  %v7079_v5 = vld [vmem:[%s16769_s3 + $0xc80] sm:$0xff] }
 0x19e   : > { %9335 = vmatprep.subr.bf16.mxu1 %v9334_v26  ;;  %9395 = vmatprep.subr.bf16.mxu0 %v9394_v27  ;;  %v1665_v26 = vsel %vm564_vm5, %v1659_v56, %v1664_v8  ;;  %v9410_v27 = vpack.c.bf16 %v7060_v17, %v7056_v15  ;;  %v9470_v28 = vpack.c.bf16 %v7062_v19, %v7058_v18  ;;  %v7071_v56 = vld [vmem:[%s16769_s3 + $0xc40] sm:$0xff]  ;;  %v7092_v15 = vld [vmem:[%s16769_s3 + $0xce8] sm:$0xff]  ;;  %v7094_v17 = vld [vmem:[%s16769_s3 + $0xcf8] sm:$0xff] }
 0x19f   : > { %v9426_v24 = vpack.c.bf16 %v7092_v15, %v7088_v14  ;;  %v7119_v15 = vld [vmem:[%s16769_s3 + $0xdc0] sm:$0xff] }
 0x1a1   : > { %9337 = vmatpush1.bf16.msra.mxu1 %v9336_v35  ;;  %9397 = vmatpush1.bf16.msra.mxu0 %v9396_v36  ;;  %v7066_v35 = vld [vmem:[%s16769_s3 + $0xc18] sm:$0xff] }
 0x1a2   : > { %9339 = vmatprep.subr.bf16.mxu1 %v9338_v21  ;;  %9399 = vmatprep.subr.bf16.mxu0 %v9398_v40  ;;  %v7070_v36 = vld [vmem:[%s16769_s3 + $0xc38] sm:$0xff]  ;;  %v9472_v21 = vpack.c.bf16 %v7061_v30, %v7057_v29  ;;  %v7063_v40 = vld [vmem:[%s16769_s3 + $0xc00] sm:$0xff]  ;;  %v7100_v29 = vld [vmem:[%s16769_s3 + $0xd28] sm:$0xff] }
 0x1a3   : > { %v9474_v43 = vpack.c.bf16 %v7070_v36, %v7066_v35  ;;  %v9416_v53 = vpack.c.bf16 %v7067_v41, %v7063_v40  ;;  %v7098_v30 = vld [vmem:[%s16769_s3 + $0xd18] sm:$0xff]  ;;  %v7095_v36 = vld [vmem:[%s16769_s3 + $0xd00] sm:$0xff]  ;;  %v7097_v40 = vld [vmem:[%s16769_s3 + $0xd10] sm:$0xff] }
 0x1a4   : > { %v7101_v41 = vld [vmem:[%s16769_s3 + $0xd30] sm:$0xff] }
 0x1a5   : > { %9341 = vmatpush1.bf16.msra.mxu1 %v9340_v47  ;;  %9401 = vmatpush1.bf16.msra.mxu0 %v9400_v48  ;;  %v1981_v47 = vsel %vm682_vm6, %v1979_v38, %v1980_v33  ;;  %v7076_v48 = vld [vmem:[%s16769_s3 + $0xc68] sm:$0xff] }
 0x1a6   : > { %9403 = vmatprep.subr.bf16.mxu1 %v9402_v50  ;;  %9463 = vmatprep.subr.bf16.mxu0 %v9462_v52  ;;  %v7074_v50 = vld [vmem:[%s16769_s3 + $0xc58] sm:$0xff]  ;;  %v9418_v58 = vpack.c.bf16 %v7076_v48, %v7072_v46  ;;  %v7103_v48 = vld [vmem:[%s16769_s3 + $0xd40] sm:$0xff] }
 0x1a7   : > { %v7078_v52 = vld [vmem:[%s16769_s3 + $0xc78] sm:$0xff] }
 0x1a8   : > { %1742 = vmatmul.mubr.f32.vlgmr.msra.gmra.mrb[0].mxu1 %v1660_v6  ;;  %1825 = vmatmul.mubr.f32.vlgmr.msra.gmra.mrb[6].mxu0 %v1660_v6  ;;  %v9478_v59 = vpack.c.bf16 %v7078_v52, %v7074_v50  ;;  %v7083_v6 = vld [vmem:[%s16769_s3 + $0xca0] sm:$0xff] }
 0x1a9   : > { %7034 = vmatprep.mubr.msk.f32.mxu1 %vm1192_vm7, %v1667_v16  ;;  %7037 = vmatprep.mubr.msk.f32.mxu0 %vm1192_vm7, %v1667_v16  ;;  %v7090_v16 = vld [vmem:[%s16769_s3 + $0xcd8] sm:$0xff]  ;;  %v9424_v18 = vpack.c.bf16 %v7083_v6, %v7079_v5  ;;  %v7107_v50 = vld [vmem:[%s16769_s3 + $0xd60] sm:$0xff]  ;;  %v7117_v5 = vld [vmem:[%s16769_s3 + $0xdb0] sm:$0xff] }
 0x1aa   : > { %9405 = vmatpush1.bf16.msra.mxu1 %v9404_v1  ;;  %9465 = vmatpush1.bf16.msra.mxu0 %v9464_v2  ;;  %v7086_v1 = vld [vmem:[%s16769_s3 + $0xcb8] sm:$0xff]  ;;  %v9420_v2 = vpack.c.bf16 %v7075_v57, %v7071_v56  ;;  %v9486_v25 = vpack.c.bf16 %v7094_v17, %v7090_v16  ;;  %v7109_v56 = vld [vmem:[%s16769_s3 + $0xd70] sm:$0xff]  ;;  %v7112_v57 = vld [vmem:[%s16769_s3 + $0xd88] sm:$0xff] }
 0x1ab   : > { %9407 = vmatprep.subr.bf16.mxu1 %v9406_v11  ;;  %9467 = vmatprep.subr.bf16.mxu0 %v9466_v12  ;;  %v9482_v11 = vpack.c.bf16 %v7086_v1, %v7082_v0  ;;  %v7081_v12 = vld [vmem:[%s16769_s3 + $0xc90] sm:$0xff]  ;;  %v7115_v0 = vld [vmem:[%s16769_s3 + $0xda0] sm:$0xff]  ;;  %v7120_v6 = vld [vmem:[%s16769_s3 + $0xdc8] sm:$0xff] }
 0x1ac   : > { %1748 = vmatmul.mubr.f32.gmra.mrb[2].mxu1 %v1665_v26  ;;  %1831 = vmatmul.mubr.f32.gmra.mrb[8].mxu0 %v1665_v26  ;;  %v9484_v19 = vpack.c.bf16 %v7085_v13, %v7081_v12  ;;  %v7089_v26 = vld [vmem:[%s16769_s3 + $0xcd0] sm:$0xff]  ;;  %v7126_v12 = vld [vmem:[%s16769_s3 + $0xdf8] sm:$0xff]  ;;  %v7123_v16 = vld [vmem:[%s16769_s3 + $0xde0] sm:$0xff] }
 0x1ad   : > { %7035 = vmatprep.mubr.msk.f32.mxu1 %vm1192_vm7, %v1666_v61  ;;  %7038 = vmatprep.mubr.msk.f32.mxu0 %vm1192_vm7, %v1666_v61  ;;  %v7073_v61 = vld [vmem:[%s16769_s3 + $0xc50] sm:$0xff] }
 0x1ae   : > { %9409 = vmatpush1.bf16.msra.mxu1 %v9408_v20  ;;  %9469 = vmatpush1.bf16.msra.mxu0 %v9468_v60  ;;  %v9480_v4 = vpack.c.bf16 %v7077_v62, %v7073_v61  ;;  %v7087_v20 = vld [vmem:[%s16769_s3 + $0xcc0] sm:$0xff]  ;;  %v7118_v61 = vld [vmem:[%s16769_s3 + $0xdb8] sm:$0xff]  ;;  %v9436_v62 = vpack.c.bf16 %v7107_v50, %v7103_v48  ;;  %v7141_v48 = vld [vmem:[%s16769_s3 + $0xe70] sm:$0xff] }
 0x1af   : > { %9411 = vmatprep.subr.bf16.mxu1 %v9410_v27  ;;  %9471 = vmatprep.subr.bf16.mxu0 %v9470_v28  ;;  %v7091_v60 = vld [vmem:[%s16769_s3 + $0xce0] sm:$0xff]  ;;  %v7093_v27 = vld [vmem:[%s16769_s3 + $0xcf0] sm:$0xff]  ;;  %v7096_v28 = vld [vmem:[%s16769_s3 + $0xd08] sm:$0xff] }
 0x1b0   : > { %1754 = vmatmul.mubr.f32.gmra.mrb[4].mxu1 %v1664_v8  ;;  %1837 = vmatmul.mubr.f32.gmra.mrb[10].mxu0 %v1664_v8  ;;  %v9422_v8 = vpack.c.bf16 %v7084_v63, %v7080_v31  ;;  %v9428_v34 = vpack.c.bf16 %v7091_v60, %v7087_v20  ;;  %v9488_v35 = vpack.c.bf16 %v7093_v27, %v7089_v26  ;;  %v7111_v63 = vld [vmem:[%s16769_s3 + $0xd80] sm:$0xff]  ;;  %v7125_v20 = vld [vmem:[%s16769_s3 + $0xdf0] sm:$0xff]  ;;  %v7128_v60 = vld [vmem:[%s16769_s3 + $0xe08] sm:$0xff] }
 0x1b1   : > { %7159 = vmatprep.mubr.msk.f32.mxu1 %vm1192_vm7, %v1981_v47  ;;  %7162 = vmatprep.mubr.msk.f32.mxu0 %vm1192_vm7, %v1981_v47  ;;  %v9430_v38 = vpack.c.bf16 %v7100_v29, %v7096_v28  ;;  %v9492_v47 = vpack.c.bf16 %v7101_v41, %v7097_v40  ;;  %v9440_v13 = vpack.c.bf16 %v7115_v0, %v7111_v63  ;;  %v7134_v26 = vld [vmem:[%s16769_s3 + $0xe38] sm:$0xff]  ;;  %v7127_v29 = vld [vmem:[%s16769_s3 + $0xe00] sm:$0xff]  ;;  %v7144_v50 = vld [vmem:[%s16769_s3 + $0xe88] sm:$0xff] }
 0x1b2   : > { %9413 = vmatpush1.bf16.msra.mxu1 %v9412_v37  ;;  %9473 = vmatpush1.bf16.msra.mxu0 %v9472_v21  ;;  %v7099_v37 = vld [vmem:[%s16769_s3 + $0xd20] sm:$0xff]  ;;  %v9490_v21 = vpack.c.bf16 %v7102_v32, %v7098_v30  ;;  %v9444_v27 = vpack.c.bf16 %v7123_v16, %v7119_v15  ;;  %v7142_v40 = vld [vmem:[%s16769_s3 + $0xe78] sm:$0xff]  ;;  %v7149_v63 = vld [vmem:[%s16769_s3 + $0xeb0] sm:$0xff] }
 0x1b3   : > { %9415 = vmatprep.subr.bf16.mxu1 %v9414_v42  ;;  %9475 = vmatprep.subr.bf16.mxu0 %v9474_v43  ;;  %v7104_v42 = vld [vmem:[%s16769_s3 + $0xd48] sm:$0xff]  ;;  %v9432_v46 = vpack.c.bf16 %v7099_v37, %v7095_v36  ;;  %v7131_v30 = vld [vmem:[%s16769_s3 + $0xe20] sm:$0xff]  ;;  %v7133_v36 = vld [vmem:[%s16769_s3 + $0xe30] sm:$0xff] }
 0x1b4   : > { %v7108_v43 = vld [vmem:[%s16769_s3 + $0xd68] sm:$0xff]  ;;  %v9448_v41 = vpack.c.bf16 %v7131_v30, %v7127_v29  ;;  %v7157_v15 = vld [vmem:[%s16769_s3 + $0xef0] sm:$0xff] }
 0x1b5   : > { %v9434_v52 = vpack.c.bf16 %v7108_v43, %v7104_v42  ;;  %v7136_v37 = vld [vmem:[%s16769_s3 + $0xe48] sm:$0xff]  ;;  %v7135_v43 = vld [vmem:[%s16769_s3 + $0xe40] sm:$0xff]  ;;  %v7167_v29 = vld [vmem:[%s16769_s3 + $0xf10] sm:$0xff] }
 0x1b6   : > { %9417 = vmatpush1.bf16.msra.mxu1 %v9416_v53  ;;  %9477 = vmatpush1.bf16.msra.mxu0 %v9476_v55  ;;  %v9494_v53 = vpack.c.bf16 %v7110_v45, %v7106_v44  ;;  %v7105_v55 = vld [vmem:[%s16769_s3 + $0xd50] sm:$0xff]  ;;  %v7139_v44 = vld [vmem:[%s16769_s3 + $0xe60] sm:$0xff]  ;;  %v7152_v0 = vld [vmem:[%s16769_s3 + $0xec8] sm:$0xff] }
 0x1b7   : > { %9419 = vmatprep.subr.bf16.mxu1 %v9418_v58  ;;  %9479 = vmatprep.subr.bf16.mxu0 %v9478_v59  ;;  %v7116_v58 = vld [vmem:[%s16769_s3 + $0xda8] sm:$0xff]  ;;  %v7114_v59 = vld [vmem:[%s16769_s3 + $0xd98] sm:$0xff]  ;;  %v9496_v31 = vpack.c.bf16 %v7109_v56, %v7105_v55  ;;  %v9452_v56 = vpack.c.bf16 %v7139_v44, %v7135_v43  ;;  %v7171_v30 = vld [vmem:[%s16769_s3 + $0xf30] sm:$0xff]  ;;  %v1982_v44 = vrot.slane %v11812_v3, 3 }
 0x1b8   : > { %v9438_v1 = vpack.c.bf16 %v7116_v58, %v7112_v57  ;;  %v7150_v55 = vld [vmem:[%s16769_s3 + $0xeb8] sm:$0xff]  ;;  %v7143_v58 = vld [vmem:[%s16769_s3 + $0xe80] sm:$0xff]  ;;  %v7166_v16 = vld [vmem:[%s16769_s3 + $0xf08] sm:$0xff] }
 0x1ba   : > { %9421 = vmatpush1.bf16.msra.mxu1 %v9420_v2  ;;  %9481 = vmatpush1.bf16.msra.mxu0 %v9480_v4  ;;  %v9498_v2 = vpack.c.bf16 %v7118_v61, %v7114_v59  ;;  %v7113_v4 = vld [vmem:[%s16769_s3 + $0xd90] sm:$0xff]  ;;  %v7147_v59 = vld [vmem:[%s16769_s3 + $0xea0] sm:$0xff] }
 0x1bb   : > { %9423 = vmatprep.subr.bf16.mxu1 %v9422_v8  ;;  %9483 = vmatprep.subr.bf16.mxu0 %v9482_v11  ;;  %v7124_v8 = vld [vmem:[%s16769_s3 + $0xde8] sm:$0xff]  ;;  %v7122_v11 = vld [vmem:[%s16769_s3 + $0xdd8] sm:$0xff]  ;;  %v9500_v14 = vpack.c.bf16 %v7117_v5, %v7113_v4  ;;  %v9456_v5 = vpack.c.bf16 %v7147_v59, %v7143_v58  ;;  %v7181_v58 = vld [vmem:[%s16769_s3 + $0xf80] sm:$0xff] }
 0x1bc   : > { %v9442_v17 = vpack.c.bf16 %v7124_v8, %v7120_v6  ;;  %v7158_v4 = vld [vmem:[%s16769_s3 + $0xef8] sm:$0xff]  ;;  %v7151_v8 = vld [vmem:[%s16769_s3 + $0xec0] sm:$0xff] }
 0x1bd   : > { %v7185_v59 = vld [vmem:[%s16769_s3 + $0xfa0] sm:$0xff] }
 0x1be   : > { %9425 = vmatpush1.bf16.msra.mxu1 %v9424_v18  ;;  %9485 = vmatpush1.bf16.msra.mxu0 %v9484_v19  ;;  %v9502_v18 = vpack.c.bf16 %v7126_v12, %v7122_v11  ;;  %v7121_v19 = vld [vmem:[%s16769_s3 + $0xdd0] sm:$0xff]  ;;  %v7155_v11 = vld [vmem:[%s16769_s3 + $0xee0] sm:$0xff] }
 0x1bf   : > { %9427 = vmatprep.subr.bf16.mxu1 %v9426_v24  ;;  %9487 = vmatprep.subr.bf16.mxu0 %v9486_v25  ;;  %v7132_v24 = vld [vmem:[%s16769_s3 + $0xe28] sm:$0xff]  ;;  %v7130_v25 = vld [vmem:[%s16769_s3 + $0xe18] sm:$0xff]  ;;  %v9504_v28 = vpack.c.bf16 %v7125_v20, %v7121_v19  ;;  %v9460_v20 = vpack.c.bf16 %v7155_v11, %v7151_v8  ;;  %v9532_v8 = vpack.c.bf16 %v7185_v59, %v7181_v58  ;;  %v2297_v11 = vrot.slane %v11777_v49, 4  ;;  %v7195_v49 = vld [vmem:[%s16769_s3 + $0xff0] sm:$0xff] }
 0x1c0   : > { %v9446_v32 = vpack.c.bf16 %v7132_v24, %v7128_v60  ;;  %v7172_v19 = vld [vmem:[%s16769_s3 + $0xf38] sm:$0xff]  ;;  %v7215_v59 = vld [vmem:[%s16769_s3 + $0x1090] sm:$0xff] }
 0x1c2   : > { %9429 = vmatpush1.bf16.msra.mxu1 %v9428_v34  ;;  %9489 = vmatpush1.bf16.msra.mxu0 %v9488_v35  ;;  %v9506_v34 = vpack.c.bf16 %v7134_v26, %v7130_v25  ;;  %v7129_v35 = vld [vmem:[%s16769_s3 + $0xe10] sm:$0xff]  ;;  %v7165_v26 = vld [vmem:[%s16769_s3 + $0xf00] sm:$0xff] }
 0x1c3   : > { %9431 = vmatprep.subr.bf16.mxu1 %v9430_v38  ;;  %9491 = vmatprep.subr.bf16.mxu0 %v9490_v21  ;;  %v7140_v38 = vld [vmem:[%s16769_s3 + $0xe68] sm:$0xff]  ;;  %v7138_v21 = vld [vmem:[%s16769_s3 + $0xe58] sm:$0xff]  ;;  %v9508_v42 = vpack.c.bf16 %v7133_v36, %v7129_v35 }
 0x1c4   : > { %v9450_v45 = vpack.c.bf16 %v7140_v38, %v7136_v37  ;;  %v7178_v35 = vld [vmem:[%s16769_s3 + $0xf68] sm:$0xff]  ;;  %v7176_v36 = vld [vmem:[%s16769_s3 + $0xf58] sm:$0xff]  ;;  %v1976_v38 = vrot.slane %v11779_v51, 3 }
 0x1c5   : > { %v7180_v37 = vld [vmem:[%s16769_s3 + $0xf78] sm:$0xff] }
 0x1c6   : > { %9433 = vmatpush1.bf16.msra.mxu1 %v9432_v46  ;;  %9493 = vmatpush1.bf16.msra.mxu0 %v9492_v47  ;;  %v9510_v46 = vpack.c.bf16 %v7142_v40, %v7138_v21  ;;  %v7137_v47 = vld [vmem:[%s16769_s3 + $0xe50] sm:$0xff]  ;;  %v9584_v40 = vpack.c.bf16 %v7171_v30, %v7167_v29 }
 0x1c7   : > { %9435 = vmatprep.subr.bf16.mxu1 %v9434_v52  ;;  %9495 = vmatprep.subr.bf16.mxu0 %v9494_v53  ;;  %v7148_v52 = vld [vmem:[%s16769_s3 + $0xea8] sm:$0xff]  ;;  %v7146_v53 = vld [vmem:[%s16769_s3 + $0xe98] sm:$0xff]  ;;  %v9512_v57 = vpack.c.bf16 %v7141_v48, %v7137_v47  ;;  %v7175_v47 = vld [vmem:[%s16769_s3 + $0xf50] sm:$0xff] }
 0x1c8   : > { %v9454_v61 = vpack.c.bf16 %v7148_v52, %v7144_v50  ;;  %v7179_v48 = vld [vmem:[%s16769_s3 + $0xf70] sm:$0xff]  ;;  %v7182_v50 = vld [vmem:[%s16769_s3 + $0xf88] sm:$0xff] }
 0x1ca   : > { %9437 = vmatpush1.bf16.msra.mxu1 %v9436_v62  ;;  %9497 = vmatpush1.bf16.msra.mxu0 %v9496_v31  ;;  %v9514_v62 = vpack.c.bf16 %v7150_v55, %v7146_v53  ;;  %v7145_v31 = vld [vmem:[%s16769_s3 + $0xe90] sm:$0xff]  ;;  %v7186_v53 = vld [vmem:[%s16769_s3 + $0xfa8] sm:$0xff]  ;;  %v7184_v55 = vld [vmem:[%s16769_s3 + $0xf98] sm:$0xff] }
 0x1cb   : > { %9439 = vmatprep.subr.bf16.mxu1 %v9438_v1  ;;  %9499 = vmatprep.subr.bf16.mxu0 %v9498_v2  ;;  %v7156_v1 = vld [vmem:[%s16769_s3 + $0xee8] sm:$0xff]  ;;  %v7154_v2 = vld [vmem:[%s16769_s3 + $0xed8] sm:$0xff]  ;;  %v9516_v6 = vpack.c.bf16 %v7149_v63, %v7145_v31  ;;  %v7183_v63 = vld [vmem:[%s16769_s3 + $0xf90] sm:$0xff] }
 0x1cc   : > { %v9458_v12 = vpack.c.bf16 %v7156_v1, %v7152_v0  ;;  %v7187_v0 = vld [vmem:[%s16769_s3 + $0xfb0] sm:$0xff]  ;;  %v7190_v1 = vld [vmem:[%s16769_s3 + $0xfc8] sm:$0xff] }
 0x1ce   : > { %9441 = vmatpush1.bf16.msra.mxu1 %v9440_v13  ;;  %9501 = vmatpush1.bf16.msra.mxu0 %v9500_v14  ;;  %v9518_v13 = vpack.c.bf16 %v7158_v4, %v7154_v2  ;;  %v7153_v14 = vld [vmem:[%s16769_s3 + $0xed0] sm:$0xff]  ;;  %v2298_v2 = vrot.slane %v11789_v54, 4  ;;  %v7194_v4 = vld [vmem:[%s16769_s3 + $0xfe8] sm:$0xff]  ;;  %v2574_v54 = vld [vmem:[%s16771_s5 + $0x120] sm:$0xff] }
 0x1cf   : > { %9443 = vmatprep.subr.bf16.mxu1 %v9442_v17  ;;  %9503 = vmatprep.subr.bf16.mxu0 %v9502_v18  ;;  %v7170_v17 = vld [vmem:[%s16769_s3 + $0xf28] sm:$0xff]  ;;  %v7168_v18 = vld [vmem:[%s16769_s3 + $0xf18] sm:$0xff]  ;;  %v9520_v60 = vpack.c.bf16 %v7157_v15, %v7153_v14  ;;  %v7193_v14 = vld [vmem:[%s16769_s3 + $0xfe0] sm:$0xff]  ;;  %v9534_v15 = vpack.c.bf16 %v7194_v4, %v7190_v1 }
 0x1d0   : > { %v9522_v24 = vpack.c.bf16 %v7170_v17, %v7166_v16  ;;  %v9582_v25 = vpack.c.bf16 %v7172_v19, %v7168_v18  ;;  %v7191_v17 = vld [vmem:[%s16769_s3 + $0xfd0] sm:$0xff]  ;;  %v7198_v18 = vld [vmem:[%s16769_s3 + $0x1008] sm:$0xff]  ;;  %v2299_v19 = vsel %vm370_vm0, %v2297_v11, %v2298_v2 }
 0x1d2   : > { %9445 = vmatpush1.bf16.msra.mxu1 %v9444_v27  ;;  %9505 = vmatpush1.bf16.msra.mxu0 %v9504_v28  ;;  %v7169_v27 = vld [vmem:[%s16769_s3 + $0xf20] sm:$0xff]  ;;  %v1977_v28 = vrot.slane %v11781_v23, 3 }
 0x1d3   : > { %9447 = vmatprep.subr.bf16.mxu1 %v9446_v32  ;;  %9507 = vmatprep.subr.bf16.mxu0 %v9506_v34  ;;  %v7174_v32 = vld [vmem:[%s16769_s3 + $0xf48] sm:$0xff]  ;;  %v1984_v34 = vrot.slane %v11818_v9, 3  ;;  %v9524_v21 = vpack.c.bf16 %v7169_v27, %v7165_v26  ;;  %v9596_v26 = vpack.c.bf16 %v7195_v49, %v7191_v17  ;;  %v7197_v27 = vld [vmem:[%s16769_s3 + $0x1000] sm:$0xff]  ;;  %v7236_v17 = vld [vmem:[%s16769_s3 + $0x1138] sm:$0xff] }
 0x1d4   : > { %v1978_v43 = vsel %vm682_vm6, %v1976_v38, %v1977_v28  ;;  %v7212_v38 = vld [vmem:[%s16769_s3 + $0x1078] sm:$0xff] }
 0x1d5   : > { %v1985_v52 = vsel %vm682_vm6, %v1980_v33, %v1984_v34  ;;  %v9588_v33 = vpack.c.bf16 %v7179_v48, %v7175_v47  ;;  %v7214_v47 = vld [vmem:[%s16769_s3 + $0x1088] sm:$0xff] }
 0x1d6   : > { %9449 = vmatpush1.bf16.msra.mxu1 %v9448_v41  ;;  %9509 = vmatpush1.bf16.msra.mxu0 %v9508_v42  ;;  %v7173_v41 = vld [vmem:[%s16769_s3 + $0xf40] sm:$0xff]  ;;  %v7218_v48 = vld [vmem:[%s16769_s3 + $0x10a8] sm:$0xff] }
 0x1d7   : > { %9451 = vmatprep.subr.bf16.mxu1 %v9450_v45  ;;  %9511 = vmatprep.subr.bf16.mxu0 %v9510_v46  ;;  %v7177_v42 = vld [vmem:[%s16769_s3 + $0xf60] sm:$0xff]  ;;  %v9526_v45 = vpack.c.bf16 %v7178_v35, %v7174_v32  ;;  %v9586_v46 = vpack.c.bf16 %v7180_v37, %v7176_v36  ;;  %v7199_v32 = vld [vmem:[%s16769_s3 + $0x1010] sm:$0xff]  ;;  %v7206_v35 = vld [vmem:[%s16769_s3 + $0x1048] sm:$0xff] }
 0x1d8   : > { %v7210_v36 = vld [vmem:[%s16769_s3 + $0x1068] sm:$0xff]  ;;  %v7208_v37 = vld [vmem:[%s16769_s3 + $0x1058] sm:$0xff] }
 0x1da   : > { %9453 = vmatpush1.bf16.msra.mxu1 %v9452_v56  ;;  %9513 = vmatpush1.bf16.msra.mxu0 %v9512_v57  ;;  %v7188_v56 = vld [vmem:[%s16769_s3 + $0xfb8] sm:$0xff]  ;;  %v9528_v57 = vpack.c.bf16 %v7177_v42, %v7173_v41  ;;  %v7205_v41 = vld [vmem:[%s16769_s3 + $0x1040] sm:$0xff] }
 0x1db   : > { %9455 = vmatprep.subr.bf16.mxu1 %v9454_v61  ;;  %9515 = vmatprep.subr.bf16.mxu0 %v9514_v62  ;;  %v1983_v61 = vsel %vm682_vm6, %v1977_v28, %v1982_v44  ;;  %v9530_v62 = vpack.c.bf16 %v7186_v53, %v7182_v50  ;;  %v9590_v31 = vpack.c.bf16 %v7188_v56, %v7184_v55  ;;  %v7201_v28 = vld [vmem:[%s16769_s3 + $0x1020] sm:$0xff]  ;;  %v7216_v50 = vld [vmem:[%s16769_s3 + $0x1098] sm:$0xff] }
 0x1dc   : > { %v7209_v42 = vld [vmem:[%s16769_s3 + $0x1060] sm:$0xff] }
 0x1dd   : > { %v9544_v53 = vpack.c.bf16 %v7209_v42, %v7205_v41  ;;  %v7213_v56 = vld [vmem:[%s16769_s3 + $0x1080] sm:$0xff]  ;;  %v7246_v41 = vld [vmem:[%s16769_s3 + $0x1188] sm:$0xff] }
 0x1de   : > { %9457 = vmatpush1.bf16.msra.mxu1 %v9456_v5  ;;  %9517 = vmatpush1.bf16.msra.mxu0 %v9516_v6  ;;  %v7192_v5 = vld [vmem:[%s16769_s3 + $0xfd8] sm:$0xff]  ;;  %v7250_v42 = vld [vmem:[%s16769_s3 + $0x11a8] sm:$0xff] }
 0x1df   : > { %9459 = vmatprep.subr.bf16.mxu1 %v9458_v12  ;;  %9519 = vmatprep.subr.bf16.mxu0 %v9518_v13  ;;  %v7196_v6 = vld [vmem:[%s16769_s3 + $0xff8] sm:$0xff]  ;;  %v9592_v12 = vpack.c.bf16 %v7187_v0, %v7183_v63  ;;  %v7189_v13 = vld [vmem:[%s16769_s3 + $0xfc0] sm:$0xff] }
 0x1e0   : > { %v9594_v16 = vpack.c.bf16 %v7196_v6, %v7192_v5  ;;  %v7224_v63 = vld [vmem:[%s16769_s3 + $0x10d8] sm:$0xff]  ;;  %v7221_v5 = vld [vmem:[%s16769_s3 + $0x10c0] sm:$0xff] }
 0x1e1   : > { %v7228_v0 = vld [vmem:[%s16769_s3 + $0x10f8] sm:$0xff]  ;;  %v7225_v6 = vld [vmem:[%s16769_s3 + $0x10e0] sm:$0xff] }
 0x1e2   : > { %9461 = vmatpush1.bf16.msra.mxu1 %v9460_v20  ;;  %9521 = vmatpush1.bf16.msra.mxu0 %v9520_v60  ;;  %v7202_v20 = vld [vmem:[%s16769_s3 + $0x1028] sm:$0xff]  ;;  %v7200_v60 = vld [vmem:[%s16769_s3 + $0x1018] sm:$0xff]  ;;  %v9610_v11 = vpack.c.bf16 %v7228_v0, %v7224_v63  ;;  %v9552_v49 = vpack.c.bf16 %v7225_v6, %v7221_v5 }
 0x1e3   : > { %9523 = vmatprep.subr.bf16.mxu1 %v9522_v24  ;;  %9583 = vmatprep.subr.bf16.mxu0 %v9582_v25  ;;  %v7204_v24 = vld [vmem:[%s16769_s3 + $0x1038] sm:$0xff]  ;;  %v9536_v25 = vpack.c.bf16 %v7193_v14, %v7189_v13  ;;  %v9538_v29 = vpack.c.bf16 %v7202_v20, %v7198_v18  ;;  %v7227_v13 = vld [vmem:[%s16769_s3 + $0x10f0] sm:$0xff]  ;;  %v7230_v14 = vld [vmem:[%s16769_s3 + $0x1108] sm:$0xff] }
 0x1e4   : > { %v9598_v30 = vpack.c.bf16 %v7204_v24, %v7200_v60  ;;  %v7233_v20 = vld [vmem:[%s16769_s3 + $0x1120] sm:$0xff]  ;;  %v7262_v5 = vld [vmem:[%s16769_s3 + $0x1208] sm:$0xff] }
 0x1e5   : > { %2060 = vmatmul.mubr.f32.vlgmr.msra.gmra.mrb[0].mxu1 %v1978_v43  ;;  %2143 = vmatmul.mubr.f32.vlgmr.msra.gmra.mrb[6].mxu0 %v1978_v43  ;;  %v9542_v43 = vpack.c.bf16 %v7210_v36, %v7206_v35  ;;  %v7237_v35 = vld [vmem:[%s16769_s3 + $0x1140] sm:$0xff]  ;;  %v7266_v6 = vld [vmem:[%s16769_s3 + $0x1228] sm:$0xff] }
 0x1e6   : > { %7160 = vmatprep.mubr.msk.f32.mxu1 %vm1192_vm7, %v1985_v52  ;;  %7163 = vmatprep.mubr.msk.f32.mxu0 %vm1192_vm7, %v1985_v52  ;;  %v7220_v52 = vld [vmem:[%s16769_s3 + $0x10b8] sm:$0xff]  ;;  %v7241_v36 = vld [vmem:[%s16769_s3 + $0x1160] sm:$0xff] }
 0x1e7   : > { %9525 = vmatpush1.bf16.msra.mxu1 %v9524_v21  ;;  %9585 = vmatpush1.bf16.msra.mxu0 %v9584_v40  ;;  %v9540_v21 = vpack.c.bf16 %v7201_v28, %v7197_v27  ;;  %v9606_v58 = vpack.c.bf16 %v7220_v52, %v7216_v50  ;;  %v7238_v27 = vld [vmem:[%s16769_s3 + $0x1148] sm:$0xff]  ;;  %v9562_v50 = vpack.c.bf16 %v7250_v42, %v7246_v41  ;;  %v7277_v41 = vld [vmem:[%s16769_s3 + $0x1280] sm:$0xff] }
 0x1e8   : > { %9527 = vmatprep.subr.bf16.mxu1 %v9526_v45  ;;  %9587 = vmatprep.subr.bf16.mxu0 %v9586_v46  ;;  %v7207_v45 = vld [vmem:[%s16769_s3 + $0x1050] sm:$0xff]  ;;  %v7242_v28 = vld [vmem:[%s16769_s3 + $0x1168] sm:$0xff] }
 0x1e9   : > { %2066 = vmatmul.mubr.f32.gmra.mrb[2].mxu1 %v1983_v61  ;;  %2149 = vmatmul.mubr.f32.gmra.mrb[8].mxu0 %v1983_v61  ;;  %v7211_v46 = vld [vmem:[%s16769_s3 + $0x1070] sm:$0xff] }
 0x1ea   : > { %7161 = vmatprep.mubr.msk.f32.mxu1 %vm1192_vm7, %v1984_v34  ;;  %7164 = vmatprep.mubr.msk.f32.mxu0 %vm1192_vm7, %v1984_v34  ;;  %v7203_v34 = vld [vmem:[%s16769_s3 + $0x1030] sm:$0xff]  ;;  %v9604_v55 = vpack.c.bf16 %v7211_v46, %v7207_v45  ;;  %v9560_v45 = vpack.c.bf16 %v7241_v36, %v7237_v35  ;;  %v7278_v35 = vld [vmem:[%s16769_s3 + $0x1288] sm:$0xff] }
 0x1eb   : > { %9529 = vmatpush1.bf16.msra.mxu1 %v9528_v57  ;;  %9589 = vmatpush1.bf16.msra.mxu0 %v9588_v33  ;;  %v9600_v40 = vpack.c.bf16 %v7203_v34, %v7199_v32  ;;  %v7217_v57 = vld [vmem:[%s16769_s3 + $0x10a0] sm:$0xff]  ;;  %v9546_v33 = vpack.c.bf16 %v7218_v48, %v7214_v47  ;;  %v7219_v61 = vld [vmem:[%s16769_s3 + $0x10b0] sm:$0xff]  ;;  %v7282_v36 = vld [vmem:[%s16769_s3 + $0x12a8] sm:$0xff] }
 0x1ec   : > { %9531 = vmatprep.subr.bf16.mxu1 %v9530_v62  ;;  %9591 = vmatprep.subr.bf16.mxu0 %v9590_v31  ;;  %v7222_v62 = vld [vmem:[%s16769_s3 + $0x10c8] sm:$0xff]  ;;  %v9548_v1 = vpack.c.bf16 %v7217_v57, %v7213_v56  ;;  %v9608_v4 = vpack.c.bf16 %v7219_v61, %v7215_v59  ;;  %v7245_v47 = vld [vmem:[%s16769_s3 + $0x1180] sm:$0xff]  ;;  %v9578_v42 = vpack.c.bf16 %v7282_v36, %v7278_v35 }
 0x1ed   : > { %2072 = vmatmul.mubr.f32.gmra.mrb[4].mxu1 %v1982_v44  ;;  %2155 = vmatmul.mubr.f32.gmra.mrb[10].mxu0 %v1982_v44  ;;  %v9602_v44 = vpack.c.bf16 %v7212_v38, %v7208_v37  ;;  %v7226_v31 = vld [vmem:[%s16769_s3 + $0x10e8] sm:$0xff]  ;;  %v9558_v37 = vpack.c.bf16 %v7242_v28, %v7238_v27  ;;  %v7249_v48 = vld [vmem:[%s16769_s3 + $0x11a0] sm:$0xff] }
 0x1ee   : > { %7285 = vmatprep.mubr.msk.f32.mxu1 %vm1192_vm7, %v2299_v19  ;;  %7288 = vmatprep.mubr.msk.f32.mxu0 %vm1192_vm7, %v2299_v19  ;;  %v7229_v19 = vld [vmem:[%s16769_s3 + $0x1100] sm:$0xff]  ;;  %v7254_v56 = vld [vmem:[%s16769_s3 + $0x11c8] sm:$0xff]  ;;  %v9564_v59 = vpack.c.bf16 %v7249_v48, %v7245_v47 }
 0x1ef   : > { %9533 = vmatpush1.bf16.msra.mxu1 %v9532_v8  ;;  %9593 = vmatpush1.bf16.msra.mxu0 %v9592_v12  ;;  %v9550_v8 = vpack.c.bf16 %v7226_v31, %v7222_v62  ;;  %v7223_v12 = vld [vmem:[%s16769_s3 + $0x10d0] sm:$0xff]  ;;  %v9556_v32 = vpack.c.bf16 %v7233_v20, %v7229_v19  ;;  %v7258_v57 = vld [vmem:[%s16769_s3 + $0x11e8] sm:$0xff]  ;;  %v7253_v62 = vld [vmem:[%s16769_s3 + $0x11c0] sm:$0xff] }
 0x1f0   : > { %9535 = vmatprep.subr.bf16.mxu1 %v9534_v15  ;;  %9595 = vmatprep.subr.bf16.mxu0 %v9594_v16  ;;  %v7234_v15 = vld [vmem:[%s16769_s3 + $0x1128] sm:$0xff]  ;;  %v7232_v16 = vld [vmem:[%s16769_s3 + $0x1118] sm:$0xff]  ;;  %v9612_v18 = vpack.c.bf16 %v7227_v13, %v7223_v12  ;;  %v7257_v31 = vld [vmem:[%s16769_s3 + $0x11e0] sm:$0xff]  ;;  %v9566_v63 = vpack.c.bf16 %v7258_v57, %v7254_v56  ;;  %v2295_v56 = vrot.slane %v11781_v23, 4 }
 0x1f1   : > { %v9554_v60 = vpack.c.bf16 %v7234_v15, %v7230_v14  ;;  %v9614_v24 = vpack.c.bf16 %v7236_v17, %v7232_v16  ;;  %v9568_v12 = vpack.c.bf16 %v7257_v31, %v7253_v62  ;;  %v7261_v14 = vld [vmem:[%s16769_s3 + $0x1200] sm:$0xff]  ;;  %v9570_v16 = vpack.c.bf16 %v7266_v6, %v7262_v5  ;;  %v7270_v19 = vld [vmem:[%s16769_s3 + $0x1248] sm:$0xff]  ;;  %v2557_v23 = vld [vmem:[%s16771_s5 + $0x98] sm:$0xff] }
 0x1f2   : > { %v7265_v15 = vld [vmem:[%s16769_s3 + $0x1220] sm:$0xff]  ;;  %v7274_v20 = vld [vmem:[%s16769_s3 + $0x1268] sm:$0xff]  ;;  %v2294_v62 = vrot.slane %v11779_v51, 4  ;;  %v11074_v31 = vmov 0.0|0.0   ;;  %v2573_v5 = vld [vmem:[%s16771_s5 + $0x118] sm:$0xff] }
 0x1f3   : > { %9537 = vmatpush1.bf16.msra.mxu1 %v9536_v25  ;;  %9597 = vmatpush1.bf16.msra.mxu0 %v9596_v26  ;;  %v7231_v25 = vld [vmem:[%s16769_s3 + $0x1110] sm:$0xff]  ;;  %v7269_v27 = vld [vmem:[%s16769_s3 + $0x1240] sm:$0xff]  ;;  %v2555_v48 = vld [vmem:[%s16771_s5 + $0x88] sm:$0xff] }
 0x1f4   : > { %9539 = vmatprep.subr.bf16.mxu1 %v9538_v29  ;;  %9599 = vmatprep.subr.bf16.mxu0 %v9598_v30  ;;  %v7235_v26 = vld [vmem:[%s16769_s3 + $0x1130] sm:$0xff]  ;;  %v7240_v29 = vld [vmem:[%s16769_s3 + $0x1158] sm:$0xff]  ;;  %v7273_v28 = vld [vmem:[%s16769_s3 + $0x1260] sm:$0xff] }
 0x1f5   : > { %v7244_v30 = vld [vmem:[%s16769_s3 + $0x1178] sm:$0xff]  ;;  %v9616_v34 = vpack.c.bf16 %v7235_v26, %v7231_v25  ;;  %v9572_v25 = vpack.c.bf16 %v7265_v15, %v7261_v14  ;;  %v2554_v47 = vld [vmem:[%s16771_s5 + $0x80] sm:$0xff]  ;;  %v2571_v57 = vld [vmem:[%s16771_s5 + $0x108] sm:$0xff] }
 0x1f6   : > { %v9618_v38 = vpack.c.bf16 %v7244_v30, %v7240_v29  ;;  %v9574_v29 = vpack.c.bf16 %v7274_v20, %v7270_v19  ;;  %v2540_v51 = vld [vmem:[%s16771_s5 + $0x10] sm:$0xff]  ;;  %v2575_v15 = vld [vmem:[%s16771_s5 + $0x128] sm:$0xff]  ;;  %v2561_v19 = vld [vmem:[%s16771_s5 + $0xb8] sm:$0xff] }
 0x1f7   : > { %9541 = vmatpush1.bf16.msra.mxu1 %v9540_v21  ;;  %9601 = vmatpush1.bf16.msra.mxu0 %v9600_v40  ;;  %v7239_v21 = vld [vmem:[%s16769_s3 + $0x1150] sm:$0xff]  ;;  %v9681_v20 = vpack.c.bf16 %v2575_v15, %v2574_v54  ;;  %v2578_v35 = vld [vmem:[%s16771_s5 + $0x140] sm:$0xff]  ;;  %v2579_v36 = vld [vmem:[%s16771_s5 + $0x148] sm:$0xff]  ;;  %v2503_v54 = vsub.s32 2, %v11766_v10  ;;  %v2507_v15 = vsub.s32 3, %v11766_v10 }
 0x1f8   : > { %9543 = vmatprep.subr.bf16.mxu1 %v9542_v43  ;;  %9603 = vmatprep.subr.bf16.mxu0 %v9602_v44  ;;  %v7243_v40 = vld [vmem:[%s16769_s3 + $0x1170] sm:$0xff]  ;;  %v7248_v43 = vld [vmem:[%s16769_s3 + $0x1198] sm:$0xff] }
 0x1f9   : > { %v7252_v44 = vld [vmem:[%s16769_s3 + $0x11b8] sm:$0xff]  ;;  %v9620_v46 = vpack.c.bf16 %v7243_v40, %v7239_v21  ;;  %v9576_v21 = vpack.c.bf16 %v7273_v28, %v7269_v27  ;;  %v2544_v27 = vld [vmem:[%s16771_s5 + $0x30] sm:$0xff] }
 0x1fa   : > { %v9622_v52 = vpack.c.bf16 %v7252_v44, %v7248_v43  ;;  %v7281_v44 = vld [vmem:[%s16769_s3 + $0x12a0] sm:$0xff]  ;;  %v2545_v28 = vld [vmem:[%s16771_s5 + $0x38] sm:$0xff] }
 0x1fb   : > { %9545 = vmatpush1.bf16.msra.mxu1 %v9544_v53  ;;  %9605 = vmatpush1.bf16.msra.mxu0 %v9604_v55  ;;  %v7247_v53 = vld [vmem:[%s16769_s3 + $0x1190] sm:$0xff] }
 0x1fc   : > { %9547 = vmatprep.subr.bf16.mxu1 %v9546_v33  ;;  %9607 = vmatprep.subr.bf16.mxu0 %v9606_v58  ;;  %v7251_v55 = vld [vmem:[%s16769_s3 + $0x11b0] sm:$0xff]  ;;  %v7256_v33 = vld [vmem:[%s16769_s3 + $0x11d8] sm:$0xff] }
 0x1fd   : > { %v7260_v58 = vld [vmem:[%s16769_s3 + $0x11f8] sm:$0xff]  ;;  %v9624_v61 = vpack.c.bf16 %v7251_v55, %v7247_v53  ;;  %v2570_v53 = vld [vmem:[%s16771_s5 + $0x100] sm:$0xff]  ;;  %v9642_v55 = vpack.c.bf16 %v2555_v48, %v2554_v47  ;;  %v2548_v47 = vld [vmem:[%s16771_s5 + $0x50] sm:$0xff] }
 0x1fe   : > { %v9626_v0 = vpack.c.bf16 %v7260_v58, %v7256_v33  ;;  %v2538_v33 = vld [vmem:[%s16771_s5] sm:$0xff]  ;;  %v2539_v58 = vld [vmem:[%s16771_s5 + $0x8] sm:$0xff]  ;;  %v2549_v48 = vld [vmem:[%s16771_s5 + $0x58] sm:$0xff] }
 0x1ff   : > { %9549 = vmatpush1.bf16.msra.mxu1 %v9548_v1  ;;  %9609 = vmatpush1.bf16.msra.mxu0 %v9608_v4  ;;  %v7255_v1 = vld [vmem:[%s16769_s3 + $0x11d0] sm:$0xff] }
 0x200   : > { %9551 = vmatprep.subr.bf16.mxu1 %v9550_v8  ;;  %9611 = vmatprep.subr.bf16.mxu0 %v9610_v11  ;;  %v7259_v4 = vld [vmem:[%s16769_s3 + $0x11f0] sm:$0xff]  ;;  %v7264_v8 = vld [vmem:[%s16769_s3 + $0x1218] sm:$0xff] }
 0x201   : > { %v7268_v11 = vld [vmem:[%s16769_s3 + $0x1238] sm:$0xff]  ;;  %v9628_v13 = vpack.c.bf16 %v7259_v4, %v7255_v1  ;;  %v2296_v1 = vsel %vm370_vm0, %v2294_v62, %v2295_v56  ;;  %v2300_v4 = vrot.slane %v11812_v3, 4  ;;  %v2558_v3 = vld [vmem:[%s16771_s5 + $0xa0] sm:$0xff]  ;;  %v2584_v62 = vld [vmem:[%s16771_s5 + $0x170] sm:$0xff] }
 0x202   : > { %v9630_v17 = vpack.c.bf16 %v7268_v11, %v7264_v8  ;;  %v2541_v8 = vld [vmem:[%s16771_s5 + $0x18] sm:$0xff] }
 0x203   : > { %9553 = vmatpush1.bf16.msra.mxu1 %v9552_v49  ;;  %9613 = vmatpush1.bf16.msra.mxu0 %v9612_v18  ;;  %v7263_v49 = vld [vmem:[%s16769_s3 + $0x1210] sm:$0xff]  ;;  %v9648_v14 = vpack.c.bf16 %v2541_v8, %v2540_v51  ;;  %v2586_v51 = vld [vmem:[%s16771_s5 + $0x180] sm:$0xff]  ;;  %v2587_v8 = vld [vmem:[%s16771_s5 + $0x188] sm:$0xff] }
 0x204   : > { %9555 = vmatprep.subr.bf16.mxu1 %v9554_v60  ;;  %9615 = vmatprep.subr.bf16.mxu0 %v9614_v24  ;;  %v7267_v18 = vld [vmem:[%s16769_s3 + $0x1230] sm:$0xff]  ;;  %v7272_v60 = vld [vmem:[%s16769_s3 + $0x1258] sm:$0xff] }
 0x205   : > { %v7276_v24 = vld [vmem:[%s16769_s3 + $0x1278] sm:$0xff]  ;;  %v9632_v26 = vpack.c.bf16 %v7267_v18, %v7263_v49  ;;  %v2543_v49 = vld [vmem:[%s16771_s5 + $0x28] sm:$0xff]  ;;  %v2560_v18 = vld [vmem:[%s16771_s5 + $0xb0] sm:$0xff] }
 0x206   : > { %v9634_v30 = vpack.c.bf16 %v7276_v24, %v7272_v60  ;;  %v2576_v24 = vld [vmem:[%s16771_s5 + $0x130] sm:$0xff] }
 0x207   : > { %9557 = vmatpush1.bf16.msra.mxu1 %v9556_v32  ;;  %9617 = vmatpush1.bf16.msra.mxu0 %v9616_v34  ;;  %v7271_v32 = vld [vmem:[%s16769_s3 + $0x1250] sm:$0xff] }
 0x208   : > { %9559 = vmatprep.subr.bf16.mxu1 %v9558_v37  ;;  %9619 = vmatprep.subr.bf16.mxu0 %v9618_v38  ;;  %v7275_v34 = vld [vmem:[%s16769_s3 + $0x1270] sm:$0xff]  ;;  %v7280_v37 = vld [vmem:[%s16769_s3 + $0x1298] sm:$0xff] }
 0x209   : > { %v7284_v38 = vld [vmem:[%s16769_s3 + $0x12b8] sm:$0xff]  ;;  %v9636_v40 = vpack.c.bf16 %v7275_v34, %v7271_v32  ;;  %v9656_v34 = vpack.c.bf16 %v2545_v28, %v2544_v27  ;;  %v7310_v28 = vld [vmem:[%s16771_s5 + $0x220] sm:$0xff] }
 0x20a   : > { %v9638_v43 = vpack.c.bf16 %v7284_v38, %v7280_v37  ;;  %v2546_v38 = vld [vmem:[%s16771_s5 + $0x40] sm:$0xff] }
 0x20b   : > { %9561 = vmatpush1.bf16.msra.mxu1 %v9560_v45  ;;  %9621 = vmatpush1.bf16.msra.mxu0 %v9620_v46  ;;  %v7279_v45 = vld [vmem:[%s16769_s3 + $0x1290] sm:$0xff] }
 0x20c   : > { %9563 = vmatprep.subr.bf16.mxu1 %v9562_v50  ;;  %9623 = vmatprep.subr.bf16.mxu0 %v9622_v52  ;;  %v7283_v46 = vld [vmem:[%s16769_s3 + $0x12b0] sm:$0xff]  ;;  %v9580_v50 = vpack.c.bf16 %v7281_v44, %v7277_v41  ;;  %v2565_v41 = vld [vmem:[%s16771_s5 + $0xd8] sm:$0xff] }
 0x20d   : > { %v9640_v52 = vpack.c.bf16 %v7283_v46, %v7279_v45  ;;  %v2580_v44 = vld [vmem:[%s16771_s5 + $0x150] sm:$0xff]  ;;  %v2581_v45 = vld [vmem:[%s16771_s5 + $0x158] sm:$0xff] }
 0x20f   : > { %9565 = vmatpush1.bf16.msra.mxu1 %v9564_v59  ;;  %9625 = vmatpush1.bf16.msra.mxu0 %v9624_v61  ;;  %v2302_v59 = vrot.slane %v11818_v9, 4  ;;  %v2556_v61 = vld [vmem:[%s16771_s5 + $0x90] sm:$0xff] }
 0x210   : > { %9567 = vmatprep.subr.bf16.mxu1 %v9566_v63  ;;  %9627 = vmatprep.subr.bf16.mxu0 %v9626_v0  ;;  %v9675_v63 = vpack.c.bf16 %v2571_v57, %v2570_v53  ;;  %v9644_v0 = vpack.c.bf16 %v2539_v58, %v2538_v33  ;;  %v2572_v9 = vld [vmem:[%s16771_s5 + $0x110] sm:$0xff]  ;;  %v9646_v6 = vpack.c.bf16 %v2557_v23, %v2556_v61  ;;  %v2583_v57 = vld [vmem:[%s16771_s5 + $0x168] sm:$0xff]  ;;  %v2550_v58 = vld [vmem:[%s16771_s5 + $0x60] sm:$0xff] }
 0x211   : > { %v2303_v11 = vsel %vm370_vm0, %v2298_v2, %v2302_v59  ;;  %v2301_v2 = vsel %vm370_vm0, %v2295_v56, %v2300_v4  ;;  %v9690_v53 = vpack.c.bf16 %v2581_v45, %v2580_v44  ;;  %v2582_v56 = vld [vmem:[%s16771_s5 + $0x160] sm:$0xff] }
 0x212   : > { %v9693_v61 = vpack.c.bf16 %v2583_v57, %v2582_v56 }
 0x213   : > { %9569 = vmatpush1.bf16.msra.mxu1 %v9568_v12  ;;  %9629 = vmatpush1.bf16.msra.mxu0 %v9628_v13  ;;  %v2559_v12 = vld [vmem:[%s16771_s5 + $0xa8] sm:$0xff]  ;;  %v9678_v13 = vpack.c.bf16 %v2573_v5, %v2572_v9  ;;  %v2568_v9 = vld [vmem:[%s16771_s5 + $0xf0] sm:$0xff] }
 0x214   : > { %9571 = vmatprep.subr.bf16.mxu1 %v9570_v16  ;;  %9631 = vmatprep.subr.bf16.mxu0 %v9630_v17  ;;  %v9650_v16 = vpack.c.bf16 %v2559_v12, %v2558_v3  ;;  %v2542_v17 = vld [vmem:[%s16771_s5 + $0x20] sm:$0xff]  ;;  %v9699_v3 = vpack.c.bf16 %v2587_v8, %v2586_v51  ;;  %v7308_v12 = vld [vmem:[%s16771_s5 + $0x210] sm:$0xff]  ;;  %v7329_v8 = vld [vmem:[%s16771_s5 + $0x2b8] sm:$0xff] }
 0x215   : > { %v9652_v60 = vpack.c.bf16 %v2543_v49, %v2542_v17  ;;  %v7328_v51 = vld [vmem:[%s16771_s5 + $0x2b0] sm:$0xff] }
 0x217   : > { %9573 = vmatpush1.bf16.msra.mxu1 %v9572_v25  ;;  %9633 = vmatpush1.bf16.msra.mxu0 %v9632_v26  ;;  %v2577_v25 = vld [vmem:[%s16771_s5 + $0x138] sm:$0xff]  ;;  %v9654_v26 = vpack.c.bf16 %v2561_v19, %v2560_v18 }
 0x218   : > { %9575 = vmatprep.subr.bf16.mxu1 %v9574_v29  ;;  %9635 = vmatprep.subr.bf16.mxu0 %v9634_v30  ;;  %v2562_v29 = vld [vmem:[%s16771_s5 + $0xc0] sm:$0xff]  ;;  %v2563_v30 = vld [vmem:[%s16771_s5 + $0xc8] sm:$0xff]  ;;  %v9684_v32 = vpack.c.bf16 %v2577_v25, %v2576_v24  ;;  %v7293_v24 = vld [vmem:[%s16771_s5 + $0x198] sm:$0xff] }
 0x219   : > { %v9658_v37 = vpack.c.bf16 %v2563_v30, %v2562_v29  ;;  %v7324_v25 = vld [vmem:[%s16771_s5 + $0x290] sm:$0xff]  ;;  %v7311_v29 = vld [vmem:[%s16771_s5 + $0x228] sm:$0xff] }
 0x21b   : > { %9577 = vmatpush1.bf16.msra.mxu1 %v9576_v21  ;;  %9637 = vmatpush1.bf16.msra.mxu0 %v9636_v40  ;;  %v2547_v21 = vld [vmem:[%s16771_s5 + $0x48] sm:$0xff]  ;;  %v2564_v40 = vld [vmem:[%s16771_s5 + $0xd0] sm:$0xff] }
 0x21c   : > { %9579 = vmatprep.subr.bf16.mxu1 %v9578_v42  ;;  %9639 = vmatprep.subr.bf16.mxu0 %v9638_v43  ;;  %v9687_v42 = vpack.c.bf16 %v2579_v36, %v2578_v35  ;;  %v9660_v43 = vpack.c.bf16 %v2547_v21, %v2546_v38  ;;  %v9662_v46 = vpack.c.bf16 %v2565_v41, %v2564_v40  ;;  %v7294_v41 = vld [vmem:[%s16771_s5 + $0x1a0] sm:$0xff] }
 0x21d   : > { %v9705_v40 = vpack.c.bf16 %v7311_v29, %v7310_v28 }
 0x21f   : > { %9581 = vmatpush1.bf16.msra.mxu1 %v9580_v50  ;;  %9641 = vmatpush1.bf16.msra.mxu0 %v9640_v52  ;;  %v2566_v50 = vld [vmem:[%s16771_s5 + $0xe0] sm:$0xff]  ;;  %v2567_v52 = vld [vmem:[%s16771_s5 + $0xe8] sm:$0xff] }
 0x220   : > { %9674 = vmatprep.subr.bf16.mxu0 %v11074_v31  ;;  %9643 = vmatprep.subr.bf16.mxu1 %v9642_v55  ;;  %v9664_v55 = vpack.c.bf16 %v2549_v48, %v2548_v47  ;;  %v9666_v33 = vpack.c.bf16 %v2567_v52, %v2566_v50  ;;  %v7326_v50 = vld [vmem:[%s16771_s5 + $0x2a0] sm:$0xff]  ;;  %v7327_v52 = vld [vmem:[%s16771_s5 + $0x2a8] sm:$0xff] }
 0x222   : > { %2378 = vmatmul.mubr.f32.vlgmr.msra.gmra.mrb[0].mxu1 %v2296_v1  ;;  %2461 = vmatmul.mubr.f32.vlgmr.msra.gmra.mrb[6].mxu0 %v2296_v1  ;;  %v2569_v1 = vld [vmem:[%s16771_s5 + $0xf8] sm:$0xff] }
 0x223   : > { %7286 = vmatprep.mubr.msk.f32.mxu1 %vm1192_vm7, %v2303_v11  ;;  %7289 = vmatprep.mubr.msk.f32.mxu0 %vm1192_vm7, %v2303_v11  ;;  %v9670_v5 = vpack.c.bf16 %v2569_v1, %v2568_v9 }
 0x224   : > { %9676 = vmatpush1.bf16.msra.mxu0 %v9675_v63  ;;  %9645 = vmatpush3.bf16.msra.mxu1 %v9644_v0  ;;  %v2585_v63 = vld [vmem:[%s16771_s5 + $0x178] sm:$0xff] }
 0x225   : > { %9677 = vmatprep.subr.bf16.mxu0 %v11074_v31  ;;  %9647 = vmatprep.subr.bf16.mxu1 %v9646_v6  ;;  %v9696_v0 = vpack.c.bf16 %v2585_v63, %v2584_v62  ;;  %v2553_v6 = vld [vmem:[%s16771_s5 + $0x78] sm:$0xff]  ;;  %v9737_v62 = vpack.c.bf16 %v7327_v52, %v7326_v50  ;;  %v7296_v63 = vld [vmem:[%s16771_s5 + $0x1b0] sm:$0xff] }
 0x226   : > { %2384 = vmatmul.mubr.f32.gmra.mrb[2].mxu1 %v2301_v2  ;;  %2467 = vmatmul.mubr.f32.gmra.mrb[8].mxu0 %v2301_v2  ;;  %v2491_v2 = vld [vmem:[%s16770_s4] sm:$0xf]  ;;  %v7305_v50 = vld [vmem:[%s16771_s5 + $0x1f8] sm:$0xff]  ;;  %v7336_v52 = vld [vmem:[%s16771_s5 + $0x2f0] sm:$0xff] }
 0x227   : > { %7287 = vmatprep.mubr.msk.f32.mxu1 %vm1192_vm7, %v2302_v59  ;;  %7290 = vmatprep.mubr.msk.f32.mxu0 %vm1192_vm7, %v2302_v59  ;;  %v2551_v59 = vld [vmem:[%s16771_s5 + $0x68] sm:$0xff]  ;;  %v2504_v17 = vrot.slane %v2491_v2, %v2503_v54  ;;  %v2500_v49 = vrot.slane %v2491_v2, %v916_v39  ;;  %v2508_v18 = vrot.slane %v2491_v2, %v2507_v15  ;;  %v7325_v39 = vld [vmem:[%s16771_s5 + $0x298] sm:$0xff] }
 0x228   : > { %9679 = vmatpush1.bf16.msra.mxu0 %v9678_v13  ;;  %9649 = vmatpush3.bf16.msra.mxu1 %v9648_v14  ;;  %v9668_v23 = vpack.c.bf16 %v2551_v59, %v2550_v58  ;;  %v7309_v13 = vld [vmem:[%s16771_s5 + $0x218] sm:$0xff]  ;;  %v9734_v21 = vpack.c.bf16 %v7325_v39, %v7324_v25  ;;  %v9740_v54 = vpack.c.bf16 %v7329_v8, %v7328_v51  ;;  %v7319_v39 = vld [vmem:[%s16771_s5 + $0x268] sm:$0xff]  ;;  %v7340_v8 = vld [vmem:[%s16771_s5 + $0x310] sm:$0xff] }
 0x229   : > { %9680 = vmatprep.subr.bf16.mxu0 %v11074_v31  ;;  %9651 = vmatprep.subr.bf16.mxu1 %v9650_v16  ;;  %v9701_v14 = vpack.c.bf16 %v7309_v13, %v7308_v12  ;;  %v2496_v16 = vrot.slane %v2491_v2, %v912_v22  ;;  %v7313_v58 = vld [vmem:[%s16771_s5 + $0x238] sm:$0xff]  ;;  %v7314_v12 = vld [vmem:[%s16771_s5 + $0x240] sm:$0xff]  ;;  %v7315_v13 = vld [vmem:[%s16771_s5 + $0x248] sm:$0xff] }
 0x22a   : > { %2390 = vmatmul.mubr.f32.gmra.mrb[4].mxu1 %v2300_v4  ;;  %2473 = vmatmul.mubr.f32.gmra.mrb[10].mxu0 %v2300_v4  ;;  %v2552_v4 = vld [vmem:[%s16771_s5 + $0x70] sm:$0xff]  ;;  %v7298_v2 = vld [vmem:[%s16771_s5 + $0x1c0] sm:$0xff]  ;;  %v9713_v15 = vpack.c.bf16 %v7315_v13, %v7314_v12  ;;  %v7341_v13 = vld [vmem:[%s16771_s5 + $0x318] sm:$0xff] }
 0x22b   : > { %v9672_v11 = vpack.c.bf16 %v2553_v6, %v2552_v4  ;;  %v7297_v6 = vld [vmem:[%s16771_s5 + $0x1b8] sm:$0xff] }
 0x22c   : > { %9682 = vmatpush1.bf16.msra.mxu0 %v9681_v20  ;;  %9653 = vmatpush3.bf16.msra.mxu1 %v9652_v60  ;;  %v7292_v60 = vld [vmem:[%s16771_s5 + $0x190] sm:$0xff] }
 0x22d   : > { %9683 = vmatprep.subr.bf16.mxu0 %v11074_v31  ;;  %9655 = vmatprep.subr.bf16.mxu1 %v9654_v26 }
 0x230   : > { %9685 = vmatpush1.bf16.msra.mxu0 %v9684_v32  ;;  %9657 = vmatpush3.bf16.msra.mxu1 %v9656_v34  ;;  %v9703_v34 = vpack.c.bf16 %v7293_v24, %v7292_v60  ;;  %v7300_v24 = vld [vmem:[%s16771_s5 + $0x1d0] sm:$0xff] }
 0x231   : > { %9686 = vmatprep.subr.bf16.mxu0 %v11074_v31  ;;  %9659 = vmatprep.subr.bf16.mxu1 %v9658_v37 }
 0x234   : > { %9688 = vmatpush1.bf16.msra.mxu0 %v9687_v42  ;;  %9661 = vmatpush3.bf16.msra.mxu1 %v9660_v43  ;;  %v7295_v42 = vld [vmem:[%s16771_s5 + $0x1a8] sm:$0xff] }
 0x235   : > { %9689 = vmatprep.subr.bf16.mxu0 %v11074_v31  ;;  %9663 = vmatprep.subr.bf16.mxu1 %v9662_v46 }
 0x238   : > { %9691 = vmatpush1.bf16.msra.mxu0 %v9690_v53  ;;  %9665 = vmatpush3.bf16.msra.mxu1 %v9664_v55 }
 0x239   : > { %9692 = vmatprep.subr.bf16.mxu0 %v11074_v31  ;;  %9667 = vmatprep.subr.bf16.mxu1 %v9666_v33  ;;  %v7312_v33 = vld [vmem:[%s16771_s5 + $0x230] sm:$0xff] }
 0x23c   : > { %9694 = vmatpush1.bf16.msra.mxu0 %v9693_v61  ;;  %9669 = vmatpush3.bf16.msra.mxu1 %v9668_v23  ;;  %v9707_v23 = vpack.c.bf16 %v7295_v42, %v7294_v41 }
 0x23d   : > { %9695 = vmatprep.subr.bf16.mxu0 %v11074_v31  ;;  %9671 = vmatprep.subr.bf16.mxu1 %v9670_v5  ;;  %v9709_v5 = vpack.c.bf16 %v7313_v58, %v7312_v33  ;;  %v7323_v33 = vld [vmem:[%s16771_s5 + $0x288] sm:$0xff] }
 0x240   : > { %9697 = vmatpush1.bf16.msra.mxu0 %v9696_v0  ;;  %9673 = vmatpush3.bf16.msra.mxu1 %v9672_v11 }
 0x241   : > { %9698 = vmatprep.subr.bf16.mxu0 %v11074_v31  ;;  %9733 = vmatprep.subr.bf16.mxu1 %v11074_v31 }
 0x244   : > { %9700 = vmatpush1.bf16.msra.mxu0 %v9699_v3 }
 0x245   : > { %9702 = vmatprep.subr.bf16.mxu0 %v9701_v14  ;;  %v9711_v14 = vpack.c.bf16 %v7297_v6, %v7296_v63  ;;  %v7338_v63 = vld [vmem:[%s16771_s5 + $0x300] sm:$0xff] }
 0x2f5   : > { %v2379_v19 = vpop.f32.mrb[0].mxu1  ;;  %v2462_v20 = vpop.f32.mrb[6].mxu0 }
 0x2f6   : > { %v2513_v22 = vadd.f32 %v2496_v16, %v2379_v19  ;;  %v2515_v26 = vadd.f32 %v2504_v17, %v2462_v20  ;;  %v2381_v27 = vpop.f32.mrb[1].mxu1  ;;  %v2464_v10 = vpop.f32.mrb[7].mxu0  ;;  %v7317_v19 = vld [vmem:[%s16771_s5 + $0x258] sm:$0xff] }
 0x2f7   : > { %v2514_v30 = vadd.f32 %v2500_v49, %v2381_v27  ;;  %v2516_v32 = vadd.f32 %v2508_v18, %v2464_v10  ;;  %v7333_v27 = vld [vmem:[%s16771_s5 + $0x2d8] sm:$0xff]  ;;  %v7318_v10 = vld [vmem:[%s16771_s5 + $0x260] sm:$0xff] }
 0x2f8   : > { %v13514_v43 = vmax.f32 %v2513_v22, 0.0  ;;  %v13516_v44 = vmax.f32 %v2515_v26, 0.0  ;;  %v7301_v22 = vld [vmem:[%s16771_s5 + $0x1d8] sm:$0xff]  ;;  %v7332_v26 = vld [vmem:[%s16771_s5 + $0x2d0] sm:$0xff] }
 0x2f9   : > { %v13504_v35 = vmax.f32 %v2514_v30, 0.0  ;;  %v13506_v36 = vmax.f32 %v2516_v32, 0.0  ;;  %v2385_v37 = vpop.f32.mrb[2].mxu1  ;;  %v2468_v38 = vpop.f32.mrb[8].mxu0  ;;  %v9719_v28 = vpack.c.bf16 %v7301_v22, %v7300_v24  ;;  %v9746_v29 = vpack.c.bf16 %v7333_v27, %v7332_v26  ;;  %v7302_v30 = vld [vmem:[%s16771_s5 + $0x1e0] sm:$0xff]  ;;  %v7376_v24 = vld [vmem:[%s16771_s5 + $0x428] sm:$0xff] }
 0x2fa   : > { %v13518_v45 = vadd.f32 %v2496_v16, %v2385_v37  ;;  %v13520_v46 = vadd.f32 %v2504_v17, %v2468_v38  ;;  %v2387_v47 = vpop.f32.mrb[3].mxu1  ;;  %v2470_v48 = vpop.f32.mrb[9].mxu0  ;;  %v9721_v32 = vpack.c.bf16 %v7319_v39, %v7318_v10  ;;  %v7334_v37 = vld [vmem:[%s16771_s5 + $0x2e0] sm:$0xff]  ;;  %v7335_v38 = vld [vmem:[%s16771_s5 + $0x2e8] sm:$0xff] }
 0x2fb   : > { %v13528_v53 = vadd.f32 %v2500_v49, %v2387_v47  ;;  %v13530_v55 = vadd.f32 %v2508_v18, %v2470_v48  ;;  %2656 = vmatprep.mubr.f32.mxu1 %v13504_v35  ;;  %7291 = vmatprep.mubr.msk.f32.mxu0 %vm2588_vm8, %v13506_v36  ;;  %v2788_v56 = vrot.slane %v13504_v35, 1  ;;  %v2790_v57 = vrot.slane %v13506_v36, 1  ;;  %v7304_v47 = vld [vmem:[%s16771_s5 + $0x1f0] sm:$0xff]  ;;  %v7364_v22 = vld [vmem:[%s16771_s5 + $0x3c8] sm:$0xff]  ;;  %v7347_v39 = vld [vmem:[%s16771_s5 + $0x340] sm:$0xff] }
 0x2fc   : > { %2657 = vmatmul.mubr.f32.vlgmr.msra.gmra.mrb[6].mxu1 %v13514_v43  ;;  %2727 = vmatmul.mubr.f32.vlgmr.msra.gmra.mrb[12].mxu0 %v13516_v44  ;;  %v9749_v42 = vpack.c.bf16 %v7335_v38, %v7334_v37  ;;  %v9727_v58 = vpack.c.bf16 %v7305_v50, %v7304_v47  ;;  %v2989_v26 = vrot.slane %v13504_v35, 2  ;;  %v7365_v37 = vld [vmem:[%s16771_s5 + $0x3d0] sm:$0xff]  ;;  %v7366_v38 = vld [vmem:[%s16771_s5 + $0x3d8] sm:$0xff]  ;;  %v7379_v50 = vld [vmem:[%s16771_s5 + $0x440] sm:$0xff] }
 0x2fd   : > { %9704 = vmatpush3.bf16.msra.mxu0 %v9703_v34  ;;  %9735 = vmatpush1.bf16.msra.mxu1 %v9734_v21  ;;  %v2391_v59 = vpop.f32.mrb[4].mxu1  ;;  %v2474_v61 = vpop.f32.mrb[10].mxu0  ;;  %v7303_v34 = vld [vmem:[%s16771_s5 + $0x1e8] sm:$0xff]  ;;  %v7320_v21 = vld [vmem:[%s16771_s5 + $0x270] sm:$0xff]  ;;  %v9772_v47 = vpack.c.bf16 %v7366_v38, %v7365_v37 }
 0x2fe   : > { %v13548_v0 = vadd.f32 %v2496_v16, %v2391_v59  ;;  %v13550_v9 = vadd.f32 %v2504_v17, %v2474_v61  ;;  %2860 = vmatprep.mubr.f32.mxu0 %v2788_v56  ;;  %7342 = vmatprep.mubr.msk.f32.mxu1 %vm2588_vm8, %v2790_v57  ;;  %v2393_v1 = vpop.f32.mrb[5].mxu1  ;;  %v2476_v4 = vpop.f32.mrb[11].mxu0  ;;  %v7299_v16 = vld [vmem:[%s16771_s5 + $0x1c8] sm:$0xff]  ;;  %v7330_v17 = vld [vmem:[%s16771_s5 + $0x2c0] sm:$0xff]  ;;  %v9723_v41 = vpack.c.bf16 %v7303_v34, %v7302_v30  ;;  %v7337_v56 = vld [vmem:[%s16771_s5 + $0x2f8] sm:$0xff] }
 0x2ff   : > { %v13562_v11 = vadd.f32 %v2500_v49, %v2393_v1  ;;  %v13564_v3 = vadd.f32 %v2508_v18, %v2476_v4  ;;  %9706 = vmatprep.subr.bf16.mxu0 %v9705_v40  ;;  %9736 = vmatprep.subr.bf16.mxu1 %v11074_v31  ;;  %v7331_v49 = vld [vmem:[%s16771_s5 + $0x2c8] sm:$0xff]  ;;  %v7316_v18 = vld [vmem:[%s16771_s5 + $0x250] sm:$0xff]  ;;  %v9715_v20 = vpack.c.bf16 %v7299_v16, %v7298_v2  ;;  %v7321_v40 = vld [vmem:[%s16771_s5 + $0x278] sm:$0xff] }
 0x300   : > { %v9743_v60 = vpack.c.bf16 %v7331_v49, %v7330_v17  ;;  %v9717_v25 = vpack.c.bf16 %v7317_v19, %v7316_v18  ;;  %v9725_v48 = vpack.c.bf16 %v7321_v40, %v7320_v21  ;;  %v7322_v57 = vld [vmem:[%s16771_s5 + $0x280] sm:$0xff]  ;;  %v9752_v59 = vpack.c.bf16 %v7337_v56, %v7336_v52  ;;  %v7339_v1 = vld [vmem:[%s16771_s5 + $0x308] sm:$0xff]  ;;  %v7361_v2 = vld [vmem:[%s16771_s5 + $0x3b0] sm:$0xff] }
 0x301   : > { %9708 = vmatpush3.bf16.msra.mxu0 %v9707_v23  ;;  %9738 = vmatpush1.bf16.msra.mxu1 %v9737_v62  ;;  %v7306_v61 = vld [vmem:[%s16771_s5 + $0x200] sm:$0xff]  ;;  %v9729_v23 = vpack.c.bf16 %v7323_v33, %v7322_v57  ;;  %v7307_v62 = vld [vmem:[%s16771_s5 + $0x208] sm:$0xff]  ;;  %v9755_v51 = vpack.c.bf16 %v7339_v1, %v7338_v63  ;;  %v9758_v16 = vpack.c.bf16 %v7341_v13, %v7340_v8  ;;  %v7345_v49 = vld [vmem:[%s16771_s5 + $0x330] sm:$0xff]  ;;  %v2787_v18 = vrot.slane %v13514_v43, 1 }
 0x302   : > { %9710 = vmatprep.subr.bf16.mxu0 %v9709_v5  ;;  %9739 = vmatprep.subr.bf16.mxu1 %v11074_v31  ;;  %v7359_v4 = vld [vmem:[%s16771_s5 + $0x3a0] sm:$0xff]  ;;  %v7360_v5 = vld [vmem:[%s16771_s5 + $0x3a8] sm:$0xff]  ;;  %v9731_v6 = vpack.c.bf16 %v7307_v62, %v7306_v61  ;;  %v7378_v34 = vld [vmem:[%s16771_s5 + $0x438] sm:$0xff]  ;;  %v2991_v21 = vrot.slane %v13506_v36, 2 }
 0x303   : > { %v9760_v12 = vpack.c.bf16 %v7360_v5, %v7359_v4  ;;  %v7348_v30 = vld [vmem:[%s16771_s5 + $0x348] sm:$0xff]  ;;  %v7367_v56 = vld [vmem:[%s16771_s5 + $0x3e0] sm:$0xff]  ;;  %v7381_v62 = vld [vmem:[%s16771_s5 + $0x450] sm:$0xff] }
 0x304   : > { %v9770_v40 = vpack.c.bf16 %v7348_v30, %v7347_v39  ;;  %v7380_v52 = vld [vmem:[%s16771_s5 + $0x448] sm:$0xff]  ;;  %v7382_v63 = vld [vmem:[%s16771_s5 + $0x458] sm:$0xff]  ;;  %v7369_v1 = vld [vmem:[%s16771_s5 + $0x3f0] sm:$0xff] }
 0x305   : > { %9712 = vmatpush3.bf16.msra.mxu0 %v9711_v14  ;;  %9741 = vmatpush1.bf16.msra.mxu1 %v9740_v54  ;;  %v7343_v14 = vld [vmem:[%s16771_s5 + $0x320] sm:$0xff]  ;;  %v7344_v54 = vld [vmem:[%s16771_s5 + $0x328] sm:$0xff]  ;;  %v7370_v4 = vld [vmem:[%s16771_s5 + $0x3f8] sm:$0xff] }
 0x306   : > { %9714 = vmatprep.subr.bf16.mxu0 %v9713_v15  ;;  %9742 = vmatprep.subr.bf16.mxu1 %v11074_v31  ;;  %v7362_v15 = vld [vmem:[%s16771_s5 + $0x3b8] sm:$0xff]  ;;  %v9762_v17 = vpack.c.bf16 %v7344_v54, %v7343_v14  ;;  %v7368_v57 = vld [vmem:[%s16771_s5 + $0x3e8] sm:$0xff]  ;;  %v9780_v8 = vpack.c.bf16 %v7370_v4, %v7369_v1  ;;  %v7383_v13 = vld [vmem:[%s16771_s5 + $0x460] sm:$0xff] }
 0x307   : > { %v9764_v19 = vpack.c.bf16 %v7362_v15, %v7361_v2  ;;  %v9776_v61 = vpack.c.bf16 %v7368_v57, %v7367_v56  ;;  %v7384_v14 = vld [vmem:[%s16771_s5 + $0x468] sm:$0xff]  ;;  %v7371_v54 = vld [vmem:[%s16771_s5 + $0x400] sm:$0xff]  ;;  %v7411_v30 = vld [vmem:[%s16771_s5 + $0x538] sm:$0xff]  ;;  %v2988_v56 = vrot.slane %v13514_v43, 2 }
 0x308   : > { %v7372_v2 = vld [vmem:[%s16771_s5 + $0x408] sm:$0xff]  ;;  %v7387_v39 = vld [vmem:[%s16771_s5 + $0x480] sm:$0xff]  ;;  %v7389_v37 = vld [vmem:[%s16771_s5 + $0x490] sm:$0xff] }
 0x309   : > { %9716 = vmatpush3.bf16.msra.mxu0 %v9715_v20  ;;  %9744 = vmatpush1.bf16.msra.mxu1 %v9743_v60  ;;  %v7346_v20 = vld [vmem:[%s16771_s5 + $0x338] sm:$0xff]  ;;  %v7375_v60 = vld [vmem:[%s16771_s5 + $0x420] sm:$0xff]  ;;  %v7392_v57 = vld [vmem:[%s16771_s5 + $0x4a8] sm:$0xff] }
 0x30a   : > { %9718 = vmatprep.subr.bf16.mxu0 %v9717_v25  ;;  %9745 = vmatprep.subr.bf16.mxu1 %v11074_v31  ;;  %v7363_v25 = vld [vmem:[%s16771_s5 + $0x3c0] sm:$0xff]  ;;  %v9766_v27 = vpack.c.bf16 %v7346_v20, %v7345_v49  ;;  %v9793_v10 = vpack.c.bf16 %v7376_v24, %v7375_v60  ;;  %v9784_v49 = vpack.c.bf16 %v7372_v2, %v7371_v54  ;;  %v7386_v20 = vld [vmem:[%s16771_s5 + $0x478] sm:$0xff]  ;;  %v7373_v60 = vld [vmem:[%s16771_s5 + $0x410] sm:$0xff] }
 0x30b   : > { %v7374_v24 = vld [vmem:[%s16771_s5 + $0x418] sm:$0xff]  ;;  %v7398_v4 = vld [vmem:[%s16771_s5 + $0x4d0] sm:$0xff]  ;;  %v7400_v2 = vld [vmem:[%s16771_s5 + $0x4e0] sm:$0xff] }
 0x30d   : > { %9720 = vmatpush3.bf16.msra.mxu0 %v9719_v28  ;;  %9747 = vmatpush1.bf16.msra.mxu1 %v9746_v29  ;;  %v2789_v28 = vrot.slane %v13516_v44, 1  ;;  %v9768_v29 = vpack.c.bf16 %v7364_v22, %v7363_v25 }
 0x30e   : > { %9722 = vmatprep.subr.bf16.mxu0 %v9721_v32  ;;  %9748 = vmatprep.subr.bf16.mxu1 %v11074_v31  ;;  %v7377_v32 = vld [vmem:[%s16771_s5 + $0x430] sm:$0xff] }
 0x311   : > { %9724 = vmatpush3.bf16.msra.mxu0 %v9723_v41  ;;  %9750 = vmatpush1.bf16.msra.mxu1 %v9749_v42  ;;  %v9796_v41 = vpack.c.bf16 %v7378_v34, %v7377_v32  ;;  %v7349_v42 = vld [vmem:[%s16771_s5 + $0x350] sm:$0xff] }
 0x312   : > { %9726 = vmatprep.subr.bf16.mxu0 %v9725_v48  ;;  %9751 = vmatprep.subr.bf16.mxu1 %v11074_v31  ;;  %v7350_v48 = vld [vmem:[%s16771_s5 + $0x358] sm:$0xff] }
 0x313   : > { %v9774_v33 = vpack.c.bf16 %v7350_v48, %v7349_v42  ;;  %v7412_v42 = vld [vmem:[%s16771_s5 + $0x540] sm:$0xff] }
 0x315   : > { %9728 = vmatpush3.bf16.msra.mxu0 %v9727_v58  ;;  %9753 = vmatpush1.bf16.msra.mxu1 %v9752_v59  ;;  %v9799_v58 = vpack.c.bf16 %v7380_v52, %v7379_v50  ;;  %v7351_v59 = vld [vmem:[%s16771_s5 + $0x360] sm:$0xff] }
 0x316   : > { %9730 = vmatprep.subr.bf16.mxu0 %v9729_v23  ;;  %9754 = vmatprep.subr.bf16.mxu1 %v11074_v31  ;;  %v7352_v23 = vld [vmem:[%s16771_s5 + $0x368] sm:$0xff]  ;;  %v7391_v52 = vld [vmem:[%s16771_s5 + $0x4a0] sm:$0xff] }
 0x317   : > { %v9778_v5 = vpack.c.bf16 %v7352_v23, %v7351_v59  ;;  %v7415_v23 = vld [vmem:[%s16771_s5 + $0x558] sm:$0xff] }
 0x319   : > { %9732 = vmatpush3.bf16.msra.mxu0 %v9731_v6  ;;  %9756 = vmatpush1.bf16.msra.mxu1 %v9755_v51  ;;  %v9802_v6 = vpack.c.bf16 %v7382_v63, %v7381_v62  ;;  %v7353_v51 = vld [vmem:[%s16771_s5 + $0x370] sm:$0xff]  ;;  %v3190_v62 = vrot.slane %v13504_v35, 3  ;;  %v9817_v63 = vpack.c.bf16 %v7392_v57, %v7391_v52 }
 0x31a   : > { %9757 = vmatprep.subr.bf16.mxu1 %v11074_v31  ;;  %9761 = vmatprep.subr.bf16.mxu0 %v9760_v12  ;;  %v7354_v12 = vld [vmem:[%s16771_s5 + $0x378] sm:$0xff]  ;;  %v7434_v57 = vld [vmem:[%s16771_s5 + $0x5f0] sm:$0xff] }
 0x31b   : > { %v9782_v15 = vpack.c.bf16 %v7354_v12, %v7353_v51  ;;  %v7426_v51 = vld [vmem:[%s16771_s5 + $0x5b0] sm:$0xff]  ;;  %v7416_v12 = vld [vmem:[%s16771_s5 + $0x560] sm:$0xff] }
 0x31c   : > { %2861 = vmatmul.mubr.f32.vlgmr.msra.gmra.mrb[14].mxu0 %v2787_v18  ;;  %v7356_v18 = vld [vmem:[%s16771_s5 + $0x388] sm:$0xff] }
 0x31d   : > { %9759 = vmatpush1.bf16.msra.mxu1 %v9758_v16  ;;  %9763 = vmatpush3.bf16.msra.mxu0 %v9762_v17  ;;  %v9805_v16 = vpack.c.bf16 %v7384_v14, %v7383_v13  ;;  %v7355_v17 = vld [vmem:[%s16771_s5 + $0x380] sm:$0xff]  ;;  %v7417_v13 = vld [vmem:[%s16771_s5 + $0x568] sm:$0xff] }
 0x31e   : > { %3061 = vmatprep.mubr.f32.mxu0 %v2989_v26  ;;  %9765 = vmatprep.subr.bf16.mxu0 %v9764_v19  ;;  %v7385_v19 = vld [vmem:[%s16771_s5 + $0x470] sm:$0xff]  ;;  %v9786_v25 = vpack.c.bf16 %v7356_v18, %v7355_v17  ;;  %v7401_v17 = vld [vmem:[%s16771_s5 + $0x4e8] sm:$0xff] }
 0x31f   : > { %9792 = vmatprep.subr.bf16.mxu1 %v11074_v31  ;;  %v9808_v22 = vpack.c.bf16 %v7386_v20, %v7385_v19  ;;  %v7357_v26 = vld [vmem:[%s16771_s5 + $0x390] sm:$0xff]  ;;  %v7429_v18 = vld [vmem:[%s16771_s5 + $0x5c8] sm:$0xff]  ;;  %v7419_v20 = vld [vmem:[%s16771_s5 + $0x578] sm:$0xff] }
 0x320   : > { %2931 = vmatmul.mubr.f32.vlgmr.msra.gmra.mrb[8].mxu1 %v2789_v28  ;;  %v7388_v28 = vld [vmem:[%s16771_s5 + $0x488] sm:$0xff]  ;;  %v7418_v19 = vld [vmem:[%s16771_s5 + $0x570] sm:$0xff] }
 0x321   : > { %9767 = vmatpush3.bf16.msra.mxu0 %v9766_v27  ;;  %9794 = vmatpush1.bf16.msra.mxu1 %v9793_v10  ;;  %v9788_v27 = vpack.c.bf16 %v7374_v24, %v7373_v60  ;;  %v7358_v10 = vld [vmem:[%s16771_s5 + $0x398] sm:$0xff]  ;;  %v9811_v34 = vpack.c.bf16 %v7388_v28, %v7387_v39  ;;  %v3192_v60 = vrot.slane %v13506_v36, 3  ;;  %v9833_v24 = vpack.c.bf16 %v7401_v17, %v7400_v2  ;;  %v7420_v28 = vld [vmem:[%s16771_s5 + $0x580] sm:$0xff] }
 0x322   : > { %7393 = vmatprep.mubr.msk.f32.mxu1 %vm2588_vm8, %v2991_v21  ;;  %9769 = vmatprep.subr.bf16.mxu0 %v9768_v29  ;;  %v7410_v29 = vld [vmem:[%s16771_s5 + $0x530] sm:$0xff]  ;;  %v9790_v32 = vpack.c.bf16 %v7358_v10, %v7357_v26  ;;  %v7390_v21 = vld [vmem:[%s16771_s5 + $0x498] sm:$0xff]  ;;  %v9835_v26 = vpack.c.bf16 %v7419_v20, %v7418_v19  ;;  %v7445_v2 = vld [vmem:[%s16771_s5 + $0x640] sm:$0xff]  ;;  %v3189_v20 = vrot.slane %v13514_v43, 3 }
 0x323   : > { %9795 = vmatprep.subr.bf16.mxu1 %v11074_v31  ;;  %v9819_v38 = vpack.c.bf16 %v7411_v30, %v7410_v29  ;;  %v9814_v48 = vpack.c.bf16 %v7390_v21, %v7389_v37  ;;  %v7430_v10 = vld [vmem:[%s16771_s5 + $0x5d0] sm:$0xff]  ;;  %v7431_v39 = vld [vmem:[%s16771_s5 + $0x5d8] sm:$0xff]  ;;  %v7421_v29 = vld [vmem:[%s16771_s5 + $0x588] sm:$0xff] }
 0x324   : > { %v9839_v37 = vpack.c.bf16 %v7421_v29, %v7420_v28  ;;  %v7432_v21 = vld [vmem:[%s16771_s5 + $0x5e0] sm:$0xff]  ;;  %v7464_v17 = vld [vmem:[%s16771_s5 + $0x6d8] sm:$0xff]  ;;  %v7442_v29 = vld [vmem:[%s16771_s5 + $0x630] sm:$0xff] }
 0x325   : > { %9771 = vmatpush3.bf16.msra.mxu0 %v9770_v40  ;;  %9797 = vmatpush1.bf16.msra.mxu1 %v9796_v41  ;;  %v7394_v40 = vld [vmem:[%s16771_s5 + $0x4b0] sm:$0xff]  ;;  %v7395_v41 = vld [vmem:[%s16771_s5 + $0x4b8] sm:$0xff]  ;;  %v7440_v19 = vld [vmem:[%s16771_s5 + $0x620] sm:$0xff] }
 0x326   : > { %9773 = vmatprep.subr.bf16.mxu0 %v9772_v47  ;;  %9798 = vmatprep.subr.bf16.mxu1 %v11074_v31  ;;  %v7413_v47 = vld [vmem:[%s16771_s5 + $0x548] sm:$0xff]  ;;  %v9821_v50 = vpack.c.bf16 %v7395_v41, %v7394_v40  ;;  %v7422_v41 = vld [vmem:[%s16771_s5 + $0x590] sm:$0xff] }
 0x327   : > { %v9823_v59 = vpack.c.bf16 %v7413_v47, %v7412_v42  ;;  %v7433_v40 = vld [vmem:[%s16771_s5 + $0x5e8] sm:$0xff]  ;;  %v7423_v42 = vld [vmem:[%s16771_s5 + $0x598] sm:$0xff] }
 0x328   : > { %v9843_v52 = vpack.c.bf16 %v7423_v42, %v7422_v41  ;;  %v7451_v42 = vld [vmem:[%s16771_s5 + $0x670] sm:$0xff] }
 0x329   : > { %9775 = vmatpush3.bf16.msra.mxu0 %v9774_v33  ;;  %9800 = vmatpush1.bf16.msra.mxu1 %v9799_v58  ;;  %v7396_v33 = vld [vmem:[%s16771_s5 + $0x4c0] sm:$0xff]  ;;  %v7397_v58 = vld [vmem:[%s16771_s5 + $0x4c8] sm:$0xff] }
 0x32a   : > { %9777 = vmatprep.subr.bf16.mxu0 %v9776_v61  ;;  %9801 = vmatprep.subr.bf16.mxu1 %v11074_v31  ;;  %v7414_v61 = vld [vmem:[%s16771_s5 + $0x550] sm:$0xff]  ;;  %v9825_v1 = vpack.c.bf16 %v7397_v58, %v7396_v33  ;;  %v7435_v33 = vld [vmem:[%s16771_s5 + $0x5f8] sm:$0xff]  ;;  %v7424_v58 = vld [vmem:[%s16771_s5 + $0x5a0] sm:$0xff] }
 0x32d   : > { %9779 = vmatpush3.bf16.msra.mxu0 %v9778_v5  ;;  %9803 = vmatpush1.bf16.msra.mxu1 %v9802_v6  ;;  %v9827_v5 = vpack.c.bf16 %v7415_v23, %v7414_v61  ;;  %v7399_v6 = vld [vmem:[%s16771_s5 + $0x4d8] sm:$0xff]  ;;  %v9864_v23 = vpack.c.bf16 %v7435_v33, %v7434_v57  ;;  %v7470_v57 = vld [vmem:[%s16771_s5 + $0x708] sm:$0xff] }
 0x32e   : > { %9781 = vmatprep.subr.bf16.mxu0 %v9780_v8  ;;  %9804 = vmatprep.subr.bf16.mxu1 %v11074_v31  ;;  %v7427_v8 = vld [vmem:[%s16771_s5 + $0x5b8] sm:$0xff]  ;;  %v9829_v14 = vpack.c.bf16 %v7399_v6, %v7398_v4  ;;  %v7436_v4 = vld [vmem:[%s16771_s5 + $0x600] sm:$0xff] }
 0x32f   : > { %v9852_v54 = vpack.c.bf16 %v7427_v8, %v7426_v51  ;;  %v7461_v6 = vld [vmem:[%s16771_s5 + $0x6c0] sm:$0xff]  ;;  %v7462_v51 = vld [vmem:[%s16771_s5 + $0x6c8] sm:$0xff] }
 0x331   : > { %9783 = vmatpush3.bf16.msra.mxu0 %v9782_v15  ;;  %9806 = vmatpush1.bf16.msra.mxu1 %v9805_v16  ;;  %v2990_v15 = vrot.slane %v13516_v44, 2  ;;  %v9831_v16 = vpack.c.bf16 %v7417_v13, %v7416_v12  ;;  %v7438_v13 = vld [vmem:[%s16771_s5 + $0x610] sm:$0xff] }
 0x332   : > { %9785 = vmatprep.subr.bf16.mxu0 %v9784_v49  ;;  %9807 = vmatprep.subr.bf16.mxu1 %v11074_v31  ;;  %v7428_v49 = vld [vmem:[%s16771_s5 + $0x5c0] sm:$0xff] }
 0x335   : > { %9787 = vmatpush3.bf16.msra.mxu0 %v9786_v25  ;;  %9809 = vmatpush1.bf16.msra.mxu1 %v9808_v22  ;;  %v9855_v25 = vpack.c.bf16 %v7429_v18, %v7428_v49  ;;  %v7402_v22 = vld [vmem:[%s16771_s5 + $0x4f0] sm:$0xff] }
 0x336   : > { %9789 = vmatprep.subr.bf16.mxu0 %v9788_v27  ;;  %9810 = vmatprep.subr.bf16.mxu1 %v11074_v31  ;;  %v7403_v27 = vld [vmem:[%s16771_s5 + $0x4f8] sm:$0xff] }
 0x337   : > { %v9837_v30 = vpack.c.bf16 %v7403_v27, %v7402_v22  ;;  %v7466_v27 = vld [vmem:[%s16771_s5 + $0x6e8] sm:$0xff] }
 0x339   : > { %9791 = vmatpush3.bf16.msra.mxu0 %v9790_v32  ;;  %9812 = vmatpush1.bf16.msra.mxu1 %v9811_v34  ;;  %v9858_v32 = vpack.c.bf16 %v7431_v39, %v7430_v10  ;;  %v7404_v34 = vld [vmem:[%s16771_s5 + $0x500] sm:$0xff]  ;;  %v3391_v10 = vrot.slane %v13504_v35, 4 }
 0x33a   : > { %9813 = vmatprep.subr.bf16.mxu1 %v11074_v31  ;;  %9820 = vmatprep.subr.bf16.mxu0 %v9819_v38  ;;  %v7405_v38 = vld [vmem:[%s16771_s5 + $0x508] sm:$0xff] }
 0x33b   : > { %v9841_v47 = vpack.c.bf16 %v7405_v38, %v7404_v34  ;;  %v7449_v34 = vld [vmem:[%s16771_s5 + $0x660] sm:$0xff]  ;;  %v7467_v38 = vld [vmem:[%s16771_s5 + $0x6f0] sm:$0xff] }
 0x33c   : > { %3062 = vmatmul.mubr.f32.vlgmr.msra.gmra.mrb[16].mxu0 %v2988_v56  ;;  %v7407_v56 = vld [vmem:[%s16771_s5 + $0x518] sm:$0xff] }
 0x33d   : > { %9815 = vmatpush1.bf16.msra.mxu1 %v9814_v48  ;;  %9822 = vmatpush3.bf16.msra.mxu0 %v9821_v50  ;;  %v9861_v48 = vpack.c.bf16 %v7433_v40, %v7432_v21  ;;  %v7406_v50 = vld [vmem:[%s16771_s5 + $0x510] sm:$0xff]  ;;  %v7468_v21 = vld [vmem:[%s16771_s5 + $0x6f8] sm:$0xff] }
 0x33e   : > { %3262 = vmatprep.mubr.f32.mxu0 %v3190_v62  ;;  %9816 = vmatprep.subr.bf16.mxu1 %v11074_v31  ;;  %v9845_v61 = vpack.c.bf16 %v7407_v56, %v7406_v50  ;;  %v7408_v62 = vld [vmem:[%s16771_s5 + $0x520] sm:$0xff] }
 0x33f   : > { %9824 = vmatprep.subr.bf16.mxu0 %v9823_v59  ;;  %v7425_v59 = vld [vmem:[%s16771_s5 + $0x5a8] sm:$0xff]  ;;  %v7477_v50 = vld [vmem:[%s16771_s5 + $0x740] sm:$0xff] }
 0x340   : > { %v7469_v56 = vld [vmem:[%s16771_s5 + $0x700] sm:$0xff] }
 0x341   : > { %9818 = vmatpush1.bf16.msra.mxu1 %v9817_v63  ;;  %9826 = vmatpush3.bf16.msra.mxu0 %v9825_v1  ;;  %v9847_v63 = vpack.c.bf16 %v7425_v59, %v7424_v58  ;;  %v7409_v1 = vld [vmem:[%s16771_s5 + $0x528] sm:$0xff]  ;;  %v7453_v59 = vld [vmem:[%s16771_s5 + $0x680] sm:$0xff] }
 0x342   : > { %9828 = vmatprep.subr.bf16.mxu0 %v9827_v5  ;;  %9851 = vmatprep.subr.bf16.mxu1 %v11074_v31  ;;  %v7437_v5 = vld [vmem:[%s16771_s5 + $0x608] sm:$0xff]  ;;  %v9849_v8 = vpack.c.bf16 %v7409_v1, %v7408_v62  ;;  %v7480_v1 = vld [vmem:[%s16771_s5 + $0x758] sm:$0xff] }
 0x343   : > { %v9867_v12 = vpack.c.bf16 %v7437_v5, %v7436_v4  ;;  %v7454_v62 = vld [vmem:[%s16771_s5 + $0x688] sm:$0xff]  ;;  %v7471_v4 = vld [vmem:[%s16771_s5 + $0x710] sm:$0xff]  ;;  %v7472_v5 = vld [vmem:[%s16771_s5 + $0x718] sm:$0xff] }
 0x344   : > { %3132 = vmatmul.mubr.f32.vlgmr.msra.gmra.mrb[8].mxu1 %v2990_v15  ;;  %v7446_v15 = vld [vmem:[%s16771_s5 + $0x648] sm:$0xff] }
 0x345   : > { %9830 = vmatpush3.bf16.msra.mxu0 %v9829_v14  ;;  %9853 = vmatpush1.bf16.msra.mxu1 %v9852_v54  ;;  %v9878_v14 = vpack.c.bf16 %v7462_v51, %v7461_v6  ;;  %v7439_v54 = vld [vmem:[%s16771_s5 + $0x618] sm:$0xff]  ;;  %v9880_v18 = vpack.c.bf16 %v7446_v15, %v7445_v2  ;;  %v3393_v6 = vrot.slane %v13506_v36, 4  ;;  %v9896_v51 = vpack.c.bf16 %v7454_v62, %v7453_v59  ;;  %v7482_v2 = vld [vmem:[%s16771_s5 + $0x768] sm:$0xff]  ;;  %v7473_v15 = vld [vmem:[%s16771_s5 + $0x720] sm:$0xff] }
 0x346   : > { %7444 = vmatprep.mubr.msk.f32.mxu1 %vm2588_vm8, %v3192_v60  ;;  %9832 = vmatprep.subr.bf16.mxu0 %v9831_v16  ;;  %v7463_v16 = vld [vmem:[%s16771_s5 + $0x6d0] sm:$0xff]  ;;  %v9870_v49 = vpack.c.bf16 %v7439_v54, %v7438_v13  ;;  %v7441_v60 = vld [vmem:[%s16771_s5 + $0x628] sm:$0xff]  ;;  %v9898_v13 = vpack.c.bf16 %v7472_v5, %v7471_v4  ;;  %v7481_v54 = vld [vmem:[%s16771_s5 + $0x760] sm:$0xff] }
 0x347   : > { %9854 = vmatprep.subr.bf16.mxu1 %v11074_v31  ;;  %v9882_v22 = vpack.c.bf16 %v7464_v17, %v7463_v16  ;;  %v9873_v39 = vpack.c.bf16 %v7441_v60, %v7440_v19  ;;  %v7474_v16 = vld [vmem:[%s16771_s5 + $0x728] sm:$0xff]  ;;  %v7483_v60 = vld [vmem:[%s16771_s5 + $0x770] sm:$0xff]  ;;  %v7498_v59 = vld [vmem:[%s16771_s5 + $0x7e0] sm:$0xff] }
 0x348   : > { %v9902_v19 = vpack.c.bf16 %v7474_v16, %v7473_v15  ;;  %v7516_v62 = vld [vmem:[%s16771_s5 + $0x870] sm:$0xff]  ;;  %v7493_v16 = vld [vmem:[%s16771_s5 + $0x7c0] sm:$0xff] }
 0x349   : > { %9834 = vmatpush3.bf16.msra.mxu0 %v9833_v24  ;;  %9856 = vmatpush1.bf16.msra.mxu1 %v9855_v25  ;;  %v7447_v24 = vld [vmem:[%s16771_s5 + $0x650] sm:$0xff]  ;;  %v7448_v25 = vld [vmem:[%s16771_s5 + $0x658] sm:$0xff] }
 0x34a   : > { %9836 = vmatprep.subr.bf16.mxu0 %v9835_v26  ;;  %9857 = vmatprep.subr.bf16.mxu1 %v11074_v31  ;;  %v7465_v26 = vld [vmem:[%s16771_s5 + $0x6e0] sm:$0xff]  ;;  %v9884_v28 = vpack.c.bf16 %v7448_v25, %v7447_v24  ;;  %v7484_v24 = vld [vmem:[%s16771_s5 + $0x778] sm:$0xff]  ;;  %v7475_v25 = vld [vmem:[%s16771_s5 + $0x730] sm:$0xff] }
 0x34d   : > { %9838 = vmatpush3.bf16.msra.mxu0 %v9837_v30  ;;  %9859 = vmatpush1.bf16.msra.mxu1 %v9858_v32  ;;  %v9886_v30 = vpack.c.bf16 %v7466_v27, %v7465_v26  ;;  %v7443_v32 = vld [vmem:[%s16771_s5 + $0x638] sm:$0xff]  ;;  %v9920_v27 = vpack.c.bf16 %v7484_v24, %v7483_v60 }
 0x34e   : > { %9840 = vmatprep.subr.bf16.mxu0 %v9839_v37  ;;  %9860 = vmatprep.subr.bf16.mxu1 %v11074_v31  ;;  %v7450_v37 = vld [vmem:[%s16771_s5 + $0x668] sm:$0xff]  ;;  %v9876_v40 = vpack.c.bf16 %v7443_v32, %v7442_v29  ;;  %v7485_v29 = vld [vmem:[%s16771_s5 + $0x780] sm:$0xff]  ;;  %v7512_v32 = vld [vmem:[%s16771_s5 + $0x850] sm:$0xff] }
 0x34f   : > { %v9888_v41 = vpack.c.bf16 %v7450_v37, %v7449_v34  ;;  %v7513_v34 = vld [vmem:[%s16771_s5 + $0x858] sm:$0xff] }
 0x350   : > { %v7521_v60 = vld [vmem:[%s16771_s5 + $0x898] sm:$0xff] }
 0x351   : > { %9842 = vmatpush3.bf16.msra.mxu0 %v9841_v47  ;;  %9862 = vmatpush1.bf16.msra.mxu1 %v9861_v48  ;;  %v9890_v47 = vpack.c.bf16 %v7468_v21, %v7467_v38  ;;  %v7452_v48 = vld [vmem:[%s16771_s5 + $0x678] sm:$0xff]  ;;  %v7487_v21 = vld [vmem:[%s16771_s5 + $0x790] sm:$0xff] }
 0x352   : > { %9844 = vmatprep.subr.bf16.mxu0 %v9843_v52  ;;  %9863 = vmatprep.subr.bf16.mxu1 %v11074_v31  ;;  %v7478_v52 = vld [vmem:[%s16771_s5 + $0x748] sm:$0xff]  ;;  %v9892_v33 = vpack.c.bf16 %v7452_v48, %v7451_v42  ;;  %v7496_v42 = vld [vmem:[%s16771_s5 + $0x7d0] sm:$0xff]  ;;  %v7514_v48 = vld [vmem:[%s16771_s5 + $0x860] sm:$0xff] }
 0x353   : > { %v9911_v58 = vpack.c.bf16 %v7478_v52, %v7477_v50  ;;  %v7515_v50 = vld [vmem:[%s16771_s5 + $0x868] sm:$0xff] }
 0x355   : > { %9846 = vmatpush3.bf16.msra.mxu0 %v9845_v61  ;;  %9865 = vmatpush1.bf16.msra.mxu1 %v9864_v23  ;;  %v3191_v61 = vrot.slane %v13516_v44, 3  ;;  %v9894_v23 = vpack.c.bf16 %v7470_v57, %v7469_v56  ;;  %v7489_v57 = vld [vmem:[%s16771_s5 + $0x7a0] sm:$0xff] }
 0x356   : > { %9848 = vmatprep.subr.bf16.mxu0 %v9847_v63  ;;  %9866 = vmatprep.subr.bf16.mxu1 %v11074_v31  ;;  %v7479_v63 = vld [vmem:[%s16771_s5 + $0x750] sm:$0xff] }
 0x359   : > { %9850 = vmatpush3.bf16.msra.mxu0 %v9849_v8  ;;  %9868 = vmatpush1.bf16.msra.mxu1 %v9867_v12  ;;  %v9914_v8 = vpack.c.bf16 %v7480_v1, %v7479_v63  ;;  %v7455_v12 = vld [vmem:[%s16771_s5 + $0x690] sm:$0xff]  ;;  %v7517_v63 = vld [vmem:[%s16771_s5 + $0x878] sm:$0xff]  ;;  %v3592_v1 = vrot.slane %v13504_v35, 5 }
 0x35a   : > { %9869 = vmatprep.subr.bf16.mxu1 %v11074_v31  ;;  %9879 = vmatprep.subr.bf16.mxu0 %v9878_v14  ;;  %v7456_v14 = vld [vmem:[%s16771_s5 + $0x698] sm:$0xff] }
 0x35b   : > { %v9900_v17 = vpack.c.bf16 %v7456_v14, %v7455_v12  ;;  %v7500_v12 = vld [vmem:[%s16771_s5 + $0x7f0] sm:$0xff]  ;;  %v7518_v14 = vld [vmem:[%s16771_s5 + $0x880] sm:$0xff] }
 0x35c   : > { %3263 = vmatmul.mubr.f32.vlgmr.msra.gmra.mrb[18].mxu0 %v3189_v20  ;;  %v7458_v20 = vld [vmem:[%s16771_s5 + $0x6a8] sm:$0xff] }
 0x35d   : > { %9871 = vmatpush1.bf16.msra.mxu1 %v9870_v49  ;;  %9881 = vmatpush3.bf16.msra.mxu0 %v9880_v18  ;;  %v9917_v49 = vpack.c.bf16 %v7482_v2, %v7481_v54  ;;  %v7457_v18 = vld [vmem:[%s16771_s5 + $0x6a0] sm:$0xff]  ;;  %v7519_v54 = vld [vmem:[%s16771_s5 + $0x888] sm:$0xff] }
 0x35e   : > { %3463 = vmatprep.mubr.f32.mxu0 %v3391_v10  ;;  %9872 = vmatprep.subr.bf16.mxu1 %v11074_v31  ;;  %v9904_v26 = vpack.c.bf16 %v7458_v20, %v7457_v18  ;;  %v7459_v10 = vld [vmem:[%s16771_s5 + $0x6b0] sm:$0xff]  ;;  %v7502_v18 = vld [vmem:[%s16771_s5 + $0x800] sm:$0xff] }
 0x35f   : > { %9883 = vmatprep.subr.bf16.mxu0 %v9882_v22  ;;  %v7476_v22 = vld [vmem:[%s16771_s5 + $0x738] sm:$0xff]  ;;  %v7520_v20 = vld [vmem:[%s16771_s5 + $0x890] sm:$0xff] }
 0x361   : > { %9874 = vmatpush1.bf16.msra.mxu1 %v9873_v39  ;;  %9885 = vmatpush3.bf16.msra.mxu0 %v9884_v28  ;;  %v9906_v39 = vpack.c.bf16 %v7476_v22, %v7475_v25  ;;  %v7460_v28 = vld [vmem:[%s16771_s5 + $0x6b8] sm:$0xff]  ;;  %v7504_v22 = vld [vmem:[%s16771_s5 + $0x810] sm:$0xff] }
 0x362   : > { %9875 = vmatprep.subr.bf16.mxu1 %v11074_v31  ;;  %9887 = vmatprep.subr.bf16.mxu0 %v9886_v30  ;;  %v7486_v30 = vld [vmem:[%s16771_s5 + $0x788] sm:$0xff]  ;;  %v9908_v37 = vpack.c.bf16 %v7460_v28, %v7459_v10  ;;  %v7528_v10 = vld [vmem:[%s16771_s5 + $0x8d0] sm:$0xff]  ;;  %v7522_v28 = vld [vmem:[%s16771_s5 + $0x8a0] sm:$0xff] }
 0x363   : > { %v9923_v38 = vpack.c.bf16 %v7486_v30, %v7485_v29  ;;  %v7523_v29 = vld [vmem:[%s16771_s5 + $0x8a8] sm:$0xff] }
 0x365   : > { %9877 = vmatpush1.bf16.msra.mxu1 %v9876_v40  ;;  %9889 = vmatpush3.bf16.msra.mxu0 %v9888_v41  ;;  %v9937_v40 = vpack.c.bf16 %v7513_v34, %v7512_v32  ;;  %v7488_v41 = vld [vmem:[%s16771_s5 + $0x798] sm:$0xff]  ;;  %v7506_v34 = vld [vmem:[%s16771_s5 + $0x820] sm:$0xff] }
 0x366   : > { %9891 = vmatprep.subr.bf16.mxu0 %v9890_v47  ;;  %9910 = vmatprep.subr.bf16.mxu1 %v11074_v31  ;;  %v7497_v47 = vld [vmem:[%s16771_s5 + $0x7d8] sm:$0xff]  ;;  %v9926_v52 = vpack.c.bf16 %v7488_v41, %v7487_v21  ;;  %v7507_v21 = vld [vmem:[%s16771_s5 + $0x828] sm:$0xff] }
 0x367   : > { %v9939_v56 = vpack.c.bf16 %v7497_v47, %v7496_v42  ;;  %v7531_v41 = vld [vmem:[%s16771_s5 + $0x8e8] sm:$0xff]  ;;  %v7524_v42 = vld [vmem:[%s16771_s5 + $0x8b0] sm:$0xff]  ;;  %v7525_v47 = vld [vmem:[%s16771_s5 + $0x8b8] sm:$0xff] }
 0x368   : > { %3333 = vmatmul.mubr.f32.vlgmr.msra.gmra.mrb[8].mxu1 %v3191_v61  ;;  %v7499_v61 = vld [vmem:[%s16771_s5 + $0x7e8] sm:$0xff] }
 0x369   : > { %9893 = vmatpush3.bf16.msra.mxu0 %v9892_v33  ;;  %9912 = vmatpush1.bf16.msra.mxu1 %v9911_v58  ;;  %v3390_v33 = vrot.slane %v13514_v43, 4  ;;  %v7490_v58 = vld [vmem:[%s16771_s5 + $0x7a8] sm:$0xff]  ;;  %v9943_v5 = vpack.c.bf16 %v7499_v61, %v7498_v59  ;;  %v7533_v59 = vld [vmem:[%s16771_s5 + $0x8f8] sm:$0xff]  ;;  %v7526_v61 = vld [vmem:[%s16771_s5 + $0x8c0] sm:$0xff] }
 0x36a   : > { %7495 = vmatprep.mubr.msk.f32.mxu1 %vm2588_vm8, %v3393_v6  ;;  %9895 = vmatprep.subr.bf16.mxu0 %v9894_v23  ;;  %v9941_v23 = vpack.c.bf16 %v7515_v50, %v7514_v48  ;;  %v9929_v4 = vpack.c.bf16 %v7490_v58, %v7489_v57  ;;  %v7491_v6 = vld [vmem:[%s16771_s5 + $0x7b0] sm:$0xff]  ;;  %v3594_v48 = vrot.slane %v13506_v36, 5  ;;  %v9959_v50 = vpack.c.bf16 %v7507_v21, %v7506_v34  ;;  %v7552_v21 = vld [vmem:[%s16771_s5 + $0x988] sm:$0xff] }
 0x36b   : > { %9913 = vmatprep.subr.bf16.mxu1 %v11074_v31  ;;  %v9961_v57 = vpack.c.bf16 %v7525_v47, %v7524_v42  ;;  %v7532_v58 = vld [vmem:[%s16771_s5 + $0x8f0] sm:$0xff] }
 0x36d   : > { %9897 = vmatpush3.bf16.msra.mxu0 %v9896_v51  ;;  %9915 = vmatpush1.bf16.msra.mxu1 %v9914_v8  ;;  %v9945_v51 = vpack.c.bf16 %v7517_v63, %v7516_v62  ;;  %v7492_v8 = vld [vmem:[%s16771_s5 + $0x7b8] sm:$0xff]  ;;  %v9976_v63 = vpack.c.bf16 %v7533_v59, %v7532_v58  ;;  %v7572_v58 = vld [vmem:[%s16771_s5 + $0xa28] sm:$0xff] }
 0x36e   : > { %9899 = vmatprep.subr.bf16.mxu0 %v9898_v13  ;;  %9916 = vmatprep.subr.bf16.mxu1 %v11074_v31  ;;  %v7501_v13 = vld [vmem:[%s16771_s5 + $0x7f8] sm:$0xff]  ;;  %v9932_v2 = vpack.c.bf16 %v7492_v8, %v7491_v6  ;;  %v7534_v6 = vld [vmem:[%s16771_s5 + $0x900] sm:$0xff] }
 0x36f   : > { %v9947_v15 = vpack.c.bf16 %v7501_v13, %v7500_v12  ;;  %v7563_v8 = vld [vmem:[%s16771_s5 + $0x9e0] sm:$0xff]  ;;  %v7564_v12 = vld [vmem:[%s16771_s5 + $0x9e8] sm:$0xff] }
 0x371   : > { %9901 = vmatpush3.bf16.msra.mxu0 %v9900_v17  ;;  %9918 = vmatpush1.bf16.msra.mxu1 %v9917_v49  ;;  %v9949_v17 = vpack.c.bf16 %v7519_v54, %v7518_v14  ;;  %v7494_v49 = vld [vmem:[%s16771_s5 + $0x7c8] sm:$0xff]  ;;  %v7536_v54 = vld [vmem:[%s16771_s5 + $0x910] sm:$0xff] }
 0x372   : > { %9903 = vmatprep.subr.bf16.mxu0 %v9902_v19  ;;  %9919 = vmatprep.subr.bf16.mxu1 %v11074_v31  ;;  %v7503_v19 = vld [vmem:[%s16771_s5 + $0x808] sm:$0xff]  ;;  %v9935_v24 = vpack.c.bf16 %v7494_v49, %v7493_v16  ;;  %v7547_v16 = vld [vmem:[%s16771_s5 + $0x960] sm:$0xff]  ;;  %v7565_v49 = vld [vmem:[%s16771_s5 + $0x9f0] sm:$0xff] }
 0x373   : > { %v9951_v25 = vpack.c.bf16 %v7503_v19, %v7502_v18  ;;  %v7566_v18 = vld [vmem:[%s16771_s5 + $0x9f8] sm:$0xff] }
 0x375   : > { %9905 = vmatpush3.bf16.msra.mxu0 %v9904_v26  ;;  %9921 = vmatpush1.bf16.msra.mxu1 %v9920_v27  ;;  %v9953_v26 = vpack.c.bf16 %v7521_v60, %v7520_v20  ;;  %v7505_v27 = vld [vmem:[%s16771_s5 + $0x818] sm:$0xff]  ;;  %v7538_v60 = vld [vmem:[%s16771_s5 + $0x920] sm:$0xff] }
 0x376   : > { %9907 = vmatprep.subr.bf16.mxu0 %v9906_v39  ;;  %9922 = vmatprep.subr.bf16.mxu1 %v11074_v31  ;;  %v7529_v39 = vld [vmem:[%s16771_s5 + $0x8d8] sm:$0xff]  ;;  %v9955_v30 = vpack.c.bf16 %v7505_v27, %v7504_v22  ;;  %v7549_v22 = vld [vmem:[%s16771_s5 + $0x970] sm:$0xff]  ;;  %v10000_v27 = vpack.c.bf16 %v7566_v18, %v7565_v49  ;;  %v7559_v18 = vld [vmem:[%s16771_s5 + $0x9c0] sm:$0xff] }
 0x377   : > { %v9970_v32 = vpack.c.bf16 %v7529_v39, %v7528_v10  ;;  %v7567_v10 = vld [vmem:[%s16771_s5 + $0xa00] sm:$0xff]  ;;  %v7568_v39 = vld [vmem:[%s16771_s5 + $0xa08] sm:$0xff] }
 0x378   : > { %v10004_v34 = vpack.c.bf16 %v7568_v39, %v7567_v10 }
 0x379   : > { %9909 = vmatpush3.bf16.msra.mxu0 %v9908_v37  ;;  %9924 = vmatpush1.bf16.msra.mxu1 %v9923_v38  ;;  %v3392_v37 = vrot.slane %v13516_v44, 4  ;;  %v9957_v38 = vpack.c.bf16 %v7523_v29, %v7522_v28  ;;  %v3793_v28 = vrot.slane %v13504_v35, 6 }
 0x37a   : > { %9925 = vmatprep.subr.bf16.mxu1 %v11074_v31  ;;  %9938 = vmatprep.subr.bf16.mxu0 %v9937_v40  ;;  %v7530_v40 = vld [vmem:[%s16771_s5 + $0x8e0] sm:$0xff] }
 0x37c   : > { %3464 = vmatmul.mubr.f32.vlgmr.msra.gmra.mrb[20].mxu0 %v3390_v33  ;;  %v7509_v33 = vld [vmem:[%s16771_s5 + $0x838] sm:$0xff] }
 0x37d   : > { %9927 = vmatpush1.bf16.msra.mxu1 %v9926_v52  ;;  %9940 = vmatpush3.bf16.msra.mxu0 %v9939_v56  ;;  %v9973_v52 = vpack.c.bf16 %v7531_v41, %v7530_v40  ;;  %v7508_v56 = vld [vmem:[%s16771_s5 + $0x830] sm:$0xff]  ;;  %v7570_v41 = vld [vmem:[%s16771_s5 + $0xa18] sm:$0xff] }
 0x37e   : > { %3664 = vmatprep.mubr.f32.mxu0 %v3592_v1  ;;  %9928 = vmatprep.subr.bf16.mxu1 %v11074_v31  ;;  %v9963_v62 = vpack.c.bf16 %v7509_v33, %v7508_v56  ;;  %v7510_v1 = vld [vmem:[%s16771_s5 + $0x840] sm:$0xff]  ;;  %v7569_v40 = vld [vmem:[%s16771_s5 + $0xa10] sm:$0xff] }
 0x37f   : > { %9942 = vmatprep.subr.bf16.mxu0 %v9941_v23  ;;  %v7527_v23 = vld [vmem:[%s16771_s5 + $0x8c8] sm:$0xff]  ;;  %v7553_v56 = vld [vmem:[%s16771_s5 + $0x990] sm:$0xff]  ;;  %v7571_v33 = vld [vmem:[%s16771_s5 + $0xa20] sm:$0xff] }
 0x381   : > { %9930 = vmatpush1.bf16.msra.mxu1 %v9929_v4  ;;  %9944 = vmatpush3.bf16.msra.mxu0 %v9943_v5  ;;  %v9965_v4 = vpack.c.bf16 %v7527_v23, %v7526_v61  ;;  %v7511_v5 = vld [vmem:[%s16771_s5 + $0x848] sm:$0xff]  ;;  %v7544_v23 = vld [vmem:[%s16771_s5 + $0x950] sm:$0xff] }
 0x382   : > { %9931 = vmatprep.subr.bf16.mxu1 %v11074_v31  ;;  %9946 = vmatprep.subr.bf16.mxu0 %v9945_v51  ;;  %v7535_v51 = vld [vmem:[%s16771_s5 + $0x908] sm:$0xff]  ;;  %v9967_v13 = vpack.c.bf16 %v7511_v5, %v7510_v1  ;;  %v7555_v1 = vld [vmem:[%s16771_s5 + $0x9a0] sm:$0xff]  ;;  %v7573_v5 = vld [vmem:[%s16771_s5 + $0xa30] sm:$0xff] }
 0x383   : > { %v9979_v14 = vpack.c.bf16 %v7535_v51, %v7534_v6  ;;  %v7574_v6 = vld [vmem:[%s16771_s5 + $0xa38] sm:$0xff] }
 0x385   : > { %9933 = vmatpush1.bf16.msra.mxu1 %v9932_v2  ;;  %9948 = vmatpush3.bf16.msra.mxu0 %v9947_v15  ;;  %v9996_v2 = vpack.c.bf16 %v7564_v12, %v7563_v8  ;;  %v7537_v15 = vld [vmem:[%s16771_s5 + $0x918] sm:$0xff]  ;;  %v7557_v12 = vld [vmem:[%s16771_s5 + $0x9b0] sm:$0xff] }
 0x386   : > { %9934 = vmatprep.subr.bf16.mxu1 %v11074_v31  ;;  %9950 = vmatprep.subr.bf16.mxu0 %v9949_v17  ;;  %v7548_v17 = vld [vmem:[%s16771_s5 + $0x968] sm:$0xff]  ;;  %v9982_v19 = vpack.c.bf16 %v7537_v15, %v7536_v54  ;;  %v7579_v54 = vld [vmem:[%s16771_s5 + $0xa60] sm:$0xff] }
 0x387   : > { %v9998_v20 = vpack.c.bf16 %v7548_v17, %v7547_v16  ;;  %v7575_v15 = vld [vmem:[%s16771_s5 + $0xa40] sm:$0xff]  ;;  %v7576_v16 = vld [vmem:[%s16771_s5 + $0xa48] sm:$0xff] }
 0x389   : > { %9936 = vmatpush1.bf16.msra.mxu1 %v9935_v24  ;;  %9952 = vmatpush3.bf16.msra.mxu0 %v9951_v25  ;;  %v3591_v24 = vrot.slane %v13514_v43, 5  ;;  %v7539_v25 = vld [vmem:[%s16771_s5 + $0x928] sm:$0xff] }
 0x38a   : > { %9954 = vmatprep.subr.bf16.mxu0 %v9953_v26  ;;  %9969 = vmatprep.subr.bf16.mxu1 %v11074_v31  ;;  %v7550_v26 = vld [vmem:[%s16771_s5 + $0x978] sm:$0xff]  ;;  %v9985_v29 = vpack.c.bf16 %v7539_v25, %v7538_v60  ;;  %v7560_v60 = vld [vmem:[%s16771_s5 + $0x9c8] sm:$0xff] }
 0x38b   : > { %v7582_v25 = vld [vmem:[%s16771_s5 + $0xa78] sm:$0xff]  ;;  %v10022_v10 = vpack.c.bf16 %v7560_v60, %v7559_v18  ;;  %v7592_v18 = vld [vmem:[%s16771_s5 + $0xac8] sm:$0xff]  ;;  %v7622_v60 = vld [vmem:[%s16771_s5 + $0xbb0] sm:$0xff] }
 0x38c   : > { %3534 = vmatmul.mubr.f32.vlgmr.msra.gmra.mrb[8].mxu1 %v3392_v37  ;;  %v7541_v37 = vld [vmem:[%s16771_s5 + $0x938] sm:$0xff] }
 0x38d   : > { %9956 = vmatpush3.bf16.msra.mxu0 %v9955_v30  ;;  %9971 = vmatpush1.bf16.msra.mxu1 %v9970_v32  ;;  %v10002_v30 = vpack.c.bf16 %v7550_v26, %v7549_v22  ;;  %v7540_v32 = vld [vmem:[%s16771_s5 + $0x930] sm:$0xff]  ;;  %v7578_v26 = vld [vmem:[%s16771_s5 + $0xa58] sm:$0xff] }
 0x38e   : > { %7546 = vmatprep.mubr.msk.f32.mxu1 %vm2588_vm8, %v3594_v48  ;;  %9958 = vmatprep.subr.bf16.mxu0 %v9957_v38  ;;  %v7551_v38 = vld [vmem:[%s16771_s5 + $0x980] sm:$0xff]  ;;  %v9988_v42 = vpack.c.bf16 %v7541_v37, %v7540_v32  ;;  %v7577_v22 = vld [vmem:[%s16771_s5 + $0xa50] sm:$0xff] }
 0x38f   : > { %9972 = vmatprep.subr.bf16.mxu1 %v11074_v31  ;;  %v10006_v47 = vpack.c.bf16 %v7552_v21, %v7551_v38  ;;  %v7542_v48 = vld [vmem:[%s16771_s5 + $0x940] sm:$0xff]  ;;  %v7614_v37 = vld [vmem:[%s16771_s5 + $0xb70] sm:$0xff]  ;;  %v7615_v38 = vld [vmem:[%s16771_s5 + $0xb78] sm:$0xff] }
 0x390   : > { %v7583_v32 = vld [vmem:[%s16771_s5 + $0xa80] sm:$0xff] }
 0x391   : > { %9960 = vmatpush3.bf16.msra.mxu0 %v9959_v50  ;;  %9974 = vmatpush1.bf16.msra.mxu1 %v9973_v52  ;;  %v10008_v50 = vpack.c.bf16 %v7570_v41, %v7569_v40  ;;  %v7543_v52 = vld [vmem:[%s16771_s5 + $0x948] sm:$0xff]  ;;  %v7585_v41 = vld [vmem:[%s16771_s5 + $0xa90] sm:$0xff] }
 0x392   : > { %9962 = vmatprep.subr.bf16.mxu0 %v9961_v57  ;;  %9975 = vmatprep.subr.bf16.mxu1 %v11074_v31  ;;  %v7554_v57 = vld [vmem:[%s16771_s5 + $0x998] sm:$0xff]  ;;  %v9991_v59 = vpack.c.bf16 %v7543_v52, %v7542_v48  ;;  %v7598_v48 = vld [vmem:[%s16771_s5 + $0xaf0] sm:$0xff]  ;;  %v7616_v52 = vld [vmem:[%s16771_s5 + $0xb80] sm:$0xff] }
 0x393   : > { %v10010_v61 = vpack.c.bf16 %v7554_v57, %v7553_v56  ;;  %v7617_v56 = vld [vmem:[%s16771_s5 + $0xb88] sm:$0xff] }
 0x395   : > { %9964 = vmatpush3.bf16.msra.mxu0 %v9963_v62  ;;  %9977 = vmatpush1.bf16.msra.mxu1 %v9976_v63  ;;  %v10012_v62 = vpack.c.bf16 %v7572_v58, %v7571_v33  ;;  %v7545_v63 = vld [vmem:[%s16771_s5 + $0x958] sm:$0xff]  ;;  %v7587_v58 = vld [vmem:[%s16771_s5 + $0xaa0] sm:$0xff] }
 0x396   : > { %9966 = vmatprep.subr.bf16.mxu0 %v9965_v4  ;;  %9978 = vmatprep.subr.bf16.mxu1 %v11074_v31  ;;  %v7556_v4 = vld [vmem:[%s16771_s5 + $0x9a8] sm:$0xff]  ;;  %v9994_v51 = vpack.c.bf16 %v7545_v63, %v7544_v23  ;;  %v7600_v23 = vld [vmem:[%s16771_s5 + $0xb00] sm:$0xff]  ;;  %v10059_v63 = vpack.c.bf16 %v7617_v56, %v7616_v52  ;;  %v7610_v52 = vld [vmem:[%s16771_s5 + $0xb50] sm:$0xff] }
 0x397   : > { %v10014_v8 = vpack.c.bf16 %v7556_v4, %v7555_v1  ;;  %v7618_v1 = vld [vmem:[%s16771_s5 + $0xb90] sm:$0xff]  ;;  %v7619_v4 = vld [vmem:[%s16771_s5 + $0xb98] sm:$0xff] }
 0x399   : > { %9968 = vmatpush3.bf16.msra.mxu0 %v9967_v13  ;;  %9980 = vmatpush1.bf16.msra.mxu1 %v9979_v14  ;;  %v10016_v13 = vpack.c.bf16 %v7574_v6, %v7573_v5  ;;  %v7558_v14 = vld [vmem:[%s16771_s5 + $0x9b8] sm:$0xff]  ;;  %v3994_v5 = vrot.slane %v13504_v35, 7  ;;  %v7602_v35 = vld [vmem:[%s16771_s5 + $0xb10] sm:$0xff] }
 0x39a   : > { %9981 = vmatprep.subr.bf16.mxu1 %v11074_v31  ;;  %9997 = vmatprep.subr.bf16.mxu0 %v9996_v2  ;;  %v7580_v2 = vld [vmem:[%s16771_s5 + $0xa68] sm:$0xff]  ;;  %v10018_v17 = vpack.c.bf16 %v7558_v14, %v7557_v12  ;;  %v10063_v12 = vpack.c.bf16 %v7619_v4, %v7618_v1  ;;  %v7603_v14 = vld [vmem:[%s16771_s5 + $0xb18] sm:$0xff] }
 0x39b   : > { %v10029_v49 = vpack.c.bf16 %v7580_v2, %v7579_v54  ;;  %v7620_v54 = vld [vmem:[%s16771_s5 + $0xba0] sm:$0xff]  ;;  %v7621_v2 = vld [vmem:[%s16771_s5 + $0xba8] sm:$0xff] }
 0x39c   : > { %3665 = vmatmul.mubr.f32.vlgmr.msra.gmra.mrb[22].mxu0 %v3591_v24  ;;  %v7581_v24 = vld [vmem:[%s16771_s5 + $0xa70] sm:$0xff] }
 0x39d   : > { %9983 = vmatpush1.bf16.msra.mxu1 %v9982_v19  ;;  %9999 = vmatpush3.bf16.msra.mxu0 %v9998_v20  ;;  %v3593_v19 = vrot.slane %v13516_v44, 5  ;;  %v10020_v20 = vpack.c.bf16 %v7576_v16, %v7575_v15  ;;  %v10032_v39 = vpack.c.bf16 %v7582_v25, %v7581_v24  ;;  %v10065_v16 = vpack.c.bf16 %v7603_v14, %v7602_v35  ;;  %v7623_v24 = vld [vmem:[%s16771_s5 + $0xbb8] sm:$0xff]  ;;  %v7613_v35 = vld [vmem:[%s16771_s5 + $0xb68] sm:$0xff]  ;;  %v7632_v14 = vld [vmem:[%s16771_s5 + $0xc00] sm:$0xff] }
 0x39e   : > { %3865 = vmatprep.mubr.f32.mxu0 %v3793_v28  ;;  %9984 = vmatprep.subr.bf16.mxu1 %v11074_v31  ;;  %v7561_v28 = vld [vmem:[%s16771_s5 + $0x9d0] sm:$0xff] }
 0x39f   : > { %10001 = vmatprep.subr.bf16.mxu0 %v10000_v27  ;;  %v3795_v27 = vrot.slane %v13506_v36, 6 }
 0x3a1   : > { %9986 = vmatpush1.bf16.msra.mxu1 %v9985_v29  ;;  %10003 = vmatpush3.bf16.msra.mxu0 %v10002_v30  ;;  %v10024_v29 = vpack.c.bf16 %v7578_v26, %v7577_v22  ;;  %v7562_v30 = vld [vmem:[%s16771_s5 + $0x9d8] sm:$0xff]  ;;  %v7593_v26 = vld [vmem:[%s16771_s5 + $0xad0] sm:$0xff] }
 0x3a2   : > { %9987 = vmatprep.subr.bf16.mxu1 %v11074_v31  ;;  %10005 = vmatprep.subr.bf16.mxu0 %v10004_v34  ;;  %v7584_v34 = vld [vmem:[%s16771_s5 + $0xa88] sm:$0xff]  ;;  %v10026_v21 = vpack.c.bf16 %v7562_v30, %v7561_v28  ;;  %v7607_v28 = vld [vmem:[%s16771_s5 + $0xb38] sm:$0xff] }
 0x3a3   : > { %v10035_v40 = vpack.c.bf16 %v7584_v34, %v7583_v32  ;;  %v7625_v30 = vld [vmem:[%s16771_s5 + $0xbc8] sm:$0xff] }
 0x3a5   : > { %9989 = vmatpush1.bf16.msra.mxu1 %v9988_v42  ;;  %10007 = vmatpush3.bf16.msra.mxu0 %v10006_v47  ;;  %v10055_v42 = vpack.c.bf16 %v7615_v38, %v7614_v37  ;;  %v7586_v47 = vld [vmem:[%s16771_s5 + $0xa98] sm:$0xff]  ;;  %v7595_v37 = vld [vmem:[%s16771_s5 + $0xae0] sm:$0xff] }
 0x3a6   : > { %9990 = vmatprep.subr.bf16.mxu1 %v11074_v31  ;;  %10009 = vmatprep.subr.bf16.mxu0 %v10008_v50  ;;  %v7599_v50 = vld [vmem:[%s16771_s5 + $0xaf8] sm:$0xff]  ;;  %v10038_v57 = vpack.c.bf16 %v7586_v47, %v7585_v41  ;;  %v7609_v41 = vld [vmem:[%s16771_s5 + $0xb48] sm:$0xff] }
 0x3a7   : > { %v10057_v33 = vpack.c.bf16 %v7599_v50, %v7598_v48  ;;  %v7627_v47 = vld [vmem:[%s16771_s5 + $0xbd8] sm:$0xff] }
 0x3a9   : > { %9992 = vmatpush1.bf16.msra.mxu1 %v9991_v59  ;;  %10011 = vmatpush3.bf16.msra.mxu0 %v10010_v61  ;;  %v3792_v59 = vrot.slane %v13514_v43, 6  ;;  %v7588_v61 = vld [vmem:[%s16771_s5 + $0xaa8] sm:$0xff] }
 0x3aa   : > { %9993 = vmatprep.subr.bf16.mxu1 %v11074_v31  ;;  %10013 = vmatprep.subr.bf16.mxu0 %v10012_v62  ;;  %v7601_v62 = vld [vmem:[%s16771_s5 + $0xb08] sm:$0xff]  ;;  %v10041_v6 = vpack.c.bf16 %v7588_v61, %v7587_v58  ;;  %v7631_v58 = vld [vmem:[%s16771_s5 + $0xbf8] sm:$0xff] }
 0x3ad   : > { %9995 = vmatpush1.bf16.msra.mxu1 %v9994_v51  ;;  %10015 = vmatpush3.bf16.msra.mxu0 %v10014_v8  ;;  %v10061_v51 = vpack.c.bf16 %v7601_v62, %v7600_v23  ;;  %v7589_v8 = vld [vmem:[%s16771_s5 + $0xab0] sm:$0xff]  ;;  %v7628_v23 = vld [vmem:[%s16771_s5 + $0xbe0] sm:$0xff]  ;;  %v7629_v62 = vld [vmem:[%s16771_s5 + $0xbe8] sm:$0xff] }
 0x3ae   : > { %10017 = vmatprep.subr.bf16.mxu0 %v10016_v13  ;;  %10028 = vmatprep.subr.bf16.mxu1 %v11074_v31  ;;  %v7590_v13 = vld [vmem:[%s16771_s5 + $0xab8] sm:$0xff] }
 0x3af   : > { %v10044_v15 = vpack.c.bf16 %v7590_v13, %v7589_v8  ;;  %v7612_v8 = vld [vmem:[%s16771_s5 + $0xb60] sm:$0xff]  ;;  %v10083_v13 = vpack.c.bf16 %v7629_v62, %v7628_v23  ;;  %v7656_v23 = vld [vmem:[%s16771_s5 + $0xcb8] sm:$0xff] }
 0x3b0   : > { %3735 = vmatmul.mubr.f32.vlgmr.msra.gmra.mrb[8].mxu1 %v3593_v19  ;;  %v7604_v19 = vld [vmem:[%s16771_s5 + $0xb20] sm:$0xff] }
 0x3b1   : > { %10019 = vmatpush3.bf16.msra.mxu0 %v10018_v17  ;;  %10030 = vmatpush1.bf16.msra.mxu1 %v10029_v49  ;;  %v7591_v17 = vld [vmem:[%s16771_s5 + $0xac0] sm:$0xff]  ;;  %v10067_v49 = vpack.c.bf16 %v7621_v2, %v7620_v54  ;;  %v7633_v54 = vld [vmem:[%s16771_s5 + $0xc08] sm:$0xff] }
 0x3b2   : > { %7597 = vmatprep.mubr.msk.f32.mxu1 %vm2588_vm8, %v3795_v27  ;;  %10021 = vmatprep.subr.bf16.mxu0 %v10020_v20  ;;  %v7605_v20 = vld [vmem:[%s16771_s5 + $0xb28] sm:$0xff]  ;;  %v10047_v25 = vpack.c.bf16 %v7592_v18, %v7591_v17  ;;  %v10071_v27 = vpack.c.bf16 %v7623_v24, %v7622_v60  ;;  %v3996_v17 = vrot.slane %v13506_v36, 7  ;;  %v10091_v18 = vpack.c.bf16 %v7633_v54, %v7632_v14  ;;  %v7635_v24 = vld [vmem:[%s16771_s5 + $0xc18] sm:$0xff]  ;;  %v7649_v36 = vld [vmem:[%s16771_s5 + $0xc80] sm:$0xff] }
 0x3b3   : > { %10031 = vmatprep.subr.bf16.mxu1 %v11074_v31  ;;  %v10069_v22 = vpack.c.bf16 %v7605_v20, %v7604_v19  ;;  %v7634_v19 = vld [vmem:[%s16771_s5 + $0xc10] sm:$0xff]  ;;  %v7673_v62 = vld [vmem:[%s16771_s5 + $0xd40] sm:$0xff] }
 0x3b5   : > { %10023 = vmatpush3.bf16.msra.mxu0 %v10022_v10  ;;  %10033 = vmatpush1.bf16.msra.mxu1 %v10032_v39  ;;  %v7594_v10 = vld [vmem:[%s16771_s5 + $0xad8] sm:$0xff]  ;;  %v7606_v39 = vld [vmem:[%s16771_s5 + $0xb30] sm:$0xff] }
 0x3b6   : > { %10025 = vmatprep.subr.bf16.mxu0 %v10024_v29  ;;  %10034 = vmatprep.subr.bf16.mxu1 %v11074_v31  ;;  %v7624_v29 = vld [vmem:[%s16771_s5 + $0xbc0] sm:$0xff]  ;;  %v10050_v32 = vpack.c.bf16 %v7594_v10, %v7593_v26  ;;  %v10073_v34 = vpack.c.bf16 %v7607_v28, %v7606_v39  ;;  %v7668_v26 = vld [vmem:[%s16771_s5 + $0xd18] sm:$0xff]  ;;  %v3993_v28 = vrot.slane %v13514_v43, 7 }
 0x3b7   : > { %v10075_v38 = vpack.c.bf16 %v7625_v30, %v7624_v29  ;;  %v7636_v39 = vld [vmem:[%s16771_s5 + $0xc20] sm:$0xff]  ;;  %v7637_v29 = vld [vmem:[%s16771_s5 + $0xc28] sm:$0xff]  ;;  %v7651_v30 = vld [vmem:[%s16771_s5 + $0xc90] sm:$0xff] }
 0x3b8   : > { %v7669_v43 = vld [vmem:[%s16771_s5 + $0xd20] sm:$0xff] }
 0x3b9   : > { %10027 = vmatpush3.bf16.msra.mxu0 %v10026_v21  ;;  %10036 = vmatpush1.bf16.msra.mxu1 %v10035_v40  ;;  %v7596_v21 = vld [vmem:[%s16771_s5 + $0xae8] sm:$0xff]  ;;  %v7608_v40 = vld [vmem:[%s16771_s5 + $0xb40] sm:$0xff] }
 0x3ba   : > { %10037 = vmatprep.subr.bf16.mxu1 %v11074_v31  ;;  %10056 = vmatprep.subr.bf16.mxu0 %v10055_v42  ;;  %v7626_v42 = vld [vmem:[%s16771_s5 + $0xbd0] sm:$0xff]  ;;  %v10053_v48 = vpack.c.bf16 %v7596_v21, %v7595_v37  ;;  %v10077_v50 = vpack.c.bf16 %v7609_v41, %v7608_v40  ;;  %v7670_v37 = vld [vmem:[%s16771_s5 + $0xd28] sm:$0xff]  ;;  %v10097_v21 = vpack.c.bf16 %v7637_v29, %v7636_v39 }
 0x3bb   : > { %v10079_v56 = vpack.c.bf16 %v7627_v47, %v7626_v42  ;;  %v7638_v41 = vld [vmem:[%s16771_s5 + $0xc30] sm:$0xff]  ;;  %v10122_v42 = vpack.c.bf16 %v7670_v37, %v7669_v43  ;;  %v7639_v47 = vld [vmem:[%s16771_s5 + $0xc38] sm:$0xff] }
 0x3bc   : > { %3866 = vmatmul.mubr.f32.vlgmr.msra.gmra.mrb[24].mxu0 %v3792_v59  ;;  %v7679_v39 = vld [vmem:[%s16771_s5 + $0xd70] sm:$0xff] }
 0x3bd   : > { %10039 = vmatpush1.bf16.msra.mxu1 %v10038_v57  ;;  %10058 = vmatpush3.bf16.msra.mxu0 %v10057_v33  ;;  %v7611_v57 = vld [vmem:[%s16771_s5 + $0xb58] sm:$0xff]  ;;  %v7630_v33 = vld [vmem:[%s16771_s5 + $0xbf0] sm:$0xff] }
 0x3be   : > { %4066 = vmatprep.mubr.f32.mxu0 %v3994_v5  ;;  %10040 = vmatprep.subr.bf16.mxu1 %v11074_v31  ;;  %v7663_v43 = vld [vmem:[%s16771_s5 + $0xcf0] sm:$0xff] }
 0x3bf   : > { %10060 = vmatprep.subr.bf16.mxu0 %v10059_v63  ;;  %v2537_v63 = vld [vmem:[%s16772_s6] sm:$0x1] }
 0x3c1   : > { %10042 = vmatpush1.bf16.msra.mxu1 %v10041_v6  ;;  %10062 = vmatpush3.bf16.msra.mxu0 %v10061_v51  ;;  %v10081_v6 = vpack.c.bf16 %v7611_v57, %v7610_v52  ;;  %v10088_v51 = vpack.c.bf16 %v7631_v58, %v7630_v33  ;;  %v7672_v52 = vld [vmem:[%s16771_s5 + $0xd38] sm:$0xff]  ;;  %v7640_v33 = vld [vmem:[%s16771_s5 + $0xc40] sm:$0xff] }
 0x3c2   : > { %10043 = vmatprep.subr.bf16.mxu1 %v11074_v31  ;;  %10064 = vmatprep.subr.bf16.mxu0 %v10063_v12  ;;  %v3794_v12 = vrot.slane %v13516_v44, 6 }
 0x3c5   : > { %10045 = vmatpush1.bf16.msra.mxu1 %v10044_v15  ;;  %10066 = vmatpush3.bf16.msra.mxu0 %v10065_v16  ;;  %v7665_v15 = vld [vmem:[%s16771_s5 + $0xd00] sm:$0xff]  ;;  %v7666_v16 = vld [vmem:[%s16771_s5 + $0xd08] sm:$0xff] }
 0x3c6   : > { %10046 = vmatprep.subr.bf16.mxu1 %v11074_v31  ;;  %10068 = vmatprep.subr.bf16.mxu0 %v10067_v49  ;;  %v10085_v49 = vpack.c.bf16 %v7613_v35, %v7612_v8  ;;  %v10114_v60 = vpack.c.bf16 %v7666_v16, %v7665_v15  ;;  %v7657_v8 = vld [vmem:[%s16771_s5 + $0xcc0] sm:$0xff]  ;;  %v7676_v35 = vld [vmem:[%s16771_s5 + $0xd58] sm:$0xff]  ;;  %v7645_v16 = vld [vmem:[%s16771_s5 + $0xc68] sm:$0xff] }
 0x3c9   : > { %10048 = vmatpush1.bf16.msra.mxu1 %v10047_v25  ;;  %10070 = vmatpush3.bf16.msra.mxu0 %v10069_v22  ;;  %v7650_v25 = vld [vmem:[%s16771_s5 + $0xc88] sm:$0xff]  ;;  %v7667_v22 = vld [vmem:[%s16771_s5 + $0xd10] sm:$0xff] }
 0x3ca   : > { %10049 = vmatprep.subr.bf16.mxu1 %v11074_v31  ;;  %10072 = vmatprep.subr.bf16.mxu0 %v10071_v27  ;;  %v10094_v27 = vpack.c.bf16 %v7635_v24, %v7634_v19  ;;  %v10116_v10 = vpack.c.bf16 %v7650_v25, %v7649_v36  ;;  %v7678_v19 = vld [vmem:[%s16771_s5 + $0xd68] sm:$0xff]  ;;  %v7646_v36 = vld [vmem:[%s16771_s5 + $0xc70] sm:$0xff] }
 0x3cd   : > { %10051 = vmatpush1.bf16.msra.mxu1 %v10050_v32  ;;  %10074 = vmatpush3.bf16.msra.mxu0 %v10073_v34  ;;  %v7652_v32 = vld [vmem:[%s16771_s5 + $0xc98] sm:$0xff]  ;;  %v10118_v34 = vpack.c.bf16 %v7668_v26, %v7667_v22  ;;  %v7661_v26 = vld [vmem:[%s16771_s5 + $0xce0] sm:$0xff] }
 0x3ce   : > { %10052 = vmatprep.subr.bf16.mxu1 %v11074_v31  ;;  %10076 = vmatprep.subr.bf16.mxu0 %v10075_v38  ;;  %v14655_v38 = vmax.f32 %v13528_v53, 0.0  ;;  %v10120_v40 = vpack.c.bf16 %v7652_v32, %v7651_v30  ;;  %v7653_v53 = vld [vmem:[%s16771_s5 + $0xca0] sm:$0xff]  ;;  %v7647_v22 = vld [vmem:[%s16771_s5 + $0xc78] sm:$0xff] }
 0x3cf   : > { %v8299_v59 = vpop.f32.mrb[6].mxu1  ;;  %v2728_v61 = vpop.f32.mrb[12].mxu0  ;;  %v10112_v32 = vpack.c.bf16 %v7647_v22, %v7646_v36  ;;  %v7706_v36 = vld [vmem:[%s16771_s5 + $0xe40] sm:$0xff]  ;;  %v7724_v22 = vld [vmem:[%s16771_s5 + $0xed0] sm:$0xff] }
 0x3d0   : > { %v8300_v1 = vpop.f32.mrb[7].mxu1  ;;  %v2730_v4 = vpop.f32.mrb[13].mxu0 }
 0x3d1   : > { %v8301_v5 = vadd.f32 %v8300_v1, %v8299_v59  ;;  %10054 = vmatpush1.bf16.msra.mxu1 %v10053_v48  ;;  %10078 = vmatpush3.bf16.msra.mxu0 %v10077_v50  ;;  %v7654_v48 = vld [vmem:[%s16771_s5 + $0xca8] sm:$0xff]  ;;  %v7671_v50 = vld [vmem:[%s16771_s5 + $0xd30] sm:$0xff] }
 0x3d2   : > { %10080 = vmatprep.subr.bf16.mxu0 %v10079_v56  ;;  %10087 = vmatprep.subr.bf16.mxu1 %v11074_v31  ;;  %v10100_v56 = vpack.c.bf16 %v7639_v47, %v7638_v41  ;;  %v10124_v57 = vpack.c.bf16 %v7654_v48, %v7653_v53  ;;  %v10126_v58 = vpack.c.bf16 %v7672_v52, %v7671_v50  ;;  %v7641_v59 = vld [vmem:[%s16771_s5 + $0xc48] sm:$0xff]  ;;  %v7716_v47 = vld [vmem:[%s16771_s5 + $0xe90] sm:$0xff]  ;;  %v7717_v53 = vld [vmem:[%s16771_s5 + $0xe98] sm:$0xff] }
 0x3d3   : > { %v10831_v2 = vadd.f32 %v8301_v5, %v2537_v63  ;;  %v7674_v63 = vld [vmem:[%s16771_s5 + $0xd48] sm:$0xff]  ;;  %v10103_v1 = vpack.c.bf16 %v7641_v59, %v7640_v33  ;;  %v7642_v5 = vld [vmem:[%s16771_s5 + $0xc50] sm:$0xff]  ;;  %v7701_v33 = vld [vmem:[%s16771_s5 + $0xe18] sm:$0xff]  ;;  %v14790_v59 = vmax.f32 %v13530_v55, 0.0  ;;  %v14802_v55 = vmax.f32 %v13518_v45, 0.0 }
 0x3d4   : > { %3936 = vmatmul.mubr.f32.vlgmr.msra.gmra.mrb[8].mxu1 %v3794_v12  ;;  %v7658_v12 = vld [vmem:[%s16771_s5 + $0xcc8] sm:$0xff]  ;;  %v7683_v52 = vld [vmem:[%s16771_s5 + $0xd90] sm:$0xff] }
 0x3d5   : > { %10082 = vmatpush3.bf16.msra.mxu0 %v10081_v6  ;;  %10089 = vmatpush1.bf16.msra.mxu1 %v10088_v51  ;;  %v14615_v20 = vadd.f32 %v10831_v2, %v2728_v61  ;;  %v7655_v61 = vld [vmem:[%s16771_s5 + $0xcb0] sm:$0xff]  ;;  %v10130_v6 = vpack.c.bf16 %v7674_v63, %v7673_v62  ;;  %v7643_v51 = vld [vmem:[%s16771_s5 + $0xc58] sm:$0xff]  ;;  %v10132_v54 = vpack.c.bf16 %v7658_v12, %v7657_v8  ;;  %v7644_v2 = vld [vmem:[%s16771_s5 + $0xc60] sm:$0xff]  ;;  %v4393_v8 = vrot.slane %v14655_v38, 1 }
 0x3d6   : > { %7648 = vmatprep.mubr.msk.f32.mxu1 %vm2588_vm8, %v3996_v17  ;;  %10084 = vmatprep.subr.bf16.mxu0 %v10083_v13  ;;  %v10128_v4 = vpack.c.bf16 %v7656_v23, %v7655_v61  ;;  %v7675_v13 = vld [vmem:[%s16771_s5 + $0xd50] sm:$0xff]  ;;  %v10106_v14 = vpack.c.bf16 %v7643_v51, %v7642_v5  ;;  %v7682_v41 = vld [vmem:[%s16771_s5 + $0xd88] sm:$0xff]  ;;  %v7685_v63 = vld [vmem:[%s16771_s5 + $0xda0] sm:$0xff] }
 0x3d7   : > { %10090 = vmatprep.subr.bf16.mxu1 %v11074_v31  ;;  %v10134_v15 = vpack.c.bf16 %v7676_v35, %v7675_v13  ;;  %v7659_v17 = vld [vmem:[%s16771_s5 + $0xcd0] sm:$0xff]  ;;  %v7719_v61 = vld [vmem:[%s16771_s5 + $0xea8] sm:$0xff]  ;;  %v7721_v51 = vld [vmem:[%s16771_s5 + $0xeb8] sm:$0xff] }
 0x3d8   : > { %v7703_v5 = vld [vmem:[%s16771_s5 + $0xe28] sm:$0xff]  ;;  %v7687_v35 = vld [vmem:[%s16771_s5 + $0xdb0] sm:$0xff] }
 0x3d9   : > { %10086 = vmatpush3.bf16.msra.mxu0 %v10085_v49  ;;  %10092 = vmatpush1.bf16.msra.mxu1 %v10091_v18  ;;  %v7660_v49 = vld [vmem:[%s16771_s5 + $0xcd8] sm:$0xff]  ;;  %v7677_v18 = vld [vmem:[%s16771_s5 + $0xd60] sm:$0xff] }
 0x3da   : > { %10093 = vmatprep.subr.bf16.mxu1 %v11074_v31  ;;  %10115 = vmatprep.subr.bf16.mxu0 %v10114_v60  ;;  %v10109_v60 = vpack.c.bf16 %v7645_v16, %v7644_v2  ;;  %v10136_v24 = vpack.c.bf16 %v7660_v49, %v7659_v17  ;;  %v10138_v25 = vpack.c.bf16 %v7678_v19, %v7677_v18  ;;  %v7704_v2 = vld [vmem:[%s16771_s5 + $0xe30] sm:$0xff]  ;;  %v7722_v16 = vld [vmem:[%s16771_s5 + $0xec0] sm:$0xff]  ;;  %v7723_v17 = vld [vmem:[%s16771_s5 + $0xec8] sm:$0xff] }
 0x3db   : > { %v7689_v19 = vld [vmem:[%s16771_s5 + $0xdc0] sm:$0xff] }
 0x3dc   : > { %4067 = vmatmul.mubr.f32.vlgmr.msra.gmra.mrb[26].mxu0 %v3993_v28  ;;  %v7680_v28 = vld [vmem:[%s16771_s5 + $0xd78] sm:$0xff] }
 0x3dd   : > { %10095 = vmatpush1.bf16.msra.mxu1 %v10094_v27  ;;  %10117 = vmatpush3.bf16.msra.mxu0 %v10116_v10  ;;  %v7662_v27 = vld [vmem:[%s16771_s5 + $0xce8] sm:$0xff]  ;;  %v10142_v37 = vpack.c.bf16 %v7680_v28, %v7679_v39  ;;  %v7691_v39 = vld [vmem:[%s16771_s5 + $0xdd0] sm:$0xff] }
 0x3de   : > { %4261 = vmatprep.mubr.f32.mxu0 %v14655_v38  ;;  %10096 = vmatprep.subr.bf16.mxu1 %v11074_v31 }
 0x3df   : > { %10119 = vmatprep.subr.bf16.mxu0 %v10118_v34  ;;  %v10140_v34 = vpack.c.bf16 %v7662_v27, %v7661_v26  ;;  %v7725_v26 = vld [vmem:[%s16771_s5 + $0xed8] sm:$0xff] }
 0x3e0   : > { %v10189_v28 = vpack.c.bf16 %v7725_v26, %v7724_v22  ;;  %v7734_v26 = vld [vmem:[%s16771_s5 + $0xf20] sm:$0xff] }
 0x3e1   : > { %10098 = vmatpush1.bf16.msra.mxu1 %v10097_v21  ;;  %10121 = vmatpush3.bf16.msra.mxu0 %v10120_v40  ;;  %v7664_v21 = vld [vmem:[%s16771_s5 + $0xcf8] sm:$0xff]  ;;  %v7681_v40 = vld [vmem:[%s16771_s5 + $0xd80] sm:$0xff] }
 0x3e2   : > { %10099 = vmatprep.subr.bf16.mxu1 %v11074_v31  ;;  %10123 = vmatprep.subr.bf16.mxu0 %v10122_v42  ;;  %v10144_v48 = vpack.c.bf16 %v7664_v21, %v7663_v43  ;;  %v10147_v50 = vpack.c.bf16 %v7682_v41, %v7681_v40  ;;  %v7727_v43 = vld [vmem:[%s16771_s5 + $0xee8] sm:$0xff]  ;;  %v7693_v40 = vld [vmem:[%s16771_s5 + $0xde0] sm:$0xff] }
 0x3e5   : > { %10101 = vmatpush1.bf16.msra.mxu1 %v10100_v56  ;;  %10125 = vmatpush3.bf16.msra.mxu0 %v10124_v57  ;;  %v3995_v56 = vrot.slane %v13516_v44, 7  ;;  %v7700_v57 = vld [vmem:[%s16771_s5 + $0xe10] sm:$0xff]  ;;  %v7718_v44 = vld [vmem:[%s16771_s5 + $0xea0] sm:$0xff] }
 0x3e6   : > { %10102 = vmatprep.subr.bf16.mxu1 %v11074_v31  ;;  %10127 = vmatprep.subr.bf16.mxu0 %v10126_v58  ;;  %v10173_v58 = vpack.c.bf16 %v7717_v53, %v7716_v47  ;;  %v10175_v62 = vpack.c.bf16 %v7701_v33, %v7700_v57  ;;  %v10177_v45 = vpack.c.bf16 %v7719_v61, %v7718_v44  ;;  %v7694_v47 = vld [vmem:[%s16771_s5 + $0xde8] sm:$0xff]  ;;  %v7710_v53 = vld [vmem:[%s16771_s5 + $0xe60] sm:$0xff]  ;;  %v7695_v57 = vld [vmem:[%s16771_s5 + $0xdf0] sm:$0xff] }
 0x3e7   : > { %v7712_v44 = vld [vmem:[%s16771_s5 + $0xe70] sm:$0xff]  ;;  %v7713_v61 = vld [vmem:[%s16771_s5 + $0xe78] sm:$0xff] }
 0x3e9   : > { %10104 = vmatpush1.bf16.msra.mxu1 %v10103_v1  ;;  %10129 = vmatpush3.bf16.msra.mxu0 %v10128_v4  ;;  %v7686_v1 = vld [vmem:[%s16771_s5 + $0xda8] sm:$0xff]  ;;  %v7702_v4 = vld [vmem:[%s16771_s5 + $0xe20] sm:$0xff] }
 0x3ea   : > { %10105 = vmatprep.subr.bf16.mxu1 %v11074_v31  ;;  %10131 = vmatprep.subr.bf16.mxu0 %v10130_v6  ;;  %v7720_v6 = vld [vmem:[%s16771_s5 + $0xeb0] sm:$0xff]  ;;  %v10153_v12 = vpack.c.bf16 %v7686_v1, %v7685_v63  ;;  %v10179_v13 = vpack.c.bf16 %v7703_v5, %v7702_v4  ;;  %v7731_v63 = vld [vmem:[%s16771_s5 + $0xf08] sm:$0xff] }
 0x3ed   : > { %10107 = vmatpush1.bf16.msra.mxu1 %v10106_v14  ;;  %10133 = vmatpush3.bf16.msra.mxu0 %v10132_v54  ;;  %v10181_v14 = vpack.c.bf16 %v7721_v51, %v7720_v6  ;;  %v7688_v54 = vld [vmem:[%s16771_s5 + $0xdb8] sm:$0xff]  ;;  %v7697_v6 = vld [vmem:[%s16771_s5 + $0xe00] sm:$0xff] }
 0x3ee   : > { %10108 = vmatprep.subr.bf16.mxu1 %v11074_v31  ;;  %10135 = vmatprep.subr.bf16.mxu0 %v10134_v15  ;;  %v7705_v15 = vld [vmem:[%s16771_s5 + $0xe38] sm:$0xff]  ;;  %v10156_v49 = vpack.c.bf16 %v7688_v54, %v7687_v35  ;;  %v7768_v54 = vld [vmem:[%s16771_s5 + $0x1028] sm:$0xff] }
 0x3ef   : > { %v8334_v10 = vpop.f32.mrb[14].mxu0  ;;  %v10183_v18 = vpack.c.bf16 %v7705_v15, %v7704_v2 }
 0x3f0   : > { %v8335_v29 = vpop.f32.mrb[15].mxu0 }
 0x3f1   : > { %v8336_v30 = vadd.f32 %v8335_v29, %v8334_v10  ;;  %10110 = vmatpush1.bf16.msra.mxu1 %v10109_v60  ;;  %10137 = vmatpush3.bf16.msra.mxu0 %v10136_v24  ;;  %v10185_v60 = vpack.c.bf16 %v7723_v17, %v7722_v16  ;;  %v7690_v24 = vld [vmem:[%s16771_s5 + $0xdc8] sm:$0xff]  ;;  %v7692_v29 = vld [vmem:[%s16771_s5 + $0xdd8] sm:$0xff] }
 0x3f2   : > { %10111 = vmatprep.subr.bf16.mxu1 %v11074_v31  ;;  %10139 = vmatprep.subr.bf16.mxu0 %v10138_v25  ;;  %v7707_v25 = vld [vmem:[%s16771_s5 + $0xe48] sm:$0xff]  ;;  %v10159_v27 = vpack.c.bf16 %v7690_v24, %v7689_v19  ;;  %v7733_v17 = vld [vmem:[%s16771_s5 + $0xf18] sm:$0xff]  ;;  %v7769_v19 = vld [vmem:[%s16771_s5 + $0x1030] sm:$0xff] }
 0x3f3   : > { %v14767_v42 = vadd.f32 %v14615_v20, %v8336_v30  ;;  %v7684_v20 = vld [vmem:[%s16771_s5 + $0xd98] sm:$0xff]  ;;  %v10187_v10 = vpack.c.bf16 %v7707_v25, %v7706_v36  ;;  %v7708_v30 = vld [vmem:[%s16771_s5 + $0xe50] sm:$0xff]  ;;  %v14961_v36 = vmax.f32 %v13520_v46, 0.0  ;;  %v4392_v25 = vrot.slane %v14802_v55, 1 }
 0x3f4   : > { %v10150_v23 = vpack.c.bf16 %v7684_v20, %v7683_v52  ;;  %v7729_v52 = vld [vmem:[%s16771_s5 + $0xef8] sm:$0xff]  ;;  %v7753_v46 = vld [vmem:[%s16771_s5 + $0xfb0] sm:$0xff] }
 0x3f5   : > { %10113 = vmatpush1.bf16.msra.mxu1 %v10112_v32  ;;  %10141 = vmatpush3.bf16.msra.mxu0 %v10140_v34  ;;  %v7709_v32 = vld [vmem:[%s16771_s5 + $0xe58] sm:$0xff]  ;;  %v7726_v34 = vld [vmem:[%s16771_s5 + $0xee0] sm:$0xff] }
 0x3f6   : > { %10143 = vmatprep.subr.bf16.mxu0 %v10142_v37  ;;  %10146 = vmatprep.subr.bf16.mxu1 %v11074_v31  ;;  %v10162_v37 = vpack.c.bf16 %v7692_v29, %v7691_v39  ;;  %v10191_v21 = vpack.c.bf16 %v7709_v32, %v7708_v30  ;;  %v10193_v41 = vpack.c.bf16 %v7727_v43, %v7726_v34  ;;  %v4594_v29 = vrot.slane %v14655_v38, 2  ;;  %v7771_v30 = vld [vmem:[%s16771_s5 + $0x1040] sm:$0xff]  ;;  %v7772_v32 = vld [vmem:[%s16771_s5 + $0x1048] sm:$0xff] }
 0x3f8   : > { %4137 = vmatmul.mubr.f32.vlgmr.msra.gmra.mrb[8].mxu1 %v3995_v56  ;;  %v10165_v56 = vpack.c.bf16 %v7694_v47, %v7693_v40  ;;  %v10240_v40 = vpack.c.bf16 %v7772_v32, %v7771_v30  ;;  %v7756_v47 = vld [vmem:[%s16771_s5 + $0xfc8] sm:$0xff] }
 0x3f9   : > { %10145 = vmatpush3.bf16.msra.mxu0 %v10144_v48  ;;  %10148 = vmatpush1.bf16.msra.mxu1 %v10147_v50  ;;  %v7711_v48 = vld [vmem:[%s16771_s5 + $0xe68] sm:$0xff]  ;;  %v7728_v50 = vld [vmem:[%s16771_s5 + $0xef0] sm:$0xff] }
 0x3fa   : > { %7699 = vmatprep.mubr.msk.f32.mxu1 %vm2588_vm8, %v14790_v59  ;;  %10149 = vmatprep.subr.bf16.mxu1 %v11074_v31  ;;  %v10195_v20 = vpack.c.bf16 %v7711_v48, %v7710_v53  ;;  %v10197_v33 = vpack.c.bf16 %v7729_v52, %v7728_v50  ;;  %v7773_v53 = vld [vmem:[%s16771_s5 + $0x1050] sm:$0xff]  ;;  %v7774_v48 = vld [vmem:[%s16771_s5 + $0x1058] sm:$0xff]  ;;  %v7747_v30 = vld [vmem:[%s16771_s5 + $0xf88] sm:$0xff] }
 0x3fb   : > { %10174 = vmatprep.subr.bf16.mxu0 %v10173_v58  ;;  %v7696_v58 = vld [vmem:[%s16771_s5 + $0xdf8] sm:$0xff] }
 0x3fc   : > { %4262 = vmatmul.mubr.f32.vlgmr.msra.gmra.mrb[28].mxu0 %v14802_v55  ;;  %v10168_v5 = vpack.c.bf16 %v7696_v58, %v7695_v57  ;;  %v10244_v57 = vpack.c.bf16 %v7774_v48, %v7773_v53  ;;  %v7758_v58 = vld [vmem:[%s16771_s5 + $0xfd8] sm:$0xff] }
 0x3fd   : > { %10151 = vmatpush1.bf16.msra.mxu1 %v10150_v23  ;;  %10176 = vmatpush3.bf16.msra.mxu0 %v10175_v62  ;;  %v7730_v62 = vld [vmem:[%s16771_s5 + $0xf00] sm:$0xff]  ;;  %v7749_v53 = vld [vmem:[%s16771_s5 + $0xf98] sm:$0xff] }
 0x3fe   : > { %4465 = vmatprep.mubr.f32.mxu0 %v4393_v8  ;;  %10152 = vmatprep.subr.bf16.mxu1 %v11074_v31  ;;  %v10201_v51 = vpack.c.bf16 %v7731_v63, %v7730_v62  ;;  %v7698_v8 = vld [vmem:[%s16771_s5 + $0xe08] sm:$0xff]  ;;  %v7740_v63 = vld [vmem:[%s16771_s5 + $0xf50] sm:$0xff] }
 0x3ff   : > { %10178 = vmatprep.subr.bf16.mxu0 %v10177_v45  ;;  %v10199_v45 = vpack.c.bf16 %v7713_v61, %v7712_v44  ;;  %v10171_v2 = vpack.c.bf16 %v7698_v8, %v7697_v6  ;;  %v7775_v44 = vld [vmem:[%s16771_s5 + $0x1060] sm:$0xff]  ;;  %v7776_v61 = vld [vmem:[%s16771_s5 + $0x1068] sm:$0xff]  ;;  %v7777_v6 = vld [vmem:[%s16771_s5 + $0x1070] sm:$0xff] }
 0x401   : > { %10154 = vmatpush1.bf16.msra.mxu1 %v10153_v12  ;;  %10180 = vmatpush3.bf16.msra.mxu0 %v10179_v13  ;;  %v7714_v12 = vld [vmem:[%s16771_s5 + $0xe80] sm:$0xff]  ;;  %v7715_v13 = vld [vmem:[%s16771_s5 + $0xe88] sm:$0xff] }
 0x402   : > { %10155 = vmatprep.subr.bf16.mxu1 %v11074_v31  ;;  %10182 = vmatprep.subr.bf16.mxu0 %v10181_v14  ;;  %v7767_v14 = vld [vmem:[%s16771_s5 + $0x1020] sm:$0xff]  ;;  %v10203_v15 = vpack.c.bf16 %v7715_v13, %v7714_v12 }
 0x403   : > { %v10232_v16 = vpack.c.bf16 %v7768_v54, %v7767_v14  ;;  %v7742_v13 = vld [vmem:[%s16771_s5 + $0xf60] sm:$0xff]  ;;  %v7743_v14 = vld [vmem:[%s16771_s5 + $0xf68] sm:$0xff] }
 0x405   : > { %10157 = vmatpush1.bf16.msra.mxu1 %v10156_v49  ;;  %10184 = vmatpush3.bf16.msra.mxu0 %v10183_v18  ;;  %v7751_v49 = vld [vmem:[%s16771_s5 + $0xfa0] sm:$0xff]  ;;  %v7752_v18 = vld [vmem:[%s16771_s5 + $0xfa8] sm:$0xff] }
 0x406   : > { %10158 = vmatprep.subr.bf16.mxu1 %v11074_v31  ;;  %10186 = vmatprep.subr.bf16.mxu0 %v10185_v60  ;;  %v7770_v60 = vld [vmem:[%s16771_s5 + $0x1038] sm:$0xff]  ;;  %v10234_v22 = vpack.c.bf16 %v7752_v18, %v7751_v49  ;;  %v7744_v18 = vld [vmem:[%s16771_s5 + $0xf70] sm:$0xff] }
 0x407   : > { %v10236_v39 = vpack.c.bf16 %v7770_v60, %v7769_v19  ;;  %v7745_v19 = vld [vmem:[%s16771_s5 + $0xf78] sm:$0xff] }
 0x409   : > { %10160 = vmatpush1.bf16.msra.mxu1 %v10159_v27  ;;  %10188 = vmatpush3.bf16.msra.mxu0 %v10187_v10  ;;  %v7735_v27 = vld [vmem:[%s16771_s5 + $0xf28] sm:$0xff]  ;;  %v4395_v10 = vrot.slane %v14790_v59, 1 }
 0x40a   : > { %10161 = vmatprep.subr.bf16.mxu1 %v11074_v31  ;;  %10190 = vmatprep.subr.bf16.mxu0 %v10189_v28  ;;  %v7754_v28 = vld [vmem:[%s16771_s5 + $0xfb8] sm:$0xff]  ;;  %v10209_v34 = vpack.c.bf16 %v7735_v27, %v7734_v26  ;;  %v7781_v27 = vld [vmem:[%s16771_s5 + $0x1090] sm:$0xff] }
 0x40b   : > { %v10238_v43 = vpack.c.bf16 %v7754_v28, %v7753_v46  ;;  %v10224_v46 = vpack.c.bf16 %v7745_v19, %v7744_v18  ;;  %v7788_v18 = vld [vmem:[%s16771_s5 + $0x10c8] sm:$0xff] }
 0x40d   : > { %10163 = vmatpush1.bf16.msra.mxu1 %v10162_v37  ;;  %10192 = vmatpush3.bf16.msra.mxu0 %v10191_v21  ;;  %v7736_v37 = vld [vmem:[%s16771_s5 + $0xf30] sm:$0xff]  ;;  %v7737_v21 = vld [vmem:[%s16771_s5 + $0xf38] sm:$0xff] }
 0x40e   : > { %10164 = vmatprep.subr.bf16.mxu1 %v11074_v31  ;;  %10194 = vmatprep.subr.bf16.mxu0 %v10193_v41  ;;  %v7755_v41 = vld [vmem:[%s16771_s5 + $0xfc0] sm:$0xff]  ;;  %v10212_v50 = vpack.c.bf16 %v7737_v21, %v7736_v37  ;;  %v7766_v37 = vld [vmem:[%s16771_s5 + $0x1018] sm:$0xff]  ;;  %v7818_v21 = vld [vmem:[%s16771_s5 + $0x11b0] sm:$0xff] }
 0x40f   : > { %v8369_v23 = vpop.f32.mrb[16].mxu0  ;;  %v10242_v52 = vpack.c.bf16 %v7756_v47, %v7755_v41  ;;  %v7748_v47 = vld [vmem:[%s16771_s5 + $0xf90] sm:$0xff] }
 0x410   : > { %v8370_v1 = vpop.f32.mrb[17].mxu0 }
 0x411   : > { %v8371_v4 = vadd.f32 %v8370_v1, %v8369_v23  ;;  %10166 = vmatpush1.bf16.msra.mxu1 %v10165_v56  ;;  %10196 = vmatpush3.bf16.msra.mxu0 %v10195_v20  ;;  %v7738_v56 = vld [vmem:[%s16771_s5 + $0xf40] sm:$0xff]  ;;  %v7739_v20 = vld [vmem:[%s16771_s5 + $0xf48] sm:$0xff]  ;;  %v7741_v1 = vld [vmem:[%s16771_s5 + $0xf58] sm:$0xff] }
 0x412   : > { %10167 = vmatprep.subr.bf16.mxu1 %v11074_v31  ;;  %10198 = vmatprep.subr.bf16.mxu0 %v10197_v33  ;;  %v7757_v33 = vld [vmem:[%s16771_s5 + $0xfd0] sm:$0xff]  ;;  %v10215_v23 = vpack.c.bf16 %v7739_v20, %v7738_v56  ;;  %v10218_v8 = vpack.c.bf16 %v7741_v1, %v7740_v63  ;;  %v7820_v56 = vld [vmem:[%s16771_s5 + $0x11c0] sm:$0xff]  ;;  %v7821_v20 = vld [vmem:[%s16771_s5 + $0x11c8] sm:$0xff]  ;;  %v4795_v1 = vrot.slane %v14655_v38, 3 }
 0x413   : > { %v14933_v35 = vadd.f32 %v14767_v42, %v8371_v4  ;;  %v7732_v42 = vld [vmem:[%s16771_s5 + $0xf10] sm:$0xff]  ;;  %v10246_v62 = vpack.c.bf16 %v7758_v58, %v7757_v33  ;;  %v10248_v4 = vpack.c.bf16 %v7776_v61, %v7775_v44  ;;  %v7783_v58 = vld [vmem:[%s16771_s5 + $0x10a0] sm:$0xff]  ;;  %v7784_v44 = vld [vmem:[%s16771_s5 + $0x10a8] sm:$0xff]  ;;  %v4593_v61 = vrot.slane %v14802_v55, 2 }
 0x414   : > { %v10206_v24 = vpack.c.bf16 %v7733_v17, %v7732_v42  ;;  %v7780_v42 = vld [vmem:[%s16771_s5 + $0x1088] sm:$0xff]  ;;  %v10221_v17 = vpack.c.bf16 %v7743_v14, %v7742_v13  ;;  %v4596_v13 = vrot.slane %v14790_v59, 2 }
 0x415   : > { %10169 = vmatpush1.bf16.msra.mxu1 %v10168_v5  ;;  %10200 = vmatpush3.bf16.msra.mxu0 %v10199_v45  ;;  %v7759_v5 = vld [vmem:[%s16771_s5 + $0xfe0] sm:$0xff]  ;;  %v7760_v45 = vld [vmem:[%s16771_s5 + $0xfe8] sm:$0xff] }
 0x416   : > { %10170 = vmatprep.subr.bf16.mxu1 %v11074_v31  ;;  %10202 = vmatprep.subr.bf16.mxu0 %v10201_v51  ;;  %v7778_v51 = vld [vmem:[%s16771_s5 + $0x1078] sm:$0xff]  ;;  %v10250_v12 = vpack.c.bf16 %v7760_v45, %v7759_v5  ;;  %v7805_v63 = vld [vmem:[%s16771_s5 + $0x1148] sm:$0xff]  ;;  %v10265_v45 = vpack.c.bf16 %v7784_v44, %v7783_v58  ;;  %v7814_v58 = vld [vmem:[%s16771_s5 + $0x1190] sm:$0xff] }
 0x417   : > { %v10252_v54 = vpack.c.bf16 %v7778_v51, %v7777_v6  ;;  %v7823_v5 = vld [vmem:[%s16771_s5 + $0x11d8] sm:$0xff]  ;;  %v4394_v6 = vrot.slane %v14961_v36, 1 }
 0x418   : > { %v7815_v44 = vld [vmem:[%s16771_s5 + $0x1198] sm:$0xff] }
 0x419   : > { %10172 = vmatpush1.bf16.msra.mxu1 %v10171_v2  ;;  %10204 = vmatpush3.bf16.msra.mxu0 %v10203_v15  ;;  %v7761_v2 = vld [vmem:[%s16771_s5 + $0xff0] sm:$0xff]  ;;  %v7762_v15 = vld [vmem:[%s16771_s5 + $0xff8] sm:$0xff] }
 0x41a   : > { %10205 = vmatprep.subr.bf16.mxu1 %v11074_v31  ;;  %10233 = vmatprep.subr.bf16.mxu0 %v10232_v16  ;;  %v7779_v16 = vld [vmem:[%s16771_s5 + $0x1080] sm:$0xff]  ;;  %v10254_v49 = vpack.c.bf16 %v7762_v15, %v7761_v2  ;;  %v7807_v2 = vld [vmem:[%s16771_s5 + $0x1158] sm:$0xff] }
 0x41b   : > { %v7824_v15 = vld [vmem:[%s16771_s5 + $0x11e0] sm:$0xff] }
 0x41c   : > { %4332 = vmatmul.mubr.f32.vlgmr.msra.gmra.mrb[8].mxu1 %v14961_v36  ;;  %4466 = vmatmul.mubr.f32.vlgmr.msra.gmra.mrb[30].mxu0 %v4392_v25  ;;  %v7763_v25 = vld [vmem:[%s16771_s5 + $0x1000] sm:$0xff] }
 0x41d   : > { %10207 = vmatpush1.bf16.msra.mxu1 %v10206_v24  ;;  %7750 = vmatprep.mubr.msk.f32.mxu1 %vm2588_vm8, %v4395_v10  ;;  %v10256_v24 = vpack.c.bf16 %v7780_v42, %v7779_v16  ;;  %v7782_v10 = vld [vmem:[%s16771_s5 + $0x1098] sm:$0xff]  ;;  %v7825_v16 = vld [vmem:[%s16771_s5 + $0x11e8] sm:$0xff] }
 0x41e   : > { %10235 = vmatpush3.bf16.msra.mxu0 %v10234_v22  ;;  %4666 = vmatprep.mubr.f32.mxu0 %v4594_v29  ;;  %v7764_v22 = vld [vmem:[%s16771_s5 + $0x1008] sm:$0xff]  ;;  %v7746_v29 = vld [vmem:[%s16771_s5 + $0xf80] sm:$0xff]  ;;  %v10303_v19 = vpack.c.bf16 %v7825_v16, %v7824_v15  ;;  %v7798_v15 = vld [vmem:[%s16771_s5 + $0x1118] sm:$0xff] }
 0x41f   : > { %10208 = vmatprep.subr.bf16.mxu1 %v11074_v31  ;;  %10237 = vmatprep.subr.bf16.mxu0 %v10236_v39  ;;  %v10258_v28 = vpack.c.bf16 %v7764_v22, %v7763_v25  ;;  %v7826_v25 = vld [vmem:[%s16771_s5 + $0x11f0] sm:$0xff]  ;;  %v7827_v22 = vld [vmem:[%s16771_s5 + $0x11f8] sm:$0xff] }
 0x421   : > { %10210 = vmatpush1.bf16.msra.mxu1 %v10209_v34  ;;  %v10260_v34 = vpack.c.bf16 %v7782_v10, %v7781_v27  ;;  %v7789_v10 = vld [vmem:[%s16771_s5 + $0x10d0] sm:$0xff] }
 0x422   : > { %10239 = vmatpush3.bf16.msra.mxu0 %v10238_v43  ;;  %10211 = vmatprep.subr.bf16.mxu1 %v11074_v31  ;;  %v7765_v43 = vld [vmem:[%s16771_s5 + $0x1010] sm:$0xff] }
 0x423   : > { %10241 = vmatprep.subr.bf16.mxu0 %v10240_v40  ;;  %v7819_v40 = vld [vmem:[%s16771_s5 + $0x11b8] sm:$0xff]  ;;  %v10262_v41 = vpack.c.bf16 %v7766_v37, %v7765_v43 }
 0x424   : > { %v10291_v48 = vpack.c.bf16 %v7819_v40, %v7818_v21  ;;  %v7791_v21 = vld [vmem:[%s16771_s5 + $0x10e0] sm:$0xff]  ;;  %v7792_v40 = vld [vmem:[%s16771_s5 + $0x10e8] sm:$0xff] }
 0x425   : > { %10213 = vmatpush1.bf16.msra.mxu1 %v10212_v50  ;;  %v7802_v50 = vld [vmem:[%s16771_s5 + $0x1130] sm:$0xff] }
 0x426   : > { %10243 = vmatpush3.bf16.msra.mxu0 %v10242_v52  ;;  %10214 = vmatprep.subr.bf16.mxu1 %v11074_v31  ;;  %v7803_v52 = vld [vmem:[%s16771_s5 + $0x1138] sm:$0xff] }
 0x427   : > { %10245 = vmatprep.subr.bf16.mxu0 %v10244_v57  ;;  %v10230_v57 = vpack.c.bf16 %v7749_v53, %v7748_v47  ;;  %v10293_v33 = vpack.c.bf16 %v7803_v52, %v7802_v50  ;;  %v7813_v47 = vld [vmem:[%s16771_s5 + $0x1188] sm:$0xff]  ;;  %v7830_v53 = vld [vmem:[%s16771_s5 + $0x1210] sm:$0xff]  ;;  %v10277_v50 = vpack.c.bf16 %v7792_v40, %v7791_v21  ;;  %v7857_v21 = vld [vmem:[%s16771_s5 + $0x12e0] sm:$0xff] }
 0x428   : > { %v7858_v40 = vld [vmem:[%s16771_s5 + $0x12e8] sm:$0xff] }
 0x429   : > { %10216 = vmatpush1.bf16.msra.mxu1 %v10215_v23  ;;  %v10295_v23 = vpack.c.bf16 %v7821_v20, %v7820_v56  ;;  %v7793_v56 = vld [vmem:[%s16771_s5 + $0x10f0] sm:$0xff]  ;;  %v7794_v20 = vld [vmem:[%s16771_s5 + $0x10f8] sm:$0xff] }
 0x42a   : > { %10247 = vmatpush3.bf16.msra.mxu0 %v10246_v62  ;;  %10217 = vmatprep.subr.bf16.mxu1 %v11074_v31  ;;  %v7804_v62 = vld [vmem:[%s16771_s5 + $0x1140] sm:$0xff] }
 0x42b   : > { %10249 = vmatprep.subr.bf16.mxu0 %v10248_v4  ;;  %v7822_v4 = vld [vmem:[%s16771_s5 + $0x11d0] sm:$0xff]  ;;  %v10297_v51 = vpack.c.bf16 %v7805_v63, %v7804_v62  ;;  %v7833_v62 = vld [vmem:[%s16771_s5 + $0x1228] sm:$0xff] }
 0x42c   : > { %v10299_v14 = vpack.c.bf16 %v7823_v5, %v7822_v4  ;;  %v10317_v4 = vpack.c.bf16 %v7815_v44, %v7814_v58  ;;  %v7795_v5 = vld [vmem:[%s16771_s5 + $0x1100] sm:$0xff]  ;;  %v7878_v44 = vld [vmem:[%s16771_s5 + $0x1388] sm:$0xff] }
 0x42d   : > { %10219 = vmatpush1.bf16.msra.mxu1 %v10218_v8  ;;  %v7785_v8 = vld [vmem:[%s16771_s5 + $0x10b0] sm:$0xff]  ;;  %v7877_v58 = vld [vmem:[%s16771_s5 + $0x1380] sm:$0xff] }
 0x42e   : > { %10251 = vmatpush3.bf16.msra.mxu0 %v10250_v12  ;;  %10220 = vmatprep.subr.bf16.mxu1 %v11074_v31  ;;  %v7786_v12 = vld [vmem:[%s16771_s5 + $0x10b8] sm:$0xff] }
 0x42f   : > { %v8404_v60 = vpop.f32.mrb[18].mxu0  ;;  %10253 = vmatprep.subr.bf16.mxu0 %v10252_v54  ;;  %v7806_v54 = vld [vmem:[%s16771_s5 + $0x1150] sm:$0xff]  ;;  %v10268_v42 = vpack.c.bf16 %v7786_v12, %v7785_v8  ;;  %v7816_v8 = vld [vmem:[%s16771_s5 + $0x11a0] sm:$0xff]  ;;  %v7817_v12 = vld [vmem:[%s16771_s5 + $0x11a8] sm:$0xff] }
 0x430   : > { %v8405_v26 = vpop.f32.mrb[19].mxu0 }
 0x431   : > { %v8406_v39 = vadd.f32 %v8405_v26, %v8404_v60  ;;  %10222 = vmatpush1.bf16.msra.mxu1 %v10221_v17  ;;  %v10301_v17 = vpack.c.bf16 %v7807_v2, %v7806_v54  ;;  %v7808_v60 = vld [vmem:[%s16771_s5 + $0x1160] sm:$0xff]  ;;  %v10321_v54 = vpack.c.bf16 %v7817_v12, %v7816_v8  ;;  %v7797_v2 = vld [vmem:[%s16771_s5 + $0x1110] sm:$0xff] }
 0x432   : > { %10255 = vmatpush3.bf16.msra.mxu0 %v10254_v49  ;;  %10223 = vmatprep.subr.bf16.mxu1 %v11074_v31  ;;  %v7787_v49 = vld [vmem:[%s16771_s5 + $0x10c0] sm:$0xff] }
 0x433   : > { %v15090_v32 = vadd.f32 %v14933_v35, %v8406_v39  ;;  %10257 = vmatprep.subr.bf16.mxu0 %v10256_v24  ;;  %v10227_v35 = vpack.c.bf16 %v7747_v30, %v7746_v29  ;;  %v7809_v24 = vld [vmem:[%s16771_s5 + $0x1168] sm:$0xff]  ;;  %v10271_v26 = vpack.c.bf16 %v7788_v18, %v7787_v49  ;;  %v7790_v39 = vld [vmem:[%s16771_s5 + $0x10d8] sm:$0xff]  ;;  %v7828_v30 = vld [vmem:[%s16771_s5 + $0x1200] sm:$0xff] }
 0x434   : > { %v10305_v27 = vpack.c.bf16 %v7809_v24, %v7808_v60  ;;  %v7811_v29 = vld [vmem:[%s16771_s5 + $0x1178] sm:$0xff]  ;;  %v10274_v43 = vpack.c.bf16 %v7790_v39, %v7789_v10  ;;  %v7871_v49 = vld [vmem:[%s16771_s5 + $0x1350] sm:$0xff]  ;;  %v7799_v24 = vld [vmem:[%s16771_s5 + $0x1120] sm:$0xff]  ;;  %v4996_v39 = vrot.slane %v14655_v38, 4 }
 0x435   : > { %10225 = vmatpush1.bf16.msra.mxu1 %v10224_v46  ;;  %v10307_v46 = vpack.c.bf16 %v7827_v22, %v7826_v25  ;;  %v7872_v18 = vld [vmem:[%s16771_s5 + $0x1358] sm:$0xff]  ;;  %v7800_v25 = vld [vmem:[%s16771_s5 + $0x1128] sm:$0xff]  ;;  %v4794_v22 = vrot.slane %v14802_v55, 3 }
 0x436   : > { %10259 = vmatpush3.bf16.msra.mxu0 %v10258_v28  ;;  %10226 = vmatprep.subr.bf16.mxu1 %v11074_v31  ;;  %v7810_v28 = vld [vmem:[%s16771_s5 + $0x1170] sm:$0xff]  ;;  %v7856_v10 = vld [vmem:[%s16771_s5 + $0x12d8] sm:$0xff] }
 0x437   : > { %10261 = vmatprep.subr.bf16.mxu0 %v10260_v34  ;;  %v7829_v34 = vld [vmem:[%s16771_s5 + $0x1208] sm:$0xff]  ;;  %v10309_v37 = vpack.c.bf16 %v7811_v29, %v7810_v28  ;;  %v10289_v29 = vpack.c.bf16 %v7800_v25, %v7799_v24  ;;  %v7865_v24 = vld [vmem:[%s16771_s5 + $0x1320] sm:$0xff] }
 0x438   : > { %v7874_v28 = vld [vmem:[%s16771_s5 + $0x1368] sm:$0xff] }
 0x439   : > { %10228 = vmatpush1.bf16.msra.mxu1 %v10227_v35  ;;  %v10311_v35 = vpack.c.bf16 %v7829_v34, %v7828_v30  ;;  %v7834_v34 = vld [vmem:[%s16771_s5 + $0x1230] sm:$0xff]  ;;  %v7866_v25 = vld [vmem:[%s16771_s5 + $0x1328] sm:$0xff] }
 0x43a   : > { %10263 = vmatpush3.bf16.msra.mxu0 %v10262_v41  ;;  %10229 = vmatprep.subr.bf16.mxu1 %v11074_v31  ;;  %v7812_v41 = vld [vmem:[%s16771_s5 + $0x1180] sm:$0xff] }
 0x43b   : > { %10292 = vmatprep.subr.bf16.mxu0 %v10291_v48  ;;  %v7831_v48 = vld [vmem:[%s16771_s5 + $0x1218] sm:$0xff]  ;;  %v10313_v52 = vpack.c.bf16 %v7813_v47, %v7812_v41 }
 0x43c   : > { %v7876_v41 = vld [vmem:[%s16771_s5 + $0x1378] sm:$0xff] }
 0x43d   : > { %4667 = vmatmul.mubr.f32.vlgmr.msra.gmra.mrb[32].mxu0 %v4593_v61  ;;  %10231 = vmatpush1.bf16.msra.mxu1 %v10230_v57 }
 0x43e   : > { %10294 = vmatpush3.bf16.msra.mxu0 %v10293_v33  ;;  %4867 = vmatprep.mubr.f32.mxu0 %v4795_v1  ;;  %v10315_v33 = vpack.c.bf16 %v7831_v48, %v7830_v53  ;;  %v10280_v1 = vpack.c.bf16 %v7794_v20, %v7793_v56  ;;  %v4595_v53 = vrot.slane %v14961_v36, 2  ;;  %v10360_v48 = vpack.c.bf16 %v7858_v40, %v7857_v21  ;;  %v7920_v21 = vld [vmem:[%s16771_s5 + $0x14d0] sm:$0xff]  ;;  %v7921_v40 = vld [vmem:[%s16771_s5 + $0x14d8] sm:$0xff] }
 0x43f   : > { %10264 = vmatprep.subr.bf16.mxu1 %v11074_v31  ;;  %10296 = vmatprep.subr.bf16.mxu0 %v10295_v23  ;;  %v7832_v23 = vld [vmem:[%s16771_s5 + $0x1220] sm:$0xff]  ;;  %v4797_v56 = vrot.slane %v14790_v59, 3 }
 0x440   : > { %4536 = vmatmul.mubr.f32.vlgmr.msra.gmra.mrb[8].mxu1 %v4394_v6 }
 0x441   : > { %10266 = vmatpush1.bf16.msra.mxu1 %v10265_v45  ;;  %7801 = vmatprep.mubr.msk.f32.mxu1 %vm2588_vm8, %v4596_v13  ;;  %v7796_v45 = vld [vmem:[%s16771_s5 + $0x1108] sm:$0xff]  ;;  %v7869_v13 = vld [vmem:[%s16771_s5 + $0x1340] sm:$0xff] }
 0x442   : > { %10298 = vmatpush3.bf16.msra.mxu0 %v10297_v51  ;;  %10267 = vmatprep.subr.bf16.mxu1 %v11074_v31  ;;  %v10319_v51 = vpack.c.bf16 %v7833_v62, %v7832_v23  ;;  %v7838_v62 = vld [vmem:[%s16771_s5 + $0x1250] sm:$0xff] }
 0x443   : > { %10300 = vmatprep.subr.bf16.mxu0 %v10299_v14  ;;  %v7870_v14 = vld [vmem:[%s16771_s5 + $0x1348] sm:$0xff] }
 0x444   : > { %v10350_v16 = vpack.c.bf16 %v7870_v14, %v7869_v13  ;;  %v7840_v13 = vld [vmem:[%s16771_s5 + $0x1260] sm:$0xff]  ;;  %v7841_v14 = vld [vmem:[%s16771_s5 + $0x1268] sm:$0xff] }
 0x445   : > { %10269 = vmatpush1.bf16.msra.mxu1 %v10268_v42  ;;  %v7853_v42 = vld [vmem:[%s16771_s5 + $0x12c0] sm:$0xff] }
 0x446   : > { %10302 = vmatpush3.bf16.msra.mxu0 %v10301_v17  ;;  %10270 = vmatprep.subr.bf16.mxu1 %v11074_v31  ;;  %v7854_v17 = vld [vmem:[%s16771_s5 + $0x12c8] sm:$0xff] }
 0x447   : > { %10304 = vmatprep.subr.bf16.mxu0 %v10303_v19  ;;  %v10286_v19 = vpack.c.bf16 %v7798_v15, %v7797_v2  ;;  %v10352_v60 = vpack.c.bf16 %v7854_v17, %v7853_v42  ;;  %v7864_v2 = vld [vmem:[%s16771_s5 + $0x1318] sm:$0xff]  ;;  %v7881_v15 = vld [vmem:[%s16771_s5 + $0x13a0] sm:$0xff]  ;;  %v10333_v42 = vpack.c.bf16 %v7841_v14, %v7840_v13  ;;  %v7908_v13 = vld [vmem:[%s16771_s5 + $0x1470] sm:$0xff] }
 0x448   : > { %v7909_v14 = vld [vmem:[%s16771_s5 + $0x1478] sm:$0xff] }
 0x449   : > { %10272 = vmatpush1.bf16.msra.mxu1 %v10271_v26  ;;  %v10354_v26 = vpack.c.bf16 %v7872_v18, %v7871_v49  ;;  %v7842_v49 = vld [vmem:[%s16771_s5 + $0x1270] sm:$0xff]  ;;  %v7843_v18 = vld [vmem:[%s16771_s5 + $0x1278] sm:$0xff] }
 0x44a   : > { %10306 = vmatpush3.bf16.msra.mxu0 %v10305_v27  ;;  %10273 = vmatprep.subr.bf16.mxu1 %v11074_v31  ;;  %v7855_v27 = vld [vmem:[%s16771_s5 + $0x12d0] sm:$0xff] }
 0x44b   : > { %10308 = vmatprep.subr.bf16.mxu0 %v10307_v46  ;;  %v7873_v46 = vld [vmem:[%s16771_s5 + $0x1360] sm:$0xff]  ;;  %v10356_v30 = vpack.c.bf16 %v7856_v10, %v7855_v27  ;;  %v7884_v27 = vld [vmem:[%s16771_s5 + $0x13b8] sm:$0xff] }
 0x44d   : > { %10275 = vmatpush1.bf16.msra.mxu1 %v10274_v43  ;;  %v7835_v43 = vld [vmem:[%s16771_s5 + $0x1238] sm:$0xff] }
 0x44e   : > { %10310 = vmatpush3.bf16.msra.mxu0 %v10309_v37  ;;  %10276 = vmatprep.subr.bf16.mxu1 %v11074_v31  ;;  %v10358_v37 = vpack.c.bf16 %v7874_v28, %v7873_v46  ;;  %v10324_v47 = vpack.c.bf16 %v7835_v43, %v7834_v34  ;;  %v10376_v46 = vpack.c.bf16 %v7866_v25, %v7865_v24  ;;  %v7844_v28 = vld [vmem:[%s16771_s5 + $0x1280] sm:$0xff]  ;;  %v7867_v43 = vld [vmem:[%s16771_s5 + $0x1330] sm:$0xff]  ;;  %v4796_v25 = vrot.slane %v14961_v36, 3 }
 0x44f   : > { %v8439_v57 = vpop.f32.mrb[20].mxu0  ;;  %10312 = vmatprep.subr.bf16.mxu0 %v10311_v35  ;;  %v7875_v35 = vld [vmem:[%s16771_s5 + $0x1370] sm:$0xff] }
 0x450   : > { %v8440_v61 = vpop.f32.mrb[21].mxu0  ;;  %v10362_v20 = vpack.c.bf16 %v7876_v41, %v7875_v35  ;;  %v7846_v41 = vld [vmem:[%s16771_s5 + $0x1290] sm:$0xff] }
 0x451   : > { %v8441_v63 = vadd.f32 %v8440_v61, %v8439_v57  ;;  %10278 = vmatpush1.bf16.msra.mxu1 %v10277_v50  ;;  %v7836_v50 = vld [vmem:[%s16771_s5 + $0x1240] sm:$0xff]  ;;  %v7859_v57 = vld [vmem:[%s16771_s5 + $0x12f0] sm:$0xff] }
 0x452   : > { %10314 = vmatpush3.bf16.msra.mxu0 %v10313_v52  ;;  %10279 = vmatprep.subr.bf16.mxu1 %v11074_v31  ;;  %v7837_v52 = vld [vmem:[%s16771_s5 + $0x1248] sm:$0xff] }
 0x453   : > { %v15250_v6 = vadd.f32 %v15090_v32, %v8441_v63  ;;  %10316 = vmatprep.subr.bf16.mxu0 %v10315_v33  ;;  %v10283_v32 = vpack.c.bf16 %v7796_v45, %v7795_v5  ;;  %v7860_v33 = vld [vmem:[%s16771_s5 + $0x12f8] sm:$0xff]  ;;  %v10327_v61 = vpack.c.bf16 %v7837_v52, %v7836_v50  ;;  %v7862_v5 = vld [vmem:[%s16771_s5 + $0x1308] sm:$0xff]  ;;  %v7879_v45 = vld [vmem:[%s16771_s5 + $0x1390] sm:$0xff] }
 0x454   : > { %v10364_v23 = vpack.c.bf16 %v7860_v33, %v7859_v57  ;;  %v7839_v63 = vld [vmem:[%s16771_s5 + $0x1258] sm:$0xff]  ;;  %v7922_v52 = vld [vmem:[%s16771_s5 + $0x14e0] sm:$0xff] }
 0x455   : > { %10281 = vmatpush1.bf16.msra.mxu1 %v10280_v1  ;;  %v10366_v1 = vpack.c.bf16 %v7878_v44, %v7877_v58  ;;  %v10330_v8 = vpack.c.bf16 %v7839_v63, %v7838_v62  ;;  %v7905_v50 = vld [vmem:[%s16771_s5 + $0x1458] sm:$0xff]  ;;  %v7848_v33 = vld [vmem:[%s16771_s5 + $0x12a0] sm:$0xff]  ;;  %v7849_v58 = vld [vmem:[%s16771_s5 + $0x12a8] sm:$0xff]  ;;  %v4995_v44 = vrot.slane %v14802_v55, 4  ;;  %v5197_v63 = vrot.slane %v14655_v38, 5 }
 0x456   : > { %10318 = vmatpush3.bf16.msra.mxu0 %v10317_v4  ;;  %10282 = vmatprep.subr.bf16.mxu1 %v11074_v31  ;;  %v7861_v4 = vld [vmem:[%s16771_s5 + $0x1300] sm:$0xff]  ;;  %v7907_v62 = vld [vmem:[%s16771_s5 + $0x1468] sm:$0xff] }
 0x457   : > { %10320 = vmatprep.subr.bf16.mxu0 %v10319_v51  ;;  %v7880_v51 = vld [vmem:[%s16771_s5 + $0x1398] sm:$0xff]  ;;  %v10368_v12 = vpack.c.bf16 %v7862_v5, %v7861_v4  ;;  %v10345_v5 = vpack.c.bf16 %v7849_v58, %v7848_v33  ;;  %v7916_v33 = vld [vmem:[%s16771_s5 + $0x14b0] sm:$0xff] }
 0x458   : > { %v7925_v4 = vld [vmem:[%s16771_s5 + $0x14f8] sm:$0xff] }
 0x459   : > { %10284 = vmatpush1.bf16.msra.mxu1 %v10283_v32  ;;  %v10370_v32 = vpack.c.bf16 %v7880_v51, %v7879_v45  ;;  %v7850_v51 = vld [vmem:[%s16771_s5 + $0x12b0] sm:$0xff]  ;;  %v7917_v58 = vld [vmem:[%s16771_s5 + $0x14b8] sm:$0xff] }
 0x45a   : > { %10322 = vmatpush3.bf16.msra.mxu0 %v10321_v54  ;;  %10285 = vmatprep.subr.bf16.mxu1 %v11074_v31  ;;  %v7863_v54 = vld [vmem:[%s16771_s5 + $0x1310] sm:$0xff] }
 0x45b   : > { %10351 = vmatprep.subr.bf16.mxu0 %v10350_v16  ;;  %v7882_v16 = vld [vmem:[%s16771_s5 + $0x13a8] sm:$0xff]  ;;  %v10372_v17 = vpack.c.bf16 %v7864_v2, %v7863_v54 }
 0x45c   : > { %v7927_v54 = vld [vmem:[%s16771_s5 + $0x1508] sm:$0xff] }
 0x45d   : > { %4868 = vmatmul.mubr.f32.vlgmr.msra.gmra.mrb[34].mxu0 %v4794_v22  ;;  %10287 = vmatpush1.bf16.msra.mxu1 %v10286_v19 }
 0x45e   : > { %10353 = vmatpush3.bf16.msra.mxu0 %v10352_v60  ;;  %5068 = vmatprep.mubr.f32.mxu0 %v4996_v39  ;;  %v10374_v60 = vpack.c.bf16 %v7882_v16, %v7881_v15  ;;  %v10336_v39 = vpack.c.bf16 %v7843_v18, %v7842_v49  ;;  %v10419_v15 = vpack.c.bf16 %v7909_v14, %v7908_v13  ;;  %v7885_v16 = vld [vmem:[%s16771_s5 + $0x13c0] sm:$0xff]  ;;  %v7911_v18 = vld [vmem:[%s16771_s5 + $0x1488] sm:$0xff] }
 0x45f   : > { %10288 = vmatprep.subr.bf16.mxu1 %v11074_v31  ;;  %10355 = vmatprep.subr.bf16.mxu0 %v10354_v26  ;;  %v7883_v26 = vld [vmem:[%s16771_s5 + $0x13b0] sm:$0xff]  ;;  %v7910_v49 = vld [vmem:[%s16771_s5 + $0x1480] sm:$0xff]  ;;  %v7972_v14 = vld [vmem:[%s16771_s5 + $0x1668] sm:$0xff] }
 0x460   : > { %v10378_v34 = vpack.c.bf16 %v7884_v27, %v7883_v26  ;;  %v7887_v26 = vld [vmem:[%s16771_s5 + $0x13d0] sm:$0xff]  ;;  %v7888_v27 = vld [vmem:[%s16771_s5 + $0x13d8] sm:$0xff]  ;;  %v7971_v13 = vld [vmem:[%s16771_s5 + $0x1660] sm:$0xff] }
 0x461   : > { %10290 = vmatpush1.bf16.msra.mxu1 %v10289_v29  ;;  %v7845_v29 = vld [vmem:[%s16771_s5 + $0x1288] sm:$0xff] }
 0x462   : > { %10357 = vmatpush3.bf16.msra.mxu0 %v10356_v30  ;;  %10323 = vmatprep.subr.bf16.mxu1 %v11074_v31 }
 0x463   : > { %10359 = vmatprep.subr.bf16.mxu0 %v10358_v37  ;;  %v7868_v37 = vld [vmem:[%s16771_s5 + $0x1338] sm:$0xff] }
 0x464   : > { %4737 = vmatmul.mubr.f32.vlgmr.msra.gmra.mrb[8].mxu1 %v4595_v53  ;;  %v10380_v35 = vpack.c.bf16 %v7868_v37, %v7867_v43  ;;  %v10409_v53 = vpack.c.bf16 %v7921_v40, %v7920_v21  ;;  %v10386_v43 = vpack.c.bf16 %v7888_v27, %v7887_v26  ;;  %v7889_v21 = vld [vmem:[%s16771_s5 + $0x13e0] sm:$0xff]  ;;  %v7890_v40 = vld [vmem:[%s16771_s5 + $0x13e8] sm:$0xff]  ;;  %v7957_v26 = vld [vmem:[%s16771_s5 + $0x15f0] sm:$0xff] }
 0x465   : > { %10325 = vmatpush1.bf16.msra.mxu1 %v10324_v47  ;;  %7852 = vmatprep.mubr.msk.f32.mxu1 %vm2588_vm8, %v4797_v56  ;;  %v7847_v47 = vld [vmem:[%s16771_s5 + $0x1298] sm:$0xff]  ;;  %v7923_v56 = vld [vmem:[%s16771_s5 + $0x14e8] sm:$0xff] }
 0x466   : > { %10361 = vmatpush3.bf16.msra.mxu0 %v10360_v48  ;;  %10326 = vmatprep.subr.bf16.mxu1 %v11074_v31  ;;  %v7904_v48 = vld [vmem:[%s16771_s5 + $0x1450] sm:$0xff]  ;;  %v7958_v27 = vld [vmem:[%s16771_s5 + $0x15f8] sm:$0xff] }
 0x467   : > { %10363 = vmatprep.subr.bf16.mxu0 %v10362_v20  ;;  %v10342_v20 = vpack.c.bf16 %v7847_v47, %v7846_v41  ;;  %v10411_v57 = vpack.c.bf16 %v7905_v50, %v7904_v48  ;;  %v7915_v41 = vld [vmem:[%s16771_s5 + $0x14a8] sm:$0xff]  ;;  %v7932_v47 = vld [vmem:[%s16771_s5 + $0x1530] sm:$0xff]  ;;  %v10389_v48 = vpack.c.bf16 %v7890_v40, %v7889_v21  ;;  %v7959_v21 = vld [vmem:[%s16771_s5 + $0x1600] sm:$0xff] }
 0x468   : > { %v7960_v40 = vld [vmem:[%s16771_s5 + $0x1608] sm:$0xff] }
 0x469   : > { %10328 = vmatpush1.bf16.msra.mxu1 %v10327_v61  ;;  %v10413_v61 = vpack.c.bf16 %v7923_v56, %v7922_v52  ;;  %v7891_v52 = vld [vmem:[%s16771_s5 + $0x13f0] sm:$0xff]  ;;  %v7892_v56 = vld [vmem:[%s16771_s5 + $0x13f8] sm:$0xff] }
 0x46a   : > { %10365 = vmatpush3.bf16.msra.mxu0 %v10364_v23  ;;  %10329 = vmatprep.subr.bf16.mxu1 %v11074_v31  ;;  %v7906_v23 = vld [vmem:[%s16771_s5 + $0x1460] sm:$0xff] }
 0x46b   : > { %10367 = vmatprep.subr.bf16.mxu0 %v10366_v1  ;;  %v7924_v1 = vld [vmem:[%s16771_s5 + $0x14f0] sm:$0xff]  ;;  %v10415_v45 = vpack.c.bf16 %v7907_v62, %v7906_v23  ;;  %v7935_v23 = vld [vmem:[%s16771_s5 + $0x1548] sm:$0xff] }
 0x46d   : > { %10331 = vmatpush1.bf16.msra.mxu1 %v10330_v8  ;;  %v7851_v8 = vld [vmem:[%s16771_s5 + $0x12b8] sm:$0xff] }
 0x46e   : > { %10369 = vmatpush3.bf16.msra.mxu0 %v10368_v12  ;;  %10332 = vmatprep.subr.bf16.mxu1 %v11074_v31  ;;  %v10417_v12 = vpack.c.bf16 %v7925_v4, %v7924_v1  ;;  %v10348_v2 = vpack.c.bf16 %v7851_v8, %v7850_v51  ;;  %v10435_v1 = vpack.c.bf16 %v7917_v58, %v7916_v33  ;;  %v7893_v4 = vld [vmem:[%s16771_s5 + $0x1400] sm:$0xff] }
 0x46f   : > { %v8474_v19 = vpop.f32.mrb[22].mxu0  ;;  %10371 = vmatprep.subr.bf16.mxu0 %v10370_v32  ;;  %v7926_v32 = vld [vmem:[%s16771_s5 + $0x1500] sm:$0xff] }
 0x470   : > { %v8475_v22 = vpop.f32.mrb[23].mxu0  ;;  %v7918_v8 = vld [vmem:[%s16771_s5 + $0x14c0] sm:$0xff] }
 0x471   : > { %v8476_v10 = vadd.f32 %v8475_v22, %v8474_v19  ;;  %10334 = vmatpush1.bf16.msra.mxu1 %v10333_v42  ;;  %v7886_v42 = vld [vmem:[%s16771_s5 + $0x13c8] sm:$0xff]  ;;  %v7928_v19 = vld [vmem:[%s16771_s5 + $0x1510] sm:$0xff]  ;;  %v10423_v22 = vpack.c.bf16 %v7911_v18, %v7910_v49  ;;  %v7974_v49 = vld [vmem:[%s16771_s5 + $0x1678] sm:$0xff] }
 0x472   : > { %10373 = vmatpush3.bf16.msra.mxu0 %v10372_v17  ;;  %10335 = vmatprep.subr.bf16.mxu1 %v11074_v31  ;;  %v10421_v17 = vpack.c.bf16 %v7927_v54, %v7926_v32  ;;  %v10383_v24 = vpack.c.bf16 %v7886_v42, %v7885_v16  ;;  %v7895_v54 = vld [vmem:[%s16771_s5 + $0x1410] sm:$0xff]  ;;  %v7955_v16 = vld [vmem:[%s16771_s5 + $0x15e0] sm:$0xff]  ;;  %v7956_v42 = vld [vmem:[%s16771_s5 + $0x15e8] sm:$0xff] }
 0x473   : > { %v15410_v30 = vadd.f32 %v15250_v6, %v8476_v10  ;;  %10375 = vmatprep.subr.bf16.mxu0 %v10374_v60  ;;  %v10339_v6 = vpack.c.bf16 %v7845_v29, %v7844_v28  ;;  %v7929_v60 = vld [vmem:[%s16771_s5 + $0x1518] sm:$0xff]  ;;  %v4998_v10 = vrot.slane %v14790_v59, 4  ;;  %v7930_v29 = vld [vmem:[%s16771_s5 + $0x1520] sm:$0xff] }
 0x474   : > { %v7913_v28 = vld [vmem:[%s16771_s5 + $0x1498] sm:$0xff] }
 0x475   : > { %10337 = vmatpush1.bf16.msra.mxu1 %v10336_v39  ;;  %v10425_v39 = vpack.c.bf16 %v7929_v60, %v7928_v19  ;;  %v10470_v19 = vpack.c.bf16 %v7956_v42, %v7955_v16  ;;  %v7897_v60 = vld [vmem:[%s16771_s5 + $0x1420] sm:$0xff] }
 0x476   : > { %10377 = vmatpush3.bf16.msra.mxu0 %v10376_v46  ;;  %10338 = vmatprep.subr.bf16.mxu1 %v11074_v31  ;;  %v7912_v46 = vld [vmem:[%s16771_s5 + $0x1490] sm:$0xff] }
 0x477   : > { %10379 = vmatprep.subr.bf16.mxu0 %v10378_v34  ;;  %v7931_v34 = vld [vmem:[%s16771_s5 + $0x1528] sm:$0xff]  ;;  %v10427_v37 = vpack.c.bf16 %v7913_v28, %v7912_v46 }
 0x478   : > { %v7976_v46 = vld [vmem:[%s16771_s5 + $0x1688] sm:$0xff] }
 0x479   : > { %10340 = vmatpush1.bf16.msra.mxu1 %v10339_v6  ;;  %v10429_v6 = vpack.c.bf16 %v7931_v34, %v7930_v29  ;;  %v10474_v29 = vpack.c.bf16 %v7958_v27, %v7957_v26  ;;  %v7899_v34 = vld [vmem:[%s16771_s5 + $0x1430] sm:$0xff]  ;;  %v7986_v26 = vld [vmem:[%s16771_s5 + $0x16d8] sm:$0xff] }
 0x47a   : > { %10381 = vmatpush3.bf16.msra.mxu0 %v10380_v35  ;;  %10341 = vmatprep.subr.bf16.mxu1 %v11074_v31  ;;  %v7914_v35 = vld [vmem:[%s16771_s5 + $0x14a0] sm:$0xff] }
 0x47b   : > { %10410 = vmatprep.subr.bf16.mxu0 %v10409_v53  ;;  %v7933_v53 = vld [vmem:[%s16771_s5 + $0x1538] sm:$0xff]  ;;  %v10431_v50 = vpack.c.bf16 %v7915_v41, %v7914_v35 }
 0x47c   : > { %v7978_v35 = vld [vmem:[%s16771_s5 + $0x1698] sm:$0xff] }
 0x47d   : > { %5069 = vmatmul.mubr.f32.vlgmr.msra.gmra.mrb[36].mxu0 %v4995_v44  ;;  %10343 = vmatpush1.bf16.msra.mxu1 %v10342_v20 }
 0x47e   : > { %10412 = vmatpush3.bf16.msra.mxu0 %v10411_v57  ;;  %5269 = vmatprep.mubr.f32.mxu0 %v5197_v63  ;;  %v10433_v57 = vpack.c.bf16 %v7933_v53, %v7932_v47  ;;  %v10392_v63 = vpack.c.bf16 %v7892_v56, %v7891_v52  ;;  %v10478_v47 = vpack.c.bf16 %v7960_v40, %v7959_v21  ;;  %v7901_v53 = vld [vmem:[%s16771_s5 + $0x1440] sm:$0xff]  ;;  %v7961_v52 = vld [vmem:[%s16771_s5 + $0x1610] sm:$0xff]  ;;  %v7962_v56 = vld [vmem:[%s16771_s5 + $0x1618] sm:$0xff] }
 0x47f   : > { %10344 = vmatprep.subr.bf16.mxu1 %v11074_v31  ;;  %10414 = vmatprep.subr.bf16.mxu0 %v10413_v61  ;;  %v7934_v61 = vld [vmem:[%s16771_s5 + $0x1540] sm:$0xff]  ;;  %v10482_v58 = vpack.c.bf16 %v7962_v56, %v7961_v52  ;;  %v8022_v21 = vld [vmem:[%s16771_s5 + $0x17f0] sm:$0xff]  ;;  %v8023_v40 = vld [vmem:[%s16771_s5 + $0x17f8] sm:$0xff] }
 0x480   : > { %v10437_v51 = vpack.c.bf16 %v7935_v23, %v7934_v61  ;;  %v7937_v61 = vld [vmem:[%s16771_s5 + $0x1558] sm:$0xff]  ;;  %v8025_v52 = vld [vmem:[%s16771_s5 + $0x1808] sm:$0xff] }
 0x481   : > { %10346 = vmatpush1.bf16.msra.mxu1 %v10345_v5  ;;  %v7894_v5 = vld [vmem:[%s16771_s5 + $0x1408] sm:$0xff] }
 0x482   : > { %10416 = vmatpush3.bf16.msra.mxu0 %v10415_v45  ;;  %10347 = vmatprep.subr.bf16.mxu1 %v11074_v31 }
 0x483   : > { %10418 = vmatprep.subr.bf16.mxu0 %v10417_v12  ;;  %v7919_v12 = vld [vmem:[%s16771_s5 + $0x14c8] sm:$0xff] }
 0x484   : > { %v10439_v32 = vpack.c.bf16 %v7919_v12, %v7918_v8  ;;  %v7938_v12 = vld [vmem:[%s16771_s5 + $0x1560] sm:$0xff] }
 0x485   : > { %10349 = vmatpush1.bf16.msra.mxu1 %v10348_v2  ;;  %v7896_v2 = vld [vmem:[%s16771_s5 + $0x1418] sm:$0xff] }
 0x486   : > { %10420 = vmatpush3.bf16.msra.mxu0 %v10419_v15  ;;  %10382 = vmatprep.subr.bf16.mxu1 %v11074_v31  ;;  %v10468_v15 = vpack.c.bf16 %v7972_v14, %v7971_v13  ;;  %v10398_v18 = vpack.c.bf16 %v7896_v2, %v7895_v54  ;;  %v7939_v13 = vld [vmem:[%s16771_s5 + $0x1568] sm:$0xff]  ;;  %v5199_v14 = vrot.slane %v14790_v59, 5  ;;  %v7966_v54 = vld [vmem:[%s16771_s5 + $0x1638] sm:$0xff]  ;;  %v7983_v2 = vld [vmem:[%s16771_s5 + $0x16c0] sm:$0xff] }
 0x487   : > { %10422 = vmatprep.subr.bf16.mxu0 %v10421_v17  ;;  %v7973_v17 = vld [vmem:[%s16771_s5 + $0x1670] sm:$0xff]  ;;  %v10445_v16 = vpack.c.bf16 %v7939_v13, %v7938_v12  ;;  %v8011_v13 = vld [vmem:[%s16771_s5 + $0x1798] sm:$0xff] }
 0x488   : > { %4938 = vmatmul.mubr.f32.vlgmr.msra.gmra.mrb[8].mxu1 %v4796_v25  ;;  %v5196_v25 = vrot.slane %v14802_v55, 5  ;;  %v8010_v12 = vld [vmem:[%s16771_s5 + $0x1790] sm:$0xff] }
 0x489   : > { %10384 = vmatpush1.bf16.msra.mxu1 %v10383_v24  ;;  %7903 = vmatprep.mubr.msk.f32.mxu1 %vm2588_vm8, %v4998_v10  ;;  %v7898_v24 = vld [vmem:[%s16771_s5 + $0x1428] sm:$0xff]  ;;  %v5398_v10 = vrot.slane %v14655_v38, 6 }
 0x48a   : > { %10424 = vmatpush3.bf16.msra.mxu0 %v10423_v22  ;;  %10385 = vmatprep.subr.bf16.mxu1 %v11074_v31  ;;  %v10472_v22 = vpack.c.bf16 %v7974_v49, %v7973_v17  ;;  %v10401_v28 = vpack.c.bf16 %v7898_v24, %v7897_v60  ;;  %v7940_v17 = vld [vmem:[%s16771_s5 + $0x1570] sm:$0xff]  ;;  %v7941_v49 = vld [vmem:[%s16771_s5 + $0x1578] sm:$0xff]  ;;  %v7967_v60 = vld [vmem:[%s16771_s5 + $0x1640] sm:$0xff] }
 0x48b   : > { %10426 = vmatprep.subr.bf16.mxu0 %v10425_v39  ;;  %v7975_v39 = vld [vmem:[%s16771_s5 + $0x1680] sm:$0xff]  ;;  %v7968_v24 = vld [vmem:[%s16771_s5 + $0x1648] sm:$0xff] }
 0x48d   : > { %10387 = vmatpush1.bf16.msra.mxu1 %v10386_v43  ;;  %v7900_v43 = vld [vmem:[%s16771_s5 + $0x1438] sm:$0xff] }
 0x48e   : > { %10428 = vmatpush3.bf16.msra.mxu0 %v10427_v37  ;;  %10388 = vmatprep.subr.bf16.mxu1 %v11074_v31  ;;  %v10476_v37 = vpack.c.bf16 %v7976_v46, %v7975_v39  ;;  %v10404_v41 = vpack.c.bf16 %v7900_v43, %v7899_v34  ;;  %v10494_v39 = vpack.c.bf16 %v7968_v24, %v7967_v60  ;;  %v7942_v46 = vld [vmem:[%s16771_s5 + $0x1580] sm:$0xff]  ;;  %v7969_v43 = vld [vmem:[%s16771_s5 + $0x1650] sm:$0xff] }
 0x48f   : > { %v8509_v20 = vpop.f32.mrb[24].mxu0  ;;  %10430 = vmatprep.subr.bf16.mxu0 %v10429_v6  ;;  %v7977_v6 = vld [vmem:[%s16771_s5 + $0x1690] sm:$0xff] }
 0x490   : > { %v8510_v44 = vpop.f32.mrb[25].mxu0  ;;  %v7952_v24 = vld [vmem:[%s16771_s5 + $0x15d0] sm:$0xff] }
 0x491   : > { %v8511_v62 = vadd.f32 %v8510_v44, %v8509_v20  ;;  %10390 = vmatpush1.bf16.msra.mxu1 %v10389_v48  ;;  %v7902_v48 = vld [vmem:[%s16771_s5 + $0x1448] sm:$0xff]  ;;  %v7979_v20 = vld [vmem:[%s16771_s5 + $0x16a0] sm:$0xff]  ;;  %v7936_v44 = vld [vmem:[%s16771_s5 + $0x1550] sm:$0xff] }
 0x492   : > { %10432 = vmatpush3.bf16.msra.mxu0 %v10431_v50  ;;  %10391 = vmatprep.subr.bf16.mxu1 %v11074_v31  ;;  %v10480_v50 = vpack.c.bf16 %v7978_v35, %v7977_v6  ;;  %v10407_v33 = vpack.c.bf16 %v7902_v48, %v7901_v53  ;;  %v7944_v35 = vld [vmem:[%s16771_s5 + $0x1590] sm:$0xff]  ;;  %v8007_v48 = vld [vmem:[%s16771_s5 + $0x1778] sm:$0xff] }
 0x493   : > { %v15570_v45 = vadd.f32 %v15410_v30, %v8511_v62  ;;  %10434 = vmatprep.subr.bf16.mxu0 %v10433_v57  ;;  %v10395_v30 = vpack.c.bf16 %v7894_v5, %v7893_v4  ;;  %v7980_v57 = vld [vmem:[%s16771_s5 + $0x16a8] sm:$0xff]  ;;  %v7963_v62 = vld [vmem:[%s16771_s5 + $0x1620] sm:$0xff]  ;;  %v7982_v4 = vld [vmem:[%s16771_s5 + $0x16b8] sm:$0xff]  ;;  %v10442_v5 = vpack.c.bf16 %v7937_v61, %v7936_v44 }
 0x494   : > { %v10484_v23 = vpack.c.bf16 %v7980_v57, %v7979_v20  ;;  %v8006_v53 = vld [vmem:[%s16771_s5 + $0x1770] sm:$0xff]  ;;  %v7946_v57 = vld [vmem:[%s16771_s5 + $0x15a0] sm:$0xff] }
 0x495   : > { %10393 = vmatpush1.bf16.msra.mxu1 %v10392_v63  ;;  %v7964_v63 = vld [vmem:[%s16771_s5 + $0x1628] sm:$0xff]  ;;  %v10529_v20 = vpack.c.bf16 %v8007_v48, %v8006_v53  ;;  %v8008_v61 = vld [vmem:[%s16771_s5 + $0x1780] sm:$0xff]  ;;  %v7989_v53 = vld [vmem:[%s16771_s5 + $0x16f0] sm:$0xff] }
 0x496   : > { %10436 = vmatpush3.bf16.msra.mxu0 %v10435_v1  ;;  %10394 = vmatprep.subr.bf16.mxu1 %v11074_v31  ;;  %v7981_v1 = vld [vmem:[%s16771_s5 + $0x16b0] sm:$0xff]  ;;  %v10486_v8 = vpack.c.bf16 %v7964_v63, %v7963_v62  ;;  %v5599_v62 = vrot.slane %v14655_v38, 7  ;;  %v7949_v38 = vld [vmem:[%s16771_s5 + $0x15b8] sm:$0xff] }
 0x497   : > { %10438 = vmatprep.subr.bf16.mxu0 %v10437_v51  ;;  %v4997_v51 = vrot.slane %v14961_v36, 4  ;;  %v8026_v63 = vld [vmem:[%s16771_s5 + $0x1810] sm:$0xff]  ;;  %v7990_v48 = vld [vmem:[%s16771_s5 + $0x16f8] sm:$0xff] }
 0x499   : > { %10396 = vmatpush1.bf16.msra.mxu1 %v10395_v30  ;;  %v10488_v30 = vpack.c.bf16 %v7982_v4, %v7981_v1  ;;  %v8027_v1 = vld [vmem:[%s16771_s5 + $0x1818] sm:$0xff] }
 0x49a   : > { %10440 = vmatpush3.bf16.msra.mxu0 %v10439_v32  ;;  %10397 = vmatprep.subr.bf16.mxu1 %v11074_v31  ;;  %v7965_v32 = vld [vmem:[%s16771_s5 + $0x1630] sm:$0xff] }
 0x49b   : > { %10469 = vmatprep.subr.bf16.mxu0 %v10468_v15  ;;  %v7984_v15 = vld [vmem:[%s16771_s5 + $0x16c8] sm:$0xff]  ;;  %v10490_v42 = vpack.c.bf16 %v7966_v54, %v7965_v32  ;;  %v10537_v54 = vpack.c.bf16 %v8011_v13, %v8010_v12 }
 0x49c   : > { %v8074_v12 = vld [vmem:[%s16771_s5 + $0x1988] sm:$0xff] }
 0x49d   : > { %5270 = vmatmul.mubr.f32.vlgmr.msra.gmra.mrb[38].mxu0 %v5196_v25  ;;  %10399 = vmatpush1.bf16.msra.mxu1 %v10398_v18 }
 0x49e   : > { %10471 = vmatpush3.bf16.msra.mxu0 %v10470_v19  ;;  %5470 = vmatprep.mubr.f32.mxu0 %v5398_v10  ;;  %v10492_v19 = vpack.c.bf16 %v7984_v15, %v7983_v2  ;;  %v10448_v10 = vpack.c.bf16 %v7941_v49, %v7940_v17  ;;  %v7950_v2 = vld [vmem:[%s16771_s5 + $0x15c0] sm:$0xff]  ;;  %v7951_v15 = vld [vmem:[%s16771_s5 + $0x15c8] sm:$0xff]  ;;  %v8030_v49 = vld [vmem:[%s16771_s5 + $0x1830] sm:$0xff] }
 0x49f   : > { %10400 = vmatprep.subr.bf16.mxu1 %v11074_v31  ;;  %10473 = vmatprep.subr.bf16.mxu0 %v10472_v22  ;;  %v7985_v22 = vld [vmem:[%s16771_s5 + $0x16d0] sm:$0xff]  ;;  %v8013_v17 = vld [vmem:[%s16771_s5 + $0x17a8] sm:$0xff] }
 0x4a0   : > { %v10496_v34 = vpack.c.bf16 %v7986_v26, %v7985_v22  ;;  %v8014_v26 = vld [vmem:[%s16771_s5 + $0x17b0] sm:$0xff] }
 0x4a1   : > { %10402 = vmatpush1.bf16.msra.mxu1 %v10401_v28  ;;  %v7943_v28 = vld [vmem:[%s16771_s5 + $0x1588] sm:$0xff] }
 0x4a2   : > { %10475 = vmatpush3.bf16.msra.mxu0 %v10474_v29  ;;  %10403 = vmatprep.subr.bf16.mxu1 %v11074_v31 }
 0x4a3   : > { %10477 = vmatprep.subr.bf16.mxu0 %v10476_v37  ;;  %v7970_v37 = vld [vmem:[%s16771_s5 + $0x1658] sm:$0xff] }
 0x4a4   : > { %v10498_v6 = vpack.c.bf16 %v7970_v37, %v7969_v43  ;;  %v7988_v43 = vld [vmem:[%s16771_s5 + $0x16e8] sm:$0xff] }
 0x4a5   : > { %10405 = vmatpush1.bf16.msra.mxu1 %v10404_v41  ;;  %v7945_v41 = vld [vmem:[%s16771_s5 + $0x1598] sm:$0xff] }
 0x4a6   : > { %10479 = vmatpush3.bf16.msra.mxu0 %v10478_v47  ;;  %10406 = vmatprep.subr.bf16.mxu1 %v11074_v31  ;;  %v10527_v47 = vpack.c.bf16 %v8023_v40, %v8022_v21  ;;  %v10454_v56 = vpack.c.bf16 %v7945_v41, %v7944_v35  ;;  %v8016_v21 = vld [vmem:[%s16771_s5 + $0x17c0] sm:$0xff]  ;;  %v8017_v40 = vld [vmem:[%s16771_s5 + $0x17c8] sm:$0xff]  ;;  %v5198_v41 = vrot.slane %v14961_v36, 5 }
 0x4a7   : > { %10481 = vmatprep.subr.bf16.mxu0 %v10480_v50  ;;  %v8024_v50 = vld [vmem:[%s16771_s5 + $0x1800] sm:$0xff] }
 0x4a8   : > { %v10531_v44 = vpack.c.bf16 %v8025_v52, %v8024_v50  ;;  %v5400_v52 = vrot.slane %v14790_v59, 6 }
 0x4a9   : > { %10408 = vmatpush1.bf16.msra.mxu1 %v10407_v33  ;;  %v7947_v33 = vld [vmem:[%s16771_s5 + $0x15a8] sm:$0xff] }
 0x4aa   : > { %10483 = vmatpush3.bf16.msra.mxu0 %v10482_v58  ;;  %10441 = vmatprep.subr.bf16.mxu1 %v11074_v31  ;;  %v5397_v58 = vrot.slane %v14802_v55, 6  ;;  %v10457_v4 = vpack.c.bf16 %v7947_v33, %v7946_v57  ;;  %v8019_v57 = vld [vmem:[%s16771_s5 + $0x17d8] sm:$0xff] }
 0x4ab   : > { %10485 = vmatprep.subr.bf16.mxu0 %v10484_v23  ;;  %v8009_v23 = vld [vmem:[%s16771_s5 + $0x1788] sm:$0xff] }
 0x4ac   : > { %5139 = vmatmul.mubr.f32.vlgmr.msra.gmra.mrb[8].mxu1 %v4997_v51  ;;  %v7948_v51 = vld [vmem:[%s16771_s5 + $0x15b0] sm:$0xff] }
 0x4ad   : > { %10443 = vmatpush1.bf16.msra.mxu1 %v10442_v5  ;;  %7954 = vmatprep.mubr.msk.f32.mxu1 %vm2588_vm8, %v5199_v14  ;;  %v10533_v5 = vpack.c.bf16 %v8009_v23, %v8008_v61  ;;  %v8028_v14 = vld [vmem:[%s16771_s5 + $0x1820] sm:$0xff]  ;;  %v10460_v32 = vpack.c.bf16 %v7949_v38, %v7948_v51  ;;  %v10504_v23 = vpack.c.bf16 %v7990_v48, %v7989_v53  ;;  %v8021_v38 = vld [vmem:[%s16771_s5 + $0x17e8] sm:$0xff] }
 0x4ae   : > { %10487 = vmatpush3.bf16.msra.mxu0 %v10486_v8  ;;  %10444 = vmatprep.subr.bf16.mxu1 %v11074_v31  ;;  %v10535_v8 = vpack.c.bf16 %v8027_v1, %v8026_v63  ;;  %v7991_v63 = vld [vmem:[%s16771_s5 + $0x1700] sm:$0xff]  ;;  %v7992_v1 = vld [vmem:[%s16771_s5 + $0x1708] sm:$0xff] }
 0x4af   : > { %v8544_v18 = vpop.f32.mrb[26].mxu0  ;;  %10489 = vmatprep.subr.bf16.mxu0 %v10488_v30  ;;  %v8029_v30 = vld [vmem:[%s16771_s5 + $0x1828] sm:$0xff]  ;;  %v8020_v51 = vld [vmem:[%s16771_s5 + $0x17e0] sm:$0xff] }
 0x4b0   : > { %v8545_v25 = vpop.f32.mrb[27].mxu0  ;;  %v10557_v13 = vpack.c.bf16 %v8021_v38, %v8020_v51  ;;  %v8081_v53 = vld [vmem:[%s16771_s5 + $0x19c0] sm:$0xff]  ;;  %v8082_v48 = vld [vmem:[%s16771_s5 + $0x19c8] sm:$0xff]  ;;  %v8067_v51 = vld [vmem:[%s16771_s5 + $0x1950] sm:$0xff] }
 0x4b1   : > { %v8546_v27 = vadd.f32 %v8545_v25, %v8544_v18  ;;  %10446 = vmatpush1.bf16.msra.mxu1 %v10445_v16  ;;  %v10539_v16 = vpack.c.bf16 %v8029_v30, %v8028_v14  ;;  %v8031_v18 = vld [vmem:[%s16771_s5 + $0x1838] sm:$0xff]  ;;  %v7993_v14 = vld [vmem:[%s16771_s5 + $0x1710] sm:$0xff] }
 0x4b2   : > { %10491 = vmatpush3.bf16.msra.mxu0 %v10490_v42  ;;  %10447 = vmatprep.subr.bf16.mxu1 %v11074_v31  ;;  %v8012_v42 = vld [vmem:[%s16771_s5 + $0x17a0] sm:$0xff]  ;;  %v7953_v25 = vld [vmem:[%s16771_s5 + $0x15d8] sm:$0xff]  ;;  %v10543_v22 = vpack.c.bf16 %v8031_v18, %v8030_v49  ;;  %v7996_v18 = vld [vmem:[%s16771_s5 + $0x1728] sm:$0xff] }
 0x4b3   : > { %v15730_v29 = vadd.f32 %v15570_v45, %v8546_v27  ;;  %10493 = vmatprep.subr.bf16.mxu0 %v10492_v19  ;;  %v10451_v45 = vpack.c.bf16 %v7943_v28, %v7942_v46  ;;  %v10463_v19 = vpack.c.bf16 %v7951_v15, %v7950_v2  ;;  %v10541_v60 = vpack.c.bf16 %v8013_v17, %v8012_v42  ;;  %v8015_v27 = vld [vmem:[%s16771_s5 + $0x17b8] sm:$0xff]  ;;  %v8058_v2 = vld [vmem:[%s16771_s5 + $0x1908] sm:$0xff]  ;;  %v8075_v15 = vld [vmem:[%s16771_s5 + $0x1990] sm:$0xff] }
 0x4b4   : > { %v10466_v46 = vpack.c.bf16 %v7953_v25, %v7952_v24  ;;  %v10545_v28 = vpack.c.bf16 %v8015_v27, %v8014_v26  ;;  %v7994_v30 = vld [vmem:[%s16771_s5 + $0x1718] sm:$0xff]  ;;  %v7995_v49 = vld [vmem:[%s16771_s5 + $0x1720] sm:$0xff]  ;;  %v8059_v24 = vld [vmem:[%s16771_s5 + $0x1910] sm:$0xff] }
 0x4b5   : > { %10449 = vmatpush1.bf16.msra.mxu1 %v10448_v10  ;;  %v8032_v10 = vld [vmem:[%s16771_s5 + $0x1840] sm:$0xff]  ;;  %v10510_v42 = vpack.c.bf16 %v7994_v30, %v7993_v14  ;;  %v8060_v25 = vld [vmem:[%s16771_s5 + $0x1918] sm:$0xff]  ;;  %v10513_v27 = vpack.c.bf16 %v7996_v18, %v7995_v49  ;;  %v8038_v14 = vld [vmem:[%s16771_s5 + $0x1870] sm:$0xff] }
 0x4b6   : > { %10495 = vmatpush3.bf16.msra.mxu0 %v10494_v39  ;;  %10450 = vmatprep.subr.bf16.mxu1 %v11074_v31  ;;  %v8033_v39 = vld [vmem:[%s16771_s5 + $0x1848] sm:$0xff]  ;;  %v8077_v26 = vld [vmem:[%s16771_s5 + $0x19a0] sm:$0xff]  ;;  %v8068_v38 = vld [vmem:[%s16771_s5 + $0x1958] sm:$0xff] }
 0x4b7   : > { %10497 = vmatprep.subr.bf16.mxu0 %v10496_v34  ;;  %v7987_v34 = vld [vmem:[%s16771_s5 + $0x16e0] sm:$0xff]  ;;  %v10547_v37 = vpack.c.bf16 %v8033_v39, %v8032_v10  ;;  %v10592_v10 = vpack.c.bf16 %v8060_v25, %v8059_v24  ;;  %v7998_v39 = vld [vmem:[%s16771_s5 + $0x1738] sm:$0xff]  ;;  %v8041_v25 = vld [vmem:[%s16771_s5 + $0x1888] sm:$0xff] }
 0x4b8   : > { %v10501_v35 = vpack.c.bf16 %v7988_v43, %v7987_v34  ;;  %v8062_v34 = vld [vmem:[%s16771_s5 + $0x1928] sm:$0xff]  ;;  %v8079_v43 = vld [vmem:[%s16771_s5 + $0x19b0] sm:$0xff]  ;;  %v8039_v30 = vld [vmem:[%s16771_s5 + $0x1878] sm:$0xff] }
 0x4b9   : > { %10452 = vmatpush1.bf16.msra.mxu1 %v10451_v45  ;;  %v8034_v45 = vld [vmem:[%s16771_s5 + $0x1850] sm:$0xff]  ;;  %v10560_v18 = vpack.c.bf16 %v8039_v30, %v8038_v14  ;;  %v8040_v24 = vld [vmem:[%s16771_s5 + $0x1880] sm:$0xff]  ;;  %v8133_v30 = vld [vmem:[%s16771_s5 + $0x1b58] sm:$0xff] }
 0x4ba   : > { %10499 = vmatpush3.bf16.msra.mxu0 %v10498_v6  ;;  %10453 = vmatprep.subr.bf16.mxu1 %v11074_v31  ;;  %v8035_v6 = vld [vmem:[%s16771_s5 + $0x1858] sm:$0xff]  ;;  %v8132_v14 = vld [vmem:[%s16771_s5 + $0x1b50] sm:$0xff] }
 0x4bb   : > { %10528 = vmatprep.subr.bf16.mxu0 %v10527_v47  ;;  %v10549_v47 = vpack.c.bf16 %v8017_v40, %v8016_v21 }
 0x4bd   : > { %5471 = vmatmul.mubr.f32.vlgmr.msra.gmra.mrb[40].mxu0 %v5397_v58  ;;  %10455 = vmatpush1.bf16.msra.mxu1 %v10454_v56  ;;  %v10551_v56 = vpack.c.bf16 %v8035_v6, %v8034_v45  ;;  %v8036_v58 = vld [vmem:[%s16771_s5 + $0x1860] sm:$0xff]  ;;  %v8000_v6 = vld [vmem:[%s16771_s5 + $0x1748] sm:$0xff] }
 0x4be   : > { %10530 = vmatpush3.bf16.msra.mxu0 %v10529_v20  ;;  %5671 = vmatprep.mubr.f32.mxu0 %v5599_v62  ;;  %v8018_v20 = vld [vmem:[%s16771_s5 + $0x17d0] sm:$0xff]  ;;  %v7999_v45 = vld [vmem:[%s16771_s5 + $0x1740] sm:$0xff] }
 0x4bf   : > { %10456 = vmatprep.subr.bf16.mxu1 %v11074_v31  ;;  %10532 = vmatprep.subr.bf16.mxu0 %v10531_v44  ;;  %v8037_v44 = vld [vmem:[%s16771_s5 + $0x1868] sm:$0xff]  ;;  %v10553_v62 = vpack.c.bf16 %v8019_v57, %v8018_v20  ;;  %v8002_v20 = vld [vmem:[%s16771_s5 + $0x1758] sm:$0xff]  ;;  %v10602_v57 = vpack.c.bf16 %v8082_v48, %v8081_v53  ;;  %v16094_v53 = vmax.f32 %v13548_v0, 0.0 }
 0x4c0   : > { %v8129_v0 = vld [vmem:[%s16771_s5 + $0x1b38] sm:$0xff] }
 0x4c1   : > { %10458 = vmatpush1.bf16.msra.mxu1 %v10457_v4 }
 0x4c2   : > { %10534 = vmatpush3.bf16.msra.mxu0 %v10533_v5  ;;  %10459 = vmatprep.subr.bf16.mxu1 %v11074_v31  ;;  %v10555_v5 = vpack.c.bf16 %v8037_v44, %v8036_v58  ;;  %v8066_v58 = vld [vmem:[%s16771_s5 + $0x1948] sm:$0xff]  ;;  %v8083_v44 = vld [vmem:[%s16771_s5 + $0x19d0] sm:$0xff] }
 0x4c3   : > { %10536 = vmatprep.subr.bf16.mxu0 %v10535_v8  ;;  %v8073_v8 = vld [vmem:[%s16771_s5 + $0x1980] sm:$0xff] }
 0x4c5   : > { %10461 = vmatpush1.bf16.msra.mxu1 %v10460_v32  ;;  %v10586_v32 = vpack.c.bf16 %v8074_v12, %v8073_v8  ;;  %v8085_v8 = vld [vmem:[%s16771_s5 + $0x19e0] sm:$0xff]  ;;  %v8086_v12 = vld [vmem:[%s16771_s5 + $0x19e8] sm:$0xff] }
 0x4c6   : > { %10538 = vmatpush3.bf16.msra.mxu0 %v10537_v54  ;;  %10462 = vmatprep.subr.bf16.mxu1 %v11074_v31  ;;  %v8057_v54 = vld [vmem:[%s16771_s5 + $0x1900] sm:$0xff] }
 0x4c7   : > { %10540 = vmatprep.subr.bf16.mxu0 %v10539_v16  ;;  %v8076_v16 = vld [vmem:[%s16771_s5 + $0x1998] sm:$0xff]  ;;  %v10588_v17 = vpack.c.bf16 %v8058_v2, %v8057_v54  ;;  %v10610_v54 = vpack.c.bf16 %v8086_v12, %v8085_v8  ;;  %v8069_v2 = vld [vmem:[%s16771_s5 + $0x1960] sm:$0xff]  ;;  %v8049_v8 = vld [vmem:[%s16771_s5 + $0x18c8] sm:$0xff] }
 0x4c9   : > { %10464 = vmatpush1.bf16.msra.mxu1 %v10463_v19  ;;  %v5598_v19 = vrot.slane %v14802_v55, 7  ;;  %v8078_v55 = vld [vmem:[%s16771_s5 + $0x19a8] sm:$0xff] }
 0x4ca   : > { %10542 = vmatpush3.bf16.msra.mxu0 %v10541_v60  ;;  %10465 = vmatprep.subr.bf16.mxu1 %v11074_v31  ;;  %v10590_v60 = vpack.c.bf16 %v8076_v16, %v8075_v15  ;;  %v8070_v15 = vld [vmem:[%s16771_s5 + $0x1968] sm:$0xff] }
 0x4cb   : > { %10544 = vmatprep.subr.bf16.mxu0 %v10543_v22  ;;  %v15938_v22 = vmax.f32 %v13562_v11, 0.0  ;;  %v7997_v11 = vld [vmem:[%s16771_s5 + $0x1730] sm:$0xff] }
 0x4cc   : > { %v10516_v21 = vpack.c.bf16 %v7998_v39, %v7997_v11  ;;  %v8072_v11 = vld [vmem:[%s16771_s5 + $0x1978] sm:$0xff]  ;;  %v8124_v39 = vld [vmem:[%s16771_s5 + $0x1b10] sm:$0xff] }
 0x4cd   : > { %10467 = vmatpush1.bf16.msra.mxu1 %v10466_v46  ;;  %v10594_v46 = vpack.c.bf16 %v8078_v55, %v8077_v26  ;;  %v5601_v55 = vrot.slane %v14790_v59, 7  ;;  %v10563_v59 = vpack.c.bf16 %v8041_v25, %v8040_v24  ;;  %v8052_v24 = vld [vmem:[%s16771_s5 + $0x18e0] sm:$0xff]  ;;  %v8053_v25 = vld [vmem:[%s16771_s5 + $0x18e8] sm:$0xff] }
 0x4ce   : > { %10546 = vmatpush3.bf16.msra.mxu0 %v10545_v28  ;;  %10500 = vmatprep.subr.bf16.mxu1 %v11074_v31  ;;  %v8061_v28 = vld [vmem:[%s16771_s5 + $0x1920] sm:$0xff] }
 0x4cf   : > { %v8579_v50 = vpop.f32.mrb[28].mxu0  ;;  %10548 = vmatprep.subr.bf16.mxu0 %v10547_v37  ;;  %v8080_v37 = vld [vmem:[%s16771_s5 + $0x19b8] sm:$0xff]  ;;  %v10596_v40 = vpack.c.bf16 %v8062_v34, %v8061_v28  ;;  %v8042_v28 = vld [vmem:[%s16771_s5 + $0x1890] sm:$0xff] }
 0x4d0   : > { %v8580_v33 = vpop.f32.mrb[29].mxu0  ;;  %5340 = vmatmul.mubr.f32.vlgmr.msra.gmra.mrb[8].mxu1 %v5198_v41  ;;  %v8063_v41 = vld [vmem:[%s16771_s5 + $0x1930] sm:$0xff]  ;;  %v8043_v34 = vld [vmem:[%s16771_s5 + $0x1898] sm:$0xff] }
 0x4d1   : > { %v8581_v61 = vadd.f32 %v8580_v33, %v8579_v50  ;;  %10502 = vmatpush1.bf16.msra.mxu1 %v10501_v35  ;;  %8005 = vmatprep.mubr.msk.f32.mxu1 %vm2588_vm8, %v5400_v52  ;;  %v10598_v35 = vpack.c.bf16 %v8080_v37, %v8079_v43  ;;  %v10519_v50 = vpack.c.bf16 %v8000_v6, %v7999_v45  ;;  %v8065_v33 = vld [vmem:[%s16771_s5 + $0x1940] sm:$0xff]  ;;  %v8108_v37 = vld [vmem:[%s16771_s5 + $0x1a90] sm:$0xff]  ;;  %v8127_v45 = vld [vmem:[%s16771_s5 + $0x1b28] sm:$0xff] }
 0x4d2   : > { %10550 = vmatpush3.bf16.msra.mxu0 %v10549_v47  ;;  %10503 = vmatprep.subr.bf16.mxu1 %v11074_v31  ;;  %v8064_v47 = vld [vmem:[%s16771_s5 + $0x1938] sm:$0xff]  ;;  %v10566_v6 = vpack.c.bf16 %v8043_v34, %v8042_v28 }
 0x4d3   : > { %v15890_v4 = vadd.f32 %v15730_v29, %v8581_v61  ;;  %10552 = vmatprep.subr.bf16.mxu0 %v10551_v56  ;;  %v10507_v29 = vpack.c.bf16 %v7992_v1, %v7991_v63  ;;  %v10600_v52 = vpack.c.bf16 %v8064_v47, %v8063_v41  ;;  %v8001_v56 = vld [vmem:[%s16771_s5 + $0x1750] sm:$0xff]  ;;  %v8084_v61 = vld [vmem:[%s16771_s5 + $0x19d8] sm:$0xff]  ;;  %v8003_v63 = vld [vmem:[%s16771_s5 + $0x1760] sm:$0xff] }
 0x4d4   : > { %v8004_v1 = vld [vmem:[%s16771_s5 + $0x1768] sm:$0xff]  ;;  %v8044_v41 = vld [vmem:[%s16771_s5 + $0x18a0] sm:$0xff]  ;;  %v8055_v28 = vld [vmem:[%s16771_s5 + $0x18f8] sm:$0xff] }
 0x4d5   : > { %10505 = vmatpush1.bf16.msra.mxu1 %v10504_v23  ;;  %v10522_v23 = vpack.c.bf16 %v8002_v20, %v8001_v56  ;;  %v8045_v47 = vld [vmem:[%s16771_s5 + $0x18a8] sm:$0xff]  ;;  %v5998_v56 = vrot.slane %v15938_v22, 1  ;;  %v8128_v20 = vld [vmem:[%s16771_s5 + $0x1b30] sm:$0xff] }
 0x4d6   : > { %10554 = vmatpush3.bf16.msra.mxu0 %v10553_v62  ;;  %10506 = vmatprep.subr.bf16.mxu1 %v11074_v31  ;;  %v10604_v62 = vpack.c.bf16 %v8066_v58, %v8065_v33  ;;  %v8046_v58 = vld [vmem:[%s16771_s5 + $0x18b0] sm:$0xff] }
 0x4d7   : > { %10556 = vmatprep.subr.bf16.mxu0 %v10555_v5  ;;  %v10606_v5 = vpack.c.bf16 %v8084_v61, %v8083_v44  ;;  %v8047_v44 = vld [vmem:[%s16771_s5 + $0x18b8] sm:$0xff]  ;;  %v10653_v61 = vpack.c.bf16 %v8129_v0, %v8128_v20  ;;  %v8123_v20 = vld [vmem:[%s16771_s5 + $0x1b08] sm:$0xff] }
 0x4d9   : > { %10508 = vmatpush1.bf16.msra.mxu1 %v10507_v29  ;;  %v10525_v29 = vpack.c.bf16 %v8004_v1, %v8003_v63  ;;  %v8130_v63 = vld [vmem:[%s16771_s5 + $0x1b40] sm:$0xff]  ;;  %v8131_v1 = vld [vmem:[%s16771_s5 + $0x1b48] sm:$0xff] }
 0x4da   : > { %10558 = vmatpush3.bf16.msra.mxu0 %v10557_v13  ;;  %10509 = vmatprep.subr.bf16.mxu1 %v11074_v31  ;;  %v10608_v13 = vpack.c.bf16 %v8068_v38, %v8067_v51  ;;  %v8048_v38 = vld [vmem:[%s16771_s5 + $0x18c0] sm:$0xff]  ;;  %v10657_v12 = vpack.c.bf16 %v8131_v1, %v8130_v63  ;;  %v8160_v1 = vld [vmem:[%s16771_s5 + $0x1c28] sm:$0xff] }
 0x4db   : > { %10587 = vmatprep.subr.bf16.mxu0 %v10586_v32 }
 0x4dd   : > { %5672 = vmatmul.mubr.f32.vlgmr.msra.gmra.mrb[42].mxu0 %v5598_v19  ;;  %10511 = vmatpush1.bf16.msra.mxu1 %v10510_v42  ;;  %v8087_v42 = vld [vmem:[%s16771_s5 + $0x19f0] sm:$0xff]  ;;  %v5399_v19 = vrot.slane %v14961_v36, 6 }
 0x4de   : > { %10589 = vmatpush3.bf16.msra.mxu0 %v10588_v17  ;;  %5866 = vmatprep.mubr.f32.mxu0 %v15938_v22  ;;  %v8088_v17 = vld [vmem:[%s16771_s5 + $0x19f8] sm:$0xff] }
 0x4df   : > { %10512 = vmatprep.subr.bf16.mxu1 %v11074_v31  ;;  %10591 = vmatprep.subr.bf16.mxu0 %v10590_v60  ;;  %v10612_v60 = vpack.c.bf16 %v8070_v15, %v8069_v2  ;;  %v8050_v2 = vld [vmem:[%s16771_s5 + $0x18d0] sm:$0xff]  ;;  %v8051_v15 = vld [vmem:[%s16771_s5 + $0x18d8] sm:$0xff] }
 0x4e1   : > { %10514 = vmatpush1.bf16.msra.mxu1 %v10513_v27  ;;  %v10614_v27 = vpack.c.bf16 %v8088_v17, %v8087_v42  ;;  %v8116_v42 = vld [vmem:[%s16771_s5 + $0x1ad0] sm:$0xff]  ;;  %v8117_v17 = vld [vmem:[%s16771_s5 + $0x1ad8] sm:$0xff] }
 0x4e2   : > { %10593 = vmatpush3.bf16.msra.mxu0 %v10592_v10  ;;  %10515 = vmatprep.subr.bf16.mxu1 %v11074_v31  ;;  %v8071_v10 = vld [vmem:[%s16771_s5 + $0x1970] sm:$0xff] }
 0x4e3   : > { %10595 = vmatprep.subr.bf16.mxu0 %v10594_v46  ;;  %v10616_v46 = vpack.c.bf16 %v8072_v11, %v8071_v10  ;;  %v8119_v10 = vld [vmem:[%s16771_s5 + $0x1ae8] sm:$0xff]  ;;  %v8136_v11 = vld [vmem:[%s16771_s5 + $0x1b70] sm:$0xff] }
 0x4e5   : > { %10517 = vmatpush1.bf16.msra.mxu1 %v10516_v21  ;;  %v8109_v21 = vld [vmem:[%s16771_s5 + $0x1a98] sm:$0xff] }
 0x4e6   : > { %10597 = vmatpush3.bf16.msra.mxu0 %v10596_v40  ;;  %10518 = vmatprep.subr.bf16.mxu1 %v11074_v31  ;;  %v8126_v40 = vld [vmem:[%s16771_s5 + $0x1b20] sm:$0xff] }
 0x4e7   : > { %10599 = vmatprep.subr.bf16.mxu0 %v10598_v35  ;;  %v10647_v35 = vpack.c.bf16 %v8109_v21, %v8108_v37  ;;  %v10649_v48 = vpack.c.bf16 %v8127_v45, %v8126_v40  ;;  %v8121_v37 = vld [vmem:[%s16771_s5 + $0x1af8] sm:$0xff]  ;;  %v8138_v40 = vld [vmem:[%s16771_s5 + $0x1b80] sm:$0xff]  ;;  %v8139_v45 = vld [vmem:[%s16771_s5 + $0x1b88] sm:$0xff] }
 0x4e9   : > { %10520 = vmatpush1.bf16.msra.mxu1 %v10519_v50  ;;  %v8110_v50 = vld [vmem:[%s16771_s5 + $0x1aa0] sm:$0xff] }
 0x4ea   : > { %10601 = vmatpush3.bf16.msra.mxu0 %v10600_v52  ;;  %10521 = vmatprep.subr.bf16.mxu1 %v11074_v31  ;;  %v8111_v52 = vld [vmem:[%s16771_s5 + $0x1aa8] sm:$0xff] }
 0x4eb   : > { %10603 = vmatprep.subr.bf16.mxu0 %v10602_v57  ;;  %v10569_v57 = vpack.c.bf16 %v8045_v47, %v8044_v41  ;;  %v10651_v33 = vpack.c.bf16 %v8111_v52, %v8110_v50  ;;  %v8090_v50 = vld [vmem:[%s16771_s5 + $0x1a08] sm:$0xff]  ;;  %v10673_v52 = vpack.c.bf16 %v8139_v45, %v8138_v40  ;;  %v8167_v40 = vld [vmem:[%s16771_s5 + $0x1c60] sm:$0xff] }
 0x4ec   : > { %v8168_v45 = vld [vmem:[%s16771_s5 + $0x1c68] sm:$0xff] }
 0x4ed   : > { %10523 = vmatpush1.bf16.msra.mxu1 %v10522_v23  ;;  %v8112_v23 = vld [vmem:[%s16771_s5 + $0x1ab0] sm:$0xff] }
 0x4ee   : > { %10605 = vmatpush3.bf16.msra.mxu0 %v10604_v62  ;;  %10524 = vmatprep.subr.bf16.mxu1 %v11074_v31  ;;  %v8113_v62 = vld [vmem:[%s16771_s5 + $0x1ab8] sm:$0xff] }
 0x4ef   : > { %v8614_v32 = vpop.f32.mrb[30].mxu0  ;;  %10607 = vmatprep.subr.bf16.mxu0 %v10606_v5  ;;  %v10572_v5 = vpack.c.bf16 %v8047_v44, %v8046_v58  ;;  %v10655_v51 = vpack.c.bf16 %v8113_v62, %v8112_v23  ;;  %v5600_v44 = vrot.slane %v14961_v36, 7  ;;  %v8092_v23 = vld [vmem:[%s16771_s5 + $0x1a18] sm:$0xff]  ;;  %v16236_v62 = vmax.f32 %v13564_v3, 0.0  ;;  %v8159_v36 = vld [vmem:[%s16771_s5 + $0x1c20] sm:$0xff] }
 0x4f0   : > { %v8615_v16 = vpop.f32.mrb[31].mxu0  ;;  %v8178_v3 = vld [vmem:[%s16771_s5 + $0x1cb8] sm:$0xff] }
 0x4f1   : > { %v8616_v49 = vadd.f32 %v8615_v16, %v8614_v32  ;;  %10526 = vmatpush1.bf16.msra.mxu1 %v10525_v29  ;;  %v8114_v29 = vld [vmem:[%s16771_s5 + $0x1ac0] sm:$0xff]  ;;  %v10575_v32 = vpack.c.bf16 %v8049_v8, %v8048_v38  ;;  %v10661_v16 = vpack.c.bf16 %v8133_v30, %v8132_v14  ;;  %v10706_v38 = vpack.c.bf16 %v8160_v1, %v8159_v36  ;;  %v8161_v14 = vld [vmem:[%s16771_s5 + $0x1c30] sm:$0xff]  ;;  %v8162_v30 = vld [vmem:[%s16771_s5 + $0x1c38] sm:$0xff] }
 0x4f2   : > { %10609 = vmatpush3.bf16.msra.mxu0 %v10608_v13  ;;  %10559 = vmatprep.subr.bf16.mxu1 %v11074_v31  ;;  %v8115_v13 = vld [vmem:[%s16771_s5 + $0x1ac8] sm:$0xff]  ;;  %v8093_v8 = vld [vmem:[%s16771_s5 + $0x1a20] sm:$0xff] }
 0x4f3   : > { %v16051_v26 = vadd.f32 %v15890_v4, %v8616_v49  ;;  %10611 = vmatprep.subr.bf16.mxu0 %v10610_v54  ;;  %v8125_v4 = vld [vmem:[%s16771_s5 + $0x1b18] sm:$0xff]  ;;  %v10659_v54 = vpack.c.bf16 %v8115_v13, %v8114_v29  ;;  %v8134_v49 = vld [vmem:[%s16771_s5 + $0x1b60] sm:$0xff]  ;;  %v5997_v29 = vrot.slane %v16094_v53, 1  ;;  %v8172_v36 = vld [vmem:[%s16771_s5 + $0x1c88] sm:$0xff] }
 0x4f4   : > { %5541 = vmatmul.mubr.f32.vlgmr.msra.gmra.mrb[8].mxu1 %v5399_v19  ;;  %v10645_v43 = vpack.c.bf16 %v8125_v4, %v8124_v39  ;;  %v10578_v19 = vpack.c.bf16 %v8051_v15, %v8050_v2  ;;  %v8137_v39 = vld [vmem:[%s16771_s5 + $0x1b78] sm:$0xff]  ;;  %v10581_v4 = vpack.c.bf16 %v8053_v25, %v8052_v24  ;;  %v8180_v2 = vld [vmem:[%s16771_s5 + $0x1cc8] sm:$0xff] }
 0x4f5   : > { %10561 = vmatpush1.bf16.msra.mxu1 %v10560_v18  ;;  %8056 = vmatprep.mubr.msk.f32.mxu1 %vm2588_vm8, %v5601_v55  ;;  %v8135_v18 = vld [vmem:[%s16771_s5 + $0x1b68] sm:$0xff]  ;;  %v10669_v34 = vpack.c.bf16 %v8137_v39, %v8136_v11  ;;  %v8182_v24 = vld [vmem:[%s16771_s5 + $0x1cd8] sm:$0xff]  ;;  %v8165_v39 = vld [vmem:[%s16771_s5 + $0x1c50] sm:$0xff] }
 0x4f6   : > { %10613 = vmatpush3.bf16.msra.mxu0 %v10612_v60  ;;  %10562 = vmatprep.subr.bf16.mxu1 %v11074_v31  ;;  %v10663_v60 = vpack.c.bf16 %v8117_v17, %v8116_v42  ;;  %v10665_v55 = vpack.c.bf16 %v8135_v18, %v8134_v49  ;;  %v8095_v42 = vld [vmem:[%s16771_s5 + $0x1a30] sm:$0xff]  ;;  %v8096_v17 = vld [vmem:[%s16771_s5 + $0x1a38] sm:$0xff]  ;;  %v8163_v18 = vld [vmem:[%s16771_s5 + $0x1c40] sm:$0xff] }
 0x4f7   : > { %10615 = vmatprep.subr.bf16.mxu0 %v10614_v27  ;;  %v8118_v27 = vld [vmem:[%s16771_s5 + $0x1ae0] sm:$0xff]  ;;  %v10628_v25 = vpack.c.bf16 %v8096_v17, %v8095_v42  ;;  %v8140_v17 = vld [vmem:[%s16771_s5 + $0x1b90] sm:$0xff] }
 0x4f9   : > { %10564 = vmatpush1.bf16.msra.mxu1 %v10563_v59  ;;  %v10667_v59 = vpack.c.bf16 %v8119_v10, %v8118_v27  ;;  %v8097_v27 = vld [vmem:[%s16771_s5 + $0x1a40] sm:$0xff]  ;;  %v8098_v10 = vld [vmem:[%s16771_s5 + $0x1a48] sm:$0xff] }
 0x4fa   : > { %10617 = vmatpush3.bf16.msra.mxu0 %v10616_v46  ;;  %10565 = vmatprep.subr.bf16.mxu1 %v11074_v31  ;;  %v8054_v46 = vld [vmem:[%s16771_s5 + $0x18f0] sm:$0xff] }
 0x4fb   : > { %10646 = vmatprep.subr.bf16.mxu0 %v10645_v43  ;;  %v8120_v43 = vld [vmem:[%s16771_s5 + $0x1af0] sm:$0xff] }
 0x4fc   : > { %v10671_v47 = vpack.c.bf16 %v8121_v37, %v8120_v43  ;;  %v8099_v43 = vld [vmem:[%s16771_s5 + $0x1a50] sm:$0xff]  ;;  %v8100_v37 = vld [vmem:[%s16771_s5 + $0x1a58] sm:$0xff] }
 0x4fd   : > { %5867 = vmatmul.mubr.f32.vlgmr.msra.gmra.mrb[44].mxu0 %v16094_v53  ;;  %10567 = vmatpush1.bf16.msra.mxu1 %v10566_v6 }
 0x4fe   : > { %10648 = vmatpush3.bf16.msra.mxu0 %v10647_v35  ;;  %6070 = vmatprep.mubr.f32.mxu0 %v5998_v56  ;;  %v10584_v35 = vpack.c.bf16 %v8055_v28, %v8054_v46  ;;  %v8122_v56 = vld [vmem:[%s16771_s5 + $0x1b00] sm:$0xff]  ;;  %v8184_v46 = vld [vmem:[%s16771_s5 + $0x1ce8] sm:$0xff]  ;;  %v10631_v28 = vpack.c.bf16 %v8098_v10, %v8097_v27 }
 0x4ff   : > { %10568 = vmatprep.subr.bf16.mxu1 %v11074_v31  ;;  %10650 = vmatprep.subr.bf16.mxu0 %v10649_v48  ;;  %v8089_v48 = vld [vmem:[%s16771_s5 + $0x1a00] sm:$0xff] }
 0x500   : > { %v10619_v58 = vpack.c.bf16 %v8090_v50, %v8089_v48  ;;  %v8101_v48 = vld [vmem:[%s16771_s5 + $0x1a60] sm:$0xff]  ;;  %v8102_v50 = vld [vmem:[%s16771_s5 + $0x1a68] sm:$0xff] }
 0x501   : > { %10570 = vmatpush1.bf16.msra.mxu1 %v10569_v57  ;;  %v8175_v57 = vld [vmem:[%s16771_s5 + $0x1ca0] sm:$0xff] }
 0x502   : > { %10652 = vmatpush3.bf16.msra.mxu0 %v10651_v33  ;;  %10571 = vmatprep.subr.bf16.mxu1 %v11074_v31  ;;  %v8176_v33 = vld [vmem:[%s16771_s5 + $0x1ca8] sm:$0xff]  ;;  %v8142_v10 = vld [vmem:[%s16771_s5 + $0x1ba0] sm:$0xff] }
 0x503   : > { %10654 = vmatprep.subr.bf16.mxu0 %v10653_v61  ;;  %v10675_v61 = vpack.c.bf16 %v8123_v20, %v8122_v56  ;;  %v10704_v63 = vpack.c.bf16 %v8176_v33, %v8175_v57  ;;  %v8169_v56 = vld [vmem:[%s16771_s5 + $0x1c70] sm:$0xff]  ;;  %v8170_v20 = vld [vmem:[%s16771_s5 + $0x1c78] sm:$0xff]  ;;  %v8187_v57 = vld [vmem:[%s16771_s5 + $0x1d00] sm:$0xff] }
 0x504   : > { %v8188_v33 = vld [vmem:[%s16771_s5 + $0x1d08] sm:$0xff] }
 0x505   : > { %10573 = vmatpush1.bf16.msra.mxu1 %v10572_v5  ;;  %v8177_v5 = vld [vmem:[%s16771_s5 + $0x1cb0] sm:$0xff] }
 0x506   : > { %10656 = vmatpush3.bf16.msra.mxu0 %v10655_v51  ;;  %10574 = vmatprep.subr.bf16.mxu1 %v11074_v31  ;;  %v10708_v13 = vpack.c.bf16 %v8178_v3, %v8177_v5  ;;  %v8189_v5 = vld [vmem:[%s16771_s5 + $0x1d10] sm:$0xff]  ;;  %v8190_v3 = vld [vmem:[%s16771_s5 + $0x1d18] sm:$0xff] }
 0x507   : > { %10658 = vmatprep.subr.bf16.mxu0 %v10657_v12  ;;  %v8094_v12 = vld [vmem:[%s16771_s5 + $0x1a28] sm:$0xff] }
 0x508   : > { %v10625_v15 = vpack.c.bf16 %v8094_v12, %v8093_v8 }
 0x509   : > { %10576 = vmatpush1.bf16.msra.mxu1 %v10575_v32  ;;  %v6199_v32 = vrot.slane %v15938_v22, 2 }
 0x50a   : > { %10660 = vmatpush3.bf16.msra.mxu0 %v10659_v54  ;;  %10577 = vmatprep.subr.bf16.mxu1 %v11074_v31  ;;  %v8179_v54 = vld [vmem:[%s16771_s5 + $0x1cc0] sm:$0xff] }
 0x50b   : > { %10662 = vmatprep.subr.bf16.mxu0 %v10661_v16  ;;  %v10710_v16 = vpack.c.bf16 %v8162_v30, %v8161_v14  ;;  %v10712_v49 = vpack.c.bf16 %v8180_v2, %v8179_v54  ;;  %v10732_v14 = vpack.c.bf16 %v8190_v3, %v8189_v5  ;;  %v8173_v30 = vld [vmem:[%s16771_s5 + $0x1c90] sm:$0xff]  ;;  %v8219_v5 = vld [vmem:[%s16771_s5 + $0x1df8] sm:$0xff]  ;;  %v8236_v3 = vld [vmem:[%s16771_s5 + $0x1e80] sm:$0xff] }
 0x50c   : > { %v8226_v2 = vld [vmem:[%s16771_s5 + $0x1e30] sm:$0xff] }
 0x50d   : > { %10579 = vmatpush1.bf16.msra.mxu1 %v10578_v19  ;;  %v8164_v19 = vld [vmem:[%s16771_s5 + $0x1c48] sm:$0xff] }
 0x50e   : > { %10664 = vmatpush3.bf16.msra.mxu0 %v10663_v60  ;;  %10580 = vmatprep.subr.bf16.mxu1 %v11074_v31  ;;  %v8181_v60 = vld [vmem:[%s16771_s5 + $0x1cd0] sm:$0xff] }
 0x50f   : > { %10666 = vmatprep.subr.bf16.mxu0 %v10665_v55  ;;  %v10714_v55 = vpack.c.bf16 %v8164_v19, %v8163_v18  ;;  %v10716_v11 = vpack.c.bf16 %v8182_v24, %v8181_v60  ;;  %v8210_v18 = vld [vmem:[%s16771_s5 + $0x1db0] sm:$0xff]  ;;  %v8211_v19 = vld [vmem:[%s16771_s5 + $0x1db8] sm:$0xff]  ;;  %v8228_v24 = vld [vmem:[%s16771_s5 + $0x1e40] sm:$0xff] }
 0x510   : > { %v8649_v21 = vpop.f32.mrb[32].mxu0  ;;  %v10765_v27 = vpack.c.bf16 %v8211_v19, %v8210_v18  ;;  %v8223_v18 = vld [vmem:[%s16771_s5 + $0x1e18] sm:$0xff] }
 0x511   : > { %v8650_v6 = vpop.f32.mrb[33].mxu0  ;;  %10582 = vmatpush1.bf16.msra.mxu1 %v10581_v4  ;;  %v8166_v4 = vld [vmem:[%s16771_s5 + $0x1c58] sm:$0xff] }
 0x512   : > { %v8651_v41 = vadd.f32 %v8650_v6, %v8649_v21  ;;  %10668 = vmatpush3.bf16.msra.mxu0 %v10667_v59  ;;  %10583 = vmatprep.subr.bf16.mxu1 %v11074_v31  ;;  %v8183_v59 = vld [vmem:[%s16771_s5 + $0x1ce0] sm:$0xff]  ;;  %v8185_v6 = vld [vmem:[%s16771_s5 + $0x1cf0] sm:$0xff] }
 0x513   : > { %10670 = vmatprep.subr.bf16.mxu0 %v10669_v34  ;;  %v10718_v34 = vpack.c.bf16 %v8166_v4, %v8165_v39  ;;  %v10720_v21 = vpack.c.bf16 %v8184_v46, %v8183_v59  ;;  %v6198_v39 = vrot.slane %v16094_v53, 2  ;;  %v8213_v4 = vld [vmem:[%s16771_s5 + $0x1dc8] sm:$0xff]  ;;  %v6000_v59 = vrot.slane %v16236_v62, 1 }
 0x514   : > { %v16219_v0 = vadd.f32 %v16051_v26, %v8651_v41  ;;  %v8091_v26 = vld [vmem:[%s16771_s5 + $0x1a10] sm:$0xff]  ;;  %v10634_v41 = vpack.c.bf16 %v8100_v37, %v8099_v43  ;;  %v6400_v43 = vrot.slane %v15938_v22, 3 }
 0x515   : > { %10585 = vmatpush1.bf16.msra.mxu1 %v10584_v35  ;;  %v10622_v51 = vpack.c.bf16 %v8092_v23, %v8091_v26  ;;  %v8186_v35 = vld [vmem:[%s16771_s5 + $0x1cf8] sm:$0xff]  ;;  %v10728_v23 = vpack.c.bf16 %v8188_v33, %v8187_v57  ;;  %v8214_v22 = vld [vmem:[%s16771_s5 + $0x1dd0] sm:$0xff]  ;;  %v8216_v57 = vld [vmem:[%s16771_s5 + $0x1de0] sm:$0xff] }
 0x516   : > { %10672 = vmatpush3.bf16.msra.mxu0 %v10671_v47  ;;  %10618 = vmatprep.subr.bf16.mxu1 %v11074_v31  ;;  %v10722_v47 = vpack.c.bf16 %v8168_v45, %v8167_v40  ;;  %v8104_v26 = vld [vmem:[%s16771_s5 + $0x1a78] sm:$0xff]  ;;  %v8144_v40 = vld [vmem:[%s16771_s5 + $0x1bb0] sm:$0xff]  ;;  %v8217_v33 = vld [vmem:[%s16771_s5 + $0x1de8] sm:$0xff] }
 0x517   : > { %10674 = vmatprep.subr.bf16.mxu0 %v10673_v52  ;;  %v10724_v52 = vpack.c.bf16 %v8186_v35, %v8185_v6  ;;  %v8145_v45 = vld [vmem:[%s16771_s5 + $0x1bb8] sm:$0xff] }
 0x518   : > { %5742 = vmatmul.mubr.f32.vlgmr.msra.gmra.mrb[8].mxu1 %v5600_v44  ;;  %v10726_v44 = vpack.c.bf16 %v8170_v20, %v8169_v56  ;;  %v8215_v35 = vld [vmem:[%s16771_s5 + $0x1dd8] sm:$0xff]  ;;  %v8147_v56 = vld [vmem:[%s16771_s5 + $0x1bc8] sm:$0xff] }
 0x519   : > { %10620 = vmatpush1.bf16.msra.mxu1 %v10619_v58  ;;  %8107 = vmatprep.mubr.msk.f32.mxu1 %vm2588_vm8, %v16236_v62  ;;  %v10637_v58 = vpack.c.bf16 %v8102_v50, %v8101_v48  ;;  %v10684_v48 = vpack.c.bf16 %v8145_v45, %v8144_v40  ;;  %v10773_v50 = vpack.c.bf16 %v8215_v35, %v8214_v22  ;;  %v8192_v45 = vld [vmem:[%s16771_s5 + $0x1d28] sm:$0xff] }
 0x51a   : > { %10676 = vmatpush3.bf16.msra.mxu0 %v10675_v61  ;;  %10621 = vmatprep.subr.bf16.mxu1 %v11074_v31  ;;  %v8103_v61 = vld [vmem:[%s16771_s5 + $0x1a70] sm:$0xff] }
 0x51b   : > { %10705 = vmatprep.subr.bf16.mxu0 %v10704_v63  ;;  %v8171_v63 = vld [vmem:[%s16771_s5 + $0x1c80] sm:$0xff] }
 0x51c   : > { %v10730_v12 = vpack.c.bf16 %v8172_v36, %v8171_v63  ;;  %v8149_v63 = vld [vmem:[%s16771_s5 + $0x1bd8] sm:$0xff] }
 0x51d   : > { %6071 = vmatmul.mubr.f32.vlgmr.msra.gmra.mrb[46].mxu0 %v5997_v29  ;;  %10623 = vmatpush1.bf16.msra.mxu1 %v10622_v51  ;;  %v8105_v29 = vld [vmem:[%s16771_s5 + $0x1a80] sm:$0xff] }
 0x51e   : > { %10707 = vmatpush3.bf16.msra.mxu0 %v10706_v38  ;;  %6271 = vmatprep.mubr.f32.mxu0 %v6199_v32  ;;  %v10640_v38 = vpack.c.bf16 %v8104_v26, %v8103_v61  ;;  %v8174_v32 = vld [vmem:[%s16771_s5 + $0x1c98] sm:$0xff]  ;;  %v10777_v26 = vpack.c.bf16 %v8217_v33, %v8216_v57 }
 0x51f   : > { %10624 = vmatprep.subr.bf16.mxu1 %v11074_v31  ;;  %10709 = vmatprep.subr.bf16.mxu0 %v10708_v13  ;;  %v8106_v13 = vld [vmem:[%s16771_s5 + $0x1a88] sm:$0xff]  ;;  %v10734_v42 = vpack.c.bf16 %v8174_v32, %v8173_v30  ;;  %v8238_v32 = vld [vmem:[%s16771_s5 + $0x1e90] sm:$0xff]  ;;  %v8198_v57 = vld [vmem:[%s16771_s5 + $0x1d58] sm:$0xff] }
 0x520   : > { %v8221_v30 = vld [vmem:[%s16771_s5 + $0x1e08] sm:$0xff] }
 0x521   : > { %10626 = vmatpush1.bf16.msra.mxu1 %v10625_v15  ;;  %v8227_v15 = vld [vmem:[%s16771_s5 + $0x1e38] sm:$0xff] }
 0x522   : > { %10711 = vmatpush3.bf16.msra.mxu0 %v10710_v16  ;;  %10627 = vmatprep.subr.bf16.mxu1 %v11074_v31  ;;  %v10643_v16 = vpack.c.bf16 %v8106_v13, %v8105_v29  ;;  %v8151_v29 = vld [vmem:[%s16771_s5 + $0x1be8] sm:$0xff] }
 0x523   : > { %10713 = vmatprep.subr.bf16.mxu0 %v10712_v49  ;;  %v10763_v49 = vpack.c.bf16 %v8227_v15, %v8226_v2  ;;  %v8239_v2 = vld [vmem:[%s16771_s5 + $0x1e98] sm:$0xff] }
 0x525   : > { %10629 = vmatpush1.bf16.msra.mxu1 %v10628_v25  ;;  %v8229_v25 = vld [vmem:[%s16771_s5 + $0x1e48] sm:$0xff] }
 0x526   : > { %10715 = vmatpush3.bf16.msra.mxu0 %v10714_v55  ;;  %10630 = vmatprep.subr.bf16.mxu1 %v11074_v31  ;;  %v16410_v55 = vmax.f32 %v13550_v9, 0.0  ;;  %v8212_v9 = vld [vmem:[%s16771_s5 + $0x1dc0] sm:$0xff]  ;;  %v10767_v46 = vpack.c.bf16 %v8229_v25, %v8228_v24  ;;  %v8241_v24 = vld [vmem:[%s16771_s5 + $0x1ea8] sm:$0xff] }
 0x527   : > { %10717 = vmatprep.subr.bf16.mxu0 %v10716_v11  ;;  %v8143_v11 = vld [vmem:[%s16771_s5 + $0x1ba8] sm:$0xff] }
 0x528   : > { %v10681_v37 = vpack.c.bf16 %v8143_v11, %v8142_v10  ;;  %v5999_v35 = vrot.slane %v16410_v55, 1 }
 0x529   : > { %10632 = vmatpush1.bf16.msra.mxu1 %v10631_v28  ;;  %v8230_v28 = vld [vmem:[%s16771_s5 + $0x1e50] sm:$0xff] }
 0x52a   : > { %10719 = vmatpush3.bf16.msra.mxu0 %v10718_v34  ;;  %10633 = vmatprep.subr.bf16.mxu1 %v11074_v31  ;;  %v8231_v34 = vld [vmem:[%s16771_s5 + $0x1e58] sm:$0xff] }
 0x52b   : > { %10721 = vmatprep.subr.bf16.mxu0 %v10720_v21  ;;  %v10769_v21 = vpack.c.bf16 %v8213_v4, %v8212_v9  ;;  %v10771_v6 = vpack.c.bf16 %v8231_v34, %v8230_v28  ;;  %v8155_v9 = vld [vmem:[%s16771_s5 + $0x1c08] sm:$0xff] }
 0x52d   : > { %10635 = vmatpush1.bf16.msra.mxu1 %v10634_v41  ;;  %v8232_v41 = vld [vmem:[%s16771_s5 + $0x1e60] sm:$0xff] }
 0x52e   : > { %10723 = vmatpush3.bf16.msra.mxu0 %v10722_v47  ;;  %10636 = vmatprep.subr.bf16.mxu1 %v11074_v31  ;;  %v8233_v47 = vld [vmem:[%s16771_s5 + $0x1e68] sm:$0xff] }
 0x52f   : > { %10725 = vmatprep.subr.bf16.mxu0 %v10724_v52  ;;  %v8146_v52 = vld [vmem:[%s16771_s5 + $0x1bc0] sm:$0xff]  ;;  %v10775_v20 = vpack.c.bf16 %v8233_v47, %v8232_v41  ;;  %v8193_v41 = vld [vmem:[%s16771_s5 + $0x1d30] sm:$0xff]  ;;  %v8194_v47 = vld [vmem:[%s16771_s5 + $0x1d38] sm:$0xff] }
 0x530   : > { %v8684_v1 = vpop.f32.mrb[34].mxu0  ;;  %v10687_v61 = vpack.c.bf16 %v8147_v56, %v8146_v52  ;;  %v8196_v52 = vld [vmem:[%s16771_s5 + $0x1d48] sm:$0xff] }
 0x531   : > { %v8685_v51 = vpop.f32.mrb[35].mxu0  ;;  %10638 = vmatpush1.bf16.msra.mxu1 %v10637_v58  ;;  %v8234_v58 = vld [vmem:[%s16771_s5 + $0x1e70] sm:$0xff] }
 0x532   : > { %v8686_v8 = vadd.f32 %v8685_v51, %v8684_v1  ;;  %10727 = vmatpush3.bf16.msra.mxu0 %v10726_v44  ;;  %10639 = vmatprep.subr.bf16.mxu1 %v11074_v31  ;;  %v8235_v44 = vld [vmem:[%s16771_s5 + $0x1e78] sm:$0xff]  ;;  %v8218_v1 = vld [vmem:[%s16771_s5 + $0x1df0] sm:$0xff]  ;;  %v8237_v51 = vld [vmem:[%s16771_s5 + $0x1e88] sm:$0xff] }
 0x533   : > { %10729 = vmatprep.subr.bf16.mxu0 %v10728_v23  ;;  %v8148_v23 = vld [vmem:[%s16771_s5 + $0x1bd0] sm:$0xff]  ;;  %v10779_v36 = vpack.c.bf16 %v8235_v44, %v8234_v58  ;;  %v10783_v13 = vpack.c.bf16 %v8237_v51, %v8236_v3  ;;  %v8199_v58 = vld [vmem:[%s16771_s5 + $0x1d60] sm:$0xff]  ;;  %v8200_v44 = vld [vmem:[%s16771_s5 + $0x1d68] sm:$0xff] }
 0x534   : > { %v16382_v54 = vadd.f32 %v16219_v0, %v8686_v8  ;;  %v8141_v0 = vld [vmem:[%s16771_s5 + $0x1b98] sm:$0xff]  ;;  %v10781_v8 = vpack.c.bf16 %v8219_v5, %v8218_v1  ;;  %v8203_v3 = vld [vmem:[%s16771_s5 + $0x1d80] sm:$0xff]  ;;  %v8204_v51 = vld [vmem:[%s16771_s5 + $0x1d88] sm:$0xff] }
 0x535   : > { %10641 = vmatpush1.bf16.msra.mxu1 %v10640_v38  ;;  %v10678_v60 = vpack.c.bf16 %v8141_v0, %v8140_v17  ;;  %v10690_v38 = vpack.c.bf16 %v8149_v63, %v8148_v23  ;;  %v8153_v17 = vld [vmem:[%s16771_s5 + $0x1bf8] sm:$0xff]  ;;  %v10787_v0 = vpack.c.bf16 %v8239_v2, %v8238_v32  ;;  %v8242_v2 = vld [vmem:[%s16771_s5 + $0x1eb0] sm:$0xff] }
 0x536   : > { %10731 = vmatpush3.bf16.msra.mxu0 %v10730_v12  ;;  %10642 = vmatprep.subr.bf16.mxu1 %v11074_v31  ;;  %v8150_v12 = vld [vmem:[%s16771_s5 + $0x1be0] sm:$0xff]  ;;  %v8202_v23 = vld [vmem:[%s16771_s5 + $0x1d78] sm:$0xff] }
 0x537   : > { %10733 = vmatprep.subr.bf16.mxu0 %v10732_v14  ;;  %v8220_v14 = vld [vmem:[%s16771_s5 + $0x1e00] sm:$0xff]  ;;  %v10693_v15 = vpack.c.bf16 %v8151_v29, %v8150_v12  ;;  %v8205_v12 = vld [vmem:[%s16771_s5 + $0x1d90] sm:$0xff]  ;;  %v8206_v29 = vld [vmem:[%s16771_s5 + $0x1d98] sm:$0xff] }
 0x539   : > { %10644 = vmatpush1.bf16.msra.mxu1 %v10643_v16  ;;  %v10785_v16 = vpack.c.bf16 %v8221_v30, %v8220_v14  ;;  %v8207_v14 = vld [vmem:[%s16771_s5 + $0x1da0] sm:$0xff]  ;;  %v8208_v30 = vld [vmem:[%s16771_s5 + $0x1da8] sm:$0xff] }
 0x53a   : > { %10735 = vmatpush3.bf16.msra.mxu0 %v10734_v42  ;;  %10677 = vmatprep.subr.bf16.mxu1 %v11074_v31  ;;  %v8152_v42 = vld [vmem:[%s16771_s5 + $0x1bf0] sm:$0xff]  ;;  %v10761_v32 = vpack.c.bf16 %v8208_v30, %v8207_v14 }
 0x53b   : > { %10764 = vmatprep.subr.bf16.mxu0 %v10763_v49  ;;  %v8222_v49 = vld [vmem:[%s16771_s5 + $0x1e10] sm:$0xff] }
 0x53c   : > { %5937 = vmatmul.mubr.f32.vlgmr.msra.gmra.mrb[8].mxu1 %v16410_v55  ;;  %v10789_v11 = vpack.c.bf16 %v8223_v18, %v8222_v49  ;;  %v6402_v49 = vrot.slane %v16236_v62, 3 }
 0x53d   : > { %6272 = vmatmul.mubr.f32.vlgmr.msra.gmra.mrb[48].mxu0 %v6198_v39  ;;  %10679 = vmatpush1.bf16.msra.mxu1 %v10678_v60  ;;  %v8240_v60 = vld [vmem:[%s16771_s5 + $0x1ea0] sm:$0xff] }
 0x53e   : > { %8158 = vmatprep.mubr.msk.f32.mxu1 %vm2588_vm8, %v6000_v59  ;;  %10766 = vmatpush3.bf16.msra.mxu0 %v10765_v27  ;;  %v10696_v27 = vpack.c.bf16 %v8153_v17, %v8152_v42  ;;  %v8154_v39 = vld [vmem:[%s16771_s5 + $0x1c00] sm:$0xff]  ;;  %v10791_v4 = vpack.c.bf16 %v8241_v24, %v8240_v60  ;;  %v6200_v42 = vrot.slane %v16410_v55, 2  ;;  %v8247_v60 = vld [vmem:[%s16771_s5 + $0x1ed8] sm:$0xff] }
 0x53f   : > { %6472 = vmatprep.mubr.f32.mxu0 %v6400_v43  ;;  %10680 = vmatprep.subr.bf16.mxu1 %v11074_v31  ;;  %v8224_v59 = vld [vmem:[%s16771_s5 + $0x1e20] sm:$0xff]  ;;  %v10699_v34 = vpack.c.bf16 %v8155_v9, %v8154_v39 }
 0x540   : > { %10768 = vmatprep.subr.bf16.mxu0 %v10767_v46  ;;  %v8225_v46 = vld [vmem:[%s16771_s5 + $0x1e28] sm:$0xff]  ;;  %v8244_v17 = vld [vmem:[%s16771_s5 + $0x1ec0] sm:$0xff] }
 0x541   : > { %10682 = vmatpush1.bf16.msra.mxu1 %v10681_v37  ;;  %v10793_v43 = vpack.c.bf16 %v8225_v46, %v8224_v59  ;;  %v8156_v37 = vld [vmem:[%s16771_s5 + $0x1c10] sm:$0xff]  ;;  %v8252_v46 = vld [vmem:[%s16771_s5 + $0x1f00] sm:$0xff] }
 0x542   : > { %10770 = vmatpush3.bf16.msra.mxu0 %v10769_v21  ;;  %10683 = vmatprep.subr.bf16.mxu1 %v11074_v31  ;;  %v8157_v21 = vld [vmem:[%s16771_s5 + $0x1c18] sm:$0xff] }
 0x543   : > { %10772 = vmatprep.subr.bf16.mxu0 %v10771_v6  ;;  %v10702_v40 = vpack.c.bf16 %v8157_v21, %v8156_v37  ;;  %v6399_v6 = vrot.slane %v16094_v53, 3  ;;  %v10740_v53 = vpack.c.bf16 %v8194_v47, %v8193_v41  ;;  %v8254_v37 = vld [vmem:[%s16771_s5 + $0x1f10] sm:$0xff]  ;;  %v8255_v21 = vld [vmem:[%s16771_s5 + $0x1f18] sm:$0xff]  ;;  %v6401_v47 = vrot.slane %v16410_v55, 3 }
 0x544   : > { %v6553_v55 = vld [vmem:[%s16773_s7 + $0x18] sm:$0xff] }
 0x545   : > { %10685 = vmatpush1.bf16.msra.mxu1 %v10684_v48  ;;  %v6201_v48 = vrot.slane %v16236_v62, 2  ;;  %v8248_v62 = vld [vmem:[%s16771_s5 + $0x1ee0] sm:$0xff] }
 0x546   : > { %10774 = vmatpush3.bf16.msra.mxu0 %v10773_v50  ;;  %10686 = vmatprep.subr.bf16.mxu1 %v11074_v31  ;;  %v8195_v50 = vld [vmem:[%s16771_s5 + $0x1d40] sm:$0xff] }
 0x547   : > { %10776 = vmatprep.subr.bf16.mxu0 %v10775_v20  ;;  %v10743_v56 = vpack.c.bf16 %v8196_v52, %v8195_v50  ;;  %v8197_v20 = vld [vmem:[%s16771_s5 + $0x1d50] sm:$0xff]  ;;  %v6550_v52 = vld [vmem:[%s16773_s7] sm:$0xff] }
 0x548   : > { %v10746_v33 = vpack.c.bf16 %v8198_v57, %v8197_v20  ;;  %v6552_v20 = vld [vmem:[%s16773_s7 + $0x10] sm:$0xff] }
 0x549   : > { %10688 = vmatpush1.bf16.msra.mxu1 %v10687_v61  ;;  %v10749_v61 = vpack.c.bf16 %v8200_v44, %v8199_v58  ;;  %v10826_v58 = vpack.c.bf16 %v6553_v55, %v6552_v20 }
 0x54a   : > { %10778 = vmatpush3.bf16.msra.mxu0 %v10777_v26  ;;  %10689 = vmatprep.subr.bf16.mxu1 %v11074_v31  ;;  %v8201_v26 = vld [vmem:[%s16771_s5 + $0x1d70] sm:$0xff] }
 0x54b   : > { %10780 = vmatprep.subr.bf16.mxu0 %v10779_v36  ;;  %v10752_v1 = vpack.c.bf16 %v8202_v23, %v8201_v26 }
 0x54d   : > { %10691 = vmatpush1.bf16.msra.mxu1 %v10690_v38 }
 0x54e   : > { %10782 = vmatpush3.bf16.msra.mxu0 %v10781_v8  ;;  %10692 = vmatprep.subr.bf16.mxu1 %v11074_v31  ;;  %v10755_v8 = vpack.c.bf16 %v8204_v51, %v8203_v3  ;;  %v6554_v3 = vld [vmem:[%s16773_s7 + $0x20] sm:$0xff]  ;;  %v6555_v51 = vld [vmem:[%s16773_s7 + $0x28] sm:$0xff] }
 0x54f   : > { %10784 = vmatprep.subr.bf16.mxu0 %v10783_v13  ;;  %v10758_v13 = vpack.c.bf16 %v8206_v29, %v8205_v12 }
 0x550   : > { %v8719_v19 = vpop.f32.mrb[36].mxu0 }
 0x551   : > { %v8720_v25 = vpop.f32.mrb[37].mxu0  ;;  %10694 = vmatpush1.bf16.msra.mxu1 %v10693_v15  ;;  %v8243_v15 = vld [vmem:[%s16771_s5 + $0x1eb8] sm:$0xff] }
 0x552   : > { %v8721_v10 = vadd.f32 %v8720_v25, %v8719_v19  ;;  %10786 = vmatpush3.bf16.msra.mxu0 %v10785_v16  ;;  %10695 = vmatprep.subr.bf16.mxu1 %v11074_v31  ;;  %v10796_v16 = vpack.c.bf16 %v8243_v15, %v8242_v2  ;;  %v8246_v19 = vld [vmem:[%s16771_s5 + $0x1ed0] sm:$0xff]  ;;  %v8249_v25 = vld [vmem:[%s16771_s5 + $0x1ee8] sm:$0xff] }
 0x553   : > { %10788 = vmatprep.subr.bf16.mxu0 %v10787_v0  ;;  %v8245_v0 = vld [vmem:[%s16771_s5 + $0x1ec8] sm:$0xff]  ;;  %v10802_v24 = vpack.c.bf16 %v8247_v60, %v8246_v19 }
 0x554   : > { %v10844_v28 = vadd.f32 %v16382_v54, %v8721_v10  ;;  %v8191_v54 = vld [vmem:[%s16771_s5 + $0x1d20] sm:$0xff]  ;;  %v10799_v18 = vpack.c.bf16 %v8245_v0, %v8244_v17  ;;  %v8250_v10 = vld [vmem:[%s16771_s5 + $0x1ef0] sm:$0xff] }
 0x555   : > { %10697 = vmatpush1.bf16.msra.mxu1 %v10696_v27  ;;  %v10737_v22 = vpack.c.bf16 %v8192_v45, %v8191_v54  ;;  %v10805_v27 = vpack.c.bf16 %v8249_v25, %v8248_v62  ;;  %v8256_v54 = vld [vmem:[%s16771_s5 + $0x1f20] sm:$0xff]  ;;  %v8257_v45 = vld [vmem:[%s16771_s5 + $0x1f28] sm:$0xff] }
 0x556   : > { %10790 = vmatpush3.bf16.msra.mxu0 %v10789_v11  ;;  %10698 = vmatprep.subr.bf16.mxu1 %v11074_v31  ;;  %v8251_v11 = vld [vmem:[%s16771_s5 + $0x1ef8] sm:$0xff] }
 0x557   : > { %10792 = vmatprep.subr.bf16.mxu0 %v10791_v4  ;;  %v10808_v4 = vpack.c.bf16 %v8251_v11, %v8250_v10 }
 0x559   : > { %10700 = vmatpush1.bf16.msra.mxu1 %v10699_v34 }
 0x55a   : > { %10794 = vmatpush3.bf16.msra.mxu0 %v10793_v43  ;;  %10701 = vmatprep.subr.bf16.mxu1 %v11074_v31 }
 0x55b   : > { %10822 = vmatprep.subr.bf16.mxu0 %v11074_v31 }
 0x55d   : > { %6473 = vmatmul.mubr.f32.vlgmr.msra.gmra.mrb[50].mxu0 %v6399_v6  ;;  %10703 = vmatpush1.bf16.msra.mxu1 %v10702_v40  ;;  %v10814_v40 = vpack.c.bf16 %v8255_v21, %v8254_v37  ;;  %v10817_v6 = vpack.c.bf16 %v8257_v45, %v8256_v54 }
 0x55e   : > { %10736 = vmatprep.subr.bf16.mxu1 %v11074_v31  ;;  %8989 = vmatprep.mubr.msk.f32.mxu0 %vm11075_vm9, %v11072_v7 }
 0x560   : > { %6141 = vmatmul.mubr.f32.vlgmr.msra.gmra.mrb[8].mxu1 %v5999_v35  ;;  %v8259_v35 = vld [vmem:[%s16771_s5 + $0x1f38] sm:$0xff] }
 0x561   : > { %10738 = vmatpush1.bf16.msra.mxu1 %v10737_v22  ;;  %8209 = vmatprep.mubr.msk.f32.mxu1 %vm2588_vm8, %v6201_v48  ;;  %v8258_v22 = vld [vmem:[%s16771_s5 + $0x1f30] sm:$0xff] }
 0x562   : > { %10739 = vmatprep.subr.bf16.mxu1 %v11074_v31  ;;  %v10820_v41 = vpack.c.bf16 %v8259_v35, %v8258_v22 }
 0x565   : > { %10741 = vmatpush1.bf16.msra.mxu1 %v10740_v53 }
 0x566   : > { %10742 = vmatprep.subr.bf16.mxu1 %v11074_v31 }
 0x569   : > { %10744 = vmatpush1.bf16.msra.mxu1 %v10743_v56  ;;  %v6551_v56 = vld [vmem:[%s16773_s7 + $0x8] sm:$0xff] }
 0x56a   : > { %10745 = vmatprep.subr.bf16.mxu1 %v11074_v31  ;;  %v10823_v57 = vpack.c.bf16 %v6551_v56, %v6550_v52 }
 0x56c   : > { %10824 = vmatpush3.bf16.msra.mxu0 %v10823_v57 }
 0x56d   : > { %10747 = vmatpush1.bf16.msra.mxu1 %v10746_v33  ;;  %10825 = vmatprep.subr.bf16.mxu0 %v11074_v31 }
 0x56e   : > { %10748 = vmatprep.subr.bf16.mxu1 %v11074_v31 }
 0x570   : > { %v8754_v63 = vpop.f32.mrb[38].mxu0  ;;  %10827 = vmatpush3.bf16.msra.mxu0 %v10826_v58 }
 0x571   : > { %v8755_v36 = vpop.f32.mrb[39].mxu0  ;;  %10750 = vmatpush1.bf16.msra.mxu1 %v10749_v61  ;;  %10828 = vmatprep.subr.bf16.mxu0 %v11074_v31 }
 0x572   : > { %v8756_v5 = vadd.f32 %v8755_v36, %v8754_v63  ;;  %10751 = vmatprep.subr.bf16.mxu1 %v11074_v31 }
 0x574   : > { %v10845_v38 = vadd.f32 %v10844_v28, %v8756_v5  ;;  %v8253_v28 = vld [vmem:[%s16771_s5 + $0x1f08] sm:$0xff] }
 0x575   : > { %10753 = vmatpush1.bf16.msra.mxu1 %v10752_v1  ;;  %v10811_v43 = vpack.c.bf16 %v8253_v28, %v8252_v46 }
 0x576   : > { %10754 = vmatprep.subr.bf16.mxu1 %v11074_v31 }
 0x579   : > { %10756 = vmatpush1.bf16.msra.mxu1 %v10755_v8 }
 0x57a   : > { %10757 = vmatprep.subr.bf16.mxu1 %v11074_v31 }
 0x57d   : > { %10759 = vmatpush1.bf16.msra.mxu1 %v10758_v13 }
 0x57e   : > { %10760 = vmatprep.subr.bf16.mxu1 %v11074_v31 }
 0x581   : > { %10762 = vmatpush1.bf16.msra.mxu1 %v10761_v32 }
 0x582   : > { %10795 = vmatprep.subr.bf16.mxu1 %v11074_v31 }
 0x584   : > { %6342 = vmatmul.mubr.f32.vlgmr.msra.gmra.mrb[8].mxu1 %v6200_v42 }
 0x585   : > { %10797 = vmatpush1.bf16.msra.mxu1 %v10796_v16  ;;  %8260 = vmatprep.mubr.msk.f32.mxu1 %vm2588_vm8, %v6402_v49 }
 0x586   : > { %10798 = vmatprep.subr.bf16.mxu1 %v11074_v31 }
 0x589   : > { %10800 = vmatpush1.bf16.msra.mxu1 %v10799_v18 }
 0x58a   : > { %10801 = vmatprep.subr.bf16.mxu1 %v11074_v31 }
 0x58d   : > { %10803 = vmatpush1.bf16.msra.mxu1 %v10802_v24 }
 0x58e   : > { %10804 = vmatprep.subr.bf16.mxu1 %v11074_v31 }
 0x590   : > { %v8789_v39 = vpop.f32.mrb[40].mxu0 }
 0x591   : > { %v8790_v9 = vpop.f32.mrb[41].mxu0  ;;  %10806 = vmatpush1.bf16.msra.mxu1 %v10805_v27 }
 0x592   : > { %v8791_v59 = vadd.f32 %v8790_v9, %v8789_v39  ;;  %10807 = vmatprep.subr.bf16.mxu1 %v11074_v31 }
 0x594   : > { %v10846_v34 = vadd.f32 %v10845_v38, %v8791_v59  ;;  %v10829_v38 = vpack.c.bf16 %v6555_v51, %v6554_v3 }
 0x595   : > { %10809 = vmatpush1.bf16.msra.mxu1 %v10808_v4 }
 0x596   : > { %10810 = vmatprep.subr.bf16.mxu1 %v11074_v31  ;;  %10830 = vmatpush3.bf16.msra.mxu0 %v10829_v38 }
 0x597   : > { %8987 = vmatprep.subr.mxu0 %v11072_v7  ;;  %v6557_v7 = vld [vmem:[%s16774_s8] sm:$0x1] }
 0x599   : > { %10812 = vmatpush1.bf16.msra.mxu1 %v10811_v43 }
 0x59a   : > { %10813 = vmatprep.subr.bf16.mxu1 %v11074_v31 }
 0x59d   : > { %10815 = vmatpush1.bf16.msra.mxu1 %v10814_v40 }
 0x59e   : > { %10816 = vmatprep.subr.bf16.mxu1 %v11074_v31 }
 0x5a1   : > { %10818 = vmatpush1.bf16.msra.mxu1 %v10817_v6 }
 0x5a2   : > { %10819 = vmatprep.subr.bf16.mxu1 %v11074_v31  ;;  %v6556_v31 = vld [vmem:[%s16773_s7 + $0x30] sm:$0x3] }
 0x5a3   : > { %8988 = vmatpush3.msk.msra.mxu0 %vm6562_vm10, %v6556_v31 }
 0x5a5   : > { %10821 = vmatpush1.bf16.msra.mxu1 %v10820_v41 }
 0x5a8   : > { %6543 = vmatmul.mubr.f32.vlgmr.msra.gmra.mrb[8].mxu1 %v6401_v47 }
 0x5b0   : > { %v8824_v48 = vpop.f32.mrb[42].mxu0 }
 0x5b1   : > { %v8825_v53 = vpop.f32.mrb[43].mxu0 }
 0x5b2   : > { %v8826_v50 = vadd.f32 %v8825_v53, %v8824_v48 }
 0x5b4   : > { %v10847_v33 = vadd.f32 %v10846_v34, %v8826_v50 }
 0x5d0   : > { %v8859_v44 = vpop.f32.mrb[44].mxu0 }
 0x5d1   : > { %v8860_v61 = vpop.f32.mrb[45].mxu0 }
 0x5d2   : > { %v8861_v26 = vadd.f32 %v8860_v61, %v8859_v44 }
 0x5d4   : > { %v10848_v23 = vadd.f32 %v10847_v33, %v8861_v26 }
 0x5f0   : > { %v8894_v63 = vpop.f32.mrb[46].mxu0 }
 0x5f1   : > { %v8895_v36 = vpop.f32.mrb[47].mxu0 }
 0x5f2   : > { %v8896_v1 = vadd.f32 %v8895_v36, %v8894_v63 }
 0x5f4   : > { %v10849_v5 = vadd.f32 %v10848_v23, %v8896_v1 }
 0x610   : > { %v8929_v8 = vpop.f32.mrb[48].mxu0 }
 0x611   : > { %v8930_v12 = vpop.f32.mrb[49].mxu0 }
 0x612   : > { %v8931_v29 = vadd.f32 %v8930_v12, %v8929_v8 }
 0x614   : > { %v10850_v13 = vadd.f32 %v10849_v5, %v8931_v29 }
 0x630   : > { %v8964_v14 = vpop.f32.mrb[50].mxu0 }
 0x631   : > { %v8965_v30 = vpop.f32.mrb[51].mxu0 }
 0x632   : > { %v8966_v32 = vadd.f32 %v8965_v30, %v8964_v14 }
 0x634   : > { %v10851_v2 = vadd.f32 %v10850_v13, %v8966_v32 }
 0x67b   : > { %v6544_v15 = vpop.f32.mrb[8].mxu1 }
 0x67c   : > { %v10852_v16 = vadd.f32 %v10851_v2, %v6544_v15  ;;  %v6546_v42 = vpop.f32.mrb[9].mxu1 }
 0x67e   : > { %v6549_v17 = vmax.f32 %v10852_v16, 0.0 }
 0x680   : > { %8990 = vmatmul.mubr.msk.f32.vlgmr.msra.gmra.mrb[52].mxu0 %vm6558_vm11, %v6549_v17 }
 0x753   : > { %v6632_v0 = vpop.f32.mrb[52].mxu0 }
 0x754   : > { %v6633_v49 = vadd.f32 %v6632_v0, %v6557_v7  ;;  %v8991_v18 = vpop.f32.mrb[53].mxu0 }
 0x756   : > { %v6637_v19 = vsel %vm6636_vm12, %v6633_v49, -inf }
 0x757   : > { %6638 = vmax.xlane.f32.xlu0 %v6637_v19 }
 0x7e4   : > { %v6639_v60 = vpop.xlane.xlu0 %6638 }
 0x7e5   : > { %v6640_v24 = vsub.f32 %v6633_v49, %v6639_v60 }
 0x7e7   : > { %v6641_v62 = vmul.f32 1.442695, %v6640_v24 }
 0x7e9   : > { %11004 = vpow2.f32 %v6641_v62 }
 0x7f3   : > { %v11005_v25 = vpop.eup %11004 }
 0x7f4   : > { %v6643_v27 = vsel %vm6636_vm12, %v11005_v25, 0.0 }
 0x7f5   : > { %6644 = vadd.xlane.f32.xlu0 %v6643_v27 }
 0x882   : > { %v6645_v10 = vpop.xlane.xlu0 %6644 }
 0x883   : > { %11006 = vlog2.f32 %v6645_v10 }
 0x88d   : > { %v11007_v11 = vpop.eup %11006 }
 0x88e   : > { %v6647_v39 = vmul.f32 0.6931472, %v11007_v11 }
 0x890   : > { %v6648_v9 = vsub.f32 %v6640_v24, %v6647_v39 }
 0x892   : > { %6649 = vst.msk [vmem:[%s324_s18] sm:$0x1] %vm6636_vm12, %v6648_v9 }
 0x893   : > { %11021 = shalt.err (!%p11018_p3)
}
 0x894   : > { %s11022_s26 = scalar_lea.hbm %s16723_s17, 16  ;;  %s11026_s29 = scalar_lea.hbm %s16775_s9, 32 }
 0x895   : > { %p11023_p4 = scmp.ne.s32.totalorder %s16723_s17, %s11022_s26  ;;  %p11027_p9 = scmp.lt.u32.totalorder %s16723_s17, %s16775_s9 }
 0x896   : > { %p11028_p10 = scmp.lt.u32.totalorder %s11026_s29, %s11022_s26  ;;  %p11030_p12 = scmp.lt.u32.totalorder %s11022_s26, %s16723_s17 }
 0x897   : > { %p11024_p7 = pnand %p11023_p4, %p11165_p5 }
 0x898   : > { %p11029_p11 = por %p11028_p10, %p11027_p9 }
 0x899   : > { %p11025_p8 = pneg %p11024_p7 }
 0x89a   : > { %p11031_p13 = por %p11030_p12, %p11029_p11 }
 0x89c   : > { %p11032_p0 = pnand %p11031_p13, %p11025_p8 }
 0x89e   : > { %11035 = shalt.err (!%p11032_p0)
}
 0x89f   : > { %10961 = dma.vmem_to_hbm [thread:$0]  (%p11165_p5), %s16725_s25, 16, %s16723_s17, %s6651_s21  }
 0x8a0 PF: > { %p10967_p1 = scmp.ge.s32.totalorder %s11070_s12, 2  ;;  %s6675_s16 = sand.u32 1, %s11058_s30  }
 0x8a1   : > { %s6676_s22 = scalar_lea.sflag [#allocation3], %s6675_s16 }
 0x8a2   : > { %p10964_p2 = pnand %p10967_p1, %p11169_p6 }
 0x8a4   : > { %11053 = dma.done.wait (!%p10964_p2), %s6676_s22, 16  }
 0x8a5   : > { %11055 = vsyncadd (!%p10964_p2), %s6676_s22, 4294967280  ;;  %s16781_s13 = sld [smem:[#allocation5_spill]]  ;;  %p19_p3 = scmp.ge.s32.totalorder %s11152_s15, 4  }
 0x8a6   : > { %s16782_s30 = smov %s11062_s10  ;;  %s16783_s10 = smov %s11066_s11 }
 0x8a7   : > { %s16785_s12 = smov %s11152_s15  ;;  %21 = sbr.rel (!%p19_p3) target bundleno = 3 (0x3), region = 118 }
 0x8ab   : > { %s16784_s11 = smov %s16781_s13 }
 0x8ae   :  { %6680 = vsyncpa [#allocation3], 1 }
 0x8af   :  { %6682 = vsyncpa [#allocation3 + $0x1], 1 }

</bundles_post_ra>
